<compile_context>
chip_gen: v7x
topology: tpu7x:2x2x1
jax: 0.10.0
libtpu: 0.0.40
codegen_flags: <defaults>
</compile_context>

<pallas_src>
import jax
import jax.numpy as jnp
from jax import lax
from jax.experimental import pallas as pl
from jax.experimental.pallas import tpu as pltpu

BN_EPS = 1e-5


# ------------------------- in-kernel helpers -------------------------

def _pad_halo(x):
    """Zero-pad H and W by 1 on each side: (N, H, W, C) -> (N, H+2, W+2, C)."""
    n, h, w, c = x.shape
    zr = jnp.zeros((n, 1, w, c), x.dtype)
    x = jnp.concatenate([zr, x, zr], axis=1)
    zc = jnp.zeros((n, h + 2, 1, c), x.dtype)
    return jnp.concatenate([zc, x, zc], axis=2)


def _conv3x3_im2col(pad_ref, w_ref):
    """3x3 / stride-1 / pad-1 / bias-free conv as a single MXU matmul.

    pad_ref: Ref[(TB, H+2, W+2, Cin)] bf16 (zero-padded activations in VMEM scratch)
    w_ref:   Ref[(9*Cin, Cout)] bf16 (HWIO weights flattened as ((kh*3+kw)*Cin + cin))
    Returns (TB*H*W, Cout) float32.
    """
    tb, hp, wp, cin = pad_ref.shape
    h, w = hp - 2, wp - 2
    m = tb * h * w
    # 9 static tap slices of the padded scratch -> im2col block (M, 9*Cin), bf16.
    cols = [pad_ref[:, dy:dy + h, dx:dx + w, :].reshape(m, cin)
            for dy in range(3) for dx in range(3)]
    patches = jnp.concatenate(cols, axis=-1)                      # (M, 9*Cin) bf16
    return jnp.dot(patches, w_ref[...], preferred_element_type=jnp.float32)


# ------------------------------ kernels ------------------------------

def conv1_stats_kernel(x_ref, w_ref, y_ref, s_ref, q_ref, pad_ref):
    """conv1 on one batch tile + per-tile per-channel sum / sum-of-squares."""
    tb, h, w, c = x_ref.shape
    pad_ref[...] = _pad_halo(x_ref[...].astype(jnp.bfloat16))     # bf16 MXU inputs
    y = _conv3x3_im2col(pad_ref, w_ref)                           # (M, C) f32
    y_ref[...] = y.reshape(tb, h, w, c)
    s_ref[...] = jnp.sum(y, axis=0, keepdims=True).reshape(1, 1, c)
    q_ref[...] = jnp.sum(y * y, axis=0, keepdims=True).reshape(1, 1, c)


def bn_relu_conv2_stats_kernel(y1_ref, sc_ref, bi_ref, w_ref, y_ref, s_ref, q_ref, pad_ref):
    """Apply folded bn1 (scale/bias) + ReLU, then conv2 + per-tile stats."""
    tb, h, w, c = y1_ref.shape
    scale = sc_ref[...].reshape(1, 1, 1, c)                       # f32 VPU math
    bias = bi_ref[...].reshape(1, 1, 1, c)
    z = jnp.maximum(y1_ref[...] * scale + bias, 0.0)
    pad_ref[...] = _pad_halo(z.astype(jnp.bfloat16))
    y = _conv3x3_im2col(pad_ref, w_ref)
    y_ref[...] = y.reshape(tb, h, w, c)
    s_ref[...] = jnp.sum(y, axis=0, keepdims=True).reshape(1, 1, c)
    q_ref[...] = jnp.sum(y * y, axis=0, keepdims=True).reshape(1, 1, c)


def bn_residual_relu_kernel(y2_ref, x_ref, sc_ref, bi_ref, o_ref):
    """Apply folded bn2, add residual, ReLU."""
    tb, h, w, c = y2_ref.shape
    scale = sc_ref[...].reshape(1, 1, 1, c)
    bias = bi_ref[...].reshape(1, 1, 1, c)
    out = y2_ref[...] * scale + bias + x_ref[...]
    o_ref[...] = jnp.maximum(out, 0.0).astype(o_ref.dtype)


# ----------------------------- wrapper -----------------------------

def _finalize_bn(s_part, q_part, gamma, beta, count):
    """Reduce per-tile partial stats and fold BN into a single mul+add (scale, bias)."""
    s = jnp.sum(s_part, axis=(0, 1))                              # (C,)
    q = jnp.sum(q_part, axis=(0, 1))                              # (C,)
    mean = s / count
    var = jnp.maximum(q / count - mean * mean, 0.0)               # biased var, clamped >= 0
    scale = gamma * lax.rsqrt(var + BN_EPS)
    bias = beta - mean * scale
    return scale.reshape(1, -1).astype(jnp.float32), bias.reshape(1, -1).astype(jnp.float32)


def resblock_pallas(x, w1, w2, g1, b1, g2, b2, *, batch_tile=1):
    """x: (N, H, W, C) f32; w*: (3, 3, C, C) HWIO; g*/b*: (C,).

    Note: C should be a multiple of 128 for lane-dense I/O (module default C=128).
    """
    n, h, w, c = x.shape
    assert n % batch_tile == 0, "batch must be divisible by batch_tile"
    nt = n // batch_tile
    count = float(n * h * w)

    # Flatten HWIO -> (9*Cin, Cout), cast to bf16 for the MXU (accum stays f32).
    w1f = jnp.asarray(w1, jnp.float32).reshape(9 * c, c).astype(jnp.bfloat16)
    w2f = jnp.asarray(w2, jnp.float32).reshape(9 * c, c).astype(jnp.bfloat16)

    act_spec = pl.BlockSpec((batch_tile, h, w, c), lambda i: (i, 0, 0, 0))
    w_spec = pl.BlockSpec((9 * c, c), lambda i: (0, 0))
    vec_spec = pl.BlockSpec((1, c), lambda i: (0, 0))
    stat_spec = pl.BlockSpec((1, 1, c), lambda i: (i, 0, 0))

    act_shape_f32 = jax.ShapeDtypeStruct((n, h, w, c), jnp.float32)
    stat_shape = jax.ShapeDtypeStruct((nt, 1, c), jnp.float32)
    pad_scratch = pltpu.VMEM((batch_tile, h + 2, w + 2, c), jnp.bfloat16)

    cparams = pltpu.CompilerParams(
        dimension_semantics=("parallel",),        # batch tiles are independent per pass
        vmem_limit_bytes=64 * 1024 * 1024,
    )

    # ---- pass 1: conv1 + partial BN1 stats ----
    y1, s1, q1 = pl.pallas_call(
        conv1_stats_kernel,
        grid=(nt,),
        in_specs=[act_spec, w_spec],
        out_specs=[act_spec, stat_spec, stat_spec],
        out_shape=[act_shape_f32, stat_shape, stat_shape],
        scratch_shapes=[pad_scratch],
        compiler_params=cparams,
    )(x.astype(jnp.float32), w1f)

    scale1, bias1 = _finalize_bn(s1, q1, g1, b1, count)

    # ---- pass 2: bn1 + relu + conv2 + partial BN2 stats ----
    y2, s2, q2 = pl.pallas_call(
        bn_relu_conv2_stats_kernel,
        grid=(nt,),
        in_specs=[act_spec, vec_spec, vec_spec, w_spec],
        out_specs=[act_spec, stat_spec, stat_spec],
        out_shape=[act_shape_f32, stat_shape, stat_shape],
        scratch_shapes=[pad_scratch],
        compiler_params=cparams,
    )(y1, scale1, bias1, w2f)

    scale2, bias2 = _finalize_bn(s2, q2, g2, b2, count)

    # ---- pass 3: bn2 + residual + relu ----
    out = pl.pallas_call(
        bn_residual_relu_kernel,
        grid=(nt,),
        in_specs=[act_spec, act_spec, vec_spec, vec_spec],
        out_specs=act_spec,
        out_shape=jax.ShapeDtypeStruct((n, h, w, c), x.dtype),
        compiler_params=cparams,
    )(y2, x, scale2, bias2)
    return out


# --------------------------- pure-JAX reference ---------------------------

def resblock_ref(x, w1, w2, g1, b1, g2, b2, *, matmul_bf16=False):
    def conv(y, w):
        if matmul_bf16:
            y = y.astype(jnp.bfloat16)
            w = w.astype(jnp.bfloat16)
        return lax.conv_general_dilated(
            y, w, window_strides=(1, 1), padding="SAME",
            dimension_numbers=("NHWC", "HWIO", "NHWC"),
            preferred_element_type=jnp.float32)

    def bn(y, g, b):
        mean = jnp.mean(y, axis=(0, 1, 2), keepdims=True)
        var = jnp.mean((y - mean) ** 2, axis=(0, 1, 2), keepdims=True)
        return (y - mean) * (g.reshape(1, 1, 1, -1) * lax.rsqrt(var + BN_EPS)) \
            + b.reshape(1, 1, 1, -1)

    out = conv(x, w1)
    out = jax.nn.relu(bn(out, g1, b1))
    out = bn(conv(out, w2), g2, b2)
    return jax.nn.relu(out + x)


# --------------------------------- main ---------------------------------

if __name__ == "__main__":
    # Module default inplanes = planes = 128 -> lane-dense channels; small spatial/batch.
    N, H, W, C = 2, 16, 16, 128

    key = jax.random.PRNGKey(0)
    kx, kw1, kw2, kg1, kb1, kg2, kb2 = jax.random.split(key, 7)

    x = jax.random.normal(kx, (N, H, W, C), jnp.float32)
    w1 = jax.random.normal(kw1, (3, 3, C, C), jnp.float32) * 0.05
    w2 = jax.random.normal(kw2, (3, 3, C, C), jnp.float32) * 0.05
    g1 = jax.random.uniform(kg1, (C,), jnp.float32, 0.5, 1.5)
    b1 = jax.random.normal(kb1, (C,), jnp.float32) * 0.1
    g2 = jax.random.uniform(kg2, (C,), jnp.float32, 0.5, 1.5)
    b2 = jax.random.normal(kb2, (C,), jnp.float32) * 0.1

    fn = jax.jit(resblock_pallas)
    out = jax.block_until_ready(fn(x, w1, w2, g1, b1, g2, b2))

    assert out.shape == (N, H, W, C) and out.dtype == jnp.float32

    # Tight check against a reference that also feeds bf16 operands to the MXU (f32 accum).
    ref_bf16 = resblock_ref(x, w1, w2, g1, b1, g2, b2, matmul_bf16=True)
    if not jnp.allclose(out, ref_bf16, atol=2e-2, rtol=2e-2):
        raise AssertionError("Pallas ResBlock does not match bf16-matmul JAX reference")

    # Looser check against the full-f32 reference (bf16 MXU inputs -> ~1% numeric drift).
    ref_f32 = resblock_ref(x, w1, w2, g1, b1, g2, b2, matmul_bf16=False)
    if not jnp.allclose(out, ref_f32, atol=1e-1, rtol=1e-1):
        raise AssertionError("Pallas ResBlock does not match f32 JAX reference")

    print("KERNEL_OK")
</pallas_src>

<mosaic_0001>
module attributes {stable_mosaic.version = 11 : i64} {
  func.func @conv1_stats_kernel(%arg0: i32, %arg1: memref<1x16x16x128xf32, #tpu.memory_space<vmem>>, %arg2: memref<1152x128xbf16, #tpu.memory_space<vmem>>, %arg3: memref<1x16x16x128xf32, #tpu.memory_space<vmem>>, %arg4: memref<1x1x128xf32, #tpu.memory_space<vmem>>, %arg5: memref<1x1x128xf32, #tpu.memory_space<vmem>>, %arg6: memref<1x18x18x128xbf16, #tpu.memory_space<vmem>>) attributes {dimension_semantics = [#tpu.dimension_semantics<parallel>], iteration_bounds = array<i64: 2>, scalar_prefetch = 0 : i64, scratch_operands = 1 : i64, tpu.core_type = #tpu.core_type<tc>, window_params = [{transform_indices = @transform_0, window_bounds = array<i64: 1, 16, 16, 128>}, {pipeline_mode = #tpu.pipeline_mode<synchronous>, transform_indices = @transform_1, window_bounds = array<i64: 1152, 128>}, {transform_indices = @transform_2, window_bounds = array<i64: 1, 16, 16, 128>}, {transform_indices = @transform_3, window_bounds = array<i64: 1, 1, 128>}, {transform_indices = @transform_4, window_bounds = array<i64: 1, 1, 128>}]} {
    %c0 = arith.constant 0 : index
    %c0_0 = arith.constant 0 : index
    %c0_1 = arith.constant 0 : index
    %c0_2 = arith.constant 0 : index
    %0 = vector.load %arg1[%c0, %c0_0, %c0_1, %c0_2] : memref<1x16x16x128xf32, #tpu.memory_space<vmem>>, vector<1x16x16x128xf32>
    %1 = arith.truncf %0 : vector<1x16x16x128xf32> to vector<1x16x16x128xbf16>
    %cst = arith.constant 0.000000e+00 : bf16
    %2 = vector.broadcast %cst : bf16 to vector<1x1x16x128xbf16>
    %3 = tpu.concatenate %2, %1, %2 in 1 : vector<1x1x16x128xbf16>, vector<1x16x16x128xbf16>, vector<1x1x16x128xbf16> -> vector<1x18x16x128xbf16>
    %cst_3 = arith.constant 0.000000e+00 : bf16
    %4 = vector.broadcast %cst_3 : bf16 to vector<1x18x1x128xbf16>
    %5 = tpu.concatenate %4, %3, %4 in 2 : vector<1x18x1x128xbf16>, vector<1x18x16x128xbf16>, vector<1x18x1x128xbf16> -> vector<1x18x18x128xbf16>
    %c0_4 = arith.constant 0 : index
    %c0_5 = arith.constant 0 : index
    %c0_6 = arith.constant 0 : index
    %c0_7 = arith.constant 0 : index
    %6 = vector.load %arg6[%c0_4, %c0_5, %c0_6, %c0_7] : memref<1x18x18x128xbf16, #tpu.memory_space<vmem>>, vector<1x18x18x128xbf16>
    tpu.vector_store %arg6[%c0_4, %c0_5, %c0_6, %c0_7], %5 {strides = array<i32>} : memref<1x18x18x128xbf16, #tpu.memory_space<vmem>>, vector<1x18x18x128xbf16>,
    %c0_8 = arith.constant 0 : index
    %c0_9 = arith.constant 0 : index
    %c0_10 = arith.constant 0 : index
    %c0_11 = arith.constant 0 : index
    %7 = vector.load %arg6[%c0_8, %c0_9, %c0_10, %c0_11] : memref<1x18x18x128xbf16, #tpu.memory_space<vmem>>, vector<1x16x16x128xbf16>
    %8 = vector.shape_cast %7 : vector<1x16x16x128xbf16> to vector<256x128xbf16>
    %c0_12 = arith.constant 0 : index
    %c0_13 = arith.constant 0 : index
    %c1 = arith.constant 1 : index
    %c0_14 = arith.constant 0 : index
    %9 = vector.load %arg6[%c0_12, %c0_13, %c1, %c0_14] : memref<1x18x18x128xbf16, #tpu.memory_space<vmem>>, vector<1x16x16x128xbf16>
    %10 = vector.shape_cast %9 : vector<1x16x16x128xbf16> to vector<256x128xbf16>
    %c0_15 = arith.constant 0 : index
    %c0_16 = arith.constant 0 : index
    %c2 = arith.constant 2 : index
    %c0_17 = arith.constant 0 : index
    %11 = vector.load %arg6[%c0_15, %c0_16, %c2, %c0_17] : memref<1x18x18x128xbf16, #tpu.memory_space<vmem>>, vector<1x16x16x128xbf16>
    %12 = vector.shape_cast %11 : vector<1x16x16x128xbf16> to vector<256x128xbf16>
    %c0_18 = arith.constant 0 : index
    %c1_19 = arith.constant 1 : index
    %c0_20 = arith.constant 0 : index
    %c0_21 = arith.constant 0 : index
    %13 = vector.load %arg6[%c0_18, %c1_19, %c0_20, %c0_21] : memref<1x18x18x128xbf16, #tpu.memory_space<vmem>>, vector<1x16x16x128xbf16>
    %14 = vector.shape_cast %13 : vector<1x16x16x128xbf16> to vector<256x128xbf16>
    %c0_22 = arith.constant 0 : index
    %c1_23 = arith.constant 1 : index
    %c1_24 = arith.constant 1 : index
    %c0_25 = arith.constant 0 : index
    %15 = vector.load %arg6[%c0_22, %c1_23, %c1_24, %c0_25] : memref<1x18x18x128xbf16, #tpu.memory_space<vmem>>, vector<1x16x16x128xbf16>
    %16 = vector.shape_cast %15 : vector<1x16x16x128xbf16> to vector<256x128xbf16>
    %c0_26 = arith.constant 0 : index
    %c1_27 = arith.constant 1 : index
    %c2_28 = arith.constant 2 : index
    %c0_29 = arith.constant 0 : index
    %17 = vector.load %arg6[%c0_26, %c1_27, %c2_28, %c0_29] : memref<1x18x18x128xbf16, #tpu.memory_space<vmem>>, vector<1x16x16x128xbf16>
    %18 = vector.shape_cast %17 : vector<1x16x16x128xbf16> to vector<256x128xbf16>
    %c0_30 = arith.constant 0 : index
    %c2_31 = arith.constant 2 : index
    %c0_32 = arith.constant 0 : index
    %c0_33 = arith.constant 0 : index
    %19 = vector.load %arg6[%c0_30, %c2_31, %c0_32, %c0_33] : memref<1x18x18x128xbf16, #tpu.memory_space<vmem>>, vector<1x16x16x128xbf16>
    %20 = vector.shape_cast %19 : vector<1x16x16x128xbf16> to vector<256x128xbf16>
    %c0_34 = arith.constant 0 : index
    %c2_35 = arith.constant 2 : index
    %c1_36 = arith.constant 1 : index
    %c0_37 = arith.constant 0 : index
    %21 = vector.load %arg6[%c0_34, %c2_35, %c1_36, %c0_37] : memref<1x18x18x128xbf16, #tpu.memory_space<vmem>>, vector<1x16x16x128xbf16>
    %22 = vector.shape_cast %21 : vector<1x16x16x128xbf16> to vector<256x128xbf16>
    %c0_38 = arith.constant 0 : index
    %c2_39 = arith.constant 2 : index
    %c2_40 = arith.constant 2 : index
    %c0_41 = arith.constant 0 : index
    %23 = vector.load %arg6[%c0_38, %c2_39, %c2_40, %c0_41] : memref<1x18x18x128xbf16, #tpu.memory_space<vmem>>, vector<1x16x16x128xbf16>
    %24 = vector.shape_cast %23 : vector<1x16x16x128xbf16> to vector<256x128xbf16>
    %25 = tpu.concatenate %8, %10, %12, %14, %16, %18, %20, %22, %24 in 1 : vector<256x128xbf16>, vector<256x128xbf16>, vector<256x128xbf16>, vector<256x128xbf16>, vector<256x128xbf16>, vector<256x128xbf16>, vector<256x128xbf16>, vector<256x128xbf16>, vector<256x128xbf16> -> vector<256x1152xbf16>
    %c0_42 = arith.constant 0 : index
    %c0_43 = arith.constant 0 : index
    %26 = vector.load %arg2[%c0_42, %c0_43] : memref<1152x128xbf16, #tpu.memory_space<vmem>>, vector<1152x128xbf16>
    %cst_44 = arith.constant dense<0.000000e+00> : vector<256x128xf32>
    %27 = tpu.matmul %25, %26, %cst_44 {dimension_numbers = #tpu.dot_dimension_numbers<[1], [0], [0], [1], [0, 0, 1, 1], [], []>} : vector<256x1152xbf16>, vector<1152x128xbf16>, vector<256x128xf32> -> vector<256x128xf32>
    %28 = vector.shape_cast %27 : vector<256x128xf32> to vector<1x16x16x128xf32>
    %c0_45 = arith.constant 0 : index
    %c0_46 = arith.constant 0 : index
    %c0_47 = arith.constant 0 : index
    %c0_48 = arith.constant 0 : index
    %29 = vector.load %arg3[%c0_45, %c0_46, %c0_47, %c0_48] : memref<1x16x16x128xf32, #tpu.memory_space<vmem>>, vector<1x16x16x128xf32>
    tpu.vector_store %arg3[%c0_45, %c0_46, %c0_47, %c0_48], %28 {strides = array<i32>} : memref<1x16x16x128xf32, #tpu.memory_space<vmem>>, vector<1x16x16x128xf32>,
    %cst_49 = arith.constant dense<0.000000e+00> : vector<128xf32>
    %30 = vector.multi_reduction <add>, %27, %cst_49 [0] : vector<256x128xf32> to vector<128xf32>
    %31 = vector.shape_cast %30 : vector<128xf32> to vector<1x128xf32>
    %32 = vector.shape_cast %31 : vector<1x128xf32> to vector<1x1x128xf32>
    %c0_50 = arith.constant 0 : index
    %c0_51 = arith.constant 0 : index
    %c0_52 = arith.constant 0 : index
    %33 = vector.load %arg4[%c0_50, %c0_51, %c0_52] : memref<1x1x128xf32, #tpu.memory_space<vmem>>, vector<1x1x128xf32>
    tpu.vector_store %arg4[%c0_50, %c0_51, %c0_52], %32 {strides = array<i32>} : memref<1x1x128xf32, #tpu.memory_space<vmem>>, vector<1x1x128xf32>,
    %34 = arith.mulf %27, %27 : vector<256x128xf32>
    %cst_53 = arith.constant dense<0.000000e+00> : vector<128xf32>
    %35 = vector.multi_reduction <add>, %34, %cst_53 [0] : vector<256x128xf32> to vector<128xf32>
    %36 = vector.shape_cast %35 : vector<128xf32> to vector<1x128xf32>
    %37 = vector.shape_cast %36 : vector<1x128xf32> to vector<1x1x128xf32>
    %c0_54 = arith.constant 0 : index
    %c0_55 = arith.constant 0 : index
    %c0_56 = arith.constant 0 : index
    %38 = vector.load %arg5[%c0_54, %c0_55, %c0_56] : memref<1x1x128xf32, #tpu.memory_space<vmem>>, vector<1x1x128xf32>
    tpu.vector_store %arg5[%c0_54, %c0_55, %c0_56], %37 {strides = array<i32>} : memref<1x1x128xf32, #tpu.memory_space<vmem>>, vector<1x1x128xf32>,
    return
  }
  func.func @transform_0(%arg0: i32) -> (i32, i32, i32, i32) {
    %c0_i32 = arith.constant 0 : i32
    %c0_i32_0 = arith.constant 0 : i32
    %c0_i32_1 = arith.constant 0 : i32
    %c0_i32_2 = arith.constant 0 : i32
    return %arg0, %c0_i32, %c0_i32_0, %c0_i32_1 : i32, i32, i32, i32
  }
  func.func @transform_1(%arg0: i32) -> (i32, i32) {
    %c0_i32 = arith.constant 0 : i32
    %c0_i32_0 = arith.constant 0 : i32
    %c0_i32_1 = arith.constant 0 : i32
    return %c0_i32, %c0_i32_0 : i32, i32
  }
  func.func @transform_2(%arg0: i32) -> (i32, i32, i32, i32) {
    %c0_i32 = arith.constant 0 : i32
    %c0_i32_0 = arith.constant 0 : i32
    %c0_i32_1 = arith.constant 0 : i32
    %c0_i32_2 = arith.constant 0 : i32
    return %arg0, %c0_i32, %c0_i32_0, %c0_i32_1 : i32, i32, i32, i32
  }
  func.func @transform_3(%arg0: i32) -> (i32, i32, i32) {
    %c0_i32 = arith.constant 0 : i32
    %c0_i32_0 = arith.constant 0 : i32
    %c0_i32_1 = arith.constant 0 : i32
    return %arg0, %c0_i32, %c0_i32_0 : i32, i32, i32
  }
  func.func @transform_4(%arg0: i32) -> (i32, i32, i32) {
    %c0_i32 = arith.constant 0 : i32
    %c0_i32_0 = arith.constant 0 : i32
    %c0_i32_1 = arith.constant 0 : i32
    return %arg0, %c0_i32, %c0_i32_0 : i32, i32, i32
  }
}

module attributes {stable_mosaic.version = 11 : i64} {
  func.func @bn_relu_conv2_stats_kernel(%arg0: i32, %arg1: memref<1x16x16x128xf32, #tpu.memory_space<vmem>>, %arg2: memref<1x128xf32, #tpu.memory_space<vmem>>, %arg3: memref<1x128xf32, #tpu.memory_space<vmem>>, %arg4: memref<1152x128xbf16, #tpu.memory_space<vmem>>, %arg5: memref<1x16x16x128xf32, #tpu.memory_space<vmem>>, %arg6: memref<1x1x128xf32, #tpu.memory_space<vmem>>, %arg7: memref<1x1x128xf32, #tpu.memory_space<vmem>>, %arg8: memref<1x18x18x128xbf16, #tpu.memory_space<vmem>>) attributes {dimension_semantics = [#tpu.dimension_semantics<parallel>], iteration_bounds = array<i64: 2>, scalar_prefetch = 0 : i64, scratch_operands = 1 : i64, tpu.core_type = #tpu.core_type<tc>, window_params = [{transform_indices = @transform_0, window_bounds = array<i64: 1, 16, 16, 128>}, {pipeline_mode = #tpu.pipeline_mode<synchronous>, transform_indices = @transform_1, window_bounds = array<i64: 1, 128>}, {pipeline_mode = #tpu.pipeline_mode<synchronous>, transform_indices = @transform_2, window_bounds = array<i64: 1, 128>}, {pipeline_mode = #tpu.pipeline_mode<synchronous>, transform_indices = @transform_3, window_bounds = array<i64: 1152, 128>}, {transform_indices = @transform_4, window_bounds = array<i64: 1, 16, 16, 128>}, {transform_indices = @transform_5, window_bounds = array<i64: 1, 1, 128>}, {transform_indices = @transform_6, window_bounds = array<i64: 1, 1, 128>}]} {
    %c0 = arith.constant 0 : index
    %c0_0 = arith.constant 0 : index
    %0 = vector.load %arg2[%c0, %c0_0] : memref<1x128xf32, #tpu.memory_space<vmem>>, vector<1x128xf32>
    %1 = vector.shape_cast %0 : vector<1x128xf32> to vector<1x1x1x128xf32>
    %c0_1 = arith.constant 0 : index
    %c0_2 = arith.constant 0 : index
    %2 = vector.load %arg3[%c0_1, %c0_2] : memref<1x128xf32, #tpu.memory_space<vmem>>, vector<1x128xf32>
    %3 = vector.shape_cast %2 : vector<1x128xf32> to vector<1x1x1x128xf32>
    %c0_3 = arith.constant 0 : index
    %c0_4 = arith.constant 0 : index
    %c0_5 = arith.constant 0 : index
    %c0_6 = arith.constant 0 : index
    %4 = vector.load %arg1[%c0_3, %c0_4, %c0_5, %c0_6] : memref<1x16x16x128xf32, #tpu.memory_space<vmem>>, vector<1x16x16x128xf32>
    %5 = vector.broadcast %1 : vector<1x1x1x128xf32> to vector<1x16x16x128xf32>
    %6 = arith.mulf %4, %5 : vector<1x16x16x128xf32>
    %7 = vector.broadcast %3 : vector<1x1x1x128xf32> to vector<1x16x16x128xf32>
    %8 = arith.addf %6, %7 : vector<1x16x16x128xf32>
    %cst = arith.constant 0.000000e+00 : f32
    %9 = vector.broadcast %cst : f32 to vector<1x16x16x128xf32>
    %10 = arith.maximumf %8, %9 : vector<1x16x16x128xf32>
    %11 = arith.truncf %10 : vector<1x16x16x128xf32> to vector<1x16x16x128xbf16>
    %cst_7 = arith.constant 0.000000e+00 : bf16
    %12 = vector.broadcast %cst_7 : bf16 to vector<1x1x16x128xbf16>
    %13 = tpu.concatenate %12, %11, %12 in 1 : vector<1x1x16x128xbf16>, vector<1x16x16x128xbf16>, vector<1x1x16x128xbf16> -> vector<1x18x16x128xbf16>
    %cst_8 = arith.constant 0.000000e+00 : bf16
    %14 = vector.broadcast %cst_8 : bf16 to vector<1x18x1x128xbf16>
    %15 = tpu.concatenate %14, %13, %14 in 2 : vector<1x18x1x128xbf16>, vector<1x18x16x128xbf16>, vector<1x18x1x128xbf16> -> vector<1x18x18x128xbf16>
    %c0_9 = arith.constant 0 : index
    %c0_10 = arith.constant 0 : index
    %c0_11 = arith.constant 0 : index
    %c0_12 = arith.constant 0 : index
    %16 = vector.load %arg8[%c0_9, %c0_10, %c0_11, %c0_12] : memref<1x18x18x128xbf16, #tpu.memory_space<vmem>>, vector<1x18x18x128xbf16>
    tpu.vector_store %arg8[%c0_9, %c0_10, %c0_11, %c0_12], %15 {strides = array<i32>} : memref<1x18x18x128xbf16, #tpu.memory_space<vmem>>, vector<1x18x18x128xbf16>,
    %c0_13 = arith.constant 0 : index
    %c0_14 = arith.constant 0 : index
    %c0_15 = arith.constant 0 : index
    %c0_16 = arith.constant 0 : index
    %17 = vector.load %arg8[%c0_13, %c0_14, %c0_15, %c0_16] : memref<1x18x18x128xbf16, #tpu.memory_space<vmem>>, vector<1x16x16x128xbf16>
    %18 = vector.shape_cast %17 : vector<1x16x16x128xbf16> to vector<256x128xbf16>
    %c0_17 = arith.constant 0 : index
    %c0_18 = arith.constant 0 : index
    %c1 = arith.constant 1 : index
    %c0_19 = arith.constant 0 : index
    %19 = vector.load %arg8[%c0_17, %c0_18, %c1, %c0_19] : memref<1x18x18x128xbf16, #tpu.memory_space<vmem>>, vector<1x16x16x128xbf16>
    %20 = vector.shape_cast %19 : vector<1x16x16x128xbf16> to vector<256x128xbf16>
    %c0_20 = arith.constant 0 : index
    %c0_21 = arith.constant 0 : index
    %c2 = arith.constant 2 : index
    %c0_22 = arith.constant 0 : index
    %21 = vector.load %arg8[%c0_20, %c0_21, %c2, %c0_22] : memref<1x18x18x128xbf16, #tpu.memory_space<vmem>>, vector<1x16x16x128xbf16>
    %22 = vector.shape_cast %21 : vector<1x16x16x128xbf16> to vector<256x128xbf16>
    %c0_23 = arith.constant 0 : index
    %c1_24 = arith.constant 1 : index
    %c0_25 = arith.constant 0 : index
    %c0_26 = arith.constant 0 : index
    %23 = vector.load %arg8[%c0_23, %c1_24, %c0_25, %c0_26] : memref<1x18x18x128xbf16, #tpu.memory_space<vmem>>, vector<1x16x16x128xbf16>
    %24 = vector.shape_cast %23 : vector<1x16x16x128xbf16> to vector<256x128xbf16>
    %c0_27 = arith.constant 0 : index
    %c1_28 = arith.constant 1 : index
    %c1_29 = arith.constant 1 : index
    %c0_30 = arith.constant 0 : index
    %25 = vector.load %arg8[%c0_27, %c1_28, %c1_29, %c0_30] : memref<1x18x18x128xbf16, #tpu.memory_space<vmem>>, vector<1x16x16x128xbf16>
    %26 = vector.shape_cast %25 : vector<1x16x16x128xbf16> to vector<256x128xbf16>
    %c0_31 = arith.constant 0 : index
    %c1_32 = arith.constant 1 : index
    %c2_33 = arith.constant 2 : index
    %c0_34 = arith.constant 0 : index
    %27 = vector.load %arg8[%c0_31, %c1_32, %c2_33, %c0_34] : memref<1x18x18x128xbf16, #tpu.memory_space<vmem>>, vector<1x16x16x128xbf16>
    %28 = vector.shape_cast %27 : vector<1x16x16x128xbf16> to vector<256x128xbf16>
    %c0_35 = arith.constant 0 : index
    %c2_36 = arith.constant 2 : index
    %c0_37 = arith.constant 0 : index
    %c0_38 = arith.constant 0 : index
    %29 = vector.load %arg8[%c0_35, %c2_36, %c0_37, %c0_38] : memref<1x18x18x128xbf16, #tpu.memory_space<vmem>>, vector<1x16x16x128xbf16>
    %30 = vector.shape_cast %29 : vector<1x16x16x128xbf16> to vector<256x128xbf16>
    %c0_39 = arith.constant 0 : index
    %c2_40 = arith.constant 2 : index
    %c1_41 = arith.constant 1 : index
    %c0_42 = arith.constant 0 : index
    %31 = vector.load %arg8[%c0_39, %c2_40, %c1_41, %c0_42] : memref<1x18x18x128xbf16, #tpu.memory_space<vmem>>, vector<1x16x16x128xbf16>
    %32 = vector.shape_cast %31 : vector<1x16x16x128xbf16> to vector<256x128xbf16>
    %c0_43 = arith.constant 0 : index
    %c2_44 = arith.constant 2 : index
    %c2_45 = arith.constant 2 : index
    %c0_46 = arith.constant 0 : index
    %33 = vector.load %arg8[%c0_43, %c2_44, %c2_45, %c0_46] : memref<1x18x18x128xbf16, #tpu.memory_space<vmem>>, vector<1x16x16x128xbf16>
    %34 = vector.shape_cast %33 : vector<1x16x16x128xbf16> to vector<256x128xbf16>
    %35 = tpu.concatenate %18, %20, %22, %24, %26, %28, %30, %32, %34 in 1 : vector<256x128xbf16>, vector<256x128xbf16>, vector<256x128xbf16>, vector<256x128xbf16>, vector<256x128xbf16>, vector<256x128xbf16>, vector<256x128xbf16>, vector<256x128xbf16>, vector<256x128xbf16> -> vector<256x1152xbf16>
    %c0_47 = arith.constant 0 : index
    %c0_48 = arith.constant 0 : index
    %36 = vector.load %arg4[%c0_47, %c0_48] : memref<1152x128xbf16, #tpu.memory_space<vmem>>, vector<1152x128xbf16>
    %cst_49 = arith.constant dense<0.000000e+00> : vector<256x128xf32>
    %37 = tpu.matmul %35, %36, %cst_49 {dimension_numbers = #tpu.dot_dimension_numbers<[1], [0], [0], [1], [0, 0, 1, 1], [], []>} : vector<256x1152xbf16>, vector<1152x128xbf16>, vector<256x128xf32> -> vector<256x128xf32>
    %38 = vector.shape_cast %37 : vector<256x128xf32> to vector<1x16x16x128xf32>
    %c0_50 = arith.constant 0 : index
    %c0_51 = arith.constant 0 : index
    %c0_52 = arith.constant 0 : index
    %c0_53 = arith.constant 0 : index
    %39 = vector.load %arg5[%c0_50, %c0_51, %c0_52, %c0_53] : memref<1x16x16x128xf32, #tpu.memory_space<vmem>>, vector<1x16x16x128xf32>
    tpu.vector_store %arg5[%c0_50, %c0_51, %c0_52, %c0_53], %38 {strides = array<i32>} : memref<1x16x16x128xf32, #tpu.memory_space<vmem>>, vector<1x16x16x128xf32>,
    %cst_54 = arith.constant dense<0.000000e+00> : vector<128xf32>
    %40 = vector.multi_reduction <add>, %37, %cst_54 [0] : vector<256x128xf32> to vector<128xf32>
    %41 = vector.shape_cast %40 : vector<128xf32> to vector<1x128xf32>
    %42 = vector.shape_cast %41 : vector<1x128xf32> to vector<1x1x128xf32>
    %c0_55 = arith.constant 0 : index
    %c0_56 = arith.constant 0 : index
    %c0_57 = arith.constant 0 : index
    %43 = vector.load %arg6[%c0_55, %c0_56, %c0_57] : memref<1x1x128xf32, #tpu.memory_space<vmem>>, vector<1x1x128xf32>
    tpu.vector_store %arg6[%c0_55, %c0_56, %c0_57], %42 {strides = array<i32>} : memref<1x1x128xf32, #tpu.memory_space<vmem>>, vector<1x1x128xf32>,
    %44 = arith.mulf %37, %37 : vector<256x128xf32>
    %cst_58 = arith.constant dense<0.000000e+00> : vector<128xf32>
    %45 = vector.multi_reduction <add>, %44, %cst_58 [0] : vector<256x128xf32> to vector<128xf32>
    %46 = vector.shape_cast %45 : vector<128xf32> to vector<1x128xf32>
    %47 = vector.shape_cast %46 : vector<1x128xf32> to vector<1x1x128xf32>
    %c0_59 = arith.constant 0 : index
    %c0_60 = arith.constant 0 : index
    %c0_61 = arith.constant 0 : index
    %48 = vector.load %arg7[%c0_59, %c0_60, %c0_61] : memref<1x1x128xf32, #tpu.memory_space<vmem>>, vector<1x1x128xf32>
    tpu.vector_store %arg7[%c0_59, %c0_60, %c0_61], %47 {strides = array<i32>} : memref<1x1x128xf32, #tpu.memory_space<vmem>>, vector<1x1x128xf32>,
    return
  }
  func.func @transform_0(%arg0: i32) -> (i32, i32, i32, i32) {
    %c0_i32 = arith.constant 0 : i32
    %c0_i32_0 = arith.constant 0 : i32
    %c0_i32_1 = arith.constant 0 : i32
    %c0_i32_2 = arith.constant 0 : i32
    return %arg0, %c0_i32, %c0_i32_0, %c0_i32_1 : i32, i32, i32, i32
  }
  func.func @transform_1(%arg0: i32) -> (i32, i32) {
    %c0_i32 = arith.constant 0 : i32
    %c0_i32_0 = arith.constant 0 : i32
    %c0_i32_1 = arith.constant 0 : i32
    return %c0_i32, %c0_i32_0 : i32, i32
  }
  func.func @transform_2(%arg0: i32) -> (i32, i32) {
    %c0_i32 = arith.constant 0 : i32
    %c0_i32_0 = arith.constant 0 : i32
    %c0_i32_1 = arith.constant 0 : i32
    return %c0_i32, %c0_i32_0 : i32, i32
  }
  func.func @transform_3(%arg0: i32) -> (i32, i32) {
    %c0_i32 = arith.constant 0 : i32
    %c0_i32_0 = arith.constant 0 : i32
    %c0_i32_1 = arith.constant 0 : i32
    return %c0_i32, %c0_i32_0 : i32, i32
  }
  func.func @transform_4(%arg0: i32) -> (i32, i32, i32, i32) {
    %c0_i32 = arith.constant 0 : i32
    %c0_i32_0 = arith.constant 0 : i32
    %c0_i32_1 = arith.constant 0 : i32
    %c0_i32_2 = arith.constant 0 : i32
    return %arg0, %c0_i32, %c0_i32_0, %c0_i32_1 : i32, i32, i32, i32
  }
  func.func @transform_5(%arg0: i32) -> (i32, i32, i32) {
    %c0_i32 = arith.constant 0 : i32
    %c0_i32_0 = arith.constant 0 : i32
    %c0_i32_1 = arith.constant 0 : i32
    return %arg0, %c0_i32, %c0_i32_0 : i32, i32, i32
  }
  func.func @transform_6(%arg0: i32) -> (i32, i32, i32) {
    %c0_i32 = arith.constant 0 : i32
    %c0_i32_0 = arith.constant 0 : i32
    %c0_i32_1 = arith.constant 0 : i32
    return %arg0, %c0_i32, %c0_i32_0 : i32, i32, i32
  }
}

module attributes {stable_mosaic.version = 11 : i64} {
  func.func @bn_residual_relu_kernel(%arg0: i32, %arg1: memref<1x16x16x128xf32, #tpu.memory_space<vmem>>, %arg2: memref<1x16x16x128xf32, #tpu.memory_space<vmem>>, %arg3: memref<1x128xf32, #tpu.memory_space<vmem>>, %arg4: memref<1x128xf32, #tpu.memory_space<vmem>>, %arg5: memref<1x16x16x128xf32, #tpu.memory_space<vmem>>) attributes {dimension_semantics = [#tpu.dimension_semantics<parallel>], iteration_bounds = array<i64: 2>, scalar_prefetch = 0 : i64, scratch_operands = 0 : i64, tpu.core_type = #tpu.core_type<tc>, window_params = [{transform_indices = @transform_0, window_bounds = array<i64: 1, 16, 16, 128>}, {transform_indices = @transform_1, window_bounds = array<i64: 1, 16, 16, 128>}, {pipeline_mode = #tpu.pipeline_mode<synchronous>, transform_indices = @transform_2, window_bounds = array<i64: 1, 128>}, {pipeline_mode = #tpu.pipeline_mode<synchronous>, transform_indices = @transform_3, window_bounds = array<i64: 1, 128>}, {transform_indices = @transform_4, window_bounds = array<i64: 1, 16, 16, 128>}]} {
    %c0 = arith.constant 0 : index
    %c0_0 = arith.constant 0 : index
    %0 = vector.load %arg3[%c0, %c0_0] : memref<1x128xf32, #tpu.memory_space<vmem>>, vector<1x128xf32>
    %1 = vector.shape_cast %0 : vector<1x128xf32> to vector<1x1x1x128xf32>
    %c0_1 = arith.constant 0 : index
    %c0_2 = arith.constant 0 : index
    %2 = vector.load %arg4[%c0_1, %c0_2] : memref<1x128xf32, #tpu.memory_space<vmem>>, vector<1x128xf32>
    %3 = vector.shape_cast %2 : vector<1x128xf32> to vector<1x1x1x128xf32>
    %c0_3 = arith.constant 0 : index
    %c0_4 = arith.constant 0 : index
    %c0_5 = arith.constant 0 : index
    %c0_6 = arith.constant 0 : index
    %4 = vector.load %arg1[%c0_3, %c0_4, %c0_5, %c0_6] : memref<1x16x16x128xf32, #tpu.memory_space<vmem>>, vector<1x16x16x128xf32>
    %5 = vector.broadcast %1 : vector<1x1x1x128xf32> to vector<1x16x16x128xf32>
    %6 = arith.mulf %4, %5 : vector<1x16x16x128xf32>
    %7 = vector.broadcast %3 : vector<1x1x1x128xf32> to vector<1x16x16x128xf32>
    %8 = arith.addf %6, %7 : vector<1x16x16x128xf32>
    %c0_7 = arith.constant 0 : index
    %c0_8 = arith.constant 0 : index
    %c0_9 = arith.constant 0 : index
    %c0_10 = arith.constant 0 : index
    %9 = vector.load %arg2[%c0_7, %c0_8, %c0_9, %c0_10] : memref<1x16x16x128xf32, #tpu.memory_space<vmem>>, vector<1x16x16x128xf32>
    %10 = arith.addf %8, %9 : vector<1x16x16x128xf32>
    %cst = arith.constant 0.000000e+00 : f32
    %11 = vector.broadcast %cst : f32 to vector<1x16x16x128xf32>
    %12 = arith.maximumf %10, %11 : vector<1x16x16x128xf32>
    %c0_11 = arith.constant 0 : index
    %c0_12 = arith.constant 0 : index
    %c0_13 = arith.constant 0 : index
    %c0_14 = arith.constant 0 : index
    %13 = vector.load %arg5[%c0_11, %c0_12, %c0_13, %c0_14] : memref<1x16x16x128xf32, #tpu.memory_space<vmem>>, vector<1x16x16x128xf32>
    tpu.vector_store %arg5[%c0_11, %c0_12, %c0_13, %c0_14], %12 {strides = array<i32>} : memref<1x16x16x128xf32, #tpu.memory_space<vmem>>, vector<1x16x16x128xf32>,
    return
  }
  func.func @transform_0(%arg0: i32) -> (i32, i32, i32, i32) {
    %c0_i32 = arith.constant 0 : i32
    %c0_i32_0 = arith.constant 0 : i32
    %c0_i32_1 = arith.constant 0 : i32
    %c0_i32_2 = arith.constant 0 : i32
    return %arg0, %c0_i32, %c0_i32_0, %c0_i32_1 : i32, i32, i32, i32
  }
  func.func @transform_1(%arg0: i32) -> (i32, i32, i32, i32) {
    %c0_i32 = arith.constant 0 : i32
    %c0_i32_0 = arith.constant 0 : i32
    %c0_i32_1 = arith.constant 0 : i32
    %c0_i32_2 = arith.constant 0 : i32
    return %arg0, %c0_i32, %c0_i32_0, %c0_i32_1 : i32, i32, i32, i32
  }
  func.func @transform_2(%arg0: i32) -> (i32, i32) {
    %c0_i32 = arith.constant 0 : i32
    %c0_i32_0 = arith.constant 0 : i32
    %c0_i32_1 = arith.constant 0 : i32
    return %c0_i32, %c0_i32_0 : i32, i32
  }
  func.func @transform_3(%arg0: i32) -> (i32, i32) {
    %c0_i32 = arith.constant 0 : i32
    %c0_i32_0 = arith.constant 0 : i32
    %c0_i32_1 = arith.constant 0 : i32
    return %c0_i32, %c0_i32_0 : i32, i32
  }
  func.func @transform_4(%arg0: i32) -> (i32, i32, i32, i32) {
    %c0_i32 = arith.constant 0 : i32
    %c0_i32_0 = arith.constant 0 : i32
    %c0_i32_1 = arith.constant 0 : i32
    %c0_i32_2 = arith.constant 0 : i32
    return %arg0, %c0_i32, %c0_i32_0, %c0_i32_1 : i32, i32, i32, i32
  }
}

</mosaic_0001>

<bundles_post_ra>
// kernel: resblock_pallas.5
= control target key start
LH: loop header
LB: loop body
LE: loop exit
PB: predicated region body
PF: predicated region fallthrough
CT: control target
= control target key end

     0   :  { %s1446_s0 = inlined_call_operand.hbm [shape: f32[2,16,16,128], index: 0, kind: input, shape index: {}]   ;;  %s1447_s1 = inlined_call_operand.hbm [shape: f32[2,16,16,128], index: 1, kind: input, shape index: {}]   ;;  %s1448_s2 = inlined_call_operand.hbm [shape: f32[1,128], index: 2, kind: input, shape index: {}]   ;;  %s1449_s3 = inlined_call_operand.hbm [shape: f32[1,128], index: 3, kind: input, shape index: {}]   ;;  %s1450_s4 = inlined_call_operand.hbm [shape: f32[2,16,16,128], index: 4, kind: output, shape index: {}]  }
   0x1   :  { %1456 = sst [smem:[#allocation16_spill]] %s1446_s0 }
   0x2   :  { %9 = vsyncpa [#allocation3], 0 }
   0x3   :  { %11 = vsyncpa [#allocation3 + $0x1], 0 }
   0x4   :  { %12 = vsyncpa [#allocation6], 0 }
   0x5   :  { %14 = vsyncpa [#allocation6 + $0x1], 0 }
   0x6   :  { %15 = vsyncpa [#allocation9], 0 }
   0x7   :  { %16 = vsyncpa [#allocation4], 0 }
   0x8   :  { %18 = vsyncpa [#allocation4 + $0x1], 0  ;;  %s981_s15 = smov 0   ;;  %s983_s16 = smov 0  }
   0x9   :  { %s985_s17 = smov 0   ;;  %s987_s18 = smov 0  }
   0xa LB: > { %s1002_s19 = sadd.s32 4294967295, %s945_s18   ;;  %s648_s20 = sadd.s32 4294967294, %s945_s18   ;;  %s945_s18 = sphi %s987_s18, %s1479_s18   ;;  %s941_s17 = sphi %s985_s17, %s1478_s17   ;;  %s937_s16 = sphi %s983_s16, %s1477_s16   ;;  %s933_s15 = sphi %s981_s15, %s1476_s15  }
   0xb   : > { %s1006_s21 = sadd.s32 1, %s945_s18   ;;  %s31_s22 = sadd.s32 1, %s941_s17 }
   0xc   : > { %s28_s23 = ssub.s32 %s945_s18, %s1006_s21  ;;  %p38_p0 = scmp.ne.s32.totalorder %s941_s17, %s937_s16 }
   0xd   : > { %p29_p1 = scmp.eq.s32.totalorder %s28_s23, 0  ;;  %p39_p2 = scmp.eq.s32.totalorder %s945_s18, 0 }
   0xe   : > { %p44_p3 = scmp.ne.s32.totalorder %s937_s16, %s933_s15  ;;  %p1451_p4 = scmp.eq.s32.totalorder %s1002_s19, 0 }
   0xf   : > { %s1018_s24 = scalar_select %p29_p1, %s941_s17, %s31_s22  }
  0x10   : > { %p1020_p5 = por %p39_p2, %p38_p0  ;;  %p1026_p6 = por %p1451_p4, %p44_p3 }
  0x11   : > { %p136_p7 = scmp.eq.s32.totalorder %s1002_s19, 1  ;;  %p142_p8 = scmp.eq.s32.totalorder %s648_s20, 1 }
  0x12   : > { %s1458_s26 = scalar_select %p1026_p6, 1, 0 }
  0x13   : > { %p649_p9 = scmp.ge.s32.totalorder %s945_s18, 1  ;;  %p149_p10 = scmp.lt.s32.totalorder %s945_s18, 3 }
  0x14   : > { %p1033_p11 = por %p136_p7, %p38_p0  ;;  %p1037_p12 = por %p142_p8, %p44_p3 }
  0x15   : > { %p1041_p13 = pnand %p649_p9, %p149_p10  ;;  %s947_s30 = smov [#allocation7]  }
  0x16   : > { %s1459_s27 = scalar_select %p1033_p11, 1, 0 }
  0x17   : > { %s1460_s28 = scalar_select %p1037_p12, 1, 0 }
  0x18   : > { %s1461_s29 = scalar_select %p1041_p13, 1, 0 }
  0x19   : > { %p689_p2 = pneg %p1041_p13  ;;  %s162_s5 = sshll.u32 %s947_s30, 4  ;;  %s163_s5 = int_to_ptr.vmem [resolvable:$true] %s162_s5 }
  0x1a   : > { %p709_p4 = scmp.lt.s32.totalorder %s945_s18, 2  ;;  %p1462_p0 = scmp.eq.s32.totalorder %s1002_s19, 0 }
  0x1b   : > { %s948_s8 = smov [#allocation8]   ;;  %s751_s12 = scalar_lea.hbm %s1448_s2, 16 }
  0x1c   : > { %p1051_p7 = pnand %p689_p2, %p1462_p0  ;;  %p1057_p3 = pnand %p709_p4, %p1020_p5 }
  0x1d   : > { %s173_s9 = sshll.u32 %s948_s8, 4  ;;  %p752_p8 = scmp.ne.s32.totalorder %s1448_s2, %s751_s12  ;;  %s1061_s9 = int_to_ptr.vmem [resolvable:$true] %s173_s9 }
  0x1e   : > { %s1464_s7 = scalar_select %p1057_p3, 1, 0 }
  0x1f   : > { %p753_p9 = pneg %p1051_p7  ;;  %p758_p10 = scmp.lt.u32.totalorder %s751_s12, %s1448_s2 }
  0x21   : > { %p754_p4 = pnand %p753_p9, %p752_p8 }
  0x23   : > { %p755_p5 = pneg %p754_p4 }
  0x25   : > { %p760_p2 = pnand %p758_p10, %p755_p5 }
  0x27   : > { %763 = shalt.err (!%p760_p2)
}
  0x28   : > { %s764_s23 = scalar_lea.vmem %s163_s5, 16  ;;  %s771_s25 = scalar_lea.vmem %s163_s5, 32 }
  0x29   : > { %p765_p0 = scmp.ne.s32.totalorder %s163_s5, %s764_s23  ;;  %p772_p11 = scmp.lt.s32.totalorder %s163_s5, %s163_s5 }
  0x2a   : > { %p773_p6 = scmp.lt.s32.totalorder %s771_s25, %s764_s23 }
  0x2b   : > { %p767_p1 = pnand %p765_p0, %p753_p9 }
  0x2c   : > { %p774_p13 = por %p773_p6, %p772_p11 }
  0x2d   : > { %p768_p12 = pneg %p767_p1 }
  0x2f   : > { %p775_p3 = pnand %p774_p13, %p768_p12 }
  0x31   : > { %778 = shalt.err (!%p775_p3)
}
  0x32   : > { %692 = dma.hbm_to_vmem [thread:$0]  (!%p1051_p7), %s1448_s2, 16, %s163_s5, [#allocation6]  }
  0x33   : > { %s184_s10 = sand.u32 1, %s941_s17   ;;  %s779_s13 = scalar_lea.hbm %s1449_s3, 16 }
  0x34   : > { %p780_p1 = scmp.ne.s32.totalorder %s1449_s3, %s779_s13  ;;  %p786_p12 = scmp.lt.u32.totalorder %s779_s13, %s1449_s3 }
  0x36   : > { %p782_p6 = pnand %p780_p1, %p753_p9 }
  0x38   : > { %p783_p11 = pneg %p782_p6 }
  0x3a   : > { %p788_p13 = pnand %p786_p12, %p783_p11 }
  0x3c   : > { %791 = shalt.err (!%p788_p13)
}
  0x3d   : > { %s792_s5 = scalar_lea.vmem %s1061_s9, 16  ;;  %s799_s25 = scalar_lea.vmem %s1061_s9, 32 }
  0x3e   : > { %p793_p3 = scmp.ne.s32.totalorder %s1061_s9, %s792_s5  ;;  %p800_p5 = scmp.lt.s32.totalorder %s1061_s9, %s1061_s9 }
  0x3f   : > { %p801_p10 = scmp.lt.s32.totalorder %s799_s25, %s792_s5 }
  0x40   : > { %p795_p8 = pnand %p793_p3, %p753_p9 }
  0x41   : > { %p802_p2 = por %p801_p10, %p800_p5 }
  0x42   : > { %p796_p4 = pneg %p795_p8 }
  0x44   : > { %p803_p0 = pnand %p802_p2, %p796_p4 }
  0x46   : > { %806 = shalt.err (!%p803_p0)
}
  0x47   : > { %695 = dma.hbm_to_vmem [thread:$0]  (!%p1051_p7), %s1449_s3, 16, %s1061_s9, [#allocation9]  }
  0x48   : > { %s1112_s11 = sshll.u32 %s184_s10, 8  ;;  %s672_s12 = sshll.u32 %s945_s18, 12 }
  0x49   : > { %s1465_s0 = sld [smem:[#allocation16_spill]]  ;;  %s188_s6 = scalar_lea.vmem [#allocation2], %s1112_s11 }
  0x4a   : > { %s195_s22 = sshll.u32 %s188_s6, 4  ;;  %s1125_s23 = scalar_lea.sflag [#allocation3], %s184_s10  ;;  %s1123_s22 = int_to_ptr.vmem [resolvable:$true] %s195_s22 }
  0x4b   : > { %p1466_p9 = scmp.ne.s32.totalorder %s1464_s7, 0 }
  0x4d   : > { %p809_p1 = pneg %p1466_p9 }
  0x4f   : > { %s1120_s20 = scalar_lea.hbm %s1465_s0, %s672_s12  ;;  %s812_s30 = scalar_lea.hbm %s1465_s0, 8192 }
  0x50   : > { %s807_s9 = scalar_lea.hbm %s1120_s20, 4096  ;;  %p813_p12 = scmp.lt.u32.totalorder %s1120_s20, %s1465_s0 }
  0x51   : > { %p808_p7 = scmp.ne.s32.totalorder %s1120_s20, %s807_s9  ;;  %p814_p13 = scmp.lt.u32.totalorder %s812_s30, %s807_s9 }
  0x52   : > { %p816_p8 = scmp.lt.u32.totalorder %s807_s9, %s1120_s20 }
  0x53   : > { %p810_p6 = pnand %p809_p1, %p808_p7  ;;  %p815_p3 = por %p814_p13, %p813_p12 }
  0x55   : > { %p811_p11 = pneg %p810_p6  ;;  %p817_p4 = por %p816_p8, %p815_p3 }
  0x57   : > { %p818_p5 = pnand %p817_p4, %p811_p11 }
  0x59   : > { %821 = shalt.err (!%p818_p5)
}
  0x5a   : > { %s822_s10 = scalar_lea.vmem %s1123_s22, 4096  ;;  %s949_s14 = smov [#allocation2]  }
  0x5b   : > { %p823_p10 = scmp.ne.s32.totalorder %s1123_s22, %s822_s10  ;;  %s827_s6 = sshll.u32 %s949_s14, 4  ;;  %s828_s6 = int_to_ptr.vmem [resolvable:$false] %s827_s6 }
  0x5c   : > { %s829_s5 = scalar_lea.vmem %s828_s6, 8192  ;;  %p830_p7 = scmp.lt.s32.totalorder %s1123_s22, %s828_s6 }
  0x5d   : > { %p825_p2 = pnand %p823_p10, %p809_p1  ;;  %p831_p6 = scmp.lt.s32.totalorder %s829_s5, %s822_s10 }
  0x5f   : > { %p826_p0 = pneg %p825_p2  ;;  %p832_p12 = por %p831_p6, %p830_p7 }
  0x61   : > { %p833_p13 = pnand %p832_p12, %p826_p0 }
  0x63   : > { %836 = shalt.err (!%p833_p13)
}
  0x64   : > { %s950_s9 = smov 128   ;;  %s951_s25 = smov 8  }
  0x65   : > { %699 = dma.hbm_to_vmem [thread:$0]  (!%p1466_p9), %s1120_s20, 4096, %s1123_s22, %s1125_s23, %s950_s9, %s950_s9, %s951_s25  }
  0x66   : > { %s1161_s13 = scalar_lea.hbm %s1447_s1, %s672_s12  ;;  %s209_s10 = scalar_lea.vmem [#allocation5], %s1112_s11 }
  0x67   : > { %s216_s14 = sshll.u32 %s209_s10, 4  ;;  %s205_s6 = sand.u32 1, %s945_s18   ;;  %s1164_s14 = int_to_ptr.vmem [resolvable:$true] %s216_s14 }
  0x68   : > { %s1167_s5 = scalar_lea.sflag [#allocation6], %s205_s6  ;;  %s837_s0 = scalar_lea.hbm %s1161_s13, 4096 }
  0x69   : > { %p838_p11 = scmp.ne.s32.totalorder %s1161_s13, %s837_s0  ;;  %s842_s22 = scalar_lea.hbm %s1447_s1, 8192 }
  0x6a   : > { %p843_p4 = scmp.lt.u32.totalorder %s1161_s13, %s1447_s1  ;;  %p844_p5 = scmp.lt.u32.totalorder %s842_s22, %s837_s0 }
  0x6b   : > { %p840_p3 = pnand %p838_p11, %p809_p1  ;;  %p846_p2 = scmp.lt.u32.totalorder %s837_s0, %s1161_s13 }
  0x6c   : > { %p845_p10 = por %p844_p5, %p843_p4 }
  0x6d   : > { %p841_p8 = pneg %p840_p3 }
  0x6e   : > { %p847_p0 = por %p846_p2, %p845_p10 }
  0x70   : > { %p848_p7 = pnand %p847_p0, %p841_p8 }
  0x72   : > { %851 = shalt.err (!%p848_p7)
}
  0x73   : > { %s852_s11 = scalar_lea.vmem %s1164_s14, 4096  ;;  %s952_s8 = smov [#allocation5]  }
  0x74   : > { %p853_p6 = scmp.ne.s32.totalorder %s1164_s14, %s852_s11  ;;  %s857_s10 = sshll.u32 %s952_s8, 4  ;;  %s858_s10 = int_to_ptr.vmem [resolvable:$false] %s857_s10 }
  0x75   : > { %s859_s6 = scalar_lea.vmem %s858_s10, 8192  ;;  %p860_p11 = scmp.lt.s32.totalorder %s1164_s14, %s858_s10 }
  0x76   : > { %p855_p12 = pnand %p853_p6, %p809_p1  ;;  %p861_p3 = scmp.lt.s32.totalorder %s859_s6, %s852_s11 }
  0x78   : > { %p856_p13 = pneg %p855_p12  ;;  %p862_p4 = por %p861_p3, %p860_p11 }
  0x7a   : > { %p863_p5 = pnand %p862_p4, %p856_p13 }
  0x7c   : > { %866 = shalt.err (!%p863_p5)
}
  0x7d   : > { %702 = dma.hbm_to_vmem [thread:$0]  (!%p1466_p9), %s1161_s13, 4096, %s1164_s14, %s1167_s5, %s950_s9, %s950_s9, %s951_s25  }
  0x7e   : > { %p1467_p1 = scmp.ne.s32.totalorder %s1461_s29, 0 }
  0x7f   : > { %s1199_s0 = sand.u32 (!%p1467_p1), 1, %s937_s16   ;;  %p1468_p8 = scmp.ne.s32.totalorder (!%p1467_p1), %s1458_s26, 0 }
  0x80   : > { %228 = sbr.rel (%p1467_p1) target bundleno = 199 (0xc7), region = 36  ;;  %s1202_s20 = sshll.u32 (!%p1467_p1), %s1199_s0, 8 }
  0x81   : > { %s231_s7 = scalar_lea.sflag (!%p1467_p1), [#allocation3], %s1199_s0  ;;  %s1206_s12 = scalar_lea.vmem (!%p1467_p1), [#allocation2], %s1202_s20 }
  0x87   : > { %912 = dma.done.wait (%p1468_p8), %s231_s7, 4096  }
  0x88   : > { %914 = vsyncadd (%p1468_p8), %s231_s7, 4294963200  ;;  %s239_s29 = sand.u32 1, %s1002_s19   ;;  %s1214_s25 = scalar_lea.vmem [#allocation5], %s1202_s20 }
  0x89   : > { %s240_s9 = scalar_lea.sflag [#allocation6], %s239_s29 }
  0x8a   : > { %916 = dma.done.wait (%p1468_p8), %s240_s9, 4096  }
  0x8b   : > { %918 = vsyncadd (%p1468_p8), %s240_s9, 4294963200  ;;  %p1469_p9 = scmp.eq.s32.totalorder %s1002_s19, 0 }
  0x8d   : > { %920 = dma.done.wait (%p1469_p9), [#allocation6], 16   ;;  %p1470_p10 = pmov %p1469_p9 }
  0x8e   : > { %p1471_p2 = pmov %p1469_p9 }
  0x8f   : > { %922 = vsyncadd (%p1470_p10), [#allocation6], 4294967280 }
  0x90   : > { %924 = dma.done.wait (%p1471_p2), [#allocation9], 16   ;;  %p1472_p0 = pmov %p1471_p2 }
  0x91   : > { %v1228_v0 = vld [vmem:[#allocation7] ss:$0 sm:$0xff]  ;;  %v1230_v1 = vld [vmem:[#allocation8] ss:$0 sm:$0xff]  ;;  %v284_v4 = vld [vmem:[%s1206_s12 + $0x8] sm:$0xff]  ;;  %s1269_s26 = scalar_lea.vmem [#allocation10], %s1202_s20 }
  0x92   : > { %926 = vsyncadd (%p1472_p0), [#allocation9], 4294967280  ;;  %v283_v2 = vld [vmem:[%s1206_s12] sm:$0xff]  ;;  %v322_v6 = vmul.f32 %v1228_v0, %v284_v4  ;;  %v285_v7 = vld [vmem:[%s1206_s12 + $0x10] sm:$0xff]  ;;  %s674_s13 = sshll.u32 %s1002_s19, 12  ;;  %s533_s14 = sshll.u32 %s1269_s26, 4  ;;  %s1398_s14 = int_to_ptr.vmem [resolvable:$true] %s533_s14 }
  0x93   : > { %v321_v3 = vmul.f32 %v1228_v0, %v283_v2  ;;  %v391_v5 = vld [vmem:[%s1214_s25] sm:$0xff]  ;;  %v286_v8 = vld [vmem:[%s1206_s12 + $0x18] sm:$0xff]  ;;  %v392_v10 = vld [vmem:[%s1214_s25 + $0x8] sm:$0xff]  ;;  %v323_v11 = vmul.f32 %v1228_v0, %v285_v7  ;;  %s1396_s19 = scalar_lea.hbm %s1450_s4, %s674_s13  ;;  %s520_s23 = scalar_lea.sflag [#allocation4], %s1199_s0 }
  0x94   : > { %v393_v12 = vld [vmem:[%s1214_s25 + $0x10] sm:$0xff]  ;;  %v324_v13 = vmul.f32 %v1228_v0, %v286_v8  ;;  %v287_v14 = vld [vmem:[%s1206_s12 + $0x20] sm:$0xff]  ;;  %v360_v15 = vadd.f32 %v1230_v1, %v322_v6  ;;  %v394_v16 = vld [vmem:[%s1214_s25 + $0x18] sm:$0xff]  ;;  %s867_s30 = scalar_lea.vmem %s1398_s14, 4096  ;;  %p1473_p6 = scmp.ne.s32.totalorder %s1459_s27, 0 }
  0x95   : > { %v359_v9 = vadd.f32 %v1230_v1, %v321_v3  ;;  %v325_v17 = vmul.f32 %v1228_v0, %v287_v14  ;;  %v288_v18 = vld [vmem:[%s1206_s12 + $0x28] sm:$0xff]  ;;  %v289_v19 = vld [vmem:[%s1206_s12 + $0x30] sm:$0xff]  ;;  %v361_v21 = vadd.f32 %v1230_v1, %v323_v11  ;;  %v395_v23 = vld [vmem:[%s1214_s25 + $0x20] sm:$0xff]  ;;  %p868_p7 = scmp.ne.s32.totalorder %s1398_s14, %s867_s30  ;;  %s953_s11 = smov [#allocation10]  }
  0x96   : > { %v362_v22 = vadd.f32 %v1230_v1, %v324_v13  ;;  %v326_v24 = vmul.f32 %v1228_v0, %v288_v18  ;;  %v290_v25 = vld [vmem:[%s1206_s12 + $0x38] sm:$0xff]  ;;  %v424_v26 = vadd.f32 %v392_v10, %v360_v15  ;;  %v396_v28 = vld [vmem:[%s1214_s25 + $0x28] sm:$0xff]  ;;  %v327_v29 = vmul.f32 %v1228_v0, %v289_v19  ;;  %v291_v31 = vld [vmem:[%s1206_s12 + $0x40] sm:$0xff]  ;;  %s871_s8 = sshll.u32 %s953_s11, 4  ;;  %s872_s8 = int_to_ptr.vmem [resolvable:$false] %s871_s8 }
  0x97   : > { %v423_v20 = vadd.f32 %v391_v5, %v359_v9  ;;  %v363_v27 = vadd.f32 %v1230_v1, %v325_v17  ;;  %v328_v30 = vmul.f32 %v1228_v0, %v290_v25  ;;  %v425_v33 = vadd.f32 %v393_v12, %v361_v21  ;;  %v397_v36 = vld [vmem:[%s1214_s25 + $0x30] sm:$0xff]  ;;  %v398_v37 = vld [vmem:[%s1214_s25 + $0x38] sm:$0xff]  ;;  %v292_v38 = vld [vmem:[%s1206_s12 + $0x48] sm:$0xff]  ;;  %p869_p12 = pnand %p868_p7, %p1473_p6  ;;  %s873_s10 = scalar_lea.vmem %s872_s8, 8192 }
  0x98   : > { %v426_v34 = vadd.f32 %v394_v16, %v362_v22  ;;  %v364_v35 = vadd.f32 %v1230_v1, %v326_v24  ;;  %v456_v39 = vmax.f32 %v424_v26, 0.0  ;;  %v365_v41 = vadd.f32 %v1230_v1, %v327_v29  ;;  %v293_v43 = vld [vmem:[%s1206_s12 + $0x50] sm:$0xff]  ;;  %v294_v44 = vld [vmem:[%s1206_s12 + $0x58] sm:$0xff]  ;;  %v295_v49 = vld [vmem:[%s1206_s12 + $0x60] sm:$0xff]  ;;  %p874_p11 = scmp.lt.s32.totalorder %s1398_s14, %s872_s8  ;;  %p875_p3 = scmp.lt.s32.totalorder %s873_s10, %s867_s30 }
  0x99   : > { %v455_v32 = vmax.f32 %v423_v20, 0.0  ;;  %v427_v40 = vadd.f32 %v395_v23, %v363_v27  ;;  %v366_v42 = vadd.f32 %v1230_v1, %v328_v30  ;;  %v457_v45 = vmax.f32 %v425_v33, 0.0  ;;  %v399_v53 = vld [vmem:[%s1214_s25 + $0x40] sm:$0xff]  ;;  %v296_v55 = vld [vmem:[%s1206_s12 + $0x68] sm:$0xff]  ;;  %v297_v61 = vld [vmem:[%s1206_s12 + $0x70] sm:$0xff]  ;;  %p870_p13 = pneg %p869_p12 }
  0x9a   : > { %v458_v46 = vmax.f32 %v426_v34, 0.0  ;;  %v428_v47 = vadd.f32 %v396_v28, %v364_v35  ;;  %v329_v48 = vmul.f32 %v1228_v0, %v291_v31  ;;  %488 = vst [vmem:[%s1269_s26 + $0x8] sm:$0xff] %v456_v39  ;;  %v429_v51 = vadd.f32 %v397_v36, %v365_v41  ;;  %v400_v58 = vld [vmem:[%s1214_s25 + $0x48] sm:$0xff]  ;;  %v298_v62 = vld [vmem:[%s1206_s12 + $0x78] sm:$0xff]  ;;  %v401_v4 = vld [vmem:[%s1214_s25 + $0x50] sm:$0xff]  ;;  %p876_p4 = por %p875_p3, %p874_p11 }
  0x9b   : > { %487 = vst [vmem:[%s1269_s26] sm:$0xff] %v455_v32  ;;  %v459_v50 = vmax.f32 %v427_v40, 0.0  ;;  %v430_v52 = vadd.f32 %v398_v37, %v366_v42  ;;  %v330_v54 = vmul.f32 %v1228_v0, %v292_v38  ;;  %489 = vst [vmem:[%s1269_s26 + $0x10] sm:$0xff] %v457_v45  ;;  %v331_v59 = vmul.f32 %v1228_v0, %v293_v43  ;;  %v402_v5 = vld [vmem:[%s1214_s25 + $0x58] sm:$0xff]  ;;  %v403_v10 = vld [vmem:[%s1214_s25 + $0x60] sm:$0xff] }
  0x9c   : > { %490 = vst [vmem:[%s1269_s26 + $0x18] sm:$0xff] %v458_v46  ;;  %v460_v56 = vmax.f32 %v428_v47, 0.0  ;;  %v367_v57 = vadd.f32 %v1230_v1, %v329_v48  ;;  %v332_v60 = vmul.f32 %v1228_v0, %v294_v44  ;;  %v461_v63 = vmax.f32 %v429_v51, 0.0  ;;  %v404_v14 = vld [vmem:[%s1214_s25 + $0x68] sm:$0xff]  ;;  %v299_v17 = vld [vmem:[%s1206_s12 + $0x80] sm:$0xff]  ;;  %v405_v22 = vld [vmem:[%s1214_s25 + $0x70] sm:$0xff]  ;;  %p877_p5 = pnand %p876_p4, %p870_p13 }
  0x9d   : > { %491 = vst [vmem:[%s1269_s26 + $0x20] sm:$0xff] %v459_v50  ;;  %v462_v2 = vmax.f32 %v430_v52, 0.0  ;;  %v368_v3 = vadd.f32 %v1230_v1, %v330_v54  ;;  %v333_v6 = vmul.f32 %v1228_v0, %v295_v49  ;;  %v369_v8 = vadd.f32 %v1230_v1, %v331_v59  ;;  %v406_v23 = vld [vmem:[%s1214_s25 + $0x78] sm:$0xff]  ;;  %v300_v24 = vld [vmem:[%s1206_s12 + $0x88] sm:$0xff]  ;;  %v301_v29 = vld [vmem:[%s1206_s12 + $0x90] sm:$0xff] }
  0x9e   : > { %492 = vst [vmem:[%s1269_s26 + $0x28] sm:$0xff] %v460_v56  ;;  %v431_v7 = vadd.f32 %v399_v53, %v367_v57  ;;  %v370_v9 = vadd.f32 %v1230_v1, %v332_v60  ;;  %v334_v11 = vmul.f32 %v1228_v0, %v296_v55  ;;  %493 = vst [vmem:[%s1269_s26 + $0x30] sm:$0xff] %v461_v63  ;;  %v302_v30 = vld [vmem:[%s1206_s12 + $0x98] sm:$0xff]  ;;  %v303_v35 = vld [vmem:[%s1206_s12 + $0xa0] sm:$0xff] }
  0x9f   : > { %494 = vst [vmem:[%s1269_s26 + $0x38] sm:$0xff] %v462_v2  ;;  %v432_v12 = vadd.f32 %v400_v58, %v368_v3  ;;  %v371_v13 = vadd.f32 %v1230_v1, %v333_v6  ;;  %v335_v15 = vmul.f32 %v1228_v0, %v297_v61  ;;  %v336_v16 = vmul.f32 %v1228_v0, %v298_v62  ;;  %v407_v39 = vld [vmem:[%s1214_s25 + $0x80] sm:$0xff]  ;;  %v304_v41 = vld [vmem:[%s1206_s12 + $0xa8] sm:$0xff]  ;;  %v305_v47 = vld [vmem:[%s1206_s12 + $0xb0] sm:$0xff] }
  0xa0   : > { %v463_v18 = vmax.f32 %v431_v7, 0.0  ;;  %v433_v19 = vadd.f32 %v401_v4, %v369_v8  ;;  %v434_v20 = vadd.f32 %v402_v5, %v370_v9  ;;  %v372_v21 = vadd.f32 %v1230_v1, %v334_v11  ;;  %v408_v44 = vld [vmem:[%s1214_s25 + $0x88] sm:$0xff]  ;;  %v306_v48 = vld [vmem:[%s1206_s12 + $0xb8] sm:$0xff]  ;;  %v409_v52 = vld [vmem:[%s1214_s25 + $0x90] sm:$0xff] }
  0xa1   : > { %v464_v25 = vmax.f32 %v432_v12, 0.0  ;;  %v435_v26 = vadd.f32 %v403_v10, %v371_v13  ;;  %v373_v27 = vadd.f32 %v1230_v1, %v335_v15  ;;  %v374_v28 = vadd.f32 %v1230_v1, %v336_v16  ;;  %v410_v53 = vld [vmem:[%s1214_s25 + $0x98] sm:$0xff]  ;;  %v411_v58 = vld [vmem:[%s1214_s25 + $0xa0] sm:$0xff]  ;;  %v412_v62 = vld [vmem:[%s1214_s25 + $0xa8] sm:$0xff] }
  0xa2   : > { %495 = vst [vmem:[%s1269_s26 + $0x40] sm:$0xff] %v463_v18  ;;  %v465_v31 = vmax.f32 %v433_v19, 0.0  ;;  %v466_v32 = vmax.f32 %v434_v20, 0.0  ;;  %v436_v33 = vadd.f32 %v404_v14, %v372_v21  ;;  %v337_v34 = vmul.f32 %v1228_v0, %v299_v17  ;;  %v307_v3 = vld [vmem:[%s1206_s12 + $0xc0] sm:$0xff]  ;;  %v413_v8 = vld [vmem:[%s1214_s25 + $0xb0] sm:$0xff]  ;;  %v414_v9 = vld [vmem:[%s1214_s25 + $0xb8] sm:$0xff] }
  0xa3   : > { %496 = vst [vmem:[%s1269_s26 + $0x48] sm:$0xff] %v464_v25  ;;  %v467_v36 = vmax.f32 %v435_v26, 0.0  ;;  %v437_v37 = vadd.f32 %v405_v22, %v373_v27  ;;  %v438_v38 = vadd.f32 %v406_v23, %v374_v28  ;;  %v338_v40 = vmul.f32 %v1228_v0, %v300_v24  ;;  %v308_v10 = vld [vmem:[%s1206_s12 + $0xc8] sm:$0xff]  ;;  %v309_v15 = vld [vmem:[%s1206_s12 + $0xd0] sm:$0xff]  ;;  %v310_v16 = vld [vmem:[%s1206_s12 + $0xd8] sm:$0xff] }
  0xa4   : > { %497 = vst [vmem:[%s1269_s26 + $0x50] sm:$0xff] %v465_v31  ;;  %498 = vst [vmem:[%s1269_s26 + $0x58] sm:$0xff] %v466_v32  ;;  %v468_v42 = vmax.f32 %v436_v33, 0.0  ;;  %v375_v43 = vadd.f32 %v1230_v1, %v337_v34  ;;  %v339_v45 = vmul.f32 %v1228_v0, %v301_v29  ;;  %v340_v46 = vmul.f32 %v1228_v0, %v302_v30  ;;  %v311_v21 = vld [vmem:[%s1206_s12 + $0xe0] sm:$0xff]  ;;  %v312_v27 = vld [vmem:[%s1206_s12 + $0xe8] sm:$0xff] }
  0xa5   : > { %499 = vst [vmem:[%s1269_s26 + $0x60] sm:$0xff] %v467_v36  ;;  %v469_v49 = vmax.f32 %v437_v37, 0.0  ;;  %v470_v50 = vmax.f32 %v438_v38, 0.0  ;;  %v376_v51 = vadd.f32 %v1230_v1, %v338_v40  ;;  %v341_v54 = vmul.f32 %v1228_v0, %v303_v35  ;;  %v415_v25 = vld [vmem:[%s1214_s25 + $0xc0] sm:$0xff]  ;;  %v416_v30 = vld [vmem:[%s1214_s25 + $0xc8] sm:$0xff]  ;;  %v313_v33 = vld [vmem:[%s1206_s12 + $0xf0] sm:$0xff] }
  0xa6   : > { %500 = vst [vmem:[%s1269_s26 + $0x68] sm:$0xff] %v468_v42  ;;  %v439_v55 = vadd.f32 %v407_v39, %v375_v43  ;;  %v377_v56 = vadd.f32 %v1230_v1, %v339_v45  ;;  %v378_v57 = vadd.f32 %v1230_v1, %v340_v46  ;;  %v342_v59 = vmul.f32 %v1228_v0, %v304_v41  ;;  %v314_v34 = vld [vmem:[%s1206_s12 + $0xf8] sm:$0xff]  ;;  %v417_v38 = vld [vmem:[%s1214_s25 + $0xd0] sm:$0xff] }
  0xa7   : > { %501 = vst [vmem:[%s1269_s26 + $0x70] sm:$0xff] %v469_v49  ;;  %502 = vst [vmem:[%s1269_s26 + $0x78] sm:$0xff] %v470_v50  ;;  %v440_v60 = vadd.f32 %v408_v44, %v376_v51  ;;  %v379_v61 = vadd.f32 %v1230_v1, %v341_v54  ;;  %v343_v63 = vmul.f32 %v1228_v0, %v305_v47  ;;  %v418_v39 = vld [vmem:[%s1214_s25 + $0xd8] sm:$0xff]  ;;  %v419_v44 = vld [vmem:[%s1214_s25 + $0xe0] sm:$0xff] }
  0xa8   : > { %v344_v2 = vmul.f32 %v1228_v0, %v306_v48  ;;  %v471_v4 = vmax.f32 %v439_v55, 0.0  ;;  %v441_v5 = vadd.f32 %v409_v52, %v377_v56  ;;  %v442_v6 = vadd.f32 %v410_v53, %v378_v57  ;;  %v420_v48 = vld [vmem:[%s1214_s25 + $0xe8] sm:$0xff]  ;;  %v421_v55 = vld [vmem:[%s1214_s25 + $0xf0] sm:$0xff]  ;;  %v422_v56 = vld [vmem:[%s1214_s25 + $0xf8] sm:$0xff] }
  0xa9   : > { %v380_v7 = vadd.f32 %v1230_v1, %v342_v59  ;;  %v472_v11 = vmax.f32 %v440_v60, 0.0  ;;  %v443_v12 = vadd.f32 %v411_v58, %v379_v61  ;;  %v381_v13 = vadd.f32 %v1230_v1, %v343_v63 }
  0xaa   : > { %v382_v14 = vadd.f32 %v1230_v1, %v344_v2  ;;  %503 = vst [vmem:[%s1269_s26 + $0x80] sm:$0xff] %v471_v4  ;;  %v473_v17 = vmax.f32 %v441_v5, 0.0  ;;  %v474_v18 = vmax.f32 %v442_v6, 0.0  ;;  %v345_v20 = vmul.f32 %v1228_v0, %v307_v3 }
  0xab   : > { %v444_v19 = vadd.f32 %v412_v62, %v380_v7  ;;  %504 = vst [vmem:[%s1269_s26 + $0x88] sm:$0xff] %v472_v11  ;;  %v475_v22 = vmax.f32 %v443_v12, 0.0  ;;  %v445_v23 = vadd.f32 %v413_v8, %v381_v13  ;;  %v346_v26 = vmul.f32 %v1228_v0, %v308_v10 }
  0xac   : > { %v446_v24 = vadd.f32 %v414_v9, %v382_v14  ;;  %505 = vst [vmem:[%s1269_s26 + $0x90] sm:$0xff] %v473_v17  ;;  %506 = vst [vmem:[%s1269_s26 + $0x98] sm:$0xff] %v474_v18  ;;  %v383_v29 = vadd.f32 %v1230_v1, %v345_v20  ;;  %v347_v31 = vmul.f32 %v1228_v0, %v309_v15 }
  0xad   : > { %v476_v28 = vmax.f32 %v444_v19, 0.0  ;;  %v348_v32 = vmul.f32 %v1228_v0, %v310_v16  ;;  %507 = vst [vmem:[%s1269_s26 + $0xa0] sm:$0xff] %v475_v22  ;;  %v477_v35 = vmax.f32 %v445_v23, 0.0  ;;  %v384_v37 = vadd.f32 %v1230_v1, %v346_v26 }
  0xae   : > { %v478_v36 = vmax.f32 %v446_v24, 0.0  ;;  %v349_v40 = vmul.f32 %v1228_v0, %v311_v21  ;;  %v447_v41 = vadd.f32 %v415_v25, %v383_v29  ;;  %v385_v42 = vadd.f32 %v1230_v1, %v347_v31 }
  0xaf   : > { %508 = vst [vmem:[%s1269_s26 + $0xa8] sm:$0xff] %v476_v28  ;;  %v386_v43 = vadd.f32 %v1230_v1, %v348_v32  ;;  %v350_v45 = vmul.f32 %v1228_v0, %v312_v27  ;;  %509 = vst [vmem:[%s1269_s26 + $0xb0] sm:$0xff] %v477_v35  ;;  %v448_v46 = vadd.f32 %v416_v30, %v384_v37 }
  0xb0   : > { %510 = vst [vmem:[%s1269_s26 + $0xb8] sm:$0xff] %v478_v36  ;;  %v387_v47 = vadd.f32 %v1230_v1, %v349_v40  ;;  %v351_v49 = vmul.f32 %v1228_v0, %v313_v33  ;;  %v352_v50 = vmul.f32 %v1228_v0, %v314_v34  ;;  %v479_v51 = vmax.f32 %v447_v41, 0.0 }
  0xb1   : > { %v449_v52 = vadd.f32 %v417_v38, %v385_v42  ;;  %v450_v53 = vadd.f32 %v418_v39, %v386_v43  ;;  %v388_v54 = vadd.f32 %v1230_v1, %v350_v45  ;;  %v480_v57 = vmax.f32 %v448_v46, 0.0 }
  0xb2   : > { %v451_v58 = vadd.f32 %v419_v44, %v387_v47  ;;  %v389_v59 = vadd.f32 %v1230_v1, %v351_v49  ;;  %v390_v60 = vadd.f32 %v1230_v1, %v352_v50  ;;  %511 = vst [vmem:[%s1269_s26 + $0xc0] sm:$0xff] %v479_v51 }
  0xb3   : > { %v481_v0 = vmax.f32 %v449_v52, 0.0  ;;  %v482_v61 = vmax.f32 %v450_v53, 0.0  ;;  %v452_v62 = vadd.f32 %v420_v48, %v388_v54  ;;  %512 = vst [vmem:[%s1269_s26 + $0xc8] sm:$0xff] %v480_v57 }
  0xb4   : > { %v483_v63 = vmax.f32 %v451_v58, 0.0  ;;  %v453_v2 = vadd.f32 %v421_v55, %v389_v59  ;;  %v454_v3 = vadd.f32 %v422_v56, %v390_v60 }
  0xb5   : > { %513 = vst [vmem:[%s1269_s26 + $0xd0] sm:$0xff] %v481_v0  ;;  %514 = vst [vmem:[%s1269_s26 + $0xd8] sm:$0xff] %v482_v61  ;;  %v484_v4 = vmax.f32 %v452_v62, 0.0 }
  0xb6   : > { %515 = vst [vmem:[%s1269_s26 + $0xe0] sm:$0xff] %v483_v63  ;;  %v485_v1 = vmax.f32 %v453_v2, 0.0  ;;  %v486_v5 = vmax.f32 %v454_v3, 0.0 }
  0xb7   : > { %516 = vst [vmem:[%s1269_s26 + $0xe8] sm:$0xff] %v484_v4 }
  0xb8   : > { %517 = vst [vmem:[%s1269_s26 + $0xf0] sm:$0xff] %v485_v1  ;;  %518 = vst [vmem:[%s1269_s26 + $0xf8] sm:$0xff] %v486_v5 }
  0xb9   : > { %880 = shalt.err (!%p877_p5)
}
  0xba   : > { %s881_s6 = scalar_lea.hbm %s1396_s19, 4096  ;;  %s885_s12 = scalar_lea.hbm %s1450_s4, 8192 }
  0xbb   : > { %p882_p1 = scmp.ne.s32.totalorder %s1396_s19, %s881_s6  ;;  %p886_p10 = scmp.lt.u32.totalorder %s1396_s19, %s1450_s4 }
  0xbc   : > { %p887_p2 = scmp.lt.u32.totalorder %s885_s12, %s881_s6  ;;  %p889_p7 = scmp.lt.u32.totalorder %s881_s6, %s1396_s19 }
  0xbd   : > { %p883_p8 = pnand %p882_p1, %p1473_p6 }
  0xbe   : > { %p888_p0 = por %p887_p2, %p886_p10 }
  0xbf   : > { %p884_p9 = pneg %p883_p8 }
  0xc0   : > { %p890_p12 = por %p889_p7, %p888_p0 }
  0xc2   : > { %p891_p13 = pnand %p890_p12, %p884_p9 }
  0xc4   : > { %894 = shalt.err (!%p891_p13)
}
  0xc5   : > { %s954_s25 = smov 128   ;;  %s955_s26 = smov 8  }
  0xc6   : > { %687 = dma.vmem_to_hbm [thread:$0]  (%p1473_p6), %s1398_s14, 4096, %s1396_s19, %s520_s23, %s954_s25, %s954_s25, %s955_s26  }
  0xc7 PF: > { %s548_s13 = sand.u32 1, %s933_s15   ;;  %p1474_p11 = scmp.ne.s32.totalorder %s1460_s28, 0 }
  0xc8   : > { %p1475_p3 = scmp.ge.s32.totalorder %s945_s18, 2  ;;  %s549_s5 = scalar_lea.sflag [#allocation4], %s548_s13 }
  0xca   : > { %p704_p4 = pnand %p1475_p3, %p1474_p11 }
  0xcc   : > { %928 = dma.done.wait (!%p704_p4), %s549_s5, 4096  }
  0xcd   : > { %930 = vsyncadd (!%p704_p4), %s549_s5, 4294963200  ;;  %p21_p5 = scmp.ge.s32.totalorder %s1006_s21, 4   ;;  %s1476_s15 = smov %s937_s16 }
  0xce   : > { %s1477_s16 = smov %s941_s17  ;;  %s1478_s17 = smov %s1018_s24 }
  0xcf   : > { %s1479_s18 = smov %s1006_s21  ;;  %23 = sbr.rel (!%p21_p5) target bundleno = 10 (0xa), region = 102 }
  0xd6   :  { %554 = vsyncpa [#allocation3], 1 }
  0xd7   :  { %556 = vsyncpa [#allocation3 + $0x1], 1 }
  0xd8   :  { %557 = vsyncpa [#allocation6], 1 }
  0xd9   :  { %559 = vsyncpa [#allocation6 + $0x1], 1 }
  0xda   :  { %560 = vsyncpa [#allocation9], 1 }
  0xdb   :  { %561 = vsyncpa [#allocation4], 1 }
  0xdc   :  { %563 = vsyncpa [#allocation4 + $0x1], 1 }

// kernel: resblock_pallas.3
= control target key start
LH: loop header
LB: loop body
LE: loop exit
PB: predicated region body
PF: predicated region fallthrough
CT: control target
= control target key end

     0   :  { %10 = vsyncpa [#allocation4], 0  ;;  %s8531_s0 = inlined_call_operand.hbm [shape: f32[2,16,16,128], index: 0, kind: input, shape index: {}]   ;;  %s8532_s1 = inlined_call_operand.hbm [shape: bf16[1152,128], index: 1, kind: input, shape index: {}]   ;;  %s8533_s2 = inlined_call_operand.hbm [shape: f32[2,16,16,128], index: 2, kind: output, shape index: {0}]   ;;  %s8534_s3 = inlined_call_operand.hbm [shape: f32[2,1,128], index: 3, kind: output, shape index: {1}]   ;;  %s8535_s4 = inlined_call_operand.hbm [shape: f32[2,1,128], index: 4, kind: output, shape index: {2}]  }
   0x1   :  { %12 = vsyncpa [#allocation4 + $0x1], 0 }
   0x2   :  { %13 = vsyncpa [#allocation7], 0 }
   0x3   :  { %14 = vsyncpa [#allocation5], 0 }
   0x4   :  { %16 = vsyncpa [#allocation5 + $0x1], 0 }
   0x5   :  { %17 = vsyncpa [#allocation10], 0 }
   0x6   :  { %19 = vsyncpa [#allocation10 + $0x1], 0  ;;  %s6192_s15 = smov 0   ;;  %s6194_s16 = smov 0  }
   0x7   :  { %s6196_s17 = smov 0   ;;  %s6198_s18 = smov 0  }
   0x8 LB: > { %s6213_s19 = sadd.s32 4294967295, %s6153_s18   ;;  %s4888_s20 = sadd.s32 4294967294, %s6153_s18   ;;  %s6153_s18 = sphi %s6198_s18, %s8603_s18   ;;  %s6149_s17 = sphi %s6196_s17, %s8602_s17   ;;  %s6145_s16 = sphi %s6194_s16, %s8601_s16   ;;  %s6141_s15 = sphi %s6192_s15, %s8600_s15  }
   0x9   : > { %p45_p0 = scmp.ne.s32.totalorder %s6145_s16, %s6141_s15  ;;  %p8536_p1 = scmp.eq.s32.totalorder %s6213_s19, 0 }
   0xa   : > { %p96_p3 = scmp.eq.s32.totalorder %s4888_s20, 1  ;;  %p4889_p5 = scmp.ge.s32.totalorder %s6153_s18, 1 }
   0xb   : > { %p6224_p4 = por %p8536_p1, %p45_p0  ;;  %p155_p7 = scmp.lt.s32.totalorder %s6153_s18, 3 }
   0xc   : > { %p6229_p6 = por %p96_p3, %p45_p0  ;;  %s6155_s24 = smov [#allocation6]  }
   0xd   : > { %s8544_s21 = scalar_select %p6224_p4, 1, 0 }
   0xe   : > { %s8545_s22 = scalar_select %p6229_p6, 1, 0 }
   0xf   : > { %p6234_p8 = pnand %p4889_p5, %p155_p7  ;;  %s167_s25 = sshll.u32 %s6155_s24, 4  ;;  %s6238_s25 = int_to_ptr.vmem [resolvable:$true] %s167_s25 }
  0x10   : > { %s6250_s27 = sadd.s32 1, %s6153_s18   ;;  %s32_s28 = sadd.s32 1, %s6149_s17 }
  0x11   : > { %s8546_s23 = scalar_select %p6234_p8, 1, 0 }
  0x12   : > { %p5771_p9 = pneg %p6234_p8  ;;  %s29_s29 = ssub.s32 %s6153_s18, %s6250_s27 }
  0x13   : > { %s5965_s6 = scalar_lea.hbm %s8532_s1, 9216 }
  0x14   : > { %p6245_p11 = pnand %p5771_p9, %p8536_p1  ;;  %p5966_p12 = scmp.ne.s32.totalorder %s8532_s1, %s5965_s6 }
  0x15   : > { %p5972_p5 = scmp.lt.u32.totalorder %s5965_s6, %s8532_s1 }
  0x16   : > { %p5967_p13 = pneg %p6245_p11 }
  0x18   : > { %p5968_p0 = pnand %p5967_p13, %p5966_p12 }
  0x1a   : > { %p5969_p3 = pneg %p5968_p0 }
  0x1c   : > { %p5974_p7 = pnand %p5972_p5, %p5969_p3 }
  0x1e   : > { %5977 = shalt.err (!%p5974_p7)
}
  0x1f   : > { %s5978_s11 = scalar_lea.vmem %s6238_s25, 9216  ;;  %p5986_p2 = scmp.lt.s32.totalorder %s6238_s25, %s6238_s25 }
  0x20   : > { %p5979_p9 = scmp.ne.s32.totalorder %s6238_s25, %s5978_s11  ;;  %p5987_p6 = scmp.lt.s32.totalorder %s5978_s11, %s5978_s11 }
  0x22   : > { %p5981_p10 = pnand %p5979_p9, %p5967_p13  ;;  %p5988_p4 = por %p5987_p6, %p5986_p2 }
  0x24   : > { %p5982_p1 = pneg %p5981_p10 }
  0x26   : > { %p5989_p8 = pnand %p5988_p4, %p5982_p1 }
  0x28   : > { %5992 = shalt.err (!%p5989_p8)
}
  0x29   : > { %s6156_s12 = smov 64   ;;  %s6157_s13 = smov 4  }
  0x2a   : > { %5774 = dma.hbm_to_vmem [thread:$0]  (!%p6245_p11), %s8532_s1, 9216, %s6238_s25, [#allocation7], %s6156_s12, %s6156_s12, %s6157_s13  }
  0x2b   : > { %p30_p2 = scmp.eq.s32.totalorder %s29_s29, 0  ;;  %p39_p1 = scmp.ne.s32.totalorder %s6149_s17, %s6145_s16 }
  0x2c   : > { %p40_p4 = scmp.eq.s32.totalorder %s6153_s18, 0  ;;  %p5790_p6 = scmp.lt.s32.totalorder %s6153_s18, 2 }
  0x2d   : > { %s6281_s30 = scalar_select %p30_p2, %s6149_s17, %s32_s28  }
  0x2e   : > { %p41_p8 = por %p40_p4, %p39_p1  ;;  %p8548_p10 = scmp.eq.s32.totalorder %s6213_s19, 1 }
  0x2f   : > { %s181_s6 = sand.u32 1, %s6149_s17   ;;  %s5221_s7 = sshll.u32 %s6153_s18, 12 }
  0x30   : > { %p6285_p12 = por %p8548_p10, %p39_p1  ;;  %s4892_s8 = sshll.u32 %s181_s6, 8 }
  0x31   : > { %s6294_s10 = scalar_lea.hbm %s8531_s0, %s5221_s7  ;;  %s185_s25 = scalar_lea.vmem [#allocation3], %s4892_s8 }
  0x32   : > { %s192_s28 = sshll.u32 %s185_s25, 4  ;;  %p6296_p11 = pnand %p5790_p6, %p41_p8  ;;  %s6300_s28 = int_to_ptr.vmem [resolvable:$true] %s192_s28 }
  0x33   : > { %s6302_s11 = scalar_lea.sflag [#allocation4], %s181_s6  ;;  %s5993_s12 = scalar_lea.hbm %s6294_s10, 4096 }
  0x34   : > { %p5994_p13 = scmp.ne.s32.totalorder %s6294_s10, %s5993_s12  ;;  %p5995_p0 = pneg %p6296_p11 }
  0x35   : > { %s5998_s24 = scalar_lea.hbm %s8531_s0, 8192  ;;  %p5999_p7 = scmp.lt.u32.totalorder %s6294_s10, %s8531_s0 }
  0x36   : > { %p5996_p3 = pnand %p5995_p0, %p5994_p13  ;;  %p6000_p9 = scmp.lt.u32.totalorder %s5998_s24, %s5993_s12 }
  0x37   : > { %p6002_p1 = scmp.lt.u32.totalorder %s5993_s12, %s6294_s10 }
  0x38   : > { %p5997_p5 = pneg %p5996_p3  ;;  %p6001_p2 = por %p6000_p9, %p5999_p7 }
  0x3a   : > { %p6003_p4 = por %p6002_p1, %p6001_p2 }
  0x3c   : > { %p6004_p6 = pnand %p6003_p4, %p5997_p5 }
  0x3e   : > { %6007 = shalt.err (!%p6004_p6)
}
  0x3f   : > { %s6008_s6 = scalar_lea.vmem %s6300_s28, 4096  ;;  %s6158_s26 = smov [#allocation3]  }
  0x40   : > { %p6009_p8 = scmp.ne.s32.totalorder %s6300_s28, %s6008_s6  ;;  %s6013_s9 = sshll.u32 %s6158_s26, 4  ;;  %s6014_s9 = int_to_ptr.vmem [resolvable:$false] %s6013_s9 }
  0x41   : > { %s6015_s25 = scalar_lea.vmem %s6014_s9, 8192  ;;  %p6016_p3 = scmp.lt.s32.totalorder %s6300_s28, %s6014_s9 }
  0x42   : > { %p6011_p10 = pnand %p6009_p8, %p5995_p0  ;;  %p6017_p7 = scmp.lt.s32.totalorder %s6015_s25, %s6008_s6 }
  0x44   : > { %p6012_p13 = pneg %p6011_p10  ;;  %p6018_p9 = por %p6017_p7, %p6016_p3 }
  0x46   : > { %p6019_p2 = pnand %p6018_p9, %p6012_p13 }
  0x48   : > { %6022 = shalt.err (!%p6019_p2)
}
  0x49   : > { %s6159_s12 = smov 128   ;;  %s6160_s13 = smov 8  }
  0x4a   : > { %5778 = dma.hbm_to_vmem [thread:$0]  (!%p6296_p11), %s6294_s10, 4096, %s6300_s28, %s6302_s11, %s6159_s12, %s6159_s12, %s6160_s13  }
  0x4b   : > { %p8551_p0 = scmp.ne.s32.totalorder %s8546_s23, 0 }
  0x4d   : > { %204 = sbr.rel (%p8551_p0) target bundleno = 749 (0x2ed), region = 28 }
  0x54   : > { %s6333_s14 = sand.u32 1, %s6145_s16   ;;  %p8552_p5 = scmp.ne.s32.totalorder %s8544_s21, 0 }
  0x55   : > { %s4896_s24 = sshll.u32 %s6333_s14, 8  ;;  %s207_s7 = scalar_lea.sflag [#allocation4], %s6333_s14 }
  0x56   : > { %s6339_s8 = scalar_lea.vmem [#allocation3], %s4896_s24 }
  0x57   : > { %6124 = dma.done.wait (%p8552_p5), %s207_s7, 4096  }
  0x58   : > { %6126 = vsyncadd (%p8552_p5), %s207_s7, 4294963200  ;;  %p8553_p11 = scmp.eq.s32.totalorder %s6213_s19, 0 }
  0x5a   : > { %6128 = dma.done.wait (%p8553_p11), [#allocation7], 9216   ;;  %p8554_p1 = pmov %p8553_p11 }
  0x5b   : > { %vm449_vm0 = vcmask 1040384   ;;  %vm450_vm1 = vsmask.f32 256  ;;  %v6161_v0 = vmov 0   ;;  %v5833_v8 = vld [vmem:[#allocation6 + $0x40] sm:$0xff]   ;;  %v5835_v10 = vld [vmem:[#allocation6 + $0x48] sm:$0xff]  }
  0x5c   : > { %6130 = vsyncadd (%p8554_p1), [#allocation7], 4294958080  ;;  %v299_v1 = vrot.slane %v6161_v0, 7  ;;  %v5834_v9 = vld [vmem:[#allocation6] sm:$0xff]   ;;  %5223 = vmatprep.subr.bf16.mxu0 %v5833_v8  ;;  %5743 = vmatprep.subr.bf16.mxu1 %v5833_v8  ;;  %v5836_v11 = vld [vmem:[#allocation6 + $0x8] sm:$0xff]   ;;  %vm1226_vm5 = vcmask 1042432  }
  0x5d   : > { %vm6349_vm2 = vmand %vm449_vm0, %vm450_vm1  ;;  %5224 = vmatpush3.bf16.msra.mxu0 %v5834_v9  ;;  %5751 = vmatpush3.bf16.msra.mxu1 %v5834_v9  ;;  %v5837_v12 = vld [vmem:[#allocation6 + $0x50] sm:$0xff]   ;;  %v5839_v14 = vld [vmem:[#allocation6 + $0x58] sm:$0xff]   ;;  %vm775_vm3 = vsmask.f32 3328  ;;  %vm776_vm4 = vsmask.f32 7440 }
  0x5e   : > { %v452_v3 = vsel %vm6349_vm2, 0, %v299_v1  ;;  %v469_v4 = vsel %vm6349_vm2, %v299_v1, 0  ;;  %5225 = vmatprep.subr.bf16.mxu0 %v5835_v10  ;;  %5744 = vmatprep.subr.bf16.mxu1 %v5835_v10  ;;  %v5838_v13 = vld [vmem:[#allocation6 + $0x10] sm:$0xff]   ;;  %v5840_v15 = vld [vmem:[#allocation6 + $0x18] sm:$0xff]   ;;  %v5841_v16 = vld [vmem:[#allocation6 + $0x60] sm:$0xff]   ;;  %vm1227_vm6 = vcmask 1046532  }
  0x5f   : > { %v4899_v5 = vcombine.low %v452_v3, %v452_v3  ;;  %v4900_v6 = vcombine.high %v452_v3, %v452_v3  ;;  %v4901_v7 = vcombine.low %v469_v4, %v469_v4  ;;  %v5842_v17 = vld [vmem:[#allocation6 + $0x20] sm:$0xff]   ;;  %v5843_v18 = vld [vmem:[#allocation6 + $0x68] sm:$0xff]   ;;  %v270_v26 = vld [vmem:[%s6339_s8 + $0xb0] sm:$0xff]  ;;  %s8331_s21 = scalar_lea.vmem [#allocation8], %s4896_s24  ;;  %s5222_s23 = sshll.u32 %s6213_s19, 12 }
  0x60   : > { %v271_v27 = vld [vmem:[%s6339_s8 + $0xb8] sm:$0xff]  ;;  %v5844_v28 = vld [vmem:[#allocation6 + $0x28] sm:$0xff]   ;;  %vm6370_vm7 = vmor %vm1226_vm5, %vm1227_vm6  ;;  %s4726_s10 = sshll.u32 %s8331_s21, 4  ;;  %s8413_s11 = scalar_lea.hbm %s8533_s2, %s5222_s23  ;;  %s8415_s10 = int_to_ptr.vmem [resolvable:$true] %s4726_s10 }
  0x61   : > { %673 = vst [vmem:[#allocation2] sm:$0xf] %v4899_v5  ;;  %674 = vst [vmem:[#allocation2 + $0x4] sm:$0xf] %v4900_v6  ;;  %5226 = vmatpush3.bf16.msra.mxu0 %v5836_v11  ;;  %5752 = vmatpush3.bf16.msra.mxu1 %v5836_v11  ;;  %v291_v32 = vpack.c.bf16 %v271_v27, %v270_v26  ;;  %v5845_v38 = vld [vmem:[#allocation6 + $0x70] sm:$0xff]   ;;  %v5847_v51 = vld [vmem:[#allocation6 + $0x78] sm:$0xff]  }
  0x62   : > { %675 = vst [vmem:[#allocation2 + $0x8] sm:$0x1] %v4901_v7  ;;  %724 = vst [vmem:[#allocation2 + $0xcc] sm:$0xf] %v4899_v5  ;;  %5227 = vmatprep.subr.bf16.mxu0 %v5837_v12  ;;  %5745 = vmatprep.subr.bf16.mxu1 %v5837_v12  ;;  %v5846_v48 = vld [vmem:[#allocation6 + $0x30] sm:$0xff]   ;;  %v5848_v54 = vld [vmem:[#allocation6 + $0x38] sm:$0xff]  }
  0x63   : > { %725 = vst [vmem:[#allocation2 + $0xd0] sm:$0xf] %v4900_v6  ;;  %726 = vst [vmem:[#allocation2 + $0xd4] sm:$0x1] %v4901_v7  ;;  %v381_v40 = vshrl.u32 %v291_v32, 16  ;;  %v384_v41 = vshll.u32 %v291_v32, 16 }
  0x64   : > { %vm6378_vm8 = vmor %vm775_vm3, %vm776_vm4  ;;  %v248_v58 = vld [vmem:[%s6339_s8] sm:$0xff]  ;;  %v249_v61 = vld [vmem:[%s6339_s8 + $0x8] sm:$0xff]  ;;  %s4705_s6 = scalar_lea.sflag [#allocation5], %s6333_s14  ;;  %s6023_s26 = scalar_lea.vmem %s8415_s10, 4096 }
  0x65   : > { %5228 = vmatpush3.bf16.msra.mxu0 %v5838_v13  ;;  %5753 = vmatpush3.bf16.msra.mxu1 %v5838_v13  ;;  %v383_v47 = vrot.slane %v381_v40, 7  ;;  %v272_v62 = vld [vmem:[%s6339_s8 + $0xc0] sm:$0xff]  ;;  %v273_v63 = vld [vmem:[%s6339_s8 + $0xc8] sm:$0xff]  ;;  %v280_v4 = vpack.c.bf16 %v249_v61, %v248_v58  ;;  %v275_v32 = vld [vmem:[%s6339_s8 + $0xd8] sm:$0xff]  ;;  %p6024_p4 = scmp.ne.s32.totalorder %s8415_s10, %s6023_s26  ;;  %s6162_s9 = smov [#allocation8]  }
  0x66   : > { %5229 = vmatprep.subr.bf16.mxu0 %v5839_v14  ;;  %5746 = vmatprep.subr.bf16.mxu1 %v5839_v14  ;;  %v5851_v3 = vld [vmem:[#allocation6 + $0xc0] sm:$0xff]   ;;  %v292_v6 = vpack.c.bf16 %v273_v63, %v272_v62  ;;  %s6027_s25 = sshll.u32 %s6162_s9, 4  ;;  %s6028_s25 = int_to_ptr.vmem [resolvable:$false] %s6027_s25 }
  0x67   : > { %v386_v52 = vor.u32 %v384_v41, %v383_v47  ;;  %v481_v53 = vsel %vm6349_vm2, %v383_v47, 0  ;;  %v5852_v5 = vld [vmem:[#allocation6 + $0x140] sm:$0xff]   ;;  %v304_v7 = vshrl.u32 %v280_v4, 16  ;;  %v307_v8 = vshll.u32 %v280_v4, 16  ;;  %v277_v4 = vld [vmem:[%s6339_s8 + $0xe8] sm:$0xff]  ;;  %p6025_p6 = pnand %p6024_p4, %p6285_p12  ;;  %s6029_s12 = scalar_lea.vmem %s6028_s25, 8192 }
  0x68   : > { %v6357_v19 = vld [vmem:[#allocation2] sm:$0xf]  ;;  %v6359_v20 = vld [vmem:[#allocation2 + $0x4] sm:$0xf]  ;;  %v4937_v57 = vcombine.low %v481_v53, %v481_v53  ;;  %v388_v10 = vshrl.u32 %v292_v6, 16  ;;  %v391_v11 = vshll.u32 %v292_v6, 16  ;;  %p6030_p10 = scmp.lt.s32.totalorder %s8415_s10, %s6028_s25  ;;  %p6031_p13 = scmp.lt.s32.totalorder %s6029_s12, %s6023_s26 }
  0x69   : > { %5230 = vmatpush3.bf16.msra.mxu0 %v5840_v15  ;;  %5754 = vmatpush3.bf16.msra.mxu1 %v5840_v15  ;;  %v759_v21 = vld [vmem:[#allocation2 + $0x8] sm:$0x1]  ;;  %v779_v22 = vshrl.u32 %v6357_v19, 16  ;;  %v782_v23 = vshll.u32 %v6357_v19, 16  ;;  %v788_v24 = vshll.u32 %v6359_v20, 16  ;;  %v792_v25 = vshrl.u32 %v6359_v20, 16  ;;  %p6026_p8 = pneg %p6025_p6 }
  0x6a   : > { %5231 = vmatprep.subr.bf16.mxu0 %v5841_v16  ;;  %5747 = vmatprep.subr.bf16.mxu1 %v5841_v16  ;;  %v798_v29 = vshll.u32 %v759_v21, 16  ;;  %v1231_v30 = vrot.slane %v6359_v20, 5  ;;  %v1234_v31 = vrot.slane %v759_v21, 5  ;;  %v464_v60 = vsel %vm6349_vm2, 0, %v386_v52  ;;  %711 = vst [vmem:[#allocation2 + $0x98] sm:$0x1] %v4937_v57  ;;  %p6032_p3 = por %p6031_p13, %p6030_p10 }
  0x6b   : > { %v781_v33 = vrot.slane %v779_v22, 4  ;;  %v784_v34 = vrot.slane %v782_v23, 5  ;;  %v790_v35 = vrot.slane %v788_v24, 5  ;;  %v794_v36 = vrot.slane %v792_v25, 4  ;;  %v5854_v12 = vld [vmem:[#allocation6 + $0x100] sm:$0xff]   ;;  %v5862_v15 = vld [vmem:[#allocation6 + $0x148] sm:$0xff]  }
  0x6c   : > { %v1233_v39 = vrot.slane %v1231_v30, 4  ;;  %v800_v44 = vrot.slane %v798_v29, 5  ;;  %v4935_v0 = vcombine.low %v464_v60, %v464_v60  ;;  %v4936_v1 = vcombine.high %v464_v60, %v464_v60  ;;  %v251_v21 = vld [vmem:[%s6339_s8 + $0x18] sm:$0xff]  ;;  %v5864_v25 = vld [vmem:[#allocation6 + $0x108] sm:$0xff]   ;;  %v252_v60 = vld [vmem:[%s6339_s8 + $0x20] sm:$0xff]  ;;  %p6033_p7 = pnand %p6032_p3, %p6026_p8 }
  0x6d   : > { %5232 = vmatpush3.bf16.msra.mxu0 %v5842_v17  ;;  %5755 = vmatpush3.bf16.msra.mxu1 %v5842_v17  ;;  %v785_v42 = vor.u32 %v784_v34, %v781_v33  ;;  %v795_v43 = vor.u32 %v794_v36, %v790_v35  ;;  %v4998_v9 = vcombine.low %v6357_v19, %v6359_v20  ;;  %v306_v13 = vrot.slane %v304_v7, 7 }
  0x6e   : > { %5233 = vmatprep.subr.bf16.mxu0 %v5843_v18  ;;  %5748 = vmatprep.subr.bf16.mxu1 %v5843_v18  ;;  %v6384_v46 = vsel %vm6370_vm7, %v1233_v39, %v1234_v31  ;;  %709 = vst [vmem:[#allocation2 + $0x90] sm:$0xf] %v4935_v0  ;;  %710 = vst [vmem:[#allocation2 + $0x94] sm:$0xf] %v4936_v1  ;;  %v390_v14 = vrot.slane %v388_v10, 7  ;;  %v250_v18 = vld [vmem:[%s6339_s8 + $0x10] sm:$0xff] }
  0x6f   : > { %v786_v49 = vrot.slane %v785_v42, 4  ;;  %v796_v50 = vrot.slane %v795_v43, 4  ;;  %v309_v16 = vor.u32 %v307_v8, %v306_v13  ;;  %v470_v17 = vsel %vm6349_vm2, %v306_v13, 0  ;;  %v274_v31 = vld [vmem:[%s6339_s8 + $0xd0] sm:$0xff]  ;;  %v253_v1 = vld [vmem:[%s6339_s8 + $0x28] sm:$0xff]  ;;  %v5853_v10 = vld [vmem:[#allocation6 + $0x80] sm:$0xff]  }
  0x70   : > { %v4904_v19 = vcombine.low %v470_v17, %v470_v17  ;;  %v393_v23 = vor.u32 %v391_v11, %v390_v14  ;;  %v482_v24 = vsel %vm6349_vm2, %v390_v14, 0  ;;  %v281_v26 = vpack.c.bf16 %v251_v21, %v250_v18 }
  0x71   : > { %5234 = vmatpush3.bf16.msra.mxu0 %v5844_v28  ;;  %5756 = vmatpush3.bf16.msra.mxu1 %v5844_v28  ;;  %v791_v55 = vsel %vm6378_vm8, %v786_v49, %v790_v35  ;;  %v801_v56 = vsel %vm6378_vm8, %v796_v50, %v800_v44  ;;  %v6404_v22 = vld [vmem:[#allocation2 + $0x98] sm:$0x1]  ;;  %v453_v28 = vsel %vm6349_vm2, 0, %v309_v16  ;;  %v4940_v29 = vcombine.low %v482_v24, %v482_v24  ;;  %v5874_v24 = vld [vmem:[#allocation6 + $0x150] sm:$0xff]  }
  0x72   : > { %5235 = vmatprep.subr.bf16.mxu0 %v5845_v38  ;;  %5749 = vmatprep.subr.bf16.mxu1 %v5845_v38  ;;  %v5014_v59 = vcombine.low %v791_v55, %v801_v56  ;;  %v1086_v27 = vshll.u32 %v6404_v22, 16  ;;  %v4902_v35 = vcombine.low %v453_v28, %v453_v28  ;;  %v4903_v36 = vcombine.high %v453_v28, %v453_v28 }
  0x73   : > { %678 = vst [vmem:[#allocation2 + $0x14] sm:$0x1] %v4904_v19  ;;  %v465_v38 = vsel %vm6349_vm2, 0, %v393_v23  ;;  %v311_v39 = vshrl.u32 %v281_v26, 16  ;;  %714 = vst [vmem:[#allocation2 + $0xa4] sm:$0x1] %v4940_v29  ;;  %v6424_v55 = vpack.c.bf16 %v275_v32, %v274_v31 }
  0x74   : > { %3791 = vmatprep.mubr.bf16.mxu0 %v5014_v59  ;;  %676 = vst [vmem:[#allocation2 + $0xc] sm:$0xf] %v4902_v35  ;;  %677 = vst [vmem:[#allocation2 + $0x10] sm:$0xf] %v4903_v36  ;;  %v4938_v44 = vcombine.low %v465_v38, %v465_v38  ;;  %v4939_v47 = vcombine.high %v465_v38, %v465_v38  ;;  %v1088_v58 = vrot.slane %v1086_v27, 5  ;;  %v5856_v38 = vld [vmem:[#allocation6 + $0x88] sm:$0xff]  }
  0x75   : > { %5236 = vmatpush3.bf16.msra.mxu0 %v5846_v48  ;;  %5757 = vmatpush3.bf16.msra.mxu1 %v5846_v48  ;;  %v6413_v33 = vld [vmem:[#allocation2 + $0x90] sm:$0xf]  ;;  %v6415_v34 = vld [vmem:[#allocation2 + $0x94] sm:$0xf]  ;;  %v313_v53 = vrot.slane %v311_v39, 7  ;;  %v395_v63 = vshrl.u32 %v6424_v55, 16 }
  0x76   : > { %5237 = vmatprep.subr.bf16.mxu0 %v5847_v51  ;;  %5750 = vmatprep.subr.bf16.mxu1 %v5847_v51  ;;  %v1067_v40 = vshrl.u32 %v6413_v33, 16  ;;  %v1070_v41 = vshll.u32 %v6413_v33, 16  ;;  %v1076_v42 = vshll.u32 %v6415_v34, 16  ;;  %v1080_v43 = vshrl.u32 %v6415_v34, 16  ;;  %712 = vst [vmem:[#allocation2 + $0x9c] sm:$0xf] %v4938_v44 }
  0x77   : > { %713 = vst [vmem:[#allocation2 + $0xa0] sm:$0xf] %v4939_v47  ;;  %v5010_v59 = vcombine.low %v6413_v33, %v6415_v34  ;;  %v471_v62 = vsel %vm6349_vm2, %v313_v53, 0  ;;  %v398_v0 = vshll.u32 %v6424_v55, 16  ;;  %v397_v14 = vrot.slane %v395_v63, 7 }
  0x78   : > { %v1069_v48 = vrot.slane %v1067_v40, 4  ;;  %v1072_v49 = vrot.slane %v1070_v41, 5  ;;  %v1078_v50 = vrot.slane %v1076_v42, 5  ;;  %v1082_v51 = vrot.slane %v1080_v43, 4 }
  0x79   : > { %5238 = vmatpush3.bf16.msra.mxu0 %v5848_v54  ;;  %5758 = vmatpush3.bf16.msra.mxu1 %v5848_v54  ;;  %v314_v54 = vshll.u32 %v281_v26, 16  ;;  %v4907_v8 = vcombine.low %v471_v62, %v471_v62  ;;  %v5855_v26 = vld [vmem:[#allocation6 + $0xc8] sm:$0xff]   ;;  %v5860_v62 = vld [vmem:[#allocation6 + $0x90] sm:$0xff]  }
  0x7a   : > { %5335 = vmatprep.subr.bf16.mxu1 %v5851_v3  ;;  %5447 = vmatprep.subr.bf16.mxu0 %v5852_v5  ;;  %v1073_v56 = vor.u32 %v1072_v49, %v1069_v48  ;;  %v1083_v57 = vor.u32 %v1082_v51, %v1078_v50  ;;  %v276_v3 = vld [vmem:[%s6339_s8 + $0xe0] sm:$0xff]  ;;  %v6436_v7 = vld [vmem:[#allocation2 + $0x14] sm:$0x1]  ;;  %v5859_v49 = vld [vmem:[#allocation6 + $0xd0] sm:$0xff]  }
  0x7b   : > { %v316_v61 = vor.u32 %v314_v54, %v313_v53  ;;  %v822_v11 = vshll.u32 %v6436_v7, 16  ;;  %v6449_v18 = vld [vmem:[#allocation2 + $0xc] sm:$0xf]  ;;  %v6451_v21 = vld [vmem:[#allocation2 + $0x10] sm:$0xf] }
  0x7c   : > { %3792 = vmatmul.mubr.bf16.vlgmr.msra.gmra.mrb[0].mxu0 %v4998_v9  ;;  %v1074_v5 = vrot.slane %v1073_v56, 4  ;;  %v1084_v6 = vrot.slane %v1083_v57, 4  ;;  %v6438_v9 = vpack.c.bf16 %v253_v1, %v252_v60  ;;  %681 = vst [vmem:[#allocation2 + $0x20] sm:$0x1] %v4907_v8  ;;  %v803_v27 = vshrl.u32 %v6449_v18, 16  ;;  %v5876_v60 = vld [vmem:[#allocation6 + $0x110] sm:$0xff]  }
  0x7d   : > { %5448 = vmatpush3.bf16.msra.mxu0 %v5854_v12  ;;  %v772_v12 = vld [vmem:[#allocation2 + $0xa4] sm:$0x1]  ;;  %v454_v13 = vsel %vm6349_vm2, 0, %v316_v61  ;;  %v806_v28 = vshll.u32 %v6449_v18, 16  ;;  %v812_v29 = vshll.u32 %v6451_v21, 16  ;;  %v816_v31 = vshrl.u32 %v6451_v21, 16 }
  0x7e   : > { %5449 = vmatprep.subr.bf16.mxu0 %v5862_v15  ;;  %v6443_v15 = vpack.c.bf16 %v277_v4, %v276_v3  ;;  %v1079_v16 = vsel %vm6378_vm8, %v1074_v5, %v1078_v50  ;;  %v1089_v17 = vsel %vm6378_vm8, %v1084_v6, %v1088_v58  ;;  %v1110_v19 = vshll.u32 %v772_v12, 16  ;;  %v6457_v33 = vld [vmem:[#allocation2 + $0x9c] sm:$0xf]  ;;  %v6459_v34 = vld [vmem:[#allocation2 + $0xa0] sm:$0xf] }
  0x7f   : > { %v4905_v23 = vcombine.low %v454_v13, %v454_v13  ;;  %v824_v32 = vrot.slane %v822_v11, 5  ;;  %v4999_v35 = vcombine.low %v6449_v18, %v6451_v21  ;;  %v4906_v36 = vcombine.high %v454_v13, %v454_v13 }
  0x80   : > { %v805_v39 = vrot.slane %v803_v27, 4  ;;  %v808_v40 = vrot.slane %v806_v28, 5  ;;  %v814_v41 = vrot.slane %v812_v29, 5  ;;  %v1091_v42 = vshrl.u32 %v6457_v33, 16 }
  0x81   : > { %5450 = vmatpush3.bf16.msra.mxu0 %v5864_v25  ;;  %v5026_v25 = vcombine.low %v1079_v16, %v1089_v17  ;;  %679 = vst [vmem:[#allocation2 + $0x18] sm:$0xf] %v4905_v23  ;;  %v818_v43 = vrot.slane %v816_v31, 4  ;;  %v1094_v44 = vshll.u32 %v6457_v33, 16  ;;  %v1100_v47 = vshll.u32 %v6459_v34, 16 }
  0x82   : > { %5451 = vmatprep.subr.bf16.mxu0 %v5874_v24  ;;  %v1104_v48 = vshrl.u32 %v6459_v34, 16  ;;  %680 = vst [vmem:[#allocation2 + $0x1c] sm:$0xf] %v4906_v36  ;;  %v809_v50 = vor.u32 %v808_v40, %v805_v39  ;;  %v1093_v51 = vrot.slane %v1091_v42, 4  ;;  %v1112_v53 = vrot.slane %v1110_v19, 5  ;;  %v5861_v19 = vld [vmem:[#allocation6 + $0xd8] sm:$0xff]  }
  0x83   : > { %3887 = vmatprep.mubr.bf16.mxu1 %v5026_v25  ;;  %v5011_v54 = vcombine.low %v6457_v33, %v6459_v34  ;;  %v819_v56 = vor.u32 %v818_v43, %v814_v41  ;;  %v1096_v57 = vrot.slane %v1094_v44, 5  ;;  %v1102_v58 = vrot.slane %v1100_v47, 5  ;;  %v6469_v63 = vld [vmem:[#allocation2 + $0x20] sm:$0x1]  ;;  %v254_v43 = vld [vmem:[%s6339_s8 + $0x30] sm:$0xff]  ;;  %v255_v44 = vld [vmem:[%s6339_s8 + $0x38] sm:$0xff] }
  0x84   : > { %3888 = vmatmul.mubr.bf16.vlgmr.msra.gmra.mrb[0].mxu1 %v5010_v59  ;;  %v1106_v59 = vrot.slane %v1104_v48, 4  ;;  %v810_v61 = vrot.slane %v809_v50, 4  ;;  %v400_v1 = vor.u32 %v398_v0, %v397_v14  ;;  %v483_v3 = vsel %vm6349_vm2, %v397_v14, 0  ;;  %v6499_v47 = vld [vmem:[#allocation2 + $0xc] sm:$0xf]  ;;  %v5867_v50 = vld [vmem:[#allocation6 + $0xe0] sm:$0xff]  }
  0x85   : > { %5336 = vmatpush3.bf16.msra.mxu1 %v5853_v10  ;;  %v318_v4 = vshrl.u32 %v6438_v9, 16  ;;  %v820_v5 = vrot.slane %v819_v56, 4  ;;  %v1097_v6 = vor.u32 %v1096_v57, %v1093_v51  ;;  %v846_v10 = vshll.u32 %v6469_v63, 16  ;;  %5452 = vmatpush3.bf16.msra.mxu0 %v5876_v60 }
  0x86   : > { %5337 = vmatprep.subr.bf16.mxu1 %v5855_v26  ;;  %v1107_v8 = vor.u32 %v1106_v59, %v1102_v58  ;;  %v815_v11 = vsel %vm6378_vm8, %v810_v61, %v814_v41  ;;  %v466_v55 = vsel %vm6349_vm2, 0, %v400_v1  ;;  %v4943_v0 = vcombine.low %v483_v3, %v483_v3  ;;  %v5883_v1 = vld [vmem:[#allocation6 + $0x158] sm:$0xff]  }
  0x87   : > { %v320_v13 = vrot.slane %v318_v4, 7  ;;  %v825_v14 = vsel %vm6378_vm8, %v820_v5, %v824_v32  ;;  %v1098_v16 = vrot.slane %v1097_v6, 4  ;;  %v6489_v27 = vrot.slane %v846_v10, 5  ;;  %v5863_v32 = vld [vmem:[#allocation6 + $0x98] sm:$0xff]   ;;  %5453 = vmatprep.subr.bf16.mxu0 %v5883_v1 }
  0x88   : > { %v6479_v12 = vld [vmem:[#allocation2 + $0x18] sm:$0xf]  ;;  %v1108_v17 = vrot.slane %v1107_v8, 4  ;;  %v5015_v24 = vcombine.low %v815_v11, %v825_v14  ;;  %v4941_v28 = vcombine.low %v466_v55, %v466_v55  ;;  %717 = vst [vmem:[#allocation2 + $0xb0] sm:$0x1] %v4943_v0  ;;  %v4942_v42 = vcombine.high %v466_v55, %v466_v55  ;;  %v5884_v8 = vld [vmem:[#allocation6 + $0x118] sm:$0xff]  }
  0x89   : > { %5338 = vmatpush3.bf16.msra.mxu1 %v5856_v38  ;;  %v827_v23 = vshrl.u32 %v6479_v12, 16  ;;  %v6486_v25 = vld [vmem:[#allocation2 + $0x1c] sm:$0xf]  ;;  %v830_v26 = vshll.u32 %v6479_v12, 16  ;;  %v1103_v29 = vsel %vm6378_vm8, %v1098_v16, %v1102_v58  ;;  %v321_v51 = vshll.u32 %v6438_v9, 16  ;;  %5454 = vmatpush3.bf16.msra.mxu0 %v5884_v8 }
  0x8a   : > { %5339 = vmatprep.subr.bf16.mxu1 %v5859_v49  ;;  %v1113_v31 = vsel %vm6378_vm8, %v1108_v17, %v1112_v53  ;;  %v836_v38 = vshll.u32 %v6486_v25, 16  ;;  %3799 = vmatprep.mubr.bf16.mxu0 %v5015_v24  ;;  %v840_v41 = vshrl.u32 %v6486_v25, 16  ;;  %715 = vst [vmem:[#allocation2 + $0xa8] sm:$0xf] %v4941_v28  ;;  %v5000_v49 = vcombine.low %v6479_v12, %v6486_v25  ;;  %v5868_v58 = vld [vmem:[#allocation6 + $0xa0] sm:$0xff]  }
  0x8b   : > { %v829_v36 = vrot.slane %v827_v23, 4  ;;  %v5027_v39 = vcombine.low %v1103_v29, %v1113_v31  ;;  %v832_v40 = vrot.slane %v830_v26, 5  ;;  %3800 = vmatmul.mubr.bf16.gmra.mrb[4].mxu0 %v4999_v35  ;;  %v472_v53 = vsel %vm6349_vm2, %v320_v13, 0  ;;  %716 = vst [vmem:[#allocation2 + $0xac] sm:$0xf] %v4942_v42  ;;  %v5869_v35 = vld [vmem:[#allocation6 + $0xe8] sm:$0xff]  }
  0x8c   : > { %v838_v48 = vrot.slane %v836_v38, 5  ;;  %v842_v57 = vrot.slane %v840_v41, 4  ;;  %v4910_v59 = vcombine.low %v472_v53, %v472_v53  ;;  %v402_v18 = vshrl.u32 %v6443_v15, 16  ;;  %v5870_v31 = vld [vmem:[#allocation6 + $0xa8] sm:$0xff]  }
  0x8d   : > { %5340 = vmatpush3.bf16.msra.mxu1 %v5860_v62  ;;  %3895 = vmatprep.mubr.bf16.mxu1 %v5027_v39  ;;  %v833_v56 = vor.u32 %v832_v40, %v829_v36  ;;  %v323_v60 = vor.u32 %v321_v51, %v320_v13  ;;  %v405_v61 = vshll.u32 %v6443_v15, 16  ;;  %v283_v9 = vpack.c.bf16 %v255_v44, %v254_v43  ;;  %v5873_v40 = vld [vmem:[#allocation6 + $0xf0] sm:$0xff]  }
  0x8e   : > { %5341 = vmatprep.subr.bf16.mxu1 %v5861_v19  ;;  %3896 = vmatmul.mubr.bf16.gmra.mrb[4].mxu1 %v5011_v54  ;;  %v1391_v62 = vshrl.u32 %v6499_v47, 16  ;;  %v843_v4 = vor.u32 %v842_v57, %v838_v48  ;;  %684 = vst [vmem:[#allocation2 + $0x2c] sm:$0x1] %v4910_v59  ;;  %v404_v5 = vrot.slane %v402_v18, 7  ;;  %v1394_v6 = vshll.u32 %v6499_v47, 16 }
  0x8f   : > { %v834_v3 = vrot.slane %v833_v56, 4  ;;  %v773_v10 = vld [vmem:[#allocation2 + $0xb0] sm:$0x1]  ;;  %v455_v33 = vsel %vm6349_vm2, 0, %v323_v60  ;;  %v325_v34 = vshrl.u32 %v283_v9, 16  ;;  %v328_v54 = vshll.u32 %v283_v9, 16 }
  0x90   : > { %v6518_v15 = vrot.slane %v1391_v62, 4  ;;  %v844_v55 = vrot.slane %v843_v4, 4  ;;  %v1134_v0 = vshll.u32 %v773_v10, 16  ;;  %v4908_v13 = vcombine.low %v455_v33, %v455_v33  ;;  %v5875_v56 = vld [vmem:[#allocation6 + $0xb0] sm:$0xff]   ;;  %v6549_v9 = vld [vmem:[#allocation2 + $0x10] sm:$0xf] }
  0x91   : > { %5342 = vmatpush3.bf16.msra.mxu1 %v5863_v32  ;;  %v839_v11 = vsel %vm6378_vm8, %v834_v3, %v838_v48  ;;  %v6522_v14 = vld [vmem:[#allocation2 + $0xa8] sm:$0xf]  ;;  %v4909_v16 = vcombine.high %v455_v33, %v455_v33  ;;  %v407_v17 = vor.u32 %v405_v61, %v404_v5  ;;  %v484_v19 = vsel %vm6349_vm2, %v404_v5, 0  ;;  %v5877_v61 = vld [vmem:[#allocation6 + $0xf8] sm:$0xff]  }
  0x92   : > { %5343 = vmatprep.subr.bf16.mxu1 %v5867_v50  ;;  %v327_v23 = vrot.slane %v325_v34, 7  ;;  %v849_v24 = vsel %vm6378_vm8, %v844_v55, %v6489_v27  ;;  %v1115_v26 = vshrl.u32 %v6522_v14, 16  ;;  %v1118_v28 = vshll.u32 %v6522_v14, 16  ;;  %682 = vst [vmem:[#allocation2 + $0x24] sm:$0xf] %v4908_v13 }
  0x93   : > { %v6531_v29 = vrot.slane %v1134_v0, 5  ;;  %v5016_v32 = vcombine.low %v839_v11, %v849_v24  ;;  %v6533_v36 = vld [vmem:[#allocation2 + $0xac] sm:$0xf]  ;;  %683 = vst [vmem:[#allocation2 + $0x28] sm:$0xf] %v4909_v16  ;;  %v467_v38 = vsel %vm6349_vm2, 0, %v407_v17  ;;  %v4946_v39 = vcombine.low %v484_v19, %v484_v19 }
  0x94   : > { %v330_v27 = vor.u32 %v328_v54, %v327_v23  ;;  %v1117_v41 = vrot.slane %v1115_v26, 4  ;;  %v1120_v42 = vrot.slane %v1118_v28, 5  ;;  %v1124_v43 = vshll.u32 %v6533_v36, 16  ;;  %v6562_v55 = vld [vmem:[#allocation2] sm:$0xe]  ;;  %v5891_v19 = vld [vmem:[#allocation6 + $0x120] sm:$0xff]  }
  0x95   : > { %5344 = vmatpush3.bf16.msra.mxu1 %v5868_v58  ;;  %v1128_v44 = vshrl.u32 %v6533_v36, 16  ;;  %3807 = vmatprep.mubr.bf16.mxu0 %v5016_v32  ;;  %v5012_v48 = vcombine.low %v6522_v14, %v6533_v36  ;;  %v6541_v50 = vld [vmem:[#allocation2 + $0x2c] sm:$0x1]  ;;  %v4944_v51 = vcombine.low %v467_v38, %v467_v38  ;;  %v4945_v53 = vcombine.high %v467_v38, %v467_v38  ;;  %v5889_v58 = vld [vmem:[#allocation6 + $0x160] sm:$0xff]   ;;  %v257_v38 = vld [vmem:[%s6339_s8 + $0x48] sm:$0xff] }
  0x96   : > { %5345 = vmatprep.subr.bf16.mxu1 %v5869_v35  ;;  %720 = vst [vmem:[#allocation2 + $0xbc] sm:$0x1] %v4946_v39  ;;  %v456_v57 = vsel %vm6349_vm2, 0, %v330_v27  ;;  %v1121_v59 = vor.u32 %v1120_v42, %v1117_v41  ;;  %v1126_v18 = vrot.slane %v1124_v43, 5  ;;  %3808 = vmatmul.mubr.bf16.gmra.mrb[8].mxu0 %v5000_v49  ;;  %v870_v60 = vshll.u32 %v6541_v50, 16  ;;  %v5878_v49 = vld [vmem:[#allocation6 + $0xb8] sm:$0xff]  }
  0x97   : > { %v1130_v35 = vrot.slane %v1128_v44, 4  ;;  %718 = vst [vmem:[#allocation2 + $0xb4] sm:$0xf] %v4944_v51  ;;  %719 = vst [vmem:[#allocation2 + $0xb8] sm:$0xf] %v4945_v53  ;;  %v473_v62 = vsel %vm6349_vm2, %v327_v23, 0  ;;  %v4911_v1 = vcombine.low %v456_v57, %v456_v57  ;;  %v4912_v3 = vcombine.high %v456_v57, %v456_v57  ;;  %5455 = vmatprep.subr.bf16.mxu0 %v5889_v58 }
  0x98   : > { %v1396_v4 = vrot.slane %v1394_v6, 5  ;;  %v1122_v5 = vrot.slane %v1121_v59, 4  ;;  %v6553_v12 = vrot.slane %v870_v60, 5  ;;  %v4913_v10 = vcombine.low %v473_v62, %v473_v62  ;;  %v256_v32 = vld [vmem:[%s6339_s8 + $0x40] sm:$0xff]  ;;  %5456 = vmatpush3.bf16.msra.mxu0 %v5891_v19 }
  0x99   : > { %5346 = vmatpush3.bf16.msra.mxu1 %v5870_v31  ;;  %v1131_v8 = vor.u32 %v1130_v35, %v1126_v18  ;;  %v6555_v33 = vld [vmem:[#allocation2 + $0x24] sm:$0xf]  ;;  %685 = vst [vmem:[#allocation2 + $0x30] sm:$0xf] %v4911_v1  ;;  %686 = vst [vmem:[#allocation2 + $0x34] sm:$0xf] %v4912_v3  ;;  %v5046_v6 = vcombine.low %v6499_v47, %v6549_v9 }
  0x9a   : > { %5347 = vmatprep.subr.bf16.mxu1 %v5873_v40  ;;  %v1397_v34 = vor.u32 %v1396_v4, %v6518_v15  ;;  %v1400_v54 = vshll.u32 %v6549_v9, 16  ;;  %v1404_v11 = vshrl.u32 %v6549_v9, 16  ;;  %v1127_v0 = vsel %vm6378_vm8, %v1122_v5, %v1126_v18  ;;  %v6566_v16 = vld [vmem:[#allocation2 + $0x28] sm:$0xf]  ;;  %687 = vst [vmem:[#allocation2 + $0x38] sm:$0x1] %v4913_v10 }
  0x9b   : > { %v1132_v13 = vrot.slane %v1131_v8, 4  ;;  %v851_v17 = vshrl.u32 %v6555_v33, 16  ;;  %v854_v15 = vshll.u32 %v6555_v33, 16  ;;  %v860_v23 = vshll.u32 %v6566_v16, 16  ;;  %v5881_v31 = vld [vmem:[#allocation6 + $0x1c0] sm:$0xff]   ;;  %v5895_v1 = vld [vmem:[#allocation6 + $0x168] sm:$0xff]  }
  0x9c   : > { %v864_v24 = vshrl.u32 %v6566_v16, 16  ;;  %v5001_v26 = vcombine.low %v6555_v33, %v6566_v16  ;;  %v6574_v28 = vrot.slane %v1397_v34, 4  ;;  %v6581_v42 = vrot.slane %v1400_v54, 5  ;;  %v5896_v10 = vld [vmem:[#allocation6 + $0x128] sm:$0xff]   ;;  %5457 = vmatprep.subr.bf16.mxu0 %v5895_v1  ;;  %v1163_v33 = vld [vmem:[#allocation2 + $0xc] sm:$0xe] }
  0x9d   : > { %5348 = vmatpush3.bf16.msra.mxu1 %v5875_v56  ;;  %v1137_v39 = vsel %vm6378_vm8, %v1132_v13, %v6531_v29  ;;  %v853_v40 = vrot.slane %v851_v17, 4  ;;  %v856_v27 = vrot.slane %v854_v15, 5  ;;  %v774_v41 = vld [vmem:[#allocation2 + $0xbc] sm:$0x1]  ;;  %v862_v44 = vrot.slane %v860_v23, 5  ;;  %5458 = vmatpush3.bf16.msra.mxu0 %v5896_v10  ;;  %v258_v10 = vld [vmem:[%s6339_s8 + $0x50] sm:$0xff] }
  0x9e   : > { %5349 = vmatprep.subr.bf16.mxu1 %v5877_v61  ;;  %v5028_v43 = vcombine.low %v1127_v0, %v1137_v39  ;;  %v866_v51 = vrot.slane %v864_v24, 4  ;;  %v1158_v53 = vshll.u32 %v774_v41, 16  ;;  %v6583_v57 = vld [vmem:[#allocation2 + $0xb4] sm:$0xf]  ;;  %v6585_v58 = vld [vmem:[#allocation2 + $0xb8] sm:$0xf]  ;;  %v6588_v29 = vpack.c.bf16 %v257_v38, %v256_v32 }
  0x9f   : > { %v857_v56 = vor.u32 %v856_v27, %v853_v40  ;;  %v1406_v59 = vrot.slane %v1404_v11, 4  ;;  %v4950_v18 = vrot.slane %v6562_v55, 9  ;;  %v1139_v60 = vshrl.u32 %v6583_v57, 16 }
  0xa0   : > { %3903 = vmatprep.mubr.bf16.mxu1 %v5028_v43  ;;  %v867_v35 = vor.u32 %v866_v51, %v862_v44  ;;  %v1142_v61 = vshll.u32 %v6583_v57, 16  ;;  %v1148_v62 = vshll.u32 %v6585_v58, 16  ;;  %v1152_v4 = vshrl.u32 %v6585_v58, 16  ;;  %v6601_v0 = vld [vmem:[#allocation2 + $0x34] sm:$0xf] }
  0xa1   : > { %5350 = vmatpush3.bf16.msra.mxu1 %v5878_v49  ;;  %v858_v3 = vrot.slane %v857_v56, 4  ;;  %v1160_v5 = vrot.slane %v1158_v53, 5  ;;  %v5013_v8 = vcombine.low %v6583_v57, %v6585_v58  ;;  %v6599_v49 = vld [vmem:[#allocation2 + $0x30] sm:$0xf]  ;;  %v1141_v54 = vrot.slane %v1139_v60, 4 }
  0xa2   : > { %5559 = vmatprep.subr.bf16.mxu1 %v5881_v31  ;;  %3904 = vmatmul.mubr.bf16.gmra.mrb[8].mxu1 %v5012_v48  ;;  %v868_v34 = vrot.slane %v867_v35, 4  ;;  %v1144_v11 = vrot.slane %v1142_v61, 5  ;;  %v1150_v55 = vrot.slane %v1148_v62, 5  ;;  %v1154_v36 = vrot.slane %v1152_v4, 4  ;;  %v6605_v48 = vld [vmem:[#allocation2 + $0x38] sm:$0x1] }
  0xa3   : > { %v863_v14 = vsel %vm6378_vm8, %v858_v3, %v862_v44  ;;  %v875_v13 = vshrl.u32 %v6599_v49, 16  ;;  %v878_v17 = vshll.u32 %v6599_v49, 16  ;;  %v884_v23 = vshll.u32 %v6601_v0, 16  ;;  %v6618_v56 = vld [vmem:[#allocation2 + $0x18] sm:$0xf] }
  0xa4   : > { %v873_v15 = vsel %vm6378_vm8, %v868_v34, %v6553_v12  ;;  %v1145_v19 = vor.u32 %v1144_v11, %v1141_v54  ;;  %v888_v24 = vshrl.u32 %v6601_v0, 16  ;;  %v1155_v32 = vor.u32 %v1154_v36, %v1150_v55  ;;  %v6620_v57 = vld [vmem:[#allocation2 + $0x1c] sm:$0xf]  ;;  %v259_v54 = vld [vmem:[%s6339_s8 + $0x58] sm:$0xff]  ;;  %v6652_v36 = vld [vmem:[#allocation2 + $0x24] sm:$0xf] }
  0xa5   : > { %v5017_v31 = vcombine.low %v863_v14, %v873_v15  ;;  %v877_v38 = vrot.slane %v875_v13, 4  ;;  %v880_v39 = vrot.slane %v878_v17, 5  ;;  %v886_v27 = vrot.slane %v884_v23, 5  ;;  %v5903_v13 = vld [vmem:[#allocation6 + $0x170] sm:$0xff]   ;;  %v265_v34 = vld [vmem:[%s6339_s8 + $0x88] sm:$0xff] }
  0xa6   : > { %v1146_v40 = vrot.slane %v1145_v19, 4  ;;  %v890_v41 = vrot.slane %v888_v24, 4  ;;  %v894_v43 = vshll.u32 %v6605_v48, 16  ;;  %v1156_v44 = vrot.slane %v1155_v32, 4  ;;  %v5904_v24 = vld [vmem:[#allocation6 + $0x130] sm:$0xff]   ;;  %5459 = vmatprep.subr.bf16.mxu0 %v5903_v13 }
  0xa7   : > { %3815 = vmatprep.mubr.bf16.mxu0 %v5017_v31  ;;  %v881_v51 = vor.u32 %v880_v39, %v877_v38  ;;  %v1407_v53 = vor.u32 %v1406_v59, %v6581_v42  ;;  %v5002_v12 = vcombine.low %v6599_v49, %v6601_v0  ;;  %v6631_v59 = vsel %vm6370_vm7, %v4950_v18, %v1231_v30  ;;  %v6665_v39 = vld [vmem:[#allocation2 + $0x28] sm:$0xf] }
  0xa8   : > { %v1151_v58 = vsel %vm6378_vm8, %v1146_v40, %v1150_v55  ;;  %3816 = vmatmul.mubr.bf16.gmra.mrb[12].mxu0 %v5001_v26  ;;  %v891_v35 = vor.u32 %v890_v41, %v886_v27  ;;  %v896_v60 = vrot.slane %v894_v43, 5  ;;  %v1161_v61 = vsel %vm6378_vm8, %v1156_v44, %v1160_v5  ;;  %v1164_v40 = vld [vmem:[#allocation2 + $0x18] sm:$0xe] }
  0xa9   : > { %v882_v62 = vrot.slane %v881_v51, 4  ;;  %v6635_v1 = vrot.slane %v1407_v53, 4  ;;  %v5030_v3 = vcombine.low %v6631_v59, %v6384_v46  ;;  %v5029_v26 = vcombine.low %v1151_v58, %v1161_v61  ;;  %5460 = vmatpush3.bf16.msra.mxu0 %v5904_v24  ;;  %v5882_v41 = vld [vmem:[#allocation6 + $0x180] sm:$0xff]   ;;  %v261_v61 = vld [vmem:[%s6339_s8 + $0x68] sm:$0xff] }
  0xaa   : > { %v892_v4 = vrot.slane %v891_v35, 4  ;;  %v332_v49 = vshrl.u32 %v6588_v29, 16  ;;  %v335_v20 = vshll.u32 %v6588_v29, 16  ;;  %v1415_v18 = vshrl.u32 %v6618_v56, 16  ;;  %v5892_v24 = vld [vmem:[#allocation6 + $0x188] sm:$0xff]  }
  0xab   : > { %v887_v30 = vsel %vm6378_vm8, %v882_v62, %v886_v27  ;;  %v1418_v5 = vshll.u32 %v6618_v56, 16  ;;  %3911 = vmatprep.mubr.bf16.mxu1 %v5029_v26  ;;  %v5047_v14 = vcombine.low %v6618_v56, %v6620_v57  ;;  %v4951_v29 = vrot.slane %v1163_v33, 9  ;;  %v6683_v62 = vld [vmem:[#allocation2 + $0x30] sm:$0xf] }
  0xac   : > { %v897_v11 = vsel %vm6378_vm8, %v892_v4, %v896_v60  ;;  %v334_v55 = vrot.slane %v332_v49, 7  ;;  %3912 = vmatmul.mubr.bf16.gmra.mrb[12].mxu1 %v5013_v8  ;;  %v6654_v15 = vrot.slane %v1415_v18, 4  ;;  %v1238_v23 = vrot.slane %v6451_v21, 5  ;;  %v5890_v49 = vld [vmem:[#allocation6 + $0x1c8] sm:$0xff]   ;;  %v6724_v56 = vld [vmem:[#allocation2 + $0x30] sm:$0xe] }
  0xad   : > { %v5018_v17 = vcombine.low %v887_v30, %v897_v11  ;;  %v6656_v19 = vrot.slane %v1418_v5, 5  ;;  %3952 = vmatprep.mubr.bf16.mxu1 %v5046_v6  ;;  %v1241_v38 = vrot.slane %v6436_v7, 5  ;;  %v285_v8 = vpack.c.bf16 %v259_v54, %v258_v10  ;;  %v260_v6 = vld [vmem:[%s6339_s8 + $0x60] sm:$0xff]  ;;  %v6694_v5 = vld [vmem:[#allocation2 + $0x34] sm:$0xf] }
  0xae   : > { %v337_v31 = vor.u32 %v335_v20, %v334_v55  ;;  %v474_v32 = vsel %vm6349_vm2, %v334_v55, 0  ;;  %v6669_v21 = vsel %vm6370_vm7, %v4951_v29, %v1238_v23  ;;  %v1240_v47 = vrot.slane %v1238_v23, 4  ;;  %v5909_v54 = vld [vmem:[#allocation6 + $0x178] sm:$0xff]   ;;  %v264_v4 = vld [vmem:[%s6339_s8 + $0x80] sm:$0xff] }
  0xaf   : > { %3823 = vmatprep.mubr.bf16.mxu0 %v5018_v17  ;;  %v4916_v27 = vcombine.low %v474_v32, %v474_v32  ;;  %v1439_v9 = vshrl.u32 %v6652_v36, 16  ;;  %v339_v43 = vshrl.u32 %v285_v8, 16  ;;  %v342_v44 = vshll.u32 %v285_v8, 16  ;;  %v6699_v17 = vld [vmem:[#allocation2 + $0x24] sm:$0xe]  ;;  %5461 = vmatprep.subr.bf16.mxu0 %v5909_v54  ;;  %v5910_v32 = vld [vmem:[#allocation6 + $0x138] sm:$0xff]  }
  0xb0   : > { %3824 = vmatmul.mubr.bf16.gmra.mrb[16].mxu0 %v5002_v12  ;;  %v457_v7 = vsel %vm6349_vm2, 0, %v337_v31  ;;  %v1442_v51 = vshll.u32 %v6652_v36, 16  ;;  %v6678_v35 = vsel %vm6370_vm7, %v1240_v47, %v1241_v38  ;;  %v5048_v20 = vcombine.low %v6652_v36, %v6665_v39  ;;  %v262_v8 = vld [vmem:[%s6339_s8 + $0x70] sm:$0xff] }
  0xb1   : > { %v4914_v53 = vcombine.low %v457_v7, %v457_v7  ;;  %v4915_v58 = vcombine.high %v457_v7, %v457_v7  ;;  %690 = vst [vmem:[#allocation2 + $0x44] sm:$0x1] %v4916_v27  ;;  %v6680_v60 = vrot.slane %v1439_v9, 4  ;;  %v5031_v12 = vcombine.low %v6669_v21, %v6678_v35  ;;  %5462 = vmatpush3.bf16.msra.mxu0 %v5910_v32 }
  0xb2   : > { %v341_v33 = vrot.slane %v339_v43, 7  ;;  %v6687_v26 = vrot.slane %v1442_v51, 5  ;;  %v4952_v10 = vrot.slane %v1164_v40, 9  ;;  %v1245_v30 = vrot.slane %v6486_v25, 5  ;;  %v263_v40 = vld [vmem:[%s6339_s8 + $0x78] sm:$0xff] }
  0xb3   : > { %688 = vst [vmem:[#allocation2 + $0x3c] sm:$0xf] %v4914_v53  ;;  %689 = vst [vmem:[#allocation2 + $0x40] sm:$0xf] %v4915_v58  ;;  %v1248_v18 = vrot.slane %v6469_v63, 5  ;;  %v286_v29 = vpack.c.bf16 %v261_v61, %v260_v6  ;;  %v1463_v13 = vshrl.u32 %v6683_v62, 16  ;;  %v5049_v53 = vcombine.low %v6683_v62, %v6694_v5 }
  0xb4   : > { %v344_v11 = vor.u32 %v342_v44, %v341_v33  ;;  %v475_v55 = vsel %vm6349_vm2, %v341_v33, 0  ;;  %3953 = vmatmul.mubr.bf16.vlgmr.msra.gmra.mrb[16].mxu1 %v5030_v3  ;;  %v6706_v63 = vsel %vm6370_vm7, %v4952_v10, %v1245_v30  ;;  %v1247_v23 = vrot.slane %v1245_v30, 4  ;;  %v5900_v58 = vld [vmem:[#allocation6 + $0x190] sm:$0xff]  }
  0xb5   : > { %v4919_v25 = vcombine.low %v475_v55, %v475_v55  ;;  %v1466_v31 = vshll.u32 %v6683_v62, 16  ;;  %5560 = vmatpush3.bf16.msra.mxu1 %v5882_v41  ;;  %3960 = vmatprep.mubr.bf16.mxu1 %v5047_v14  ;;  %v346_v59 = vshrl.u32 %v286_v29, 16  ;;  %v349_v3 = vshll.u32 %v286_v29, 16  ;;  %v5899_v14 = vld [vmem:[#allocation6 + $0x1d0] sm:$0xff]   ;;  %v6726_v41 = vld [vmem:[#allocation6 + $0x200] sm:$0xff]  }
  0xb6   : > { %v458_v46 = vsel %vm6349_vm2, 0, %v344_v11  ;;  %v6714_v38 = vrot.slane %v1463_v13, 4  ;;  %v6720_v9 = vsel %vm6370_vm7, %v1247_v23, %v1248_v18  ;;  %5561 = vmatprep.subr.bf16.mxu1 %v5890_v49  ;;  %v4953_v33 = vrot.slane %v6699_v17, 9  ;;  %5695 = vmatprep.subr.bf16.mxu0 %v6726_v41 }
  0xb7   : > { %v4917_v27 = vcombine.low %v458_v46, %v458_v46  ;;  %v4918_v47 = vcombine.high %v458_v46, %v458_v46  ;;  %693 = vst [vmem:[#allocation2 + $0x50] sm:$0x1] %v4919_v25  ;;  %v6722_v6 = vrot.slane %v1466_v31, 5  ;;  %v5032_v43 = vcombine.low %v6706_v63, %v6720_v9  ;;  %v5907_v25 = vld [vmem:[#allocation6 + $0x1d8] sm:$0xff]   ;;  %v5921_v9 = vld [vmem:[#allocation6 + $0x1a8] sm:$0xff]  }
  0xb8   : > { %v6728_v7 = vld [vmem:[#allocation2 + $0x44] sm:$0x1]  ;;  %v348_v44 = vrot.slane %v346_v59, 7  ;;  %v1252_v49 = vrot.slane %v6566_v16, 5  ;;  %v1255_v10 = vrot.slane %v6541_v50, 5  ;;  %v6746_v55 = vpack.c.bf16 %v263_v40, %v262_v8 }
  0xb9   : > { %v918_v61 = vshll.u32 %v6728_v7, 16  ;;  %691 = vst [vmem:[#allocation2 + $0x48] sm:$0xf] %v4917_v27  ;;  %692 = vst [vmem:[#allocation2 + $0x4c] sm:$0xf] %v4918_v47  ;;  %5562 = vmatpush3.bf16.msra.mxu1 %v5892_v24  ;;  %v4954_v29 = vrot.slane %v6724_v56, 9  ;;  %v288_v62 = vpack.c.bf16 %v265_v34, %v264_v4 }
  0xba   : > { %v6740_v30 = vld [vmem:[#allocation2 + $0x3c] sm:$0xf]  ;;  %v6742_v18 = vld [vmem:[#allocation2 + $0x40] sm:$0xf]  ;;  %v351_v54 = vor.u32 %v349_v3, %v348_v44  ;;  %v476_v11 = vsel %vm6349_vm2, %v348_v44, 0  ;;  %5563 = vmatprep.subr.bf16.mxu1 %v5899_v14  ;;  %v5908_v3 = vld [vmem:[#allocation6 + $0x198] sm:$0xff]  }
  0xbb   : > { %v899_v13 = vshrl.u32 %v6740_v30, 16  ;;  %v902_v16 = vshll.u32 %v6740_v30, 16  ;;  %v908_v50 = vshll.u32 %v6742_v18, 16  ;;  %v912_v17 = vshrl.u32 %v6742_v18, 16  ;;  %v6757_v46 = vld [vmem:[#allocation2 + $0x3c] sm:$0xf] }
  0xbc   : > { %v920_v23 = vrot.slane %v918_v61, 5  ;;  %v5003_v24 = vcombine.low %v6740_v30, %v6742_v18  ;;  %v459_v31 = vsel %vm6349_vm2, 0, %v351_v54  ;;  %v4922_v32 = vcombine.low %v476_v11, %v476_v11  ;;  %v6759_v59 = vld [vmem:[#allocation2 + $0x40] sm:$0xf]  ;;  %3961 = vmatmul.mubr.bf16.gmra.mrb[20].mxu1 %v5031_v12 }
  0xbd   : > { %v901_v8 = vrot.slane %v899_v13, 4  ;;  %v904_v40 = vrot.slane %v902_v16, 5  ;;  %v910_v27 = vrot.slane %v908_v50, 5  ;;  %v914_v47 = vrot.slane %v912_v17, 4  ;;  %3968 = vmatprep.mubr.bf16.mxu1 %v5048_v20  ;;  %5564 = vmatpush3.bf16.msra.mxu1 %v5900_v58  ;;  %v5914_v13 = vld [vmem:[#allocation6 + $0x1e0] sm:$0xff]  }
  0xbe   : > { %v6764_v14 = vld [vmem:[#allocation2 + $0x50] sm:$0x1]  ;;  %v4920_v44 = vcombine.low %v459_v31, %v459_v31  ;;  %v4921_v61 = vcombine.high %v459_v31, %v459_v31  ;;  %696 = vst [vmem:[#allocation2 + $0x5c] sm:$0x1] %v4922_v32  ;;  %v6771_v54 = vsel %vm6370_vm7, %v4953_v33, %v1252_v49  ;;  %v1254_v11 = vrot.slane %v1252_v49, 4  ;;  %5565 = vmatprep.subr.bf16.mxu1 %v5907_v25 }
  0xbf   : > { %v905_v16 = vor.u32 %v904_v40, %v901_v8  ;;  %v915_v50 = vor.u32 %v914_v47, %v910_v27  ;;  %v942_v21 = vshll.u32 %v6764_v14, 16  ;;  %v353_v35 = vshrl.u32 %v6746_v55, 16 }
  0xc0   : > { %v6775_v12 = vld [vmem:[#allocation2 + $0x48] sm:$0xf]  ;;  %v6777_v36 = vld [vmem:[#allocation2 + $0x4c] sm:$0xf]  ;;  %694 = vst [vmem:[#allocation2 + $0x54] sm:$0xf] %v4920_v44  ;;  %v6781_v20 = vsel %vm6370_vm7, %v1254_v11, %v1255_v10  ;;  %v5050_v49 = vcombine.low %v6757_v46, %v6759_v59 }
  0xc1   : > { %695 = vst [vmem:[#allocation2 + $0x58] sm:$0xf] %v4921_v61  ;;  %v356_v58 = vshll.u32 %v6746_v55, 16  ;;  %v1487_v33 = vshrl.u32 %v6757_v46, 16  ;;  %v906_v17 = vrot.slane %v905_v16, 4  ;;  %v916_v31 = vrot.slane %v915_v50, 4  ;;  %5566 = vmatpush3.bf16.msra.mxu1 %v5908_v3 }
  0xc2   : > { %v923_v25 = vshrl.u32 %v6775_v12, 16  ;;  %v926_v32 = vshll.u32 %v6775_v12, 16  ;;  %v932_v8 = vshll.u32 %v6777_v36, 16  ;;  %v936_v10 = vshrl.u32 %v6777_v36, 16  ;;  %5567 = vmatprep.subr.bf16.mxu1 %v5914_v13  ;;  %v5916_v16 = vld [vmem:[#allocation6 + $0x1a0] sm:$0xff]   ;;  %v5919_v55 = vld [vmem:[#allocation6 + $0x1e8] sm:$0xff]  }
  0xc3   : > { %v944_v40 = vrot.slane %v942_v21, 5  ;;  %v911_v47 = vsel %vm6378_vm8, %v906_v17, %v910_v27  ;;  %v921_v44 = vsel %vm6378_vm8, %v916_v31, %v920_v23  ;;  %v5033_v21 = vcombine.low %v6771_v54, %v6781_v20 }
  0xc4   : > { %v925_v61 = vrot.slane %v923_v25, 4  ;;  %v928_v11 = vrot.slane %v926_v32, 5  ;;  %v5019_v50 = vcombine.low %v911_v47, %v921_v44  ;;  %v934_v52 = vrot.slane %v932_v8, 5  ;;  %3969 = vmatmul.mubr.bf16.gmra.mrb[24].mxu1 %v5032_v43 }
  0xc5   : > { %v938_v51 = vrot.slane %v936_v10, 4  ;;  %v6804_v27 = vld [vmem:[#allocation2 + $0x5c] sm:$0x1]  ;;  %v355_v23 = vrot.slane %v353_v35, 7  ;;  %v6806_v17 = vrot.slane %v1487_v33, 4  ;;  %v1490_v13 = vshll.u32 %v6757_v46, 16  ;;  %3976 = vmatprep.mubr.bf16.mxu1 %v5049_v53  ;;  %5568 = vmatpush3.bf16.msra.mxu1 %v5916_v16 }
  0xc6   : > { %v929_v3 = vor.u32 %v928_v11, %v925_v61  ;;  %3831 = vmatprep.mubr.bf16.mxu0 %v5019_v50  ;;  %v966_v25 = vshll.u32 %v6804_v27, 16  ;;  %v1259_v63 = vrot.slane %v6601_v0, 5  ;;  %5569 = vmatprep.subr.bf16.mxu1 %v5919_v55  ;;  %v5924_v61 = vld [vmem:[#allocation6 + $0x1f0] sm:$0xff]  }
  0xc7   : > { %v939_v31 = vor.u32 %v938_v51, %v934_v52  ;;  %3832 = vmatmul.mubr.bf16.gmra.mrb[20].mxu0 %v5003_v24  ;;  %v6818_v35 = vld [vmem:[#allocation2 + $0x54] sm:$0xf]  ;;  %v358_v51 = vor.u32 %v356_v58, %v355_v23  ;;  %v477_v33 = vsel %vm6349_vm2, %v355_v23, 0  ;;  %v5926_v46 = vld [vmem:[#allocation6 + $0x1b0] sm:$0xff]  }
  0xc8   : > { %v930_v43 = vrot.slane %v929_v3, 4  ;;  %v6820_v20 = vld [vmem:[#allocation2 + $0x58] sm:$0xf]  ;;  %v947_v32 = vshrl.u32 %v6818_v35, 16  ;;  %v950_v0 = vshll.u32 %v6818_v35, 16  ;;  %v968_v10 = vrot.slane %v966_v25, 5 }
  0xc9   : > { %v940_v53 = vrot.slane %v939_v31, 4  ;;  %v956_v8 = vshll.u32 %v6820_v20, 16  ;;  %v960_v24 = vshrl.u32 %v6820_v20, 16  ;;  %v5005_v58 = vcombine.low %v6818_v35, %v6820_v20  ;;  %5570 = vmatpush3.bf16.msra.mxu1 %v5921_v9  ;;  %v1167_v25 = vld [vmem:[#allocation2 + $0x3c] sm:$0xe] }
  0xca   : > { %v935_v30 = vsel %vm6378_vm8, %v930_v43, %v934_v52  ;;  %v949_v4 = vrot.slane %v947_v32, 4  ;;  %v952_v47 = vrot.slane %v950_v0, 5  ;;  %v460_v55 = vsel %vm6349_vm2, 0, %v358_v51  ;;  %5571 = vmatprep.subr.bf16.mxu1 %v5924_v61  ;;  %v1352_v9 = vld [vmem:[#allocation2 + $0x48] sm:$0xf]  ;;  %v268_v35 = vld [vmem:[%s6339_s8 + $0xa0] sm:$0xff] }
  0xcb   : > { %v945_v34 = vsel %vm6378_vm8, %v940_v53, %v944_v40  ;;  %v958_v44 = vrot.slane %v956_v8, 5  ;;  %v962_v16 = vrot.slane %v960_v24, 4  ;;  %v4925_v50 = vcombine.low %v477_v33, %v477_v33  ;;  %v6846_v32 = vld [vmem:[#allocation2 + $0x4c] sm:$0xf] }
  0xcc   : > { %v5020_v11 = vcombine.low %v935_v30, %v945_v34  ;;  %v953_v52 = vor.u32 %v952_v47, %v949_v4  ;;  %v4923_v3 = vcombine.low %v460_v55, %v460_v55  ;;  %v4924_v23 = vcombine.high %v460_v55, %v460_v55  ;;  %3977 = vmatmul.mubr.bf16.gmra.mrb[28].mxu1 %v5033_v21  ;;  %v266_v34 = vld [vmem:[%s6339_s8 + $0x90] sm:$0xff]  ;;  %v267_v4 = vld [vmem:[%s6339_s8 + $0x98] sm:$0xff] }
  0xcd   : > { %v6836_v31 = vrot.slane %v1490_v13, 5  ;;  %v963_v40 = vor.u32 %v962_v16, %v958_v44  ;;  %699 = vst [vmem:[#allocation2 + $0x68] sm:$0x1] %v4925_v50  ;;  %v1260_v43 = vsel %vm6370_vm7, %v4954_v29, %v1259_v63  ;;  %v1261_v53 = vrot.slane %v1259_v63, 4  ;;  %3984 = vmatprep.mubr.bf16.mxu1 %v5050_v49  ;;  %5572 = vmatpush3.bf16.msra.mxu1 %v5926_v46 }
  0xce   : > { %3839 = vmatprep.mubr.bf16.mxu0 %v5020_v11  ;;  %v1262_v51 = vrot.slane %v6605_v48, 5  ;;  %v954_v33 = vrot.slane %v953_v52, 4  ;;  %697 = vst [vmem:[#allocation2 + $0x60] sm:$0xf] %v4923_v3  ;;  %698 = vst [vmem:[#allocation2 + $0x64] sm:$0xf] %v4924_v23  ;;  %v8561_v29 = vcombine.low %v6775_v12, %v6777_v36  ;;  %v5051_v61 = vcombine.low %v1352_v9, %v6846_v32 }
  0xcf   : > { %v360_v21 = vshrl.u32 %v288_v62, 16  ;;  %v363_v13 = vshll.u32 %v288_v62, 16  ;;  %v1511_v56 = vshrl.u32 %v1352_v9, 16  ;;  %v964_v48 = vrot.slane %v963_v40, 4  ;;  %v6868_v52 = vld [vmem:[#allocation2 + $0x54] sm:$0xf] }
  0xd0   : > { %3840 = vmatmul.mubr.bf16.gmra.mrb[24].mxu0 %v8561_v29  ;;  %v1263_v63 = vsel %vm6370_vm7, %v1261_v53, %v1262_v51  ;;  %v1514_v0 = vshll.u32 %v1352_v9, 16  ;;  %v959_v49 = vsel %vm6378_vm8, %v954_v33, %v958_v44  ;;  %v4955_v11 = vrot.slane %v1167_v25, 9  ;;  %v5929_v9 = vld [vmem:[#allocation6 + $0x1f8] sm:$0xff]  }
  0xd1   : > { %v5034_v30 = vcombine.low %v1260_v43, %v1263_v63  ;;  %v362_v62 = vrot.slane %v360_v21, 7  ;;  %v6856_v24 = vrot.slane %v1511_v56, 4  ;;  %v969_v12 = vsel %vm6378_vm8, %v964_v48, %v968_v10  ;;  %5573 = vmatprep.subr.bf16.mxu1 %v5929_v9 }
  0xd2   : > { %v6862_v47 = vrot.slane %v1514_v0, 5  ;;  %v5021_v16 = vcombine.low %v959_v49, %v969_v12  ;;  %v1266_v50 = vrot.slane %v6742_v18, 5  ;;  %v1269_v23 = vrot.slane %v6728_v7, 5  ;;  %v1168_v12 = vld [vmem:[#allocation2 + $0x48] sm:$0xe] }
  0xd3   : > { %v365_v55 = vor.u32 %v363_v13, %v362_v62  ;;  %v478_v44 = vsel %vm6349_vm2, %v362_v62, 0  ;;  %v289_v40 = vpack.c.bf16 %v267_v4, %v266_v34  ;;  %v1535_v10 = vshrl.u32 %v6868_v52, 16  ;;  %v6895_v4 = vld [vmem:[#allocation2 + $0x58] sm:$0xf] }
  0xd4   : > { %v4928_v3 = vcombine.low %v478_v44, %v478_v44  ;;  %3847 = vmatprep.mubr.bf16.mxu0 %v5021_v16  ;;  %v6872_v43 = vld [vmem:[#allocation2 + $0x68] sm:$0x1]  ;;  %v1267_v53 = vsel %vm6370_vm7, %v4955_v11, %v1266_v50  ;;  %v1268_v51 = vrot.slane %v1266_v50, 4  ;;  %v1538_v18 = vshll.u32 %v6868_v52, 16  ;;  %3985 = vmatmul.mubr.bf16.gmra.mrb[32].mxu1 %v5034_v30 }
  0xd5   : > { %v461_v25 = vsel %vm6349_vm2, 0, %v365_v55  ;;  %v6879_v33 = vld [vmem:[#allocation2 + $0x60] sm:$0xf]  ;;  %v6881_v21 = vld [vmem:[#allocation2 + $0x64] sm:$0xf]  ;;  %v990_v7 = vshll.u32 %v6872_v43, 16  ;;  %3992 = vmatprep.mubr.bf16.mxu1 %v5051_v61 }
  0xd6   : > { %v4926_v13 = vcombine.low %v461_v25, %v461_v25  ;;  %v4927_v56 = vcombine.high %v461_v25, %v461_v25  ;;  %702 = vst [vmem:[#allocation2 + $0x74] sm:$0x1] %v4928_v3  ;;  %v367_v29 = vshrl.u32 %v289_v40, 16  ;;  %v971_v48 = vshrl.u32 %v6879_v33, 16  ;;  %v269_v25 = vld [vmem:[%s6339_s8 + $0xa8] sm:$0xff] }
  0xd7   : > { %v974_v63 = vshll.u32 %v6879_v33, 16  ;;  %v980_v0 = vshll.u32 %v6881_v21, 16  ;;  %v984_v46 = vshrl.u32 %v6881_v21, 16  ;;  %v992_v49 = vrot.slane %v990_v7, 5  ;;  %v5931_v7 = vld [vmem:[#allocation6 + $0x1b8] sm:$0xff]  }
  0xd8   : > { %3848 = vmatmul.mubr.bf16.gmra.mrb[28].mxu0 %v5005_v58  ;;  %v5006_v30 = vcombine.low %v6879_v33, %v6881_v21  ;;  %700 = vst [vmem:[#allocation2 + $0x6c] sm:$0xf] %v4926_v13  ;;  %701 = vst [vmem:[#allocation2 + $0x70] sm:$0xf] %v4927_v56  ;;  %v1270_v62 = vsel %vm6370_vm7, %v1268_v51, %v1269_v23  ;;  %v369_v34 = vrot.slane %v367_v29, 7  ;;  %v973_v61 = vrot.slane %v971_v48, 4 }
  0xd9   : > { %v976_v11 = vrot.slane %v974_v63, 5  ;;  %v982_v16 = vrot.slane %v980_v0, 5  ;;  %v986_v55 = vrot.slane %v984_v46, 4  ;;  %v5035_v58 = vcombine.low %v1267_v53, %v1270_v62  ;;  %5574 = vmatpush3.bf16.msra.mxu1 %v5931_v7 }
  0xda   : > { %v370_v44 = vshll.u32 %v289_v40, 16  ;;  %v479_v50 = vsel %vm6349_vm2, %v369_v34, 0  ;;  %v6900_v3 = vrot.slane %v1535_v10, 4  ;;  %v6903_v51 = vrot.slane %v1538_v18, 5  ;;  %v6908_v40 = vld [vmem:[#allocation2 + $0x60] sm:$0xf] }
  0xdb   : > { %v977_v9 = vor.u32 %v976_v11, %v973_v61  ;;  %v987_v33 = vor.u32 %v986_v55, %v982_v16  ;;  %v4931_v23 = vcombine.low %v479_v50, %v479_v50  ;;  %v5052_v29 = vcombine.low %v6868_v52, %v6895_v4 }
  0xdc   : > { %v372_v13 = vor.u32 %v370_v44, %v369_v34  ;;  %v4956_v53 = vrot.slane %v1168_v12, 9  ;;  %v1273_v0 = vrot.slane %v6777_v36, 5  ;;  %v1276_v18 = vrot.slane %v6764_v14, 5  ;;  %3993 = vmatmul.mubr.bf16.gmra.mrb[36].mxu1 %v5035_v58 }
  0xdd   : > { %v978_v48 = vrot.slane %v977_v9, 4  ;;  %v988_v63 = vrot.slane %v987_v33, 4  ;;  %v6910_v10 = vld [vmem:[#allocation2 + $0x74] sm:$0x1]  ;;  %705 = vst [vmem:[#allocation2 + $0x80] sm:$0x1] %v4931_v23  ;;  %v290_v52 = vpack.c.bf16 %v269_v25, %v268_v35  ;;  %4000 = vmatprep.mubr.bf16.mxu1 %v5052_v29 }
  0xde   : > { %v1014_v46 = vshll.u32 %v6910_v10, 16  ;;  %v462_v62 = vsel %vm6349_vm2, 0, %v372_v13  ;;  %v1559_v34 = vshrl.u32 %v6908_v40, 16  ;;  %v1274_v9 = vsel %vm6370_vm7, %v4956_v53, %v1273_v0  ;;  %v1169_v29 = vld [vmem:[#allocation2 + $0x54] sm:$0xe] }
  0xdf   : > { %v983_v12 = vsel %vm6378_vm8, %v978_v48, %v982_v16  ;;  %v993_v61 = vsel %vm6378_vm8, %v988_v63, %v992_v49  ;;  %v6922_v11 = vld [vmem:[#allocation2 + $0x6c] sm:$0xf]  ;;  %v6924_v36 = vld [vmem:[#allocation2 + $0x70] sm:$0xf]  ;;  %v4929_v14 = vcombine.low %v462_v62, %v462_v62  ;;  %v4930_v55 = vcombine.high %v462_v62, %v462_v62 }
  0xe0   : > { %v5022_v58 = vcombine.low %v983_v12, %v993_v61  ;;  %v995_v44 = vshrl.u32 %v6922_v11, 16  ;;  %v998_v35 = vshll.u32 %v6922_v11, 16  ;;  %v1004_v50 = vshll.u32 %v6924_v36, 16  ;;  %v6934_v12 = vld [vmem:[#allocation2 + $0x64] sm:$0xf] }
  0xe1   : > { %v1008_v25 = vshrl.u32 %v6924_v36, 16  ;;  %v1016_v16 = vrot.slane %v1014_v46, 5  ;;  %v5007_v49 = vcombine.low %v6922_v11, %v6924_v36  ;;  %703 = vst [vmem:[#allocation2 + $0x78] sm:$0xf] %v4929_v14  ;;  %704 = vst [vmem:[#allocation2 + $0x7c] sm:$0xf] %v4930_v55 }
  0xe2   : > { %3855 = vmatprep.mubr.bf16.mxu0 %v5022_v58  ;;  %v997_v33 = vrot.slane %v995_v44, 4  ;;  %v1000_v23 = vrot.slane %v998_v35, 5  ;;  %v1006_v7 = vrot.slane %v1004_v50, 5  ;;  %v1275_v13 = vrot.slane %v1273_v0, 4  ;;  %v1774_v58 = vld [vmem:[#allocation2 + $0xc] sm:$0xe] }
  0xe3   : > { %3856 = vmatmul.mubr.bf16.gmra.mrb[32].mxu0 %v5006_v30  ;;  %v1010_v48 = vrot.slane %v1008_v25, 4  ;;  %v374_v63 = vshrl.u32 %v290_v52, 16  ;;  %v377_v62 = vshll.u32 %v290_v52, 16  ;;  %v6936_v46 = vrot.slane %v1559_v34, 4 }
  0xe4   : > { %v1001_v61 = vor.u32 %v1000_v23, %v997_v33  ;;  %v6938_v14 = vld [vmem:[#allocation2 + $0x80] sm:$0x1]  ;;  %v1277_v53 = vsel %vm6370_vm7, %v1275_v13, %v1276_v18  ;;  %v1562_v55 = vshll.u32 %v6908_v40, 16  ;;  %v5053_v34 = vcombine.low %v6908_v40, %v6934_v12 }
  0xe5   : > { %v1011_v0 = vor.u32 %v1010_v48, %v1006_v7  ;;  %v1038_v30 = vshll.u32 %v6938_v14, 16  ;;  %v5036_v44 = vcombine.low %v1274_v9, %v1277_v53  ;;  %v376_v35 = vrot.slane %v374_v63, 7 }
  0xe6   : > { %v1002_v52 = vrot.slane %v1001_v61, 4  ;;  %v6945_v50 = vrot.slane %v1562_v55, 5  ;;  %v4957_v25 = vrot.slane %v1169_v29, 9  ;;  %v1280_v40 = vrot.slane %v6820_v20, 5 }
  0xe7   : > { %v1012_v33 = vrot.slane %v1011_v0, 4  ;;  %v6949_v23 = vrot.slane %v1038_v30, 5  ;;  %4001 = vmatmul.mubr.bf16.gmra.mrb[40].mxu1 %v5036_v44  ;;  %v379_v18 = vor.u32 %v377_v62, %v376_v35  ;;  %v480_v13 = vsel %vm6349_vm2, %v376_v35, 0 }
  0xe8   : > { %v1007_v48 = vsel %vm6378_vm8, %v1002_v52, %v1006_v7  ;;  %v6955_v9 = vld [vmem:[#allocation2 + $0x78] sm:$0xf]  ;;  %v6957_v63 = vld [vmem:[#allocation2 + $0x7c] sm:$0xf]  ;;  %v4934_v61 = vcombine.low %v480_v13, %v480_v13  ;;  %4008 = vmatprep.mubr.bf16.mxu1 %v5053_v34  ;;  %v1283_v29 = vrot.slane %v6804_v27, 5  ;;  %v1282_v8 = vrot.slane %v1280_v40, 4 }
  0xe9   : > { %v1017_v53 = vsel %vm6378_vm8, %v1012_v33, %v1016_v16  ;;  %v1019_v62 = vshrl.u32 %v6955_v9, 16  ;;  %v1022_v55 = vshll.u32 %v6955_v9, 16  ;;  %v1028_v0 = vshll.u32 %v6957_v63, 16  ;;  %v1374_v7 = vld [vmem:[#allocation2 + $0x14] sm:$0x1] }
  0xea   : > { %v5023_v30 = vcombine.low %v1007_v48, %v1017_v53  ;;  %v1032_v44 = vshrl.u32 %v6957_v63, 16  ;;  %v463_v20 = vsel %vm6349_vm2, 0, %v379_v18  ;;  %708 = vst [vmem:[#allocation2 + $0x8c] sm:$0x1] %v4934_v61  ;;  %v1358_v27 = vld [vmem:[#allocation2 + $0x6c] sm:$0xf]  ;;  %v1281_v53 = vsel %vm6370_vm7, %v4957_v25, %v1280_v40 }
  0xeb   : > { %v6971_v52 = vld [vmem:[#allocation2 + $0x70] sm:$0xf]  ;;  %v1021_v16 = vrot.slane %v1019_v62, 4  ;;  %v1024_v34 = vrot.slane %v1022_v55, 5  ;;  %v1030_v33 = vrot.slane %v1028_v0, 5  ;;  %v4932_v13 = vcombine.low %v463_v20, %v463_v20 }
  0xec   : > { %3863 = vmatprep.mubr.bf16.mxu0 %v5023_v30  ;;  %v1034_v56 = vrot.slane %v1032_v44, 4  ;;  %v4933_v48 = vcombine.high %v463_v20, %v463_v20  ;;  %v1583_v61 = vshrl.u32 %v1358_v27, 16  ;;  %v1586_v54 = vshll.u32 %v1358_v27, 16  ;;  %v1170_v25 = vld [vmem:[#allocation2 + $0x60] sm:$0xe] }
  0xed   : > { %3864 = vmatmul.mubr.bf16.gmra.mrb[36].mxu0 %v5007_v49  ;;  %v1025_v18 = vor.u32 %v1024_v34, %v1021_v16  ;;  %706 = vst [vmem:[#allocation2 + $0x84] sm:$0xf] %v4932_v13  ;;  %v1284_v0 = vsel %vm6370_vm7, %v1282_v8, %v1283_v29  ;;  %v5054_v30 = vcombine.low %v1358_v27, %v6971_v52  ;;  %v1410_v44 = vshll.u32 %v1374_v7, 16  ;;  %v5953_v13 = vld [vmem:[#allocation2 + $0x10] sm:$0xf] }
  0xee   : > { %v1035_v55 = vor.u32 %v1034_v56, %v1030_v33  ;;  %707 = vst [vmem:[#allocation2 + $0x88] sm:$0xf] %v4933_v48  ;;  %v5037_v20 = vcombine.low %v1281_v53, %v1284_v0  ;;  %v6982_v35 = vrot.slane %v1583_v61, 4  ;;  %v6984_v11 = vrot.slane %v1586_v54, 5 }
  0xef   : > { %v1026_v40 = vrot.slane %v1025_v18, 4  ;;  %v1412_v16 = vrot.slane %v1410_v44, 5  ;;  %v4966_v34 = vrot.slane %v1774_v58, 9  ;;  %v1840_v62 = vrot.slane %v5953_v13, 5 }
  0xf0   : > { %8562 = vst [vmem:[#allocation16_spill] sm:$0xff] %v6984_v11  ;;  %v1036_v49 = vrot.slane %v1035_v55, 4  ;;  %4009 = vmatmul.mubr.bf16.gmra.mrb[44].mxu1 %v5037_v20  ;;  %v1843_v8 = vrot.slane %v1374_v7, 5  ;;  %v4958_v29 = vrot.slane %v1170_v25, 9  ;;  %v1287_v27 = vrot.slane %v6881_v21, 5 }
  0xf1   : > { %v1031_v56 = vsel %vm6378_vm8, %v1026_v40, %v1030_v33  ;;  %v6988_v48 = vld [vmem:[#allocation2 + $0x8c] sm:$0x1]  ;;  %4016 = vmatprep.mubr.bf16.mxu1 %v5054_v30  ;;  %v6997_v58 = vsel %vm6370_vm7, %v4966_v34, %v1840_v62  ;;  %v1842_v18 = vrot.slane %v1840_v62, 4  ;;  %v1290_v55 = vrot.slane %v6872_v43, 5 }
  0xf2   : > { %v1041_v54 = vsel %vm6378_vm8, %v1036_v49, %v6949_v23  ;;  %v1062_v53 = vshll.u32 %v6988_v48, 16  ;;  %v1288_v61 = vsel %vm6370_vm7, %v4958_v29, %v1287_v27  ;;  %v1289_v7 = vrot.slane %v1287_v27, 4  ;;  %v7023_v49 = vld [vmem:[#allocation2 + $0x20] sm:$0x1]  ;;  %v1171_v29 = vld [vmem:[#allocation2 + $0x6c] sm:$0xe] }
  0xf3   : > { %v5024_v33 = vcombine.low %v1031_v56, %v1041_v54  ;;  %v7006_v23 = vsel %vm6370_vm7, %v1842_v18, %v1843_v8  ;;  %v1403_v30 = vsel %vm6378_vm8, %v6574_v28, %v6581_v42  ;;  %v1413_v62 = vsel %vm6378_vm8, %v6635_v1, %v1412_v16  ;;  %v1775_v28 = vld [vmem:[#allocation2 + $0x18] sm:$0xe]  ;;  %v7032_v8 = vld [vmem:[#allocation2 + $0x7c] sm:$0xf] }
  0xf4   : > { %v7002_v21 = vld [vmem:[#allocation2 + $0x84] sm:$0xf]  ;;  %v1064_v0 = vrot.slane %v1062_v53, 5  ;;  %v1291_v20 = vsel %vm6370_vm7, %v1289_v7, %v1290_v55  ;;  %v8563_v42 = vcombine.low %v6955_v9, %v6957_v63  ;;  %v1360_v56 = vld [vmem:[#allocation2 + $0x78] sm:$0xf]  ;;  %v7034_v53 = vcombine.low %v1403_v30, %v1413_v62 }
  0xf5   : > { %3871 = vmatprep.mubr.bf16.mxu0 %v5024_v33  ;;  %v7015_v44 = vld [vmem:[#allocation2 + $0x88] sm:$0xf]  ;;  %v1043_v43 = vshrl.u32 %v7002_v21, 16  ;;  %v1046_v25 = vshll.u32 %v7002_v21, 16  ;;  %v5038_v13 = vcombine.low %v1288_v61, %v1291_v20  ;;  %v1607_v18 = vshrl.u32 %v1360_v56, 16 }
  0xf6   : > { %3872 = vmatmul.mubr.bf16.gmra.mrb[40].mxu0 %v8563_v42  ;;  %v1052_v1 = vshll.u32 %v7015_v44, 16  ;;  %v1056_v16 = vshrl.u32 %v7015_v44, 16  ;;  %v5009_v34 = vcombine.low %v7002_v21, %v7015_v44  ;;  %v1610_v7 = vshll.u32 %v1360_v56, 16 }
  0xf7   : > { %v1045_v27 = vrot.slane %v1043_v43, 4  ;;  %v1048_v54 = vrot.slane %v1046_v25, 5  ;;  %v1620_v55 = vshrl.u32 %v7032_v8, 16  ;;  %v7037_v40 = vrot.slane %v1607_v18, 4  ;;  %v5954_v43 = vld [vmem:[#allocation2 + $0x1c] sm:$0xf] }
  0xf8   : > { %v1054_v33 = vrot.slane %v1052_v1, 5  ;;  %v1058_v9 = vrot.slane %v1056_v16, 4  ;;  %4017 = vmatmul.mubr.bf16.gmra.mrb[48].mxu1 %v5038_v13  ;;  %v5055_v61 = vcombine.low %v1360_v56, %v7032_v8  ;;  %v4967_v21 = vrot.slane %v1775_v28, 9 }
  0xf9   : > { %v1049_v42 = vor.u32 %v1048_v54, %v1045_v27  ;;  %v7040_v11 = vrot.slane %v1610_v7, 5  ;;  %v1847_v25 = vrot.slane %v5954_v43, 5  ;;  %v1850_v30 = vrot.slane %v7023_v49, 5 }
  0xfa   : > { %v1059_v20 = vor.u32 %v1058_v9, %v1054_v33  ;;  %4024 = vmatprep.mubr.bf16.mxu1 %v5055_v61  ;;  %v4959_v1 = vrot.slane %v1171_v29, 9  ;;  %v1294_v16 = vrot.slane %v6924_v36, 5  ;;  %v1297_v27 = vrot.slane %v6910_v10, 5  ;;  %v1776_v36 = vld [vmem:[#allocation2 + $0x24] sm:$0xe] }
  0xfb   : > { %v1050_v62 = vrot.slane %v1049_v42, 4  ;;  %v7047_v54 = vsel %vm6370_vm7, %v4967_v21, %v1847_v25  ;;  %v1849_v28 = vrot.slane %v1847_v25, 4  ;;  %v1421_v56 = vor.u32 %v6656_v19, %v6654_v15  ;;  %v1362_v19 = vld [vmem:[#allocation2 + $0x84] sm:$0xf] }
  0xfc   : > { %v1060_v13 = vrot.slane %v1059_v20, 4  ;;  %v1295_v9 = vsel %vm6370_vm7, %v4959_v1, %v1294_v16  ;;  %v1296_v29 = vrot.slane %v1294_v16, 4  ;;  %v1424_v7 = vshll.u32 %v5954_v43, 16  ;;  %v7063_v20 = vld [vmem:[#allocation2 + $0x88] sm:$0xf] }
  0xfd   : > { %v1055_v18 = vsel %vm6378_vm8, %v1050_v62, %v1054_v33  ;;  %v7059_v42 = vsel %vm6370_vm7, %v1849_v28, %v1850_v30  ;;  %v1422_v61 = vrot.slane %v1421_v56, 4  ;;  %v8564_v21 = vshrl.u32 %v6620_v57, 16  ;;  %v1376_v33 = vld [vmem:[#allocation2 + $0x2c] sm:$0x1]  ;;  %v1172_v28 = vld [vmem:[#allocation2 + $0x78] sm:$0xe] }
  0xfe   : > { %v1065_v10 = vsel %vm6378_vm8, %v1060_v13, %v1064_v0  ;;  %v5079_v43 = vcombine.low %v7047_v54, %v7059_v42  ;;  %v1298_v62 = vsel %vm6370_vm7, %v1296_v29, %v1297_v27  ;;  %v1426_v0 = vrot.slane %v1424_v7, 5  ;;  %v5955_v42 = vld [vmem:[#allocation2 + $0x28] sm:$0xf] }
  0xff   : > { %v1430_v15 = vrot.slane %v8564_v21, 4  ;;  %v5025_v25 = vcombine.low %v1055_v18, %v1065_v10  ;;  %v5039_v1 = vcombine.low %v1295_v9, %v1298_v62  ;;  %v1434_v30 = vshll.u32 %v7023_v49, 16 }
 0x100   : > { %v1631_v16 = vshrl.u32 %v1362_v19, 16  ;;  %v1634_v13 = vshll.u32 %v1362_v19, 16  ;;  %v1427_v57 = vsel %vm6378_vm8, %v1422_v61, %v1426_v0  ;;  %v1644_v18 = vshrl.u32 %v7063_v20, 16 }
 0x101   : > { %3879 = vmatprep.mubr.bf16.mxu0 %v5025_v25  ;;  %v1431_v56 = vor.u32 %v1430_v15, %v1426_v0  ;;  %v5056_v10 = vcombine.low %v1362_v19, %v7063_v20  ;;  %4025 = vmatmul.mubr.bf16.gmra.mrb[52].mxu1 %v5039_v1  ;;  %v1436_v54 = vrot.slane %v1434_v30, 5  ;;  %v4968_v49 = vrot.slane %v1776_v36, 9  ;;  %v1364_v30 = vld [vmem:[#allocation2 + $0x90] sm:$0xf] }
 0x102   : > { %3880 = vmatmul.mubr.bf16.gmra.mrb[44].mxu0 %v5009_v34  ;;  %v7074_v27 = vrot.slane %v1631_v16, 4  ;;  %v7076_v9 = vrot.slane %v1634_v13, 5  ;;  %v8565_v29 = vcombine.low %v6997_v58, %v7006_v23  ;;  %v1854_v61 = vrot.slane %v5955_v42, 5  ;;  %v7093_v16 = vld [vmem:[#allocation2 + $0x94] sm:$0xf] }
 0x103   : > { %v1432_v7 = vrot.slane %v1431_v56, 4  ;;  %4032 = vmatprep.mubr.bf16.mxu1 %v5056_v10  ;;  %v1857_v21 = vrot.slane %v1376_v33, 5  ;;  %v4960_v15 = vrot.slane %v1172_v28, 9  ;;  %v1301_v19 = vrot.slane %v6957_v63, 5  ;;  %v7099_v13 = vld [vmem:[#allocation2 + $0x38] sm:$0x1] }
 0x104   : > { %4113 = vmatprep.mubr.bf16.mxu0 %v8565_v29  ;;  %v1304_v34 = vrot.slane %v6938_v14, 5  ;;  %v1445_v25 = vor.u32 %v6687_v26, %v6680_v60  ;;  %v1448_v62 = vshll.u32 %v5955_v42, 16  ;;  %v7089_v58 = vsel %vm6370_vm7, %v4968_v49, %v1854_v61  ;;  %v1777_v28 = vld [vmem:[#allocation2 + $0x30] sm:$0xe] }
 0x105   : > { %v1437_v36 = vsel %vm6378_vm8, %v1432_v7, %v1436_v54  ;;  %v1856_v23 = vrot.slane %v1854_v61, 4  ;;  %v8566_v0 = vshrl.u32 %v6665_v39, 16  ;;  %v1302_v60 = vsel %vm6370_vm7, %v4960_v15, %v1301_v19  ;;  %v5920_v54 = vld [vmem:[#allocation6 + $0x208] sm:$0xff]  }
 0x106   : > { %v7095_v63 = vcombine.low %v1427_v57, %v1437_v36  ;;  %v1303_v26 = vrot.slane %v1301_v19, 4  ;;  %v1446_v14 = vrot.slane %v1445_v25, 4  ;;  %v1450_v10 = vrot.slane %v1448_v62, 5  ;;  %v1173_v61 = vld [vmem:[#allocation2 + $0x84] sm:$0xe] }
 0x107   : > { %v1454_v1 = vrot.slane %v8566_v0, 4  ;;  %v7103_v56 = vsel %vm6370_vm7, %v1856_v23, %v1857_v21  ;;  %v1458_v39 = vshll.u32 %v1376_v33, 16  ;;  %v1655_v49 = vshrl.u32 %v1364_v30, 16  ;;  %v5956_v23 = vld [vmem:[#allocation2 + $0x34] sm:$0xf] }
 0x108   : > { %v5080_v57 = vcombine.low %v7089_v58, %v7103_v56  ;;  %v1305_v29 = vsel %vm6370_vm7, %v1303_v26, %v1304_v34  ;;  %v1658_v7 = vshll.u32 %v1364_v30, 16  ;;  %v1668_v42 = vshrl.u32 %v7093_v16, 16 }
 0x109   : > { %v5040_v15 = vcombine.low %v1302_v60, %v1305_v29  ;;  %v1451_v19 = vsel %vm6378_vm8, %v1446_v14, %v1450_v10  ;;  %v1455_v21 = vor.u32 %v1454_v1, %v1450_v10  ;;  %v1460_v25 = vrot.slane %v1458_v39, 5 }
 0x10a   : > { %4114 = vmatmul.mubr.bf16.vlgmr.msra.gmra.mrb[48].mxu0 %v7034_v53  ;;  %v7113_v33 = vrot.slane %v1655_v49, 4  ;;  %v7115_v62 = vrot.slane %v1658_v7, 5  ;;  %v5057_v36 = vcombine.low %v1364_v30, %v7093_v16  ;;  %v4969_v58 = vrot.slane %v1777_v28, 9  ;;  %v5925_v28 = vld [vmem:[#allocation6 + $0x210] sm:$0xff]   ;;  %v7132_v49 = vld [vmem:[#allocation2 + $0xa0] sm:$0xf] }
 0x10b   : > { %5696 = vmatpush3.bf16.msra.mxu0 %v6726_v41  ;;  %4121 = vmatprep.mubr.bf16.mxu0 %v5079_v43  ;;  %v1456_v34 = vrot.slane %v1455_v21, 4  ;;  %v1861_v0 = vrot.slane %v5956_v23, 5  ;;  %v1864_v60 = vrot.slane %v7099_v13, 5  ;;  %v4961_v26 = vrot.slane %v1173_v61, 9  ;;  %v1378_v7 = vld [vmem:[#allocation2 + $0x44] sm:$0x1] }
 0x10c   : > { %4033 = vmatmul.mubr.bf16.gmra.mrb[56].mxu1 %v5040_v15  ;;  %5697 = vmatprep.subr.bf16.mxu0 %v5920_v54  ;;  %v1308_v53 = vrot.slane %v7015_v44, 5  ;;  %v1311_v1 = vrot.slane %v6988_v48, 5  ;;  %v1469_v14 = vor.u32 %v6722_v6, %v6714_v38  ;;  %v1472_v30 = vshll.u32 %v5956_v23, 16  ;;  %v1366_v44 = vld [vmem:[#allocation2 + $0x9c] sm:$0xf] }
 0x10d   : > { %v1461_v41 = vsel %vm6378_vm8, %v1456_v34, %v1460_v25  ;;  %4040 = vmatprep.mubr.bf16.mxu1 %v5057_v36  ;;  %v7128_v43 = vsel %vm6370_vm7, %v4969_v58, %v1861_v0  ;;  %v1863_v56 = vrot.slane %v1861_v0, 4  ;;  %v8567_v10 = vshrl.u32 %v6694_v5, 16  ;;  %v1778_v61 = vld [vmem:[#allocation2 + $0x3c] sm:$0xe]  ;;  %v1174_v15 = vld [vmem:[#allocation2 + $0x90] sm:$0xe] }
 0x10e   : > { %v7134_v48 = vcombine.low %v1451_v19, %v1461_v41  ;;  %v1309_v38 = vsel %vm6370_vm7, %v4961_v26, %v1308_v53  ;;  %v1310_v6 = vrot.slane %v1308_v53, 4  ;;  %v1470_v29 = vrot.slane %v1469_v14, 4  ;;  %v5930_v0 = vld [vmem:[#allocation6 + $0x218] sm:$0xff]  }
 0x10f   : > { %v1478_v39 = vrot.slane %v8567_v10, 4  ;;  %5698 = vmatpush3.bf16.msra.mxu0 %v5920_v54  ;;  %v7140_v21 = vsel %vm6370_vm7, %v1863_v56, %v1864_v60  ;;  %v1474_v5 = vrot.slane %v1472_v30, 5  ;;  %v1482_v25 = vshll.u32 %v7099_v13, 16 }
 0x110   : > { %v1679_v36 = vshrl.u32 %v1366_v44, 16  ;;  %v5081_v19 = vcombine.low %v7128_v43, %v7140_v21  ;;  %v1312_v58 = vsel %vm6370_vm7, %v1310_v6, %v1311_v1  ;;  %v1682_v34 = vshll.u32 %v1366_v44, 16  ;;  %5699 = vmatprep.subr.bf16.mxu0 %v5925_v28  ;;  %v5957_v6 = vld [vmem:[#allocation2 + $0x94] sm:$0xf]  ;;  %v5940_v43 = vld [vmem:[#allocation6 + $0x230] sm:$0xff]  }
 0x111   : > { %v5041_v54 = vcombine.low %v1309_v38, %v1312_v58  ;;  %v1475_v60 = vsel %vm6378_vm8, %v1470_v29, %v1474_v5  ;;  %v1479_v26 = vor.u32 %v1478_v39, %v1474_v5  ;;  %v1484_v53 = vrot.slane %v1482_v25, 5  ;;  %v5958_v29 = vld [vmem:[#allocation2 + $0x40] sm:$0xf]  ;;  %v1368_v58 = vld [vmem:[#allocation2 + $0xa8] sm:$0xf] }
 0x112   : > { %4122 = vmatmul.mubr.bf16.gmra.mrb[52].mxu0 %v7095_v63  ;;  %v7151_v13 = vrot.slane %v1679_v36, 4  ;;  %v7153_v14 = vrot.slane %v1682_v34, 5  ;;  %v5058_v30 = vcombine.low %v1366_v44, %v7132_v49  ;;  %v4970_v1 = vrot.slane %v1778_v61, 9  ;;  %v5934_v44 = vld [vmem:[#allocation6 + $0x220] sm:$0xff]  }
 0x113   : > { %4129 = vmatprep.mubr.bf16.mxu0 %v5080_v57  ;;  %v1480_v41 = vrot.slane %v1479_v26, 4  ;;  %v1868_v56 = vrot.slane %v6759_v59, 5  ;;  %v1871_v10 = vrot.slane %v1378_v7, 5  ;;  %v4962_v38 = vrot.slane %v1174_v15, 9  ;;  %5700 = vmatpush3.bf16.msra.mxu0 %v5925_v28  ;;  %v7173_v26 = vld [vmem:[#allocation2 + $0x50] sm:$0x1] }
 0x114   : > { %4041 = vmatmul.mubr.bf16.gmra.mrb[60].mxu1 %v5041_v54  ;;  %v1315_v39 = vrot.slane %v5957_v6, 5  ;;  %v1493_v63 = vor.u32 %v6836_v31, %v6806_v17  ;;  %v1496_v5 = vshll.u32 %v5958_v29, 16  ;;  %v8568_v25 = vshrl.u32 %v6759_v59, 16  ;;  %5701 = vmatprep.subr.bf16.mxu0 %v5930_v0  ;;  %v7171_v54 = vld [vmem:[#allocation2 + $0xac] sm:$0xf] }
 0x115   : > { %v1485_v57 = vsel %vm6378_vm8, %v1480_v41, %v1484_v53  ;;  %4048 = vmatprep.mubr.bf16.mxu1 %v5058_v30  ;;  %v7165_v28 = vsel %vm6370_vm7, %v4970_v1, %v1868_v56  ;;  %v1870_v61 = vrot.slane %v1868_v56, 4  ;;  %v1506_v15 = vshll.u32 %v1378_v7, 16  ;;  %v1779_v7 = vld [vmem:[#allocation2 + $0x48] sm:$0xe] }
 0x116   : > { %v1502_v36 = vrot.slane %v8568_v25, 4  ;;  %v7167_v34 = vcombine.low %v1475_v60, %v1485_v57  ;;  %v1316_v17 = vsel %vm6370_vm7, %v4962_v38, %v1315_v39  ;;  %v1317_v59 = vrot.slane %v1315_v39, 4 }
 0x117   : > { %v1494_v31 = vrot.slane %v1493_v63, 4  ;;  %v7177_v53 = vsel %vm6370_vm7, %v1870_v61, %v1871_v10  ;;  %v1498_v30 = vrot.slane %v1496_v5, 5  ;;  %v1508_v1 = vrot.slane %v1506_v15, 5  ;;  %5702 = vmatpush3.bf16.msra.mxu0 %v5930_v0  ;;  %v1175_v63 = vld [vmem:[#allocation2 + $0x9c] sm:$0xe]  ;;  %v5937_v10 = vld [vmem:[#allocation6 + $0x228] sm:$0xff]  }
 0x118   : > { %v1703_v41 = vshrl.u32 %v1368_v58, 16  ;;  %v5082_v60 = vcombine.low %v7165_v28, %v7177_v53  ;;  %v8569_v56 = vrot.slane %v6404_v22, 5  ;;  %v1706_v6 = vshll.u32 %v1368_v58, 16  ;;  %5703 = vmatprep.subr.bf16.mxu0 %v5934_v44 }
 0x119   : > { %v1499_v5 = vsel %vm6378_vm8, %v1494_v31, %v1498_v30  ;;  %v1503_v25 = vor.u32 %v1502_v36, %v1498_v30  ;;  %v5059_v22 = vcombine.low %v1368_v58, %v7171_v54  ;;  %v4971_v61 = vrot.slane %v1779_v7, 9  ;;  %v5959_v36 = vld [vmem:[#allocation2 + $0xa0] sm:$0xf] }
 0x11a   : > { %v1319_v38 = vsel %vm6370_vm7, %v1317_v59, %v8569_v56  ;;  %v7188_v0 = vrot.slane %v1703_v41, 4  ;;  %4130 = vmatmul.mubr.bf16.gmra.mrb[56].mxu0 %v7134_v48  ;;  %v7191_v57 = vrot.slane %v1706_v6, 5  ;;  %v1875_v15 = vrot.slane %v6846_v32, 5  ;;  %v5960_v41 = vld [vmem:[#allocation2 + $0xa4] sm:$0x1] }
 0x11b   : > { %v5042_v29 = vcombine.low %v1316_v17, %v1319_v38  ;;  %4137 = vmatprep.mubr.bf16.mxu0 %v5081_v19  ;;  %v1504_v17 = vrot.slane %v1503_v25, 4  ;;  %v1878_v59 = vrot.slane %v7173_v26, 5  ;;  %v4963_v31 = vrot.slane %v1175_v63, 9  ;;  %5704 = vmatpush3.bf16.msra.mxu0 %v5934_v44  ;;  %v1370_v25 = vld [vmem:[#allocation2 + $0xb4] sm:$0xf] }
 0x11c   : > { %v1322_v30 = vrot.slane %v5959_v36, 5  ;;  %v7201_v48 = vsel %vm6370_vm7, %v4971_v61, %v1875_v15  ;;  %v1877_v58 = vrot.slane %v1875_v15, 4  ;;  %v1325_v7 = vrot.slane %v5960_v41, 5  ;;  %5705 = vmatprep.subr.bf16.mxu0 %v5937_v10  ;;  %v7218_v61 = vld [vmem:[#allocation2 + $0xb8] sm:$0xf]  ;;  %v5943_v41 = vld [vmem:[#allocation6 + $0x238] sm:$0xff]  }
 0x11d   : > { %4049 = vmatmul.mubr.bf16.gmra.mrb[64].mxu1 %v5042_v29  ;;  %v1517_v56 = vor.u32 %v6862_v47, %v6856_v24  ;;  %v1509_v21 = vsel %vm6378_vm8, %v1504_v17, %v1508_v1  ;;  %v1520_v38 = vshll.u32 %v6846_v32, 16  ;;  %v8570_v24 = vshrl.u32 %v6846_v32, 16  ;;  %v1380_v17 = vld [vmem:[#allocation2 + $0x5c] sm:$0x1] }
 0x11e   : > { %4056 = vmatprep.mubr.bf16.mxu1 %v5059_v22  ;;  %v1323_v19 = vsel %vm6370_vm7, %v4963_v31, %v1322_v30  ;;  %v1324_v44 = vrot.slane %v1322_v30, 4  ;;  %v7210_v6 = vcombine.low %v1499_v5, %v1509_v21  ;;  %v7214_v63 = vsel %vm6370_vm7, %v1877_v58, %v1878_v59  ;;  %v1780_v31 = vld [vmem:[#allocation2 + $0x54] sm:$0xe]  ;;  %v1176_v58 = vld [vmem:[#allocation2 + $0xa8] sm:$0xe] }
 0x11f   : > { %v1518_v29 = vrot.slane %v1517_v56, 4  ;;  %v1526_v47 = vrot.slane %v8570_v24, 4  ;;  %v5083_v1 = vcombine.low %v7201_v48, %v7214_v63  ;;  %v1522_v15 = vrot.slane %v1520_v38, 5  ;;  %5706 = vmatpush3.bf16.msra.mxu0 %v5937_v10  ;;  %v1782_v48 = vld [vmem:[#allocation2 + $0x6c] sm:$0xe] }
 0x120   : > { %v1326_v22 = vsel %vm6370_vm7, %v1324_v44, %v1325_v7  ;;  %v1530_v5 = vshll.u32 %v7173_v26, 16  ;;  %v1727_v36 = vshrl.u32 %v1370_v25, 16  ;;  %v1730_v30 = vshll.u32 %v1370_v25, 16  ;;  %5707 = vmatprep.subr.bf16.mxu0 %v5940_v43 }
 0x121   : > { %v5043_v59 = vcombine.low %v1323_v19, %v1326_v22  ;;  %v1523_v56 = vsel %vm6378_vm8, %v1518_v29, %v1522_v15  ;;  %v1527_v21 = vor.u32 %v1526_v47, %v1522_v15  ;;  %v5060_v7 = vcombine.low %v1370_v25, %v7218_v61  ;;  %v5961_v47 = vld [vmem:[#allocation2 + $0xac] sm:$0xf] }
 0x122   : > { %v1532_v24 = vrot.slane %v1530_v5, 5  ;;  %4138 = vmatmul.mubr.bf16.gmra.mrb[60].mxu0 %v7167_v34  ;;  %v7230_v26 = vrot.slane %v1727_v36, 4  ;;  %v7232_v10 = vrot.slane %v1730_v30, 5  ;;  %v4972_v19 = vrot.slane %v1780_v31, 9  ;;  %v5962_v5 = vld [vmem:[#allocation2 + $0xb0] sm:$0x1] }
 0x123   : > { %v1882_v44 = vrot.slane %v6895_v4, 5  ;;  %4145 = vmatprep.mubr.bf16.mxu0 %v5082_v60  ;;  %v1528_v38 = vrot.slane %v1527_v21, 4  ;;  %v1885_v22 = vrot.slane %v1380_v17, 5  ;;  %v4964_v29 = vrot.slane %v1176_v58, 9  ;;  %5708 = vmatpush3.bf16.msra.mxu0 %v5940_v43  ;;  %v278_v36 = vld [vmem:[%s6339_s8 + $0xf0] sm:$0xff]  ;;  %v279_v30 = vld [vmem:[%s6339_s8 + $0xf8] sm:$0xff] }
 0x124   : > { %v1329_v25 = vrot.slane %v5961_v47, 5  ;;  %v1332_v31 = vrot.slane %v5962_v5, 5  ;;  %v1541_v28 = vor.u32 %v6903_v51, %v6900_v3  ;;  %5709 = vmatprep.subr.bf16.mxu0 %v5943_v41  ;;  %v1781_v58 = vld [vmem:[#allocation2 + $0x60] sm:$0xe]  ;;  %v8571_v51 = vshrl.u32 %v6895_v4, 16 }
 0x125   : > { %4057 = vmatmul.mubr.bf16.gmra.mrb[68].mxu1 %v5043_v59  ;;  %v7240_v34 = vsel %vm6370_vm7, %v4972_v19, %v1882_v44  ;;  %v1884_v15 = vrot.slane %v1882_v44, 4  ;;  %v1533_v53 = vsel %vm6378_vm8, %v1528_v38, %v1532_v24  ;;  %v1544_v59 = vshll.u32 %v6895_v4, 16  ;;  %v1381_v24 = vld [vmem:[#allocation2 + $0x68] sm:$0x1] }
 0x126   : > { %4064 = vmatprep.mubr.bf16.mxu1 %v5060_v7  ;;  %v1330_v60 = vsel %vm6370_vm7, %v4964_v29, %v1329_v25  ;;  %v1331_v43 = vrot.slane %v1329_v25, 4  ;;  %v5067_v21 = vcombine.low %v1523_v56, %v1533_v53  ;;  %v1542_v3 = vrot.slane %v1541_v28, 4 }
 0x127   : > { %v7253_v19 = vsel %vm6370_vm7, %v1884_v15, %v1885_v22  ;;  %v1550_v44 = vrot.slane %v8571_v51, 4  ;;  %v1546_v29 = vrot.slane %v1544_v59, 5  ;;  %v1554_v47 = vshll.u32 %v1380_v17, 16  ;;  %5710 = vmatpush3.bf16.msra.mxu0 %v5943_v41  ;;  %v1177_v15 = vld [vmem:[#allocation2 + $0xb4] sm:$0xe] }
 0x128   : > { %v5084_v7 = vcombine.low %v7240_v34, %v7253_v19  ;;  %v1333_v38 = vsel %vm6370_vm7, %v1331_v43, %v1332_v31  ;;  %v295_v56 = vpack.c.bf16 %v279_v30, %v278_v36  ;;  %v4973_v5 = vrot.slane %v1781_v58, 9  ;;  %v5963_v43 = vld [vmem:[#allocation2 + $0xb8] sm:$0xf]  ;;  %v5964_v36 = vld [vmem:[#allocation2 + $0xbc] sm:$0x1] }
 0x129   : > { %v5044_v25 = vcombine.low %v1330_v60, %v1333_v38  ;;  %v1889_v22 = vrot.slane %v6934_v12, 5  ;;  %v1547_v4 = vsel %vm6378_vm8, %v1542_v3, %v1546_v29  ;;  %v1551_v28 = vor.u32 %v1550_v44, %v1546_v29 }
 0x12a   : > { %v1556_v53 = vrot.slane %v1554_v47, 5  ;;  %v1892_v51 = vrot.slane %v1381_v24, 5  ;;  %4146 = vmatmul.mubr.bf16.gmra.mrb[64].mxu0 %v7210_v6  ;;  %v409_v34 = vshrl.u32 %v295_v56, 16  ;;  %v412_v19 = vshll.u32 %v295_v56, 16 }
 0x12b   : > { %v7267_v17 = vsel %vm6370_vm7, %v4973_v5, %v1889_v22  ;;  %v1891_v41 = vrot.slane %v1889_v22, 4  ;;  %4153 = vmatprep.mubr.bf16.mxu0 %v5083_v1  ;;  %v1552_v31 = vrot.slane %v1551_v28, 4  ;;  %v4965_v60 = vrot.slane %v1177_v15, 9 }
 0x12c   : > { %v1336_v59 = vrot.slane %v5963_v43, 5  ;;  %v1339_v30 = vrot.slane %v5964_v36, 5  ;;  %v7272_v58 = vrot.slane %v409_v34, 7  ;;  %v1565_v3 = vor.u32 %v6945_v50, %v6936_v46  ;;  %v1382_v46 = vld [vmem:[#allocation2 + $0x74] sm:$0x1] }
 0x12d   : > { %4065 = vmatmul.mubr.bf16.gmra.mrb[72].mxu1 %v5044_v25  ;;  %v7276_v6 = vsel %vm6370_vm7, %v1891_v41, %v1892_v51  ;;  %v1568_v44 = vshll.u32 %v6934_v12, 16  ;;  %v1557_v63 = vsel %vm6378_vm8, %v1552_v31, %v1556_v53  ;;  %v8572_v22 = vshrl.u32 %v6934_v12, 16  ;;  %v7296_v51 = vld [vmem:[#allocation2 + $0x18] sm:$0xf]  ;;  %v7305_v31 = vld [vmem:[#allocation2 + $0x1c] sm:$0xf] }
 0x12e   : > { %v5085_v1 = vcombine.low %v7267_v17, %v7276_v6  ;;  %v7287_v38 = vsel %vm6370_vm7, %v4965_v60, %v1336_v59  ;;  %v1338_v29 = vrot.slane %v1336_v59, 4  ;;  %v5068_v47 = vcombine.low %v1547_v4, %v1557_v63  ;;  %v7307_v59 = vld [vmem:[#allocation2 + $0x20] sm:$0x1] }
 0x12f   : > { %v414_v25 = vor.u32 %v412_v19, %v7272_v58  ;;  %v1566_v56 = vrot.slane %v1565_v3, 4  ;;  %v1570_v5 = vrot.slane %v1568_v44, 5  ;;  %v1574_v15 = vrot.slane %v8572_v22, 4  ;;  %v8573_v22 = vld [vmem:[#allocation16_spill] sm:$0xff] }
 0x130   : > { %v7292_v50 = vsel %vm6370_vm7, %v1338_v29, %v1339_v30  ;;  %v1578_v28 = vshll.u32 %v1381_v24, 16  ;;  %v4974_v53 = vrot.slane %v1782_v48, 9  ;;  %v1896_v41 = vrot.slane %v6971_v52, 5 }
 0x131   : > { %v468_v34 = vsel %vm6349_vm2, 0, %v414_v25  ;;  %v5045_v4 = vcombine.low %v7287_v38, %v7292_v50  ;;  %v1571_v19 = vsel %vm6378_vm8, %v1566_v56, %v1570_v5  ;;  %v1575_v43 = vor.u32 %v1574_v15, %v1570_v5 }
 0x132   : > { %v4947_v60 = vcombine.low %v468_v34, %v468_v34  ;;  %v4948_v12 = vcombine.high %v468_v34, %v468_v34  ;;  %v1580_v24 = vrot.slane %v1578_v28, 5  ;;  %4154 = vmatmul.mubr.bf16.gmra.mrb[68].mxu0 %v5067_v21  ;;  %v7311_v36 = vsel %vm6370_vm7, %v4974_v53, %v1896_v41 }
 0x133   : > { %v1898_v30 = vrot.slane %v1896_v41, 4  ;;  %v1899_v3 = vrot.slane %v1382_v46, 5  ;;  %v2000_v44 = vshrl.u32 %v7296_v51, 16  ;;  %4161 = vmatprep.mubr.bf16.mxu0 %v5084_v7  ;;  %v1576_v48 = vrot.slane %v1575_v43, 4  ;;  %v1783_v41 = vld [vmem:[#allocation2 + $0x78] sm:$0xe] }
 0x134   : > { %721 = vst [vmem:[#allocation2 + $0xc0] sm:$0xf] %v4947_v60  ;;  %722 = vst [vmem:[#allocation2 + $0xc4] sm:$0xf] %v4948_v12  ;;  %v2003_v63 = vshll.u32 %v7296_v51, 16  ;;  %v2009_v29 = vshll.u32 %v7305_v31, 16  ;;  %v1589_v15 = vor.u32 %v8573_v22, %v6982_v35 }
 0x135   : > { %v2013_v25 = vshrl.u32 %v7305_v31, 16  ;;  %v7319_v21 = vsel %vm6370_vm7, %v1898_v30, %v1899_v3  ;;  %v2002_v56 = vrot.slane %v2000_v44, 4  ;;  %v2019_v5 = vshll.u32 %v7307_v59, 16  ;;  %v7328_v3 = vld [vmem:[#allocation2 + $0x80] sm:$0x1] }
 0x136   : > { %v1581_v7 = vsel %vm6378_vm8, %v1576_v48, %v1580_v24  ;;  %v5086_v28 = vcombine.low %v7311_v36, %v7319_v21  ;;  %v2005_v53 = vrot.slane %v2003_v63, 5  ;;  %v2011_v34 = vrot.slane %v2009_v29, 5 }
 0x137   : > { %v5069_v60 = vcombine.low %v1571_v19, %v1581_v7  ;;  %v2015_v12 = vrot.slane %v2013_v25, 4  ;;  %v2021_v43 = vrot.slane %v2019_v5, 5  ;;  %v1590_v30 = vrot.slane %v1589_v15, 4 }
 0x138   : > { %v2006_v44 = vor.u32 %v2005_v53, %v2002_v56  ;;  %v1592_v32 = vshll.u32 %v6971_v52, 16  ;;  %v8574_v35 = vshrl.u32 %v6971_v52, 16  ;;  %v1602_v39 = vshll.u32 %v1382_v46, 16 }
 0x139   : > { %v2016_v24 = vor.u32 %v2015_v12, %v2011_v34  ;;  %v5094_v48 = vcombine.low %v7296_v51, %v7305_v31  ;;  %v4975_v63 = vrot.slane %v1783_v41, 9  ;;  %v1903_v29 = vrot.slane %v7032_v8, 5 }
 0x13a   : > { %v1598_v22 = vrot.slane %v8574_v35, 4  ;;  %v2007_v19 = vrot.slane %v2006_v44, 4  ;;  %v1594_v25 = vrot.slane %v1592_v32, 5  ;;  %v1604_v5 = vrot.slane %v1602_v39, 5  ;;  %4162 = vmatmul.mubr.bf16.gmra.mrb[72].mxu0 %v5068_v47  ;;  %v7350_v47 = vld [vmem:[#allocation2 + $0x24] sm:$0xf] }
 0x13b   : > { %v1906_v15 = vrot.slane %v7328_v3, 5  ;;  %v1372_v56 = vld [vmem:[#allocation2 + $0xc0] sm:$0xf]  ;;  %v7337_v7 = vld [vmem:[#allocation2 + $0xc4] sm:$0xf]  ;;  %v2017_v53 = vrot.slane %v2016_v24, 4  ;;  %v7341_v52 = vsel %vm6370_vm7, %v4975_v63, %v1903_v29  ;;  %v1613_v41 = vor.u32 %v7040_v11, %v7037_v40  ;;  %4169 = vmatprep.mubr.bf16.mxu0 %v5085_v1 }
 0x13c   : > { %v1905_v46 = vrot.slane %v1903_v29, 4  ;;  %v1751_v12 = vshrl.u32 %v1372_v56, 16  ;;  %v1754_v35 = vshll.u32 %v1372_v56, 16  ;;  %v5061_v39 = vcombine.low %v1372_v56, %v7337_v7  ;;  %v7358_v63 = vld [vmem:[#allocation2 + $0x28] sm:$0xf] }
 0x13d   : > { %v2012_v44 = vsel %vm6378_vm8, %v2007_v19, %v2011_v34  ;;  %v2022_v24 = vsel %vm6378_vm8, %v2017_v53, %v2021_v43  ;;  %v1595_v11 = vsel %vm6378_vm8, %v1590_v30, %v1594_v25  ;;  %v1599_v40 = vor.u32 %v1598_v22, %v1594_v25  ;;  %v7360_v29 = vld [vmem:[#allocation2 + $0x2c] sm:$0x1] }
 0x13e   : > { %v7362_v56 = vrot.slane %v1751_v12, 4  ;;  %v7364_v17 = vrot.slane %v1754_v35, 5  ;;  %4072 = vmatprep.mubr.bf16.mxu1 %v5061_v39  ;;  %v5110_v6 = vcombine.low %v2012_v44, %v2022_v24  ;;  %v7368_v1 = vsel %vm6370_vm7, %v1905_v46, %v1906_v15  ;;  %v1784_v12 = vld [vmem:[#allocation2 + $0x84] sm:$0xe] }
 0x13f   : > { %4073 = vmatmul.mubr.bf16.gmra.mrb[76].mxu1 %v5045_v4  ;;  %v1600_v34 = vrot.slane %v1599_v40, 4  ;;  %v5087_v43 = vcombine.low %v7341_v52, %v7368_v1  ;;  %v2024_v30 = vshrl.u32 %v7350_v47, 16  ;;  %v2027_v22 = vshll.u32 %v7350_v47, 16  ;;  %v7383_v40 = vld [vmem:[#allocation2 + $0x8c] sm:$0x1] }
 0x140   : > { %4274 = vmatprep.mubr.bf16.mxu1 %v5110_v6  ;;  %v2033_v19 = vshll.u32 %v7358_v63, 16  ;;  %v2037_v25 = vshrl.u32 %v7358_v63, 16  ;;  %v2043_v15 = vshll.u32 %v7360_v29, 16  ;;  %v1614_v46 = vrot.slane %v1613_v41, 4  ;;  %v7450_v1 = vld [vmem:[#allocation2 + $0x40] sm:$0xf] }
 0x141   : > { %v1605_v38 = vsel %vm6378_vm8, %v1600_v34, %v1604_v5  ;;  %v2026_v50 = vrot.slane %v2024_v30, 4  ;;  %v2029_v4 = vrot.slane %v2027_v22, 5  ;;  %v1616_v32 = vshll.u32 %v7032_v8, 16  ;;  %v7389_v5 = vld [vmem:[#allocation2 + $0x30] sm:$0xf] }
 0x142   : > { %v5070_v35 = vcombine.low %v1595_v11, %v1605_v38  ;;  %v2035_v39 = vrot.slane %v2033_v19, 5  ;;  %v2039_v44 = vrot.slane %v2037_v25, 4  ;;  %v2045_v24 = vrot.slane %v2043_v15, 5  ;;  %4170 = vmatmul.mubr.bf16.gmra.mrb[76].mxu0 %v5069_v60 }
 0x143   : > { %v2030_v6 = vor.u32 %v2029_v4, %v2026_v50  ;;  %v1622_v53 = vrot.slane %v1620_v55, 4  ;;  %v1626_v23 = vshll.u32 %v7328_v3, 16  ;;  %4177 = vmatprep.mubr.bf16.mxu0 %v5086_v28  ;;  %v5095_v11 = vcombine.low %v7350_v47, %v7358_v63  ;;  %v7398_v55 = vld [vmem:[#allocation2 + $0x34] sm:$0xf]  ;;  %v7412_v47 = vld [vmem:[#allocation2 + $0x38] sm:$0x1] }
 0x144   : > { %v2040_v41 = vor.u32 %v2039_v44, %v2035_v39  ;;  %v4976_v34 = vrot.slane %v1784_v12, 9  ;;  %v1910_v60 = vrot.slane %v7063_v20, 5  ;;  %v1618_v22 = vrot.slane %v1616_v32, 5 }
 0x145   : > { %v2031_v30 = vrot.slane %v2030_v6, 4  ;;  %v1628_v19 = vrot.slane %v1626_v23, 5  ;;  %v1913_v8 = vrot.slane %v7383_v40, 5  ;;  %v2048_v21 = vshrl.u32 %v7389_v5, 16 }
 0x146   : > { %v2041_v3 = vrot.slane %v2040_v41, 4  ;;  %v7402_v25 = vsel %vm6370_vm7, %v4976_v34, %v1910_v60  ;;  %v1912_v36 = vrot.slane %v1910_v60, 4  ;;  %v1619_v23 = vsel %vm6378_vm8, %v1614_v46, %v1618_v22  ;;  %v7429_v60 = vld [vmem:[#allocation2 + $0x98] sm:$0x1] }
 0x147   : > { %4275 = vmatmul.mubr.bf16.vlgmr.msra.gmra.mrb[80].mxu1 %v5094_v48  ;;  %v2036_v28 = vsel %vm6378_vm8, %v2031_v30, %v2035_v39  ;;  %v1623_v32 = vor.u32 %v1622_v53, %v1618_v22  ;;  %v2051_v15 = vshll.u32 %v7389_v5, 16  ;;  %v2050_v4 = vrot.slane %v2048_v21, 4 }
 0x148   : > { %v2046_v38 = vsel %vm6378_vm8, %v2041_v3, %v2045_v24  ;;  %v1914_v50 = vsel %vm6370_vm7, %v1912_v36, %v1913_v8  ;;  %v2057_v51 = vshll.u32 %v7398_v55, 16  ;;  %v2061_v41 = vshrl.u32 %v7398_v55, 16  ;;  %v1785_v36 = vld [vmem:[#allocation2 + $0x90] sm:$0xe] }
 0x149   : > { %v5111_v12 = vcombine.low %v2036_v28, %v2046_v38  ;;  %v1624_v39 = vrot.slane %v1623_v32, 4  ;;  %v5088_v46 = vcombine.low %v7402_v25, %v1914_v50  ;;  %v2053_v53 = vrot.slane %v2051_v15, 5 }
 0x14a   : > { %v2059_v6 = vrot.slane %v2057_v51, 5  ;;  %v2067_v24 = vshll.u32 %v7412_v47, 16  ;;  %v1637_v34 = vor.u32 %v7076_v9, %v7074_v27  ;;  %4178 = vmatmul.mubr.bf16.gmra.mrb[80].mxu0 %v5070_v35  ;;  %v1640_v3 = vshll.u32 %v7063_v20, 16  ;;  %v7446_v20 = vld [vmem:[#allocation2 + $0x3c] sm:$0xf] }
 0x14b   : > { %4282 = vmatprep.mubr.bf16.mxu1 %v5111_v12  ;;  %v1629_v22 = vsel %vm6378_vm8, %v1624_v39, %v1628_v19  ;;  %v2054_v8 = vor.u32 %v2053_v53, %v2050_v4  ;;  %v1646_v25 = vrot.slane %v1644_v18, 4  ;;  %4185 = vmatprep.mubr.bf16.mxu0 %v5087_v43  ;;  %v2063_v9 = vrot.slane %v2061_v41, 4 }
 0x14c   : > { %v5071_v27 = vcombine.low %v1619_v23, %v1629_v22  ;;  %v2069_v35 = vrot.slane %v2067_v24, 5  ;;  %v1638_v28 = vrot.slane %v1637_v34, 4  ;;  %v1642_v15 = vrot.slane %v1640_v3, 5 }
 0x14d   : > { %v2055_v32 = vrot.slane %v2054_v8, 4  ;;  %v1650_v19 = vshll.u32 %v7383_v40, 16  ;;  %v5096_v38 = vcombine.low %v7389_v5, %v7398_v55  ;;  %v2064_v18 = vor.u32 %v2063_v9, %v2059_v6  ;;  %v7456_v5 = vld [vmem:[#allocation2 + $0x44] sm:$0x1] }
 0x14e   : > { %v4977_v50 = vrot.slane %v1785_v36, 9  ;;  %v1917_v4 = vrot.slane %v7093_v16, 5  ;;  %v1920_v52 = vrot.slane %v7429_v60, 5  ;;  %v1643_v40 = vsel %vm6378_vm8, %v1638_v28, %v1642_v15  ;;  %8575 = vst [vmem:[#allocation16_spill] sm:$0xff] %v7456_v5 }
 0x14f   : > { %v7420_v48 = vpop.f32.mrb[0].mxu0  ;;  %4283 = vmatmul.mubr.bf16.gmra.mrb[84].mxu1 %v5095_v11  ;;  %v2060_v43 = vsel %vm6378_vm8, %v2055_v32, %v2059_v6  ;;  %v1647_v23 = vor.u32 %v1646_v25, %v1642_v15  ;;  %v1652_v51 = vrot.slane %v1650_v19, 5  ;;  %v2065_v12 = vrot.slane %v2064_v18, 4  ;;  %v1786_v15 = vld [vmem:[#allocation2 + $0x9c] sm:$0xe] }
 0x150   : > { %v7423_v44 = vpop.f32.mrb[1].mxu0  ;;  %v1918_v39 = vsel %vm6370_vm7, %v4977_v50, %v1917_v4  ;;  %v1919_v53 = vrot.slane %v1917_v4, 4  ;;  %v2072_v41 = vshrl.u32 %v7446_v20, 16  ;;  %v2075_v11 = vshll.u32 %v7446_v20, 16 }
 0x151   : > { %v7431_v30 = vpop.f32.mrb[2].mxu0  ;;  %v1648_v24 = vrot.slane %v1647_v23, 4  ;;  %v2081_v34 = vshll.u32 %v7450_v1, 16  ;;  %v2085_v6 = vshrl.u32 %v7450_v1, 16  ;;  %v2070_v22 = vsel %vm6378_vm8, %v2065_v12, %v2069_v35 }
 0x152   : > { %v7438_v21 = vpop.f32.mrb[3].mxu0  ;;  %v1921_v8 = vsel %vm6370_vm7, %v1919_v53, %v1920_v52  ;;  %v2074_v3 = vrot.slane %v2072_v41, 4  ;;  %v2091_v25 = vshll.u32 %v7456_v5, 16  ;;  %4186 = vmatmul.mubr.bf16.gmra.mrb[84].mxu0 %v5071_v27  ;;  %v5112_v36 = vcombine.low %v2060_v43, %v2070_v22  ;;  %v7476_v43 = vld [vmem:[#allocation2 + $0xa4] sm:$0x1] }
 0x153   : > { %v1653_v9 = vsel %vm6378_vm8, %v1648_v24, %v1652_v51  ;;  %v5089_v28 = vcombine.low %v1918_v39, %v1921_v8  ;;  %v2077_v32 = vrot.slane %v2075_v11, 5  ;;  %4193 = vmatprep.mubr.bf16.mxu0 %v5088_v46  ;;  %v2083_v18 = vrot.slane %v2081_v34, 5  ;;  %v7478_v51 = vld [vmem:[#allocation2 + $0x48] sm:$0xf]  ;;  %v7483_v53 = vld [vmem:[#allocation2 + $0x4c] sm:$0xf] }
 0x154   : > { %v5072_v19 = vcombine.low %v1643_v40, %v1653_v9  ;;  %v2087_v50 = vrot.slane %v2085_v6, 4  ;;  %v2093_v4 = vrot.slane %v2091_v25, 5  ;;  %4290 = vmatprep.mubr.bf16.mxu1 %v5112_v36  ;;  %v1661_v52 = vor.u32 %v7115_v62, %v7113_v33  ;;  %8576 = vst [vmem:[#allocation17_spill] sm:$0xff] %v7483_v53 }
 0x155   : > { %v2078_v35 = vor.u32 %v2077_v32, %v2074_v3  ;;  %v1664_v23 = vshll.u32 %v7093_v16, 16  ;;  %v1670_v27 = vrot.slane %v1668_v42, 4  ;;  %v1674_v46 = vshll.u32 %v7429_v60, 16  ;;  %v7498_v3 = vld [vmem:[#allocation2 + $0x50] sm:$0x1] }
 0x156   : > { %v2088_v12 = vor.u32 %v2087_v50, %v2083_v18  ;;  %v5097_v40 = vcombine.low %v7446_v20, %v7450_v1  ;;  %v4978_v39 = vrot.slane %v1786_v15, 9  ;;  %v1662_v62 = vrot.slane %v1661_v52, 4  ;;  %8577 = vst [vmem:[#allocation18_spill] sm:$0xff] %v7498_v3 }
 0x157   : > { %4291 = vmatmul.mubr.bf16.gmra.mrb[88].mxu1 %v5096_v38  ;;  %v2079_v33 = vrot.slane %v2078_v35, 4  ;;  %v1666_v41 = vrot.slane %v1664_v23, 5  ;;  %v1924_v16 = vrot.slane %v7132_v49, 5  ;;  %v7486_v42 = vpop.f32.mrb[0].mxu1  ;;  %v1676_v11 = vrot.slane %v1674_v46, 5 }
 0x158   : > { %v2089_v24 = vrot.slane %v2088_v12, 4  ;;  %v1927_v34 = vrot.slane %v7476_v43, 5  ;;  %v2096_v60 = vshrl.u32 %v7478_v51, 16  ;;  %v7490_v6 = vpop.f32.mrb[1].mxu1  ;;  %v2099_v15 = vshll.u32 %v7478_v51, 16 }
 0x159   : > { %v2084_v20 = vsel %vm6378_vm8, %v2079_v33, %v2083_v18  ;;  %v1667_v38 = vsel %vm6378_vm8, %v1662_v62, %v1666_v41  ;;  %v1671_v22 = vor.u32 %v1670_v27, %v1666_v41  ;;  %v1925_v8 = vsel %vm6370_vm7, %v4978_v39, %v1924_v16  ;;  %v7500_v25 = vpop.f32.mrb[2].mxu1  ;;  %v1787_v41 = vld [vmem:[#allocation2 + $0xa8] sm:$0xe] }
 0x15a   : > { %v2094_v36 = vsel %vm6378_vm8, %v2089_v24, %v2093_v4  ;;  %v1926_v9 = vrot.slane %v1924_v16, 4  ;;  %v2098_v32 = vrot.slane %v2096_v60, 4  ;;  %v7505_v50 = vpop.f32.mrb[3].mxu1  ;;  %4194 = vmatmul.mubr.bf16.gmra.mrb[88].mxu0 %v5072_v19  ;;  %v2105_v52 = vshll.u32 %v7483_v53, 16 }
 0x15b   : > { %v5113_v18 = vcombine.low %v2084_v20, %v2094_v36  ;;  %v1672_v35 = vrot.slane %v1671_v22, 4  ;;  %v2109_v23 = vshrl.u32 %v7483_v53, 16  ;;  %4201 = vmatprep.mubr.bf16.mxu0 %v5089_v28  ;;  %v2101_v12 = vrot.slane %v2099_v15, 5  ;;  %v7516_v20 = vld [vmem:[#allocation2 + $0xb0] sm:$0x1] }
 0x15c   : > { %v1928_v27 = vsel %vm6370_vm7, %v1926_v9, %v1927_v34  ;;  %v2115_v4 = vshll.u32 %v7498_v3, 16  ;;  %v1685_v46 = vor.u32 %v7153_v14, %v7151_v13  ;;  %v2107_v33 = vrot.slane %v2105_v52, 5  ;;  %v7527_v15 = vld [vmem:[#allocation2 + $0x58] sm:$0xf]  ;;  %v1388_v3 = vld [vmem:[#allocation2 + $0xbc] sm:$0x1] }
 0x15d   : > { %4298 = vmatprep.mubr.bf16.mxu1 %v5113_v18  ;;  %v1677_v19 = vsel %vm6378_vm8, %v1672_v35, %v1676_v11  ;;  %v5090_v39 = vcombine.low %v1925_v8, %v1928_v27  ;;  %v2111_v62 = vrot.slane %v2109_v23, 4  ;;  %v2102_v24 = vor.u32 %v2101_v12, %v2098_v32  ;;  %v7522_v11 = vld [vmem:[#allocation2 + $0x54] sm:$0xf]  ;;  %8579 = vst [vmem:[#allocation19_spill] sm:$0xff] %v7527_v15 }
 0x15e   : > { %v5073_v16 = vcombine.low %v1667_v38, %v1677_v19  ;;  %v2117_v28 = vrot.slane %v2115_v4, 5  ;;  %v1686_v60 = vrot.slane %v1685_v46, 4  ;;  %v1688_v22 = vshll.u32 %v7132_v49, 16 }
 0x15f   : > { %4299 = vmatmul.mubr.bf16.gmra.mrb[92].mxu1 %v5097_v40  ;;  %v2112_v34 = vor.u32 %v2111_v62, %v2107_v33  ;;  %v8578_v13 = vshrl.u32 %v7132_v49, 16  ;;  %v1698_v36 = vshll.u32 %v7476_v43, 16  ;;  %v2103_v8 = vrot.slane %v2102_v24, 4  ;;  %v7530_v49 = vpop.f32.mrb[4].mxu0  ;;  %v7543_v62 = vld [vmem:[#allocation2 + $0x5c] sm:$0x1] }
 0x160   : > { %v5098_v38 = vcombine.low %v7478_v51, %v7483_v53  ;;  %v4979_v9 = vrot.slane %v1787_v41, 9  ;;  %v1931_v32 = vrot.slane %v7171_v54, 5  ;;  %v1690_v18 = vrot.slane %v1688_v22, 5  ;;  %v7537_v12 = vpop.f32.mrb[5].mxu0  ;;  %8580 = vst [vmem:[#allocation20_spill] sm:$0xff] %v7543_v62 }
 0x161   : > { %v1694_v14 = vrot.slane %v8578_v13, 4  ;;  %v2113_v40 = vrot.slane %v2112_v34, 4  ;;  %v1700_v35 = vrot.slane %v1698_v36, 5  ;;  %v1934_v52 = vrot.slane %v7516_v20, 5  ;;  %v7546_v41 = vpop.f32.mrb[4].mxu1  ;;  %v7548_v24 = vpop.f32.mrb[6].mxu0 }
 0x162   : > { %v2108_v43 = vsel %vm6378_vm8, %v2103_v8, %v2107_v33  ;;  %v1932_v23 = vsel %vm6370_vm7, %v4979_v9, %v1931_v32  ;;  %v1933_v27 = vrot.slane %v1931_v32, 4  ;;  %v2120_v51 = vshrl.u32 %v7522_v11, 16  ;;  %4202 = vmatmul.mubr.bf16.gmra.mrb[92].mxu0 %v5073_v16  ;;  %v7553_v13 = vpop.f32.mrb[5].mxu1 }
 0x163   : > { %v2118_v4 = vsel %vm6378_vm8, %v2113_v40, %v2117_v28  ;;  %v1691_v46 = vsel %vm6378_vm8, %v1686_v60, %v1690_v18  ;;  %v1695_v19 = vor.u32 %v1694_v14, %v1690_v18  ;;  %v2123_v33 = vshll.u32 %v7522_v11, 16  ;;  %4209 = vmatprep.mubr.bf16.mxu0 %v5090_v39  ;;  %v7555_v60 = vpop.f32.mrb[7].mxu0  ;;  %v7558_v32 = vpop.f32.mrb[6].mxu1 }
 0x164   : > { %v5114_v34 = vcombine.low %v2108_v43, %v2118_v4  ;;  %v1935_v16 = vsel %vm6370_vm7, %v1933_v27, %v1934_v52  ;;  %v2122_v22 = vrot.slane %v2120_v51, 4  ;;  %v2129_v28 = vshll.u32 %v7527_v15, 16  ;;  %v7564_v43 = vpop.f32.mrb[7].mxu1 }
 0x165   : > { %v1696_v14 = vrot.slane %v1695_v19, 4  ;;  %v5091_v36 = vcombine.low %v1932_v23, %v1935_v16  ;;  %v2125_v8 = vrot.slane %v2123_v33, 5  ;;  %v2133_v9 = vshrl.u32 %v7527_v15, 16  ;;  %v1788_v33 = vld [vmem:[#allocation2 + $0xb4] sm:$0xe] }
 0x166   : > { %4306 = vmatprep.mubr.bf16.mxu1 %v5114_v34  ;;  %v2131_v39 = vrot.slane %v2129_v28, 5  ;;  %v2139_v40 = vshll.u32 %v7543_v62, 16  ;;  %v1709_v18 = vor.u32 %v7191_v57, %v7188_v0  ;;  %v1712_v52 = vshll.u32 %v7171_v54, 16 }
 0x167   : > { %v1701_v27 = vsel %vm6378_vm8, %v1696_v14, %v1700_v35  ;;  %4307 = vmatmul.mubr.bf16.gmra.mrb[96].mxu1 %v5098_v38  ;;  %v2126_v23 = vor.u32 %v2125_v8, %v2122_v22  ;;  %v2135_v51 = vrot.slane %v2133_v9, 4  ;;  %v8581_v4 = vshrl.u32 %v7171_v54, 16  ;;  %v7573_v35 = vld [vmem:[#allocation2 + $0x60] sm:$0xf]  ;;  %v7578_v14 = vld [vmem:[#allocation2 + $0x64] sm:$0xf] }
 0x168   : > { %v5074_v34 = vcombine.low %v1691_v46, %v1701_v27  ;;  %v2141_v16 = vrot.slane %v2139_v40, 5  ;;  %v1710_v28 = vrot.slane %v1709_v18, 4  ;;  %v1714_v62 = vrot.slane %v1712_v52, 5 }
 0x169   : > { %v1718_v19 = vrot.slane %v8581_v4, 4  ;;  %v2127_v0 = vrot.slane %v2126_v23, 4  ;;  %v2136_v57 = vor.u32 %v2135_v51, %v2131_v39  ;;  %v1722_v53 = vshll.u32 %v7516_v20, 16  ;;  %v7585_v27 = vpop.f32.mrb[8].mxu0  ;;  %v7589_v51 = vld [vmem:[#allocation2 + $0x68] sm:$0x1] }
 0x16a   : > { %v5099_v5 = vcombine.low %v7522_v11, %v7527_v15  ;;  %v1715_v38 = vsel %vm6378_vm8, %v1710_v28, %v1714_v62  ;;  %v4980_v22 = vrot.slane %v1788_v33, 9  ;;  %v1938_v46 = vrot.slane %v7218_v61, 5  ;;  %4210 = vmatmul.mubr.bf16.gmra.mrb[96].mxu0 %v5074_v34  ;;  %v7594_v4 = vpop.f32.mrb[9].mxu0 }
 0x16b   : > { %v1719_v54 = vor.u32 %v1718_v19, %v1714_v62  ;;  %v2132_v8 = vsel %vm6378_vm8, %v2127_v0, %v2131_v39  ;;  %v2137_v9 = vrot.slane %v2136_v57, 4  ;;  %v1724_v20 = vrot.slane %v1722_v53, 5  ;;  %4217 = vmatprep.mubr.bf16.mxu0 %v5091_v36  ;;  %v7600_v0 = vpop.f32.mrb[10].mxu0 }
 0x16c   : > { %v1941_v40 = vrot.slane %v1388_v3, 5  ;;  %v1939_v18 = vsel %vm6370_vm7, %v4980_v22, %v1938_v46  ;;  %v1940_v52 = vrot.slane %v1938_v46, 4  ;;  %v2144_v62 = vshrl.u32 %v7573_v35, 16  ;;  %v7602_v46 = vpop.f32.mrb[11].mxu0 }
 0x16d   : > { %v1720_v11 = vrot.slane %v1719_v54, 4  ;;  %v2142_v23 = vsel %vm6378_vm8, %v2137_v9, %v2141_v16  ;;  %v2147_v39 = vshll.u32 %v7573_v35, 16  ;;  %v2153_v53 = vshll.u32 %v7578_v14, 16 }
 0x16e   : > { %v2157_v36 = vshrl.u32 %v7578_v14, 16  ;;  %v5115_v19 = vcombine.low %v2132_v8, %v2142_v23  ;;  %v1942_v34 = vsel %vm6370_vm7, %v1940_v52, %v1941_v40  ;;  %v2146_v28 = vrot.slane %v2144_v62, 4 }
 0x16f   : > { %v1725_v33 = vsel %vm6378_vm8, %v1720_v11, %v1724_v20  ;;  %v5092_v57 = vcombine.low %v1939_v18, %v1942_v34  ;;  %v2149_v54 = vrot.slane %v2147_v39, 5  ;;  %v2155_v22 = vrot.slane %v2153_v53, 5  ;;  %v7628_v34 = vld [vmem:[#allocation2 + $0x70] sm:$0xf] }
 0x170   : > { %v5075_v16 = vcombine.low %v1715_v38, %v1725_v33  ;;  %4314 = vmatprep.mubr.bf16.mxu1 %v5115_v19  ;;  %v2159_v9 = vrot.slane %v2157_v36, 4  ;;  %v2163_v15 = vshll.u32 %v7589_v51, 16  ;;  %v1733_v8 = vor.u32 %v7232_v10, %v7230_v26  ;;  %v1789_v36 = vld [vmem:[#allocation2 + $0xc0] sm:$0xe] }
 0x171   : > { %v1736_v20 = vshll.u32 %v7218_v61, 16  ;;  %4315 = vmatmul.mubr.bf16.gmra.mrb[100].mxu1 %v5099_v5  ;;  %v2150_v40 = vor.u32 %v2149_v54, %v2146_v28  ;;  %v8582_v11 = vshrl.u32 %v7218_v61, 16  ;;  %v1746_v38 = vshll.u32 %v1388_v3, 16 }
 0x172   : > { %v5100_v18 = vcombine.low %v7573_v35, %v7578_v14  ;;  %v2160_v62 = vor.u32 %v2159_v9, %v2155_v22  ;;  %v2165_v23 = vrot.slane %v2163_v15, 5  ;;  %v1734_v39 = vrot.slane %v1733_v8, 4  ;;  %4218 = vmatmul.mubr.bf16.gmra.mrb[100].mxu0 %v5075_v16  ;;  %v7626_v35 = vld [vmem:[#allocation2 + $0x6c] sm:$0xf] }
 0x173   : > { %v1742_v52 = vrot.slane %v8582_v11, 4  ;;  %v1738_v53 = vrot.slane %v1736_v20, 5  ;;  %v2151_v19 = vrot.slane %v2150_v40, 4  ;;  %v1748_v33 = vrot.slane %v1746_v38, 5  ;;  %4225 = vmatprep.mubr.bf16.mxu0 %v5092_v57 }
 0x174   : > { %v7614_v26 = vadd.f32 %v7423_v44, %v7420_v48  ;;  %v7618_v61 = vadd.f32 %v7490_v6, %v7486_v42  ;;  %v2161_v10 = vrot.slane %v2160_v62, 4  ;;  %v7624_v15 = vadd.f32 %v7438_v21, %v7431_v30 }
 0x175   : > { %v1739_v5 = vsel %vm6378_vm8, %v1734_v39, %v1738_v53  ;;  %v1743_v3 = vor.u32 %v1742_v52, %v1738_v53  ;;  %v2156_v48 = vsel %vm6378_vm8, %v2151_v19, %v2155_v22  ;;  %v7634_v44 = vadd.f32 %v7505_v50, %v7500_v25  ;;  %v7642_v57 = vpop.f32.mrb[8].mxu1  ;;  %v7644_v22 = vld [vmem:[#allocation2 + $0x74] sm:$0x1] }
 0x176   : > { %v485_v42 = vsel %vm6349_vm2, %v7272_v58, 0  ;;  %v4981_v6 = vrot.slane %v1789_v36, 9  ;;  %v2166_v30 = vsel %vm6378_vm8, %v2161_v10, %v2165_v23  ;;  %v1945_v16 = vrot.slane %v7337_v7, 5  ;;  %v7649_v58 = vpop.f32.mrb[9].mxu1 }
 0x177   : > { %v1744_v21 = vrot.slane %v1743_v3, 4  ;;  %v4949_v28 = vcombine.low %v485_v42, %v485_v42  ;;  %v5116_v54 = vcombine.low %v2156_v48, %v2166_v30  ;;  %v2168_v25 = vshrl.u32 %v7626_v35, 16  ;;  %v7658_v11 = vpop.f32.mrb[10].mxu1 }
 0x178   : > { %v2171_v50 = vshll.u32 %v7626_v35, 16  ;;  %v2177_v2 = vshll.u32 %v7628_v34, 16  ;;  %v7655_v8 = vsel %vm6370_vm7, %v4981_v6, %v1945_v16  ;;  %v1947_v20 = vrot.slane %v1945_v16, 4  ;;  %v7660_v39 = vpop.f32.mrb[11].mxu1 }
 0x179   : > { %v1749_v9 = vsel %vm6378_vm8, %v1744_v21, %v1748_v33  ;;  %723 = vst [vmem:[#allocation2 + $0xc8] sm:$0x1] %v4949_v28  ;;  %v2181_v40 = vshrl.u32 %v7628_v34, 16  ;;  %4322 = vmatprep.mubr.bf16.mxu1 %v5116_v54  ;;  %v2170_v38 = vrot.slane %v2168_v25, 4  ;;  %v2187_v36 = vshll.u32 %v7644_v22, 16 }
 0x17a   : > { %v5076_v52 = vcombine.low %v1739_v5, %v1749_v9  ;;  %v2173_v62 = vrot.slane %v2171_v50, 5  ;;  %v2179_v23 = vrot.slane %v2177_v2, 5  ;;  %4323 = vmatmul.mubr.bf16.gmra.mrb[104].mxu1 %v5100_v18  ;;  %v1757_v19 = vor.u32 %v7364_v17, %v7362_v56  ;;  %v7674_v18 = vld [vmem:[#allocation2 + $0x78] sm:$0xf]  ;;  %v7676_v17 = vld [vmem:[#allocation2 + $0x7c] sm:$0xf] }
 0x17b   : > { %v2183_v53 = vrot.slane %v2181_v40, 4  ;;  %v1760_v33 = vshll.u32 %v7337_v7, 16  ;;  %v8583_v3 = vshrl.u32 %v7337_v7, 16  ;;  %v5101_v5 = vcombine.low %v7626_v35, %v7628_v34  ;;  %v7694_v50 = vld [vmem:[#allocation2 + $0x80] sm:$0x1] }
 0x17c   : > { %4226 = vmatmul.mubr.bf16.gmra.mrb[104].mxu0 %v5076_v52  ;;  %v2174_v10 = vor.u32 %v2173_v62, %v2170_v38  ;;  %v7672_v42 = vadd.f32 %v7537_v12, %v7530_v49  ;;  %v2189_v30 = vrot.slane %v2187_v36, 5  ;;  %v1758_v21 = vrot.slane %v1757_v19, 4  ;;  %v7690_v12 = vpop.f32.mrb[12].mxu0 }
 0x17d   : > { %v1766_v48 = vrot.slane %v8583_v3, 4  ;;  %v2184_v6 = vor.u32 %v2183_v53, %v2179_v23  ;;  %v1762_v56 = vrot.slane %v1760_v33, 5  ;;  %v7680_v7 = vadd.f32 %v7553_v13, %v7546_v41  ;;  %v7697_v13 = vpop.f32.mrb[13].mxu0  ;;  %v2383_v53 = vld [vmem:[#allocation2 + $0x18] sm:$0xe] }
 0x17e   : > { %v2175_v28 = vrot.slane %v2174_v10, 4  ;;  %v7684_v35 = vadd.f32 %v7555_v60, %v7548_v24  ;;  %v7688_v49 = vadd.f32 %v7564_v43, %v7558_v32  ;;  %v2192_v41 = vshrl.u32 %v7674_v18, 16  ;;  %v7704_v9 = vpop.f32.mrb[14].mxu0 }
 0x17f   : > { %v2185_v16 = vrot.slane %v2184_v6, 4  ;;  %v1763_v54 = vsel %vm6378_vm8, %v1758_v21, %v1762_v56  ;;  %v1767_v25 = vor.u32 %v1766_v48, %v1762_v56  ;;  %v2195_v60 = vshll.u32 %v7674_v18, 16  ;;  %v7708_v36 = vpop.f32.mrb[15].mxu0  ;;  %v7713_v56 = vpop.f32.mrb[12].mxu1 }
 0x180   : > { %v1389_v2 = vld [vmem:[#allocation2 + $0xc8] sm:$0x1]  ;;  %v2180_v24 = vsel %vm6378_vm8, %v2175_v28, %v2179_v23  ;;  %v2201_v32 = vshll.u32 %v7676_v17, 16  ;;  %v2205_v43 = vshrl.u32 %v7676_v17, 16  ;;  %v2194_v33 = vrot.slane %v2192_v41, 4  ;;  %v7717_v41 = vpop.f32.mrb[13].mxu1 }
 0x181   : > { %v1948_v40 = vrot.slane %v1389_v2, 5  ;;  %v2190_v52 = vsel %vm6378_vm8, %v2185_v16, %v2189_v30  ;;  %v1768_v38 = vrot.slane %v1767_v25, 4  ;;  %v1770_v62 = vshll.u32 %v1389_v2, 16  ;;  %v2384_v2 = vld [vmem:[#allocation2 + $0x24] sm:$0xe] }
 0x182   : > { %v5117_v19 = vcombine.low %v2180_v24, %v2190_v52  ;;  %v2197_v23 = vrot.slane %v2195_v60, 5  ;;  %v2203_v10 = vrot.slane %v2201_v32, 5  ;;  %v2207_v6 = vrot.slane %v2205_v43, 4  ;;  %v7722_v43 = vpop.f32.mrb[14].mxu1 }
 0x183   : > { %v1949_v3 = vsel %vm6370_vm7, %v1947_v20, %v1948_v40  ;;  %v1772_v48 = vrot.slane %v1770_v62, 5  ;;  %v2211_v21 = vshll.u32 %v7694_v50, 16  ;;  %v4982_v16 = vrot.slane %v2383_v53, 9  ;;  %v7726_v62 = vpop.f32.mrb[15].mxu1  ;;  %v7728_v53 = vpop.f32.mrb[16].mxu0 }
 0x184   : > { %v5093_v30 = vcombine.low %v7655_v8, %v1949_v3  ;;  %4330 = vmatprep.mubr.bf16.mxu1 %v5117_v19  ;;  %v2198_v28 = vor.u32 %v2197_v23, %v2194_v33  ;;  %v2449_v25 = vrot.slane %v7305_v31, 5  ;;  %v2208_v20 = vor.u32 %v2207_v6, %v2203_v10  ;;  %v7733_v33 = vld [vmem:[#allocation2 + $0x84] sm:$0xf]  ;;  %v7735_v23 = vpop.f32.mrb[17].mxu0 }
 0x185   : > { %v1773_v24 = vsel %vm6378_vm8, %v1768_v38, %v1772_v48  ;;  %4331 = vmatmul.mubr.bf16.gmra.mrb[108].mxu1 %v5101_v5  ;;  %v2213_v60 = vrot.slane %v2211_v21, 5  ;;  %v2452_v32 = vrot.slane %v7307_v59, 5  ;;  %v5102_v5 = vcombine.low %v7674_v18, %v7676_v17  ;;  %v7751_v6 = vpop.f32.mrb[18].mxu0 }
 0x186   : > { %4233 = vmatprep.mubr.bf16.mxu0 %v5093_v30  ;;  %v5077_v8 = vcombine.low %v1763_v54, %v1773_v24  ;;  %v2199_v40 = vrot.slane %v2198_v28, 4  ;;  %v2450_v52 = vsel %vm6370_vm7, %v4982_v16, %v2449_v25  ;;  %v2451_v31 = vrot.slane %v2449_v25, 4  ;;  %v7757_v16 = vld [vmem:[#allocation2 + $0x8c] sm:$0x1] }
 0x187   : > { %v2209_v19 = vrot.slane %v2208_v20, 4  ;;  %v4983_v38 = vrot.slane %v2384_v2, 9  ;;  %v2456_v59 = vrot.slane %v7358_v63, 5  ;;  %v7743_v48 = vadd.f32 %v7594_v4, %v7585_v27  ;;  %v7749_v63 = vld [vmem:[#allocation2 + $0x88] sm:$0xf]  ;;  %v7759_v4 = vpop.f32.mrb[19].mxu0 }
 0x188   : > { %4234 = vmatmul.mubr.bf16.gmra.mrb[108].mxu0 %v5077_v8  ;;  %v2204_v54 = vsel %vm6378_vm8, %v2199_v40, %v2203_v10  ;;  %v2453_v3 = vsel %vm6370_vm7, %v2451_v31, %v2452_v32  ;;  %v7747_v18 = vadd.f32 %v7649_v58, %v7642_v57  ;;  %v2385_v27 = vld [vmem:[#allocation2 + $0x30] sm:$0xe]  ;;  %v7763_v57 = vadd.f32 %v7602_v46, %v7600_v0  ;;  %v2386_v0 = vld [vmem:[#allocation2 + $0x3c] sm:$0xe]  ;;  %v7777_v46 = vpop.f32.mrb[16].mxu1 }
 0x189   : > { %v2214_v21 = vsel %vm6378_vm8, %v2209_v19, %v2213_v60  ;;  %v5126_v30 = vcombine.low %v2450_v52, %v2453_v3  ;;  %v2457_v10 = vsel %vm6370_vm7, %v4983_v38, %v2456_v59  ;;  %v2458_v28 = vrot.slane %v2456_v59, 4  ;;  %v7780_v31 = vpop.f32.mrb[17].mxu1 }
 0x18a   : > { %8584 = vst [vmem:[#allocation21_spill] sm:$0xff] %v7747_v18  ;;  %v5118_v25 = vcombine.low %v2204_v54, %v2214_v21  ;;  %v7767_v58 = vadd.f32 %v7660_v39, %v7658_v11  ;;  %v2216_v2 = vshrl.u32 %v7733_v33, 16  ;;  %v8586_v24 = vrot.slane %v7360_v29, 5  ;;  %v7783_v54 = vpop.f32.mrb[18].mxu1 }
 0x18b   : > { %5711 = vmatprep.mubr.bf16.mxu0 %v5126_v30  ;;  %v2219_v60 = vshll.u32 %v7733_v33, 16  ;;  %v2225_v32 = vshll.u32 %v7749_v63, 16  ;;  %v2229_v8 = vshrl.u32 %v7749_v63, 16  ;;  %v2235_v40 = vshll.u32 %v7757_v16, 16 }
 0x18c   : > { %8585 = vst [vmem:[#allocation22_spill] sm:$0xff] %v7767_v58  ;;  %v2460_v20 = vsel %vm6370_vm7, %v2458_v28, %v8586_v24  ;;  %4338 = vmatprep.mubr.bf16.mxu1 %v5118_v25  ;;  %v2218_v39 = vrot.slane %v2216_v2, 4  ;;  %v4984_v52 = vrot.slane %v2385_v27, 9  ;;  %v2463_v59 = vrot.slane %v7398_v55, 5  ;;  %v7788_v28 = vpop.f32.mrb[19].mxu1  ;;  %v8587_v24 = vld [vmem:[#allocation16_spill] sm:$0xff] }
 0x18d   : > { %v5127_v11 = vcombine.low %v2457_v10, %v2460_v20  ;;  %4339 = vmatmul.mubr.bf16.gmra.mrb[112].mxu1 %v5102_v5  ;;  %v2221_v29 = vrot.slane %v2219_v60, 5  ;;  %v2227_v19 = vrot.slane %v2225_v32, 5  ;;  %v2231_v38 = vrot.slane %v2229_v8, 4  ;;  %v7802_v60 = vld [vmem:[#allocation2 + $0x90] sm:$0xf] }
 0x18e   : > { %v2237_v3 = vrot.slane %v2235_v40, 5  ;;  %v2466_v21 = vrot.slane %v7412_v47, 5  ;;  %v5103_v30 = vcombine.low %v7733_v33, %v7749_v63  ;;  %v4985_v10 = vrot.slane %v2386_v0, 9 }
 0x18f   : > { %v2222_v27 = vor.u32 %v2221_v29, %v2218_v39  ;;  %v2232_v25 = vor.u32 %v2231_v38, %v2227_v19  ;;  %v2464_v5 = vsel %vm6370_vm7, %v4984_v52, %v2463_v59  ;;  %v2465_v2 = vrot.slane %v2463_v59, 4  ;;  %v2387_v29 = vld [vmem:[#allocation2 + $0x48] sm:$0xe]  ;;  %v7826_v38 = vpop.f32.mrb[20].mxu1 }
 0x190   : > { %5712 = vmatmul.mubr.bf16.vlgmr.msra.gmra.mrb[112].mxu0 %v5127_v11  ;;  %v2470_v55 = vrot.slane %v7450_v1, 5  ;;  %v2473_v20 = vrot.slane %v8587_v24, 5  ;;  %v7796_v47 = vadd.f32 %v7697_v13, %v7690_v12  ;;  %v7800_v33 = vadd.f32 %v7717_v41, %v7713_v56  ;;  %v7810_v11 = vld [vmem:[#allocation2 + $0x94] sm:$0xf]  ;;  %v7818_v41 = vld [vmem:[#allocation2 + $0x98] sm:$0x1] }
 0x191   : > { %v2223_v32 = vrot.slane %v2222_v27, 4  ;;  %v2233_v8 = vrot.slane %v2232_v25, 4  ;;  %v2467_v0 = vsel %vm6370_vm7, %v2465_v2, %v2466_v21  ;;  %v7808_v1 = vadd.f32 %v7708_v36, %v7704_v9 }
 0x192   : > { %8588 = vst [vmem:[#allocation16_spill] sm:$0xff] %v7800_v33  ;;  %v5128_v39 = vcombine.low %v2464_v5, %v2467_v0  ;;  %v2471_v12 = vsel %vm6370_vm7, %v4985_v10, %v2470_v55  ;;  %v2472_v13 = vrot.slane %v2470_v55, 4  ;;  %v7816_v56 = vadd.f32 %v7726_v62, %v7722_v43  ;;  %v2388_v5 = vld [vmem:[#allocation2 + $0x54] sm:$0xe] }
 0x193   : > { %v2228_v40 = vsel %vm6378_vm8, %v2223_v32, %v2227_v19  ;;  %v2238_v9 = vsel %vm6378_vm8, %v2233_v8, %v2237_v3  ;;  %v2240_v36 = vshrl.u32 %v7802_v60, 16  ;;  %v2243_v52 = vshll.u32 %v7802_v60, 16  ;;  %v7832_v19 = vpop.f32.mrb[21].mxu1  ;;  %v8590_v8 = vld [vmem:[#allocation17_spill] sm:$0xff] }
 0x194   : > { %8589 = vst [vmem:[#allocation23_spill] sm:$0xff] %v7816_v56  ;;  %v5119_v59 = vcombine.low %v2228_v40, %v2238_v9  ;;  %5715 = vmatprep.mubr.bf16.mxu0 %v5128_v39  ;;  %v2474_v43 = vsel %vm6370_vm7, %v2472_v13, %v2473_v20  ;;  %v2249_v62 = vshll.u32 %v7810_v11, 16  ;;  %v2253_v21 = vshrl.u32 %v7810_v11, 16  ;;  %v7835_v2 = vpop.f32.mrb[22].mxu1  ;;  %v8591_v40 = vld [vmem:[#allocation18_spill] sm:$0xff] }
 0x195   : > { %v5129_v10 = vcombine.low %v2471_v12, %v2474_v43  ;;  %v2242_v3 = vrot.slane %v2240_v36, 4  ;;  %v2245_v27 = vrot.slane %v2243_v52, 5  ;;  %v2259_v25 = vshll.u32 %v7818_v41, 16  ;;  %v7838_v0 = vpop.f32.mrb[23].mxu1 }
 0x196   : > { %4346 = vmatprep.mubr.bf16.mxu1 %v5119_v59  ;;  %v2251_v55 = vrot.slane %v2249_v62, 5  ;;  %v2255_v24 = vrot.slane %v2253_v21, 4  ;;  %v4986_v32 = vrot.slane %v2387_v29, 9  ;;  %v2477_v20 = vrot.slane %v8590_v8, 5  ;;  %v8592_v62 = vld [vmem:[#allocation19_spill] sm:$0xff]  ;;  %v8593_v8 = vld [vmem:[#allocation20_spill] sm:$0xff] }
 0x197   : > { %4347 = vmatmul.mubr.bf16.gmra.mrb[116].mxu1 %v5103_v30  ;;  %v2246_v39 = vor.u32 %v2245_v27, %v2242_v3  ;;  %v2261_v13 = vrot.slane %v2259_v25, 5  ;;  %v2480_v12 = vrot.slane %v8591_v40, 5  ;;  %v5104_v9 = vcombine.low %v7802_v60, %v7810_v11  ;;  %v7851_v3 = vld [vmem:[#allocation2 + $0x9c] sm:$0xf] }
 0x198   : > { %5716 = vmatmul.mubr.bf16.gmra.mrb[116].mxu0 %v5129_v10  ;;  %v2256_v36 = vor.u32 %v2255_v24, %v2251_v55  ;;  %v2478_v52 = vsel %vm6370_vm7, %v4986_v32, %v2477_v20  ;;  %v2479_v59 = vrot.slane %v2477_v20, 4  ;;  %v4987_v43 = vrot.slane %v2388_v5, 9  ;;  %v7861_v5 = vld [vmem:[#allocation2 + $0xa0] sm:$0xf]  ;;  %v7867_v20 = vpop.f32.mrb[24].mxu1 }
 0x199   : > { %v2247_v29 = vrot.slane %v2246_v39, 4  ;;  %v2484_v21 = vrot.slane %v8592_v62, 5  ;;  %v2487_v56 = vrot.slane %v8593_v8, 5  ;;  %v7849_v30 = vadd.f32 %v7735_v23, %v7728_v53  ;;  %v7879_v40 = vpop.f32.mrb[25].mxu1  ;;  %v2390_v62 = vld [vmem:[#allocation2 + $0x6c] sm:$0xe] }
 0x19a   : > { %v2257_v27 = vrot.slane %v2256_v36, 4  ;;  %v2481_v60 = vsel %vm6370_vm7, %v2479_v59, %v2480_v12  ;;  %v5353_v10 = vadd.f32 %v7780_v31, %v7777_v46  ;;  %v7859_v25 = vadd.f32 %v7759_v4, %v7751_v6  ;;  %v7876_v4 = vld [vmem:[#allocation2 + $0xa4] sm:$0x1]  ;;  %v7885_v59 = vpop.f32.mrb[26].mxu1 }
 0x19b   : > { %v2252_v24 = vsel %vm6378_vm8, %v2247_v29, %v2251_v55  ;;  %v5130_v53 = vcombine.low %v2478_v52, %v2481_v60  ;;  %v2485_v23 = vsel %vm6370_vm7, %v4987_v43, %v2484_v21  ;;  %v2486_v32 = vrot.slane %v2484_v21, 4  ;;  %v2389_v55 = vld [vmem:[#allocation2 + $0x60] sm:$0xe]  ;;  %v5269_v52 = vpop.f32.mrb[20].mxu0  ;;  %v7891_v8 = vpop.f32.mrb[27].mxu1 }
 0x19c   : > { %v2262_v39 = vsel %vm6378_vm8, %v2257_v27, %v2261_v13  ;;  %v7872_v46 = vadd.f32 %v5353_v10, %v7614_v26  ;;  %v5356_v6 = vadd.f32 %v7788_v28, %v7783_v54  ;;  %v2264_v31 = vshrl.u32 %v7851_v3, 16  ;;  %v5270_v21 = vpop.f32.mrb[21].mxu0 }
 0x19d   : > { %v5120_v12 = vcombine.low %v2252_v24, %v2262_v39  ;;  %5719 = vmatprep.mubr.bf16.mxu0 %v5130_v53  ;;  %v2488_v36 = vsel %vm6370_vm7, %v2486_v32, %v2487_v56  ;;  %v2267_v13 = vshll.u32 %v7851_v3, 16  ;;  %v2273_v26 = vshll.u32 %v7861_v5, 16  ;;  %v5272_v24 = vpop.f32.mrb[22].mxu0 }
 0x19e   : > { %v5131_v54 = vcombine.low %v2485_v23, %v2488_v36  ;;  %v7888_v28 = vadd.f32 %v5356_v6, %v7624_v15  ;;  %v2266_v43 = vrot.slane %v2264_v31, 4  ;;  %v2277_v29 = vshrl.u32 %v7861_v5, 16  ;;  %v5273_v39 = vpop.f32.mrb[23].mxu0 }
 0x19f   : > { %4354 = vmatprep.mubr.bf16.mxu1 %v5120_v12  ;;  %v2269_v56 = vrot.slane %v2267_v13, 5  ;;  %v2275_v27 = vrot.slane %v2273_v26, 5  ;;  %v2283_v60 = vshll.u32 %v7876_v4, 16  ;;  %v4988_v10 = vrot.slane %v2389_v55, 9 }
 0x1a0   : > { %4355 = vmatmul.mubr.bf16.gmra.mrb[120].mxu1 %v5104_v9  ;;  %5720 = vmatmul.mubr.bf16.gmra.mrb[120].mxu0 %v5131_v54  ;;  %v2279_v53 = vrot.slane %v2277_v29, 4  ;;  %v2491_v15 = vrot.slane %v7578_v14, 5  ;;  %v2494_v23 = vrot.slane %v7589_v51, 5  ;;  %v5105_v32 = vcombine.low %v7851_v3, %v7861_v5  ;;  %v7906_v3 = vld [vmem:[#allocation2 + $0xa8] sm:$0xf] }
 0x1a1   : > { %v2270_v6 = vor.u32 %v2269_v56, %v2266_v43  ;;  %v2285_v31 = vrot.slane %v2283_v60, 5  ;;  %v4989_v12 = vrot.slane %v2390_v62, 9  ;;  %v2498_v36 = vrot.slane %v7628_v34, 5  ;;  %v7908_v43 = vpop.f32.mrb[28].mxu1 }
 0x1a2   : > { %v2280_v13 = vor.u32 %v2279_v53, %v2275_v27  ;;  %v2492_v55 = vsel %vm6370_vm7, %v4988_v10, %v2491_v15  ;;  %v2493_v9 = vrot.slane %v2491_v15, 4  ;;  %v2501_v26 = vrot.slane %v7644_v22, 5  ;;  %v7916_v22 = vld [vmem:[#allocation2 + $0xac] sm:$0xf]  ;;  %v7918_v10 = vpop.f32.mrb[29].mxu1 }
 0x1a3   : > { %v2271_v54 = vrot.slane %v2270_v6, 4  ;;  %v2499_v14 = vsel %vm6370_vm7, %v4989_v12, %v2498_v36  ;;  %v2500_v51 = vrot.slane %v2498_v36, 4  ;;  %v7904_v29 = vadd.f32 %v5270_v21, %v5269_v52  ;;  %v2391_v6 = vld [vmem:[#allocation2 + $0x78] sm:$0xe] }
 0x1a4   : > { %v2281_v62 = vrot.slane %v2280_v13, 4  ;;  %v2495_v34 = vsel %vm6370_vm7, %v2493_v9, %v2494_v23  ;;  %v5359_v56 = vadd.f32 %v7832_v19, %v7826_v38  ;;  %v7914_v60 = vadd.f32 %v5273_v39, %v5272_v24  ;;  %v7926_v23 = vld [vmem:[#allocation2 + $0xb0] sm:$0x1]  ;;  %v5275_v38 = vpop.f32.mrb[24].mxu0  ;;  %v7928_v19 = vpop.f32.mrb[30].mxu1 }
 0x1a5   : > { %v2276_v52 = vsel %vm6378_vm8, %v2271_v54, %v2275_v27  ;;  %v5132_v21 = vcombine.low %v2492_v55, %v2495_v34  ;;  %v2502_v53 = vsel %vm6370_vm7, %v2500_v51, %v2501_v26  ;;  %v5362_v15 = vadd.f32 %v7838_v0, %v7835_v2  ;;  %v5276_v36 = vpop.f32.mrb[25].mxu0  ;;  %v7936_v13 = vpop.f32.mrb[31].mxu1  ;;  %v2392_v26 = vld [vmem:[#allocation2 + $0x84] sm:$0xe] }
 0x1a6   : > { %v2286_v24 = vsel %vm6378_vm8, %v2281_v62, %v2285_v31  ;;  %v5133_v39 = vcombine.low %v2499_v14, %v2502_v53  ;;  %v7933_v12 = vadd.f32 %v5359_v56, %v7672_v42  ;;  %v2288_v27 = vshrl.u32 %v7906_v3, 16  ;;  %v5278_v31 = vpop.f32.mrb[26].mxu0 }
 0x1a7   : > { %v5121_v55 = vcombine.low %v2276_v52, %v2286_v24  ;;  %5723 = vmatprep.mubr.bf16.mxu0 %v5132_v21  ;;  %v7939_v2 = vadd.f32 %v5362_v15, %v7684_v35  ;;  %v2291_v0 = vshll.u32 %v7906_v3, 16  ;;  %v2297_v9 = vshll.u32 %v7916_v22, 16  ;;  %v5279_v62 = vpop.f32.mrb[27].mxu0 }
 0x1a8   : > { %5724 = vmatmul.mubr.bf16.gmra.mrb[124].mxu0 %v5133_v39  ;;  %v2290_v54 = vrot.slane %v2288_v27, 4  ;;  %v2301_v42 = vshrl.u32 %v7916_v22, 16  ;;  %v2307_v14 = vshll.u32 %v7926_v23, 16  ;;  %v4990_v51 = vrot.slane %v2391_v6, 9 }
 0x1a9   : > { %4362 = vmatprep.mubr.bf16.mxu1 %v5121_v55  ;;  %v2293_v34 = vrot.slane %v2291_v0, 5  ;;  %v2299_v56 = vrot.slane %v2297_v9, 5  ;;  %v2505_v35 = vrot.slane %v7676_v17, 5  ;;  %v2508_v52 = vrot.slane %v7694_v50, 5  ;;  %v7952_v0 = vpop.f32.mrb[32].mxu1 }
 0x1aa   : > { %4363 = vmatmul.mubr.bf16.gmra.mrb[124].mxu1 %v5105_v32  ;;  %v2303_v21 = vrot.slane %v2301_v42, 4  ;;  %v2309_v53 = vrot.slane %v2307_v14, 5  ;;  %v5106_v15 = vcombine.low %v7906_v3, %v7916_v22  ;;  %v4991_v24 = vrot.slane %v2392_v26, 9  ;;  %v7959_v42 = vld [vmem:[#allocation2 + $0xb4] sm:$0xf]  ;;  %v7961_v3 = vpop.f32.mrb[33].mxu1 }
 0x1ab   : > { %v2294_v39 = vor.u32 %v2293_v34, %v2290_v54  ;;  %v2506_v27 = vsel %vm6370_vm7, %v4990_v51, %v2505_v35  ;;  %v2507_v6 = vrot.slane %v2505_v35, 4  ;;  %v2512_v55 = vrot.slane %v7749_v63, 5  ;;  %v7967_v51 = vld [vmem:[#allocation2 + $0xb8] sm:$0xf] }
 0x1ac   : > { %v2304_v9 = vor.u32 %v2303_v21, %v2299_v56  ;;  %v2515_v17 = vrot.slane %v7757_v16, 5  ;;  %v7955_v50 = vadd.f32 %v5276_v36, %v5275_v38  ;;  %v5365_v32 = vadd.f32 %v7879_v40, %v7867_v20  ;;  %v5281_v16 = vpop.f32.mrb[28].mxu0  ;;  %v7969_v38 = vpop.f32.mrb[34].mxu1 }
 0x1ad   : > { %v2295_v26 = vrot.slane %v2294_v39, 4  ;;  %v2509_v54 = vsel %vm6370_vm7, %v2507_v6, %v2508_v52  ;;  %v2513_v63 = vsel %vm6370_vm7, %v4991_v24, %v2512_v55  ;;  %v2514_v14 = vrot.slane %v2512_v55, 4  ;;  %v5282_v35 = vpop.f32.mrb[29].mxu0  ;;  %v7976_v21 = vpop.f32.mrb[35].mxu1  ;;  %v7984_v6 = vld [vmem:[#allocation2 + $0xbc] sm:$0x1] }
 0x1ae   : > { %v2305_v36 = vrot.slane %v2304_v9, 4  ;;  %v5134_v34 = vcombine.low %v2506_v27, %v2509_v54  ;;  %v7972_v20 = vadd.f32 %v5365_v32, %v7743_v48  ;;  %v7974_v40 = vadd.f32 %v5279_v62, %v5278_v31  ;;  %v2393_v48 = vld [vmem:[#allocation2 + $0x90] sm:$0xe]  ;;  %v5284_v55 = vpop.f32.mrb[30].mxu0  ;;  %v2394_v54 = vld [vmem:[#allocation2 + $0x9c] sm:$0xe] }
 0x1af   : > { %v2300_v52 = vsel %vm6378_vm8, %v2295_v26, %v2299_v56  ;;  %v2516_v24 = vsel %vm6370_vm7, %v2514_v14, %v2515_v17  ;;  %v5368_v39 = vadd.f32 %v7891_v8, %v7885_v59  ;;  %v2312_v27 = vshrl.u32 %v7959_v42, 16  ;;  %v5285_v32 = vpop.f32.mrb[31].mxu0 }
 0x1b0   : > { %v2310_v31 = vsel %vm6378_vm8, %v2305_v36, %v2309_v53  ;;  %5727 = vmatprep.mubr.bf16.mxu0 %v5134_v34  ;;  %v5135_v62 = vcombine.low %v2513_v63, %v2516_v24  ;;  %v2315_v9 = vshll.u32 %v7959_v42, 16  ;;  %v2321_v56 = vshll.u32 %v7967_v51, 16 }
 0x1b1   : > { %v5122_v17 = vcombine.low %v2300_v52, %v2310_v31  ;;  %v7992_v26 = vadd.f32 %v5368_v39, %v7763_v57  ;;  %v2314_v59 = vrot.slane %v2312_v27, 4  ;;  %v2325_v8 = vshrl.u32 %v7967_v51, 16  ;;  %v8000_v52 = vpop.f32.mrb[36].mxu1 }
 0x1b2   : > { %5728 = vmatmul.mubr.bf16.gmra.mrb[128].mxu0 %v5135_v62  ;;  %v2317_v14 = vrot.slane %v2315_v9, 5  ;;  %v2323_v33 = vrot.slane %v2321_v56, 5  ;;  %v2331_v53 = vshll.u32 %v7984_v6, 16  ;;  %v4992_v36 = vrot.slane %v2393_v48, 9  ;;  %v8003_v9 = vpop.f32.mrb[37].mxu1 }
 0x1b3   : > { %4370 = vmatprep.mubr.bf16.mxu1 %v5122_v17  ;;  %v2327_v63 = vrot.slane %v2325_v8, 4  ;;  %v2519_v34 = vrot.slane %v7810_v11, 5  ;;  %v2522_v24 = vrot.slane %v7818_v41, 5  ;;  %v5107_v57 = vcombine.low %v7959_v42, %v7967_v51  ;;  %v8008_v17 = vpop.f32.mrb[38].mxu1 }
 0x1b4   : > { %4371 = vmatmul.mubr.bf16.gmra.mrb[128].mxu1 %v5106_v15  ;;  %v2318_v39 = vor.u32 %v2317_v14, %v2314_v59  ;;  %v2333_v27 = vrot.slane %v2331_v53, 5  ;;  %v4993_v31 = vrot.slane %v2394_v54, 9  ;;  %v2526_v62 = vrot.slane %v7861_v5, 5  ;;  %v8014_v54 = vld [vmem:[#allocation2 + $0xc0] sm:$0xf]  ;;  %v8016_v5 = vpop.f32.mrb[39].mxu1 }
 0x1b5   : > { %v2328_v48 = vor.u32 %v2327_v63, %v2323_v33  ;;  %v2520_v56 = vsel %vm6370_vm7, %v4992_v36, %v2519_v34  ;;  %v2521_v11 = vrot.slane %v2519_v34, 4  ;;  %v2529_v41 = vrot.slane %v7876_v4, 5  ;;  %v8024_v63 = vld [vmem:[#allocation2 + $0xc4] sm:$0xf] }
 0x1b6   : > { %v2319_v42 = vrot.slane %v2318_v39, 4  ;;  %v2527_v15 = vsel %vm6370_vm7, %v4993_v31, %v2526_v62  ;;  %v2528_v59 = vrot.slane %v2526_v62, 4  ;;  %v8012_v8 = vadd.f32 %v5282_v35, %v5281_v16  ;;  %v8032_v31 = vld [vmem:[#allocation2 + $0xc8] sm:$0x1]  ;;  %v5287_v62 = vpop.f32.mrb[32].mxu0 }
 0x1b7   : > { %v2329_v14 = vrot.slane %v2328_v48, 4  ;;  %v2523_v53 = vsel %vm6370_vm7, %v2521_v11, %v2522_v24  ;;  %v5371_v4 = vadd.f32 %v7918_v10, %v7908_v43  ;;  %v8022_v36 = vadd.f32 %v5285_v32, %v5284_v55  ;;  %v2395_v24 = vld [vmem:[#allocation2 + $0xa8] sm:$0xe]  ;;  %v5288_v32 = vpop.f32.mrb[33].mxu0  ;;  %v2396_v11 = vld [vmem:[#allocation2 + $0xb4] sm:$0xe] }
 0x1b8   : > { %v2324_v34 = vsel %vm6378_vm8, %v2319_v42, %v2323_v33  ;;  %v5136_v16 = vcombine.low %v2520_v56, %v2523_v53  ;;  %v2530_v35 = vsel %vm6370_vm7, %v2528_v59, %v2529_v41  ;;  %v5374_v39 = vadd.f32 %v7936_v13, %v7928_v19  ;;  %v5290_v41 = vpop.f32.mrb[34].mxu0 }
 0x1b9   : > { %v2334_v43 = vsel %vm6378_vm8, %v2329_v14, %v2333_v27  ;;  %v5137_v10 = vcombine.low %v2527_v15, %v2530_v35  ;;  %v8037_v55 = vadd.f32 %v5371_v4, %v7796_v47  ;;  %v2336_v33 = vshrl.u32 %v8014_v54, 16  ;;  %v5291_v59 = vpop.f32.mrb[35].mxu0 }
 0x1ba   : > { %v5123_v48 = vcombine.low %v2324_v34, %v2334_v43  ;;  %5731 = vmatprep.mubr.bf16.mxu0 %v5136_v16  ;;  %v8041_v56 = vadd.f32 %v5374_v39, %v7808_v1  ;;  %v2339_v19 = vshll.u32 %v8014_v54, 16  ;;  %v2345_v13 = vshll.u32 %v8024_v63, 16  ;;  %v8049_v34 = vpop.f32.mrb[40].mxu1 }
 0x1bb   : > { %5732 = vmatmul.mubr.bf16.gmra.mrb[132].mxu0 %v5137_v10  ;;  %v2338_v27 = vrot.slane %v2336_v33, 4  ;;  %v2349_v42 = vshrl.u32 %v8024_v63, 16  ;;  %v2355_v47 = vshll.u32 %v8032_v31, 16  ;;  %v4994_v15 = vrot.slane %v2395_v24, 9  ;;  %v8053_v10 = vpop.f32.mrb[41].mxu1 }
 0x1bc   : > { %4378 = vmatprep.mubr.bf16.mxu1 %v5123_v48  ;;  %v2341_v14 = vrot.slane %v2339_v19, 5  ;;  %v2347_v53 = vrot.slane %v2345_v13, 5  ;;  %v2533_v1 = vrot.slane %v7916_v22, 5  ;;  %v2536_v4 = vrot.slane %v7926_v23, 5  ;;  %v8058_v19 = vpop.f32.mrb[42].mxu1 }
 0x1bd   : > { %4379 = vmatmul.mubr.bf16.gmra.mrb[132].mxu1 %v5107_v57  ;;  %v2351_v16 = vrot.slane %v2349_v42, 4  ;;  %v2357_v35 = vrot.slane %v2355_v47, 5  ;;  %v5108_v39 = vcombine.low %v8014_v54, %v8024_v63  ;;  %v4995_v43 = vrot.slane %v2396_v11, 9  ;;  %v8065_v11 = vld [vmem:[#allocation2 + $0xcc] sm:$0xf]  ;;  %v8067_v42 = vpop.f32.mrb[43].mxu1 }
 0x1be   : > { %v2342_v24 = vor.u32 %v2341_v14, %v2338_v27  ;;  %v2534_v33 = vsel %vm6370_vm7, %v4994_v15, %v2533_v1  ;;  %v2535_v48 = vrot.slane %v2533_v1, 4  ;;  %v2540_v22 = vrot.slane %v7967_v51, 5  ;;  %v8073_v14 = vld [vmem:[#allocation2 + $0xd0] sm:$0xf] }
 0x1bf   : > { %v2352_v23 = vor.u32 %v2351_v16, %v2347_v53  ;;  %v2543_v57 = vrot.slane %v7984_v6, 5  ;;  %v8061_v13 = vadd.f32 %v5288_v32, %v5287_v62  ;;  %v5377_v54 = vadd.f32 %v7961_v3, %v7952_v0  ;;  %v1998_v16 = vld [vmem:[#allocation2 + $0xd4] sm:$0x1] }
 0x1c0   : > { %v2343_v27 = vrot.slane %v2342_v24, 4  ;;  %v2537_v47 = vsel %vm6370_vm7, %v2535_v48, %v2536_v4  ;;  %v2541_v51 = vsel %vm6370_vm7, %v4995_v43, %v2540_v22  ;;  %v2542_v15 = vrot.slane %v2540_v22, 4  ;;  %v2397_v24 = vld [vmem:[#allocation2 + $0xc0] sm:$0xe]  ;;  %v5293_v48 = vpop.f32.mrb[36].mxu0 }
 0x1c1   : > { %v2353_v6 = vrot.slane %v2352_v23, 4  ;;  %v5138_v62 = vcombine.low %v2534_v33, %v2537_v47  ;;  %v8076_v32 = vadd.f32 %v5377_v54, %v7849_v30  ;;  %v8078_v0 = vadd.f32 %v5291_v59, %v5290_v41  ;;  %v5294_v33 = vpop.f32.mrb[37].mxu0 }
 0x1c2   : > { %v2348_v3 = vsel %vm6378_vm8, %v2343_v27, %v2347_v53  ;;  %v2544_v1 = vsel %vm6370_vm7, %v2542_v15, %v2543_v57  ;;  %v5380_v4 = vadd.f32 %v7976_v21, %v7969_v38  ;;  %v2360_v43 = vshrl.u32 %v8065_v11, 16  ;;  %v2398_v57 = vld [vmem:[#allocation2 + $0xcc] sm:$0xe]  ;;  %v5296_v54 = vpop.f32.mrb[38].mxu0 }
 0x1c3   : > { %v2358_v30 = vsel %vm6378_vm8, %v2353_v6, %v2357_v35  ;;  %5735 = vmatprep.mubr.bf16.mxu0 %v5138_v62  ;;  %v5139_v41 = vcombine.low %v2541_v51, %v2544_v1  ;;  %v2363_v59 = vshll.u32 %v8065_v11, 16  ;;  %v2369_v53 = vshll.u32 %v8073_v14, 16  ;;  %v5297_v51 = vpop.f32.mrb[39].mxu0  ;;  %v5393_v1 = vpop.f32.mrb[44].mxu1 }
 0x1c4   : > { %v5124_v22 = vcombine.low %v2348_v3, %v2358_v30  ;;  %v8092_v23 = vadd.f32 %v5380_v4, %v7859_v25  ;;  %v2362_v38 = vrot.slane %v2360_v43, 4  ;;  %v2373_v21 = vshrl.u32 %v8073_v14, 16 }
 0x1c5   : > { %5736 = vmatmul.mubr.bf16.gmra.mrb[136].mxu0 %v5139_v41  ;;  %v2365_v27 = vrot.slane %v2363_v59, 5  ;;  %v2371_v47 = vrot.slane %v2369_v53, 5  ;;  %v2379_v35 = vshll.u32 %v1998_v16, 16  ;;  %v4996_v15 = vrot.slane %v2397_v24, 9  ;;  %v5394_v59 = vpop.f32.mrb[45].mxu1 }
 0x1c6   : > { %4386 = vmatprep.mubr.bf16.mxu1 %v5124_v22  ;;  %v2375_v6 = vrot.slane %v2373_v21, 4  ;;  %v2547_v62 = vrot.slane %v8024_v63, 5  ;;  %v2550_v3 = vrot.slane %v8032_v31, 5  ;;  %v5109_v25 = vcombine.low %v8065_v11, %v8073_v14  ;;  %v5396_v63 = vpop.f32.mrb[46].mxu1 }
 0x1c7   : > { %4387 = vmatmul.mubr.bf16.gmra.mrb[136].mxu1 %v5108_v39  ;;  %v2366_v4 = vor.u32 %v2365_v27, %v2362_v38  ;;  %v2381_v43 = vrot.slane %v2379_v35, 5  ;;  %v4997_v30 = vrot.slane %v2398_v57, 9  ;;  %v2554_v41 = vrot.slane %v8073_v14, 5  ;;  %v5397_v39 = vpop.f32.mrb[47].mxu1 }
 0x1c8   : > { %v2376_v53 = vor.u32 %v2375_v6, %v2371_v47  ;;  %v2548_v24 = vsel %vm6370_vm7, %v4996_v15, %v2547_v62  ;;  %v2549_v22 = vrot.slane %v2547_v62, 4  ;;  %v2557_v21 = vrot.slane %v1998_v16, 5 }
 0x1c9   : > { %v2367_v58 = vrot.slane %v2366_v4, 4  ;;  %v2555_v31 = vsel %vm6370_vm7, %v4997_v30, %v2554_v41  ;;  %v2556_v11 = vrot.slane %v2554_v41, 4  ;;  %v5295_v18 = vadd.f32 %v5294_v33, %v5293_v48  ;;  %v5299_v48 = vpop.f32.mrb[40].mxu0 }
 0x1ca   : > { %v2377_v38 = vrot.slane %v2376_v53, 4  ;;  %v2551_v57 = vsel %vm6370_vm7, %v2549_v22, %v2550_v3  ;;  %v5383_v14 = vadd.f32 %v8003_v9, %v8000_v52  ;;  %v5298_v27 = vadd.f32 %v5297_v51, %v5296_v54  ;;  %v5300_v52 = vpop.f32.mrb[41].mxu0 }
 0x1cb   : > { %v2372_v35 = vsel %vm6378_vm8, %v2367_v58, %v2371_v47  ;;  %v5140_v16 = vcombine.low %v2548_v24, %v2551_v57  ;;  %v2558_v15 = vsel %vm6370_vm7, %v2556_v11, %v2557_v21  ;;  %v5386_v6 = vadd.f32 %v8016_v5, %v8008_v17  ;;  %v5302_v47 = vpop.f32.mrb[42].mxu0  ;;  %v5399_v4 = vpop.f32.mrb[48].mxu1 }
 0x1cc   : > { %v2382_v33 = vsel %vm6378_vm8, %v2377_v38, %v2381_v43  ;;  %v5141_v62 = vcombine.low %v2555_v31, %v2558_v15  ;;  %v8117_v3 = vadd.f32 %v5383_v14, %v7904_v29  ;;  %v5389_v9 = vadd.f32 %v8053_v10, %v8049_v34  ;;  %v5303_v29 = vpop.f32.mrb[43].mxu0 }
 0x1cd   : > { %v5125_v58 = vcombine.low %v2372_v35, %v2382_v33  ;;  %5739 = vmatprep.mubr.bf16.mxu0 %v5140_v16  ;;  %v8122_v37 = vadd.f32 %v5386_v6, %v7914_v60  ;;  %v5301_v54 = vadd.f32 %v5300_v52, %v5299_v48  ;;  %v5392_v17 = vadd.f32 %v8067_v42, %v8058_v19  ;;  %v5400_v60 = vpop.f32.mrb[49].mxu1 }
 0x1ce   : > { %5740 = vmatmul.mubr.bf16.gmra.mrb[140].mxu0 %v5141_v62  ;;  %v8127_v45 = vadd.f32 %v5389_v9, %v7955_v50  ;;  %v5395_v5 = vadd.f32 %v5394_v59, %v5393_v1  ;;  %v5398_v51 = vadd.f32 %v5397_v39, %v5396_v63  ;;  %v5304_v34 = vadd.f32 %v5303_v29, %v5302_v47  ;;  %v5402_v50 = vpop.f32.mrb[50].mxu1 }
 0x1cf   : > { %4394 = vmatprep.mubr.bf16.mxu1 %v5125_v58  ;;  %v8130_v10 = vadd.f32 %v5392_v17, %v7974_v40  ;;  %v5401_v42 = vadd.f32 %v5400_v60, %v5399_v4  ;;  %v5403_v30 = vpop.f32.mrb[51].mxu1 }
 0x1d0   : > { %4395 = vmatmul.mubr.bf16.gmra.mrb[140].mxu1 %v5109_v25  ;;  %v8133_v43 = vadd.f32 %v5395_v5, %v8012_v8  ;;  %v8136_v19 = vadd.f32 %v5398_v51, %v8022_v36  ;;  %v5404_v41 = vadd.f32 %v5403_v30, %v5402_v50 }
 0x1d1   : > { %v8139_v1 = vadd.f32 %v5401_v42, %v8061_v13 }
 0x1d2   : > { %v8142_v59 = vadd.f32 %v5404_v41, %v8078_v0 }
 0x1d4   : > { %v5405_v53 = vpop.f32.mrb[52].mxu1 }
 0x1d5   : > { %v5305_v40 = vpop.f32.mrb[44].mxu0  ;;  %v5406_v25 = vpop.f32.mrb[53].mxu1 }
 0x1d6   : > { %v5306_v24 = vpop.f32.mrb[45].mxu0  ;;  %v5407_v21 = vadd.f32 %v5406_v25, %v5405_v53  ;;  %v5408_v63 = vpop.f32.mrb[54].mxu1 }
 0x1d7   : > { %v5307_v22 = vadd.f32 %v5306_v24, %v5305_v40  ;;  %v5308_v8 = vpop.f32.mrb[46].mxu0  ;;  %v5409_v31 = vpop.f32.mrb[55].mxu1 }
 0x1d8   : > { %v5309_v36 = vpop.f32.mrb[47].mxu0  ;;  %v8144_v39 = vadd.f32 %v5407_v21, %v5295_v18  ;;  %v5410_v38 = vadd.f32 %v5409_v31, %v5408_v63 }
 0x1d9   : > { %v5310_v11 = vadd.f32 %v5309_v36, %v5308_v8 }
 0x1da   : > { %v8146_v13 = vadd.f32 %v5410_v38, %v5298_v27 }
 0x1dd   : > { %v5463_v57 = vpop.f32.mrb[48].mxu0 }
 0x1de   : > { %v5464_v14 = vpop.f32.mrb[49].mxu0 }
 0x1df   : > { %v5465_v0 = vadd.f32 %v5464_v14, %v5463_v57  ;;  %v5466_v35 = vpop.f32.mrb[50].mxu0  ;;  %v5411_v16 = vpop.f32.mrb[56].mxu1 }
 0x1e0   : > { %v5467_v15 = vpop.f32.mrb[51].mxu0  ;;  %v5412_v6 = vpop.f32.mrb[57].mxu1 }
 0x1e1   : > { %v8149_v48 = vadd.f32 %v5465_v0, %v7872_v46  ;;  %v5468_v33 = vadd.f32 %v5467_v15, %v5466_v35  ;;  %v5413_v62 = vadd.f32 %v5412_v6, %v5411_v16  ;;  %v5414_v52 = vpop.f32.mrb[58].mxu1 }
 0x1e2   : > { %v5415_v9 = vpop.f32.mrb[59].mxu1 }
 0x1e3   : > { %v8152_v18 = vadd.f32 %v5468_v33, %v7888_v28  ;;  %v8154_v58 = vadd.f32 %v5413_v62, %v5301_v54  ;;  %v5416_v27 = vadd.f32 %v5415_v9, %v5414_v52 }
 0x1e5   : > { %v5469_v47 = vpop.f32.mrb[52].mxu0  ;;  %v8156_v17 = vadd.f32 %v5416_v27, %v5304_v34 }
 0x1e6   : > { %v5470_v29 = vpop.f32.mrb[53].mxu0 }
 0x1e7   : > { %v5471_v5 = vadd.f32 %v5470_v29, %v5469_v47  ;;  %v5472_v51 = vpop.f32.mrb[54].mxu0  ;;  %v5417_v4 = vpop.f32.mrb[60].mxu1 }
 0x1e8   : > { %v5473_v60 = vpop.f32.mrb[55].mxu0  ;;  %v5418_v46 = vpop.f32.mrb[61].mxu1 }
 0x1e9   : > { %v8159_v42 = vadd.f32 %v5471_v5, %v7933_v12  ;;  %v5474_v50 = vadd.f32 %v5473_v60, %v5472_v51  ;;  %v5419_v30 = vadd.f32 %v5418_v46, %v5417_v4  ;;  %v5420_v41 = vpop.f32.mrb[62].mxu1 }
 0x1ea   : > { %v5421_v28 = vpop.f32.mrb[63].mxu1 }
 0x1eb   : > { %v8162_v54 = vadd.f32 %v5474_v50, %v7939_v2  ;;  %v8164_v40 = vadd.f32 %v5419_v30, %v5307_v22  ;;  %v5422_v34 = vadd.f32 %v5421_v28, %v5420_v41 }
 0x1ed   : > { %v5475_v53 = vpop.f32.mrb[56].mxu0  ;;  %v8166_v24 = vadd.f32 %v5422_v34, %v5310_v11 }
 0x1ee   : > { %v5476_v25 = vpop.f32.mrb[57].mxu0 }
 0x1ef   : > { %v5477_v8 = vadd.f32 %v5476_v25, %v5475_v53  ;;  %v5478_v21 = vpop.f32.mrb[58].mxu0 }
 0x1f0   : > { %v5423_v63 = vpop.f32.mrb[64].mxu1  ;;  %v5479_v36 = vpop.f32.mrb[59].mxu0 }
 0x1f1   : > { %v5424_v12 = vpop.f32.mrb[65].mxu1  ;;  %v8169_v31 = vadd.f32 %v5477_v8, %v7972_v20  ;;  %v5480_v38 = vadd.f32 %v5479_v36, %v5478_v21  ;;  %v8594_v8 = vld [vmem:[#allocation21_spill] sm:$0xff]  ;;  %v8595_v36 = vld [vmem:[#allocation22_spill] sm:$0xff] }
 0x1f2   : > { %v5425_v57 = vadd.f32 %v5424_v12, %v5423_v63  ;;  %v5426_v14 = vpop.f32.mrb[66].mxu1 }
 0x1f3   : > { %v5427_v2 = vpop.f32.mrb[67].mxu1  ;;  %v8172_v22 = vadd.f32 %v5480_v38, %v7992_v26 }
 0x1f4   : > { %v8175_v0 = vadd.f32 %v5425_v57, %v7618_v61  ;;  %v5428_v11 = vadd.f32 %v5427_v2, %v5426_v14 }
 0x1f5   : > { %v5481_v35 = vpop.f32.mrb[60].mxu0 }
 0x1f6   : > { %v8178_v16 = vadd.f32 %v5428_v11, %v7634_v44  ;;  %v5482_v15 = vpop.f32.mrb[61].mxu0 }
 0x1f7   : > { %v5483_v6 = vadd.f32 %v5482_v15, %v5481_v35  ;;  %v5484_v33 = vpop.f32.mrb[62].mxu0 }
 0x1f8   : > { %v5429_v20 = vpop.f32.mrb[68].mxu1  ;;  %v5485_v62 = vpop.f32.mrb[63].mxu0 }
 0x1f9   : > { %v5430_v52 = vpop.f32.mrb[69].mxu1  ;;  %v8181_v9 = vadd.f32 %v5483_v6, %v8037_v55  ;;  %v5486_v27 = vadd.f32 %v5485_v62, %v5484_v33 }
 0x1fa   : > { %v5431_v26 = vadd.f32 %v5430_v52, %v5429_v20  ;;  %v5432_v47 = vpop.f32.mrb[70].mxu1 }
 0x1fb   : > { %v5433_v29 = vpop.f32.mrb[71].mxu1  ;;  %v8184_v61 = vadd.f32 %v5486_v27, %v8041_v56 }
 0x1fc   : > { %v8187_v5 = vadd.f32 %v5431_v26, %v7680_v7  ;;  %v5434_v44 = vadd.f32 %v5433_v29, %v5432_v47 }
 0x1fd   : > { %v5487_v51 = vpop.f32.mrb[64].mxu0 }
 0x1fe   : > { %v8190_v4 = vadd.f32 %v5434_v44, %v7688_v49  ;;  %v5488_v60 = vpop.f32.mrb[65].mxu0 }
 0x1ff   : > { %v5489_v46 = vadd.f32 %v5488_v60, %v5487_v51  ;;  %v5490_v50 = vpop.f32.mrb[66].mxu0 }
 0x200   : > { %v5435_v55 = vpop.f32.mrb[72].mxu1  ;;  %v5491_v30 = vpop.f32.mrb[67].mxu0 }
 0x201   : > { %v5436_v41 = vpop.f32.mrb[73].mxu1  ;;  %v8193_v28 = vadd.f32 %v5489_v46, %v8076_v32  ;;  %v5492_v34 = vadd.f32 %v5491_v30, %v5490_v50 }
 0x202   : > { %v5437_v56 = vadd.f32 %v5436_v41, %v5435_v55  ;;  %v5438_v53 = vpop.f32.mrb[74].mxu1  ;;  %v8597_v41 = vld [vmem:[#allocation23_spill] sm:$0xff] }
 0x203   : > { %v5439_v25 = vpop.f32.mrb[75].mxu1  ;;  %v8196_v7 = vadd.f32 %v5492_v34, %v8092_v23 }
 0x204   : > { %v8199_v21 = vadd.f32 %v5437_v56, %v8594_v8  ;;  %v5440_v49 = vadd.f32 %v5439_v25, %v5438_v53 }
 0x205   : > { %v5493_v63 = vpop.f32.mrb[68].mxu0 }
 0x206   : > { %v8202_v12 = vadd.f32 %v5440_v49, %v8595_v36  ;;  %v5494_v38 = vpop.f32.mrb[69].mxu0 }
 0x207   : > { %v5495_v57 = vadd.f32 %v5494_v38, %v5493_v63  ;;  %v5496_v14 = vpop.f32.mrb[70].mxu0 }
 0x208   : > { %v5497_v32 = vpop.f32.mrb[71].mxu0 }
 0x209   : > { %v8205_v2 = vadd.f32 %v5495_v57, %v8117_v3  ;;  %v5498_v11 = vadd.f32 %v5497_v32, %v5496_v14 }
 0x20b   : > { %v8208_v35 = vadd.f32 %v5498_v11, %v8122_v37  ;;  %v8596_v37 = vld [vmem:[#allocation16_spill] sm:$0xff] }
 0x20d   : > { %v5499_v23 = vpop.f32.mrb[72].mxu0 }
 0x20e   : > { %v5500_v15 = vpop.f32.mrb[73].mxu0 }
 0x20f   : > { %v5501_v6 = vadd.f32 %v5500_v15, %v5499_v23  ;;  %v5502_v33 = vpop.f32.mrb[74].mxu0 }
 0x210   : > { %v5503_v20 = vpop.f32.mrb[75].mxu0 }
 0x211   : > { %v8211_v62 = vadd.f32 %v5501_v6, %v8127_v45  ;;  %v5504_v52 = vadd.f32 %v5503_v20, %v5502_v33 }
 0x212   : > { %v5441_v27 = vpop.f32.mrb[76].mxu1 }
 0x213   : > { %v5442_v26 = vpop.f32.mrb[77].mxu1  ;;  %v8214_v47 = vadd.f32 %v5504_v52, %v8130_v10 }
 0x214   : > { %v5443_v3 = vadd.f32 %v5442_v26, %v5441_v27  ;;  %v5444_v29 = vpop.f32.mrb[78].mxu1 }
 0x215   : > { %v5445_v44 = vpop.f32.mrb[79].mxu1  ;;  %v5505_v51 = vpop.f32.mrb[76].mxu0 }
 0x216   : > { %v8217_v60 = vadd.f32 %v5443_v3, %v8596_v37  ;;  %v5446_v46 = vadd.f32 %v5445_v44, %v5444_v29  ;;  %v5506_v50 = vpop.f32.mrb[77].mxu0 }
 0x217   : > { %v5507_v55 = vadd.f32 %v5506_v50, %v5505_v51  ;;  %v5508_v30 = vpop.f32.mrb[78].mxu0 }
 0x218   : > { %v8220_v45 = vadd.f32 %v5446_v46, %v8597_v41  ;;  %v5509_v34 = vpop.f32.mrb[79].mxu0 }
 0x219   : > { %v8223_v56 = vadd.f32 %v5507_v55, %v8133_v43  ;;  %v5510_v10 = vadd.f32 %v5509_v34, %v5508_v30 }
 0x21a   : > { %v5575_v53 = vpop.f32.mrb[80].mxu1 }
 0x21b   : > { %v5576_v25 = vpop.f32.mrb[81].mxu1  ;;  %v8226_v8 = vadd.f32 %v5510_v10, %v8136_v19 }
 0x21c   : > { %v5577_v49 = vadd.f32 %v5576_v25, %v5575_v53  ;;  %v5578_v63 = vpop.f32.mrb[82].mxu1 }
 0x21d   : > { %v5579_v36 = vpop.f32.mrb[83].mxu1  ;;  %v5511_v38 = vpop.f32.mrb[80].mxu0 }
 0x21e   : > { %v5580_v57 = vadd.f32 %v5579_v36, %v5578_v63  ;;  %v8229_v14 = vadd.f32 %v5577_v49, %v8149_v48  ;;  %v5512_v32 = vpop.f32.mrb[81].mxu0 }
 0x21f   : > { %v5513_v11 = vadd.f32 %v5512_v32, %v5511_v38  ;;  %v5514_v23 = vpop.f32.mrb[82].mxu0 }
 0x220   : > { %v8232_v43 = vadd.f32 %v5580_v57, %v8152_v18  ;;  %v5515_v15 = vpop.f32.mrb[83].mxu0 }
 0x221   : > { %v8235_v6 = vadd.f32 %v5513_v11, %v8139_v1  ;;  %v5516_v19 = vadd.f32 %v5515_v15, %v5514_v23 }
 0x222   : > { %v5581_v33 = vpop.f32.mrb[84].mxu1 }
 0x223   : > { %v5582_v20 = vpop.f32.mrb[85].mxu1  ;;  %v8238_v52 = vadd.f32 %v5516_v19, %v8142_v59 }
 0x224   : > { %v5583_v27 = vadd.f32 %v5582_v20, %v5581_v33  ;;  %v5584_v26 = vpop.f32.mrb[86].mxu1 }
 0x225   : > { %v5585_v48 = vpop.f32.mrb[87].mxu1  ;;  %v5517_v3 = vpop.f32.mrb[84].mxu0 }
 0x226   : > { %v5586_v29 = vadd.f32 %v5585_v48, %v5584_v26  ;;  %v8241_v44 = vadd.f32 %v5583_v27, %v8159_v42  ;;  %v5518_v18 = vpop.f32.mrb[85].mxu0 }
 0x227   : > { %v5519_v51 = vadd.f32 %v5518_v18, %v5517_v3  ;;  %v5520_v37 = vpop.f32.mrb[86].mxu0 }
 0x228   : > { %v8244_v1 = vadd.f32 %v5586_v29, %v8162_v54  ;;  %v5521_v46 = vpop.f32.mrb[87].mxu0 }
 0x229   : > { %v8247_v50 = vadd.f32 %v5519_v51, %v8144_v39  ;;  %v5522_v59 = vadd.f32 %v5521_v46, %v5520_v37 }
 0x22a   : > { %v5587_v55 = vpop.f32.mrb[88].mxu1 }
 0x22b   : > { %v5588_v30 = vpop.f32.mrb[89].mxu1  ;;  %v8250_v41 = vadd.f32 %v5522_v59, %v8146_v13 }
 0x22c   : > { %v5589_v34 = vadd.f32 %v5588_v30, %v5587_v55  ;;  %v5590_v10 = vpop.f32.mrb[90].mxu1 }
 0x22d   : > { %v5591_v42 = vpop.f32.mrb[91].mxu1  ;;  %v5523_v53 = vpop.f32.mrb[88].mxu0 }
 0x22e   : > { %v5592_v25 = vadd.f32 %v5591_v42, %v5590_v10  ;;  %v8253_v49 = vadd.f32 %v5589_v34, %v8169_v31  ;;  %v5524_v54 = vpop.f32.mrb[89].mxu0 }
 0x22f   : > { %v5525_v63 = vadd.f32 %v5524_v54, %v5523_v53  ;;  %v5526_v36 = vpop.f32.mrb[90].mxu0 }
 0x230   : > { %v8256_v39 = vadd.f32 %v5592_v25, %v8172_v22  ;;  %v5527_v38 = vpop.f32.mrb[91].mxu0 }
 0x231   : > { %v8259_v57 = vadd.f32 %v5525_v63, %v8154_v58  ;;  %v5528_v13 = vadd.f32 %v5527_v38, %v5526_v36 }
 0x232   : > { %v5593_v32 = vpop.f32.mrb[92].mxu1 }
 0x233   : > { %v5594_v11 = vpop.f32.mrb[93].mxu1  ;;  %v8262_v23 = vadd.f32 %v5528_v13, %v8156_v17 }
 0x234   : > { %v5595_v15 = vadd.f32 %v5594_v11, %v5593_v32  ;;  %v5596_v19 = vpop.f32.mrb[94].mxu1 }
 0x235   : > { %v5597_v31 = vpop.f32.mrb[95].mxu1  ;;  %v5529_v33 = vpop.f32.mrb[92].mxu0 }
 0x236   : > { %v5598_v20 = vadd.f32 %v5597_v31, %v5596_v19  ;;  %v8265_v27 = vadd.f32 %v5595_v15, %v8181_v9  ;;  %v5530_v22 = vpop.f32.mrb[93].mxu0 }
 0x237   : > { %v5531_v26 = vadd.f32 %v5530_v22, %v5529_v33  ;;  %v5532_v48 = vpop.f32.mrb[94].mxu0 }
 0x238   : > { %v8268_v58 = vadd.f32 %v5598_v20, %v8184_v61  ;;  %v5533_v3 = vpop.f32.mrb[95].mxu0 }
 0x239   : > { %v8271_v29 = vadd.f32 %v5531_v26, %v8164_v40  ;;  %v5534_v17 = vadd.f32 %v5533_v3, %v5532_v48 }
 0x23a   : > { %v5599_v18 = vpop.f32.mrb[96].mxu1 }
 0x23b   : > { %v5600_v51 = vpop.f32.mrb[97].mxu1  ;;  %v8274_v37 = vadd.f32 %v5534_v17, %v8166_v24 }
 0x23c   : > { %v5601_v46 = vadd.f32 %v5600_v51, %v5599_v18  ;;  %v5602_v59 = vpop.f32.mrb[98].mxu1 }
 0x23d   : > { %v5603_v9 = vpop.f32.mrb[99].mxu1  ;;  %v5535_v55 = vpop.f32.mrb[96].mxu0 }
 0x23e   : > { %v5604_v30 = vadd.f32 %v5603_v9, %v5602_v59  ;;  %v8277_v34 = vadd.f32 %v5601_v46, %v8193_v28  ;;  %v5536_v61 = vpop.f32.mrb[97].mxu0 }
 0x23f   : > { %v5537_v10 = vadd.f32 %v5536_v61, %v5535_v55  ;;  %v5538_v42 = vpop.f32.mrb[98].mxu0 }
 0x240   : > { %v8280_v40 = vadd.f32 %v5604_v30, %v8196_v7  ;;  %v5539_v53 = vpop.f32.mrb[99].mxu0 }
 0x241   : > { %v8283_v25 = vadd.f32 %v5537_v10, %v8175_v0  ;;  %v5540_v24 = vadd.f32 %v5539_v53, %v5538_v42 }
 0x243   : > { %v8286_v54 = vadd.f32 %v5540_v24, %v8178_v16 }
 0x244   : > { %v5605_v63 = vpop.f32.mrb[100].mxu1 }
 0x245   : > { %v5606_v36 = vpop.f32.mrb[101].mxu1  ;;  %v5541_v38 = vpop.f32.mrb[100].mxu0 }
 0x246   : > { %v5607_v13 = vadd.f32 %v5606_v36, %v5605_v63  ;;  %v5608_v28 = vpop.f32.mrb[102].mxu1  ;;  %v5542_v32 = vpop.f32.mrb[101].mxu0 }
 0x247   : > { %v5609_v11 = vpop.f32.mrb[103].mxu1  ;;  %v5543_v15 = vadd.f32 %v5542_v32, %v5541_v38  ;;  %v5544_v19 = vpop.f32.mrb[102].mxu0 }
 0x248   : > { %v5610_v31 = vadd.f32 %v5609_v11, %v5608_v28  ;;  %v8289_v7 = vadd.f32 %v5607_v13, %v8205_v2  ;;  %v5545_v33 = vpop.f32.mrb[103].mxu0 }
 0x249   : > { %v8292_v0 = vadd.f32 %v5543_v15, %v8187_v5  ;;  %v5546_v20 = vadd.f32 %v5545_v33, %v5544_v19 }
 0x24a   : > { %v8295_v16 = vadd.f32 %v5610_v31, %v8208_v35 }
 0x24b   : > { %v8298_v22 = vadd.f32 %v5546_v20, %v8190_v4 }
 0x24d   : > { %v5611_v26 = vpop.f32.mrb[104].mxu1 }
 0x24e   : > { %v5612_v3 = vpop.f32.mrb[105].mxu1 }
 0x24f   : > { %v5547_v48 = vpop.f32.mrb[104].mxu0  ;;  %v5613_v18 = vadd.f32 %v5612_v3, %v5611_v26  ;;  %v5614_v51 = vpop.f32.mrb[106].mxu1 }
 0x250   : > { %v5548_v17 = vpop.f32.mrb[105].mxu0  ;;  %v5615_v59 = vpop.f32.mrb[107].mxu1 }
 0x251   : > { %v5549_v46 = vadd.f32 %v5548_v17, %v5547_v48  ;;  %v5550_v2 = vpop.f32.mrb[106].mxu0  ;;  %v5616_v55 = vadd.f32 %v5615_v59, %v5614_v51  ;;  %v8301_v5 = vadd.f32 %v5613_v18, %v8211_v62 }
 0x252   : > { %v5551_v9 = vpop.f32.mrb[107].mxu0 }
 0x253   : > { %v8304_v35 = vadd.f32 %v5549_v46, %v8199_v21  ;;  %v5552_v30 = vadd.f32 %v5551_v9, %v5550_v2  ;;  %v8307_v4 = vadd.f32 %v5616_v55, %v8214_v47 }
 0x255   : > { %v8310_v61 = vadd.f32 %v5552_v30, %v8202_v12 }
 0x258   : > { %v5617_v10 = vpop.f32.mrb[108].mxu1 }
 0x259   : > { %v5618_v42 = vpop.f32.mrb[109].mxu1 }
 0x25a   : > { %v5619_v53 = vadd.f32 %v5618_v42, %v5617_v10  ;;  %v5620_v24 = vpop.f32.mrb[110].mxu1 }
 0x25b   : > { %v5553_v63 = vpop.f32.mrb[108].mxu0  ;;  %v5621_v36 = vpop.f32.mrb[111].mxu1 }
 0x25c   : > { %v5554_v38 = vpop.f32.mrb[109].mxu0  ;;  %v5622_v13 = vadd.f32 %v5621_v36, %v5620_v24  ;;  %v8313_v62 = vadd.f32 %v5619_v53, %v8223_v56 }
 0x25d   : > { %v5555_v21 = vadd.f32 %v5554_v38, %v5553_v63  ;;  %v5556_v28 = vpop.f32.mrb[110].mxu0 }
 0x25e   : > { %v5557_v32 = vpop.f32.mrb[111].mxu0  ;;  %v8316_v47 = vadd.f32 %v5622_v13, %v8226_v8 }
 0x25f   : > { %v8319_v12 = vadd.f32 %v5555_v21, %v8217_v60  ;;  %v5558_v11 = vadd.f32 %v5557_v32, %v5556_v28 }
 0x260   : > { %v5623_v15 = vpop.f32.mrb[112].mxu1 }
 0x261   : > { %v8322_v19 = vadd.f32 %v5558_v11, %v8220_v45  ;;  %v5624_v31 = vpop.f32.mrb[113].mxu1 }
 0x262   : > { %v5625_v33 = vadd.f32 %v5624_v31, %v5623_v15  ;;  %v5626_v20 = vpop.f32.mrb[114].mxu1 }
 0x263   : > { %v5713_v56 = vpop.f32.mrb[112].mxu0  ;;  %v5627_v26 = vpop.f32.mrb[115].mxu1 }
 0x264   : > { %v4446_v48 = vadd.f32 %v5713_v56, %v8241_v44  ;;  %v4437_v3 = vpop.f32.mrb[113].mxu0  ;;  %v5628_v17 = vadd.f32 %v5627_v26, %v5626_v20  ;;  %v8326_v8 = vadd.f32 %v5625_v33, %v8235_v6 }
 0x265   : > { %v4438_v60 = vadd.f32 %v4437_v3, %v8229_v14  ;;  %v5714_v18 = vpop.f32.mrb[114].mxu0 }
 0x266   : > { %4566 = vst [vmem:[%s8331_s21 + $0x10] sm:$0xff] %v4446_v48  ;;  %v4449_v45 = vadd.f32 %v5714_v18, %v8244_v1  ;;  %v4440_v51 = vpop.f32.mrb[115].mxu0  ;;  %v8336_v44 = vadd.f32 %v5628_v17, %v8238_v52  ;;  %v4636_v9 = vmul.f32 %v4446_v48, %v4446_v48 }
 0x267   : > { %4564 = vst [vmem:[%s8331_s21] sm:$0xff] %v4438_v60  ;;  %v4441_v6 = vadd.f32 %v4440_v51, %v8232_v43  ;;  %v4634_v14 = vmul.f32 %v4438_v60, %v4438_v60 }
 0x268   : > { %4567 = vst [vmem:[%s8331_s21 + $0x18] sm:$0xff] %v4449_v45  ;;  %v4637_v63 = vmul.f32 %v4449_v45, %v4449_v45 }
 0x269   : > { %4565 = vst [vmem:[%s8331_s21 + $0x8] sm:$0xff] %v4441_v6  ;;  %v4596_v46 = vadd.f32 %v4441_v6, %v4438_v60  ;;  %v4635_v2 = vmul.f32 %v4441_v6, %v4441_v6 }
 0x26a   : > { %v5629_v59 = vpop.f32.mrb[116].mxu1 }
 0x26b   : > { %v4597_v55 = vadd.f32 %v4596_v46, %v4446_v48  ;;  %v4666_v30 = vadd.f32 %v4635_v2, %v4634_v14  ;;  %v5717_v10 = vpop.f32.mrb[116].mxu0  ;;  %v5630_v42 = vpop.f32.mrb[117].mxu1 }
 0x26c   : > { %v4462_v1 = vadd.f32 %v5717_v10, %v8265_v27  ;;  %v5631_v52 = vadd.f32 %v5630_v42, %v5629_v59  ;;  %v4453_v53 = vpop.f32.mrb[117].mxu0  ;;  %v5632_v24 = vpop.f32.mrb[118].mxu1 }
 0x26d   : > { %v4667_v43 = vadd.f32 %v4666_v30, %v4636_v9  ;;  %v4454_v36 = vadd.f32 %v4453_v53, %v8253_v49  ;;  %v4598_v38 = vadd.f32 %v4597_v55, %v4449_v45  ;;  %v5718_v13 = vpop.f32.mrb[118].mxu0  ;;  %v5633_v21 = vpop.f32.mrb[119].mxu1 }
 0x26e   : > { %4570 = vst [vmem:[%s8331_s21 + $0x30] sm:$0xff] %v4462_v1  ;;  %v4465_v28 = vadd.f32 %v5718_v13, %v8268_v58  ;;  %v5634_v32 = vadd.f32 %v5633_v21, %v5632_v24  ;;  %v4456_v11 = vpop.f32.mrb[119].mxu0  ;;  %v8347_v15 = vadd.f32 %v5631_v52, %v8247_v50  ;;  %v4640_v58 = vmul.f32 %v4462_v1, %v4462_v1 }
 0x26f   : > { %4568 = vst [vmem:[%s8331_s21 + $0x20] sm:$0xff] %v4454_v36  ;;  %v4599_v27 = vadd.f32 %v4598_v38, %v4454_v36  ;;  %v4638_v31 = vmul.f32 %v4454_v36, %v4454_v36  ;;  %v4668_v33 = vadd.f32 %v4667_v43, %v4637_v63  ;;  %v4457_v20 = vadd.f32 %v4456_v11, %v8256_v39 }
 0x270   : > { %4571 = vst [vmem:[%s8331_s21 + $0x38] sm:$0xff] %v4465_v28  ;;  %v8353_v49 = vadd.f32 %v5634_v32, %v8250_v41  ;;  %v4641_v18 = vmul.f32 %v4465_v28, %v4465_v28 }
 0x271   : > { %v4669_v56 = vadd.f32 %v4668_v33, %v4638_v31  ;;  %4569 = vst [vmem:[%s8331_s21 + $0x28] sm:$0xff] %v4457_v20  ;;  %v4600_v26 = vadd.f32 %v4599_v27, %v4457_v20  ;;  %v4639_v48 = vmul.f32 %v4457_v20, %v4457_v20 }
 0x273   : > { %v4601_v3 = vadd.f32 %v4600_v26, %v4462_v1  ;;  %v4670_v17 = vadd.f32 %v4669_v56, %v4639_v48  ;;  %v5635_v50 = vpop.f32.mrb[120].mxu1  ;;  %v5721_v60 = vpop.f32.mrb[120].mxu0 }
 0x274   : > { %v4478_v45 = vadd.f32 %v5721_v60, %v8289_v7  ;;  %v5636_v51 = vpop.f32.mrb[121].mxu1  ;;  %v4469_v39 = vpop.f32.mrb[121].mxu0 }
 0x275   : > { %v4671_v6 = vadd.f32 %v4670_v17, %v4640_v58  ;;  %v5637_v41 = vadd.f32 %v5636_v51, %v5635_v50  ;;  %v4470_v14 = vadd.f32 %v4469_v39, %v8277_v34  ;;  %v4602_v46 = vadd.f32 %v4601_v3, %v4465_v28  ;;  %v5638_v2 = vpop.f32.mrb[122].mxu1  ;;  %v5722_v59 = vpop.f32.mrb[122].mxu0 }
 0x276   : > { %4574 = vst [vmem:[%s8331_s21 + $0x50] sm:$0xff] %v4478_v45  ;;  %v4481_v9 = vadd.f32 %v5722_v59, %v8295_v16  ;;  %v5639_v55 = vpop.f32.mrb[123].mxu1  ;;  %v4472_v30 = vpop.f32.mrb[123].mxu0  ;;  %v4644_v36 = vmul.f32 %v4478_v45, %v4478_v45 }
 0x277   : > { %4572 = vst [vmem:[%s8331_s21 + $0x40] sm:$0xff] %v4470_v14  ;;  %v4603_v10 = vadd.f32 %v4602_v46, %v4470_v14  ;;  %v4642_v42 = vmul.f32 %v4470_v14, %v4470_v14  ;;  %v4672_v7 = vadd.f32 %v4671_v6, %v4641_v18  ;;  %v5640_v1 = vadd.f32 %v5639_v55, %v5638_v2 }
 0x278   : > { %4575 = vst [vmem:[%s8331_s21 + $0x58] sm:$0xff] %v4481_v9  ;;  %v4473_v52 = vadd.f32 %v4472_v30, %v8280_v40  ;;  %v8364_v53 = vadd.f32 %v5637_v41, %v8259_v57  ;;  %v4645_v11 = vmul.f32 %v4481_v9, %v4481_v9 }
 0x279   : > { %v4673_v34 = vadd.f32 %v4672_v7, %v4642_v42  ;;  %v8367_v24 = vadd.f32 %v5640_v1, %v8262_v23 }
 0x27a   : > { %4573 = vst [vmem:[%s8331_s21 + $0x48] sm:$0xff] %v4473_v52  ;;  %v4604_v16 = vadd.f32 %v4603_v10, %v4473_v52  ;;  %v4643_v63 = vmul.f32 %v4473_v52, %v4473_v52 }
 0x27b   : > { %v5725_v43 = vpop.f32.mrb[124].mxu0 }
 0x27c   : > { %v4605_v38 = vadd.f32 %v4604_v16, %v4478_v45  ;;  %v4674_v13 = vadd.f32 %v4673_v34, %v4643_v63  ;;  %v4494_v21 = vadd.f32 %v5725_v43, %v8313_v62  ;;  %v4485_v28 = vpop.f32.mrb[125].mxu0 }
 0x27d   : > { %v5641_v40 = vpop.f32.mrb[124].mxu1  ;;  %v4486_v57 = vadd.f32 %v4485_v28, %v8301_v5  ;;  %v5726_v32 = vpop.f32.mrb[126].mxu0 }
 0x27e   : > { %v4675_v27 = vadd.f32 %v4674_v13, %v4644_v36  ;;  %4578 = vst [vmem:[%s8331_s21 + $0x70] sm:$0xff] %v4494_v21  ;;  %v5642_v23 = vpop.f32.mrb[125].mxu1  ;;  %v4606_v31 = vadd.f32 %v4605_v38, %v4481_v9  ;;  %v4497_v33 = vadd.f32 %v5726_v32, %v8316_v47  ;;  %v4488_v20 = vpop.f32.mrb[127].mxu0  ;;  %v4648_v51 = vmul.f32 %v4494_v21, %v4494_v21 }
 0x27f   : > { %v5643_v56 = vadd.f32 %v5642_v23, %v5641_v40  ;;  %4576 = vst [vmem:[%s8331_s21 + $0x60] sm:$0xff] %v4486_v57  ;;  %v4646_v26 = vmul.f32 %v4486_v57, %v4486_v57  ;;  %v5644_v48 = vpop.f32.mrb[126].mxu1  ;;  %v4489_v62 = vadd.f32 %v4488_v20, %v8307_v4 }
 0x280   : > { %v4607_v58 = vadd.f32 %v4606_v31, %v4486_v57  ;;  %v4676_v3 = vadd.f32 %v4675_v27, %v4645_v11  ;;  %4579 = vst [vmem:[%s8331_s21 + $0x78] sm:$0xff] %v4497_v33  ;;  %v5645_v5 = vpop.f32.mrb[127].mxu1  ;;  %v4649_v4 = vmul.f32 %v4497_v33, %v4497_v33 }
 0x281   : > { %v5646_v17 = vadd.f32 %v5645_v5, %v5644_v48  ;;  %4577 = vst [vmem:[%s8331_s21 + $0x68] sm:$0xff] %v4489_v62  ;;  %v4647_v50 = vmul.f32 %v4489_v62, %v4489_v62  ;;  %v4365_v60 = vadd.f32 %v5643_v56, %v8271_v29 }
 0x282   : > { %v4677_v18 = vadd.f32 %v4676_v3, %v4646_v26  ;;  %v4608_v45 = vadd.f32 %v4607_v58, %v4489_v62 }
 0x283   : > { %v4368_v47 = vadd.f32 %v5646_v17, %v8274_v37 }
 0x284   : > { %v4609_v39 = vadd.f32 %v4608_v45, %v4494_v21  ;;  %v4678_v6 = vadd.f32 %v4677_v18, %v4647_v50 }
 0x285   : > { %v5729_v41 = vpop.f32.mrb[128].mxu0 }
 0x286   : > { %v4679_v14 = vadd.f32 %v4678_v6, %v4648_v51  ;;  %v4510_v46 = vadd.f32 %v5729_v41, %v8347_v15  ;;  %v4501_v2 = vpop.f32.mrb[129].mxu0  ;;  %v4610_v59 = vadd.f32 %v4609_v39, %v4497_v33 }
 0x287   : > { %v5647_v9 = vpop.f32.mrb[128].mxu1  ;;  %v4502_v29 = vadd.f32 %v4501_v2, %v8326_v8  ;;  %v5730_v55 = vpop.f32.mrb[130].mxu0 }
 0x288   : > { %4582 = vst [vmem:[%s8331_s21 + $0x90] sm:$0xff] %v4510_v46  ;;  %v5648_v30 = vpop.f32.mrb[129].mxu1  ;;  %v4680_v37 = vadd.f32 %v4679_v14, %v4649_v4  ;;  %v4513_v10 = vadd.f32 %v5730_v55, %v8353_v49  ;;  %v4504_v42 = vpop.f32.mrb[131].mxu0  ;;  %v4652_v13 = vmul.f32 %v4510_v46, %v4510_v46 }
 0x289   : > { %v5649_v7 = vadd.f32 %v5648_v30, %v5647_v9  ;;  %4580 = vst [vmem:[%s8331_s21 + $0x80] sm:$0xff] %v4502_v29  ;;  %v4611_v1 = vadd.f32 %v4610_v59, %v4502_v29  ;;  %v4650_v52 = vmul.f32 %v4502_v29, %v4502_v29  ;;  %v5650_v34 = vpop.f32.mrb[130].mxu1  ;;  %v4505_v15 = vadd.f32 %v4504_v42, %v8336_v44 }
 0x28a   : > { %4583 = vst [vmem:[%s8331_s21 + $0x98] sm:$0xff] %v4513_v10  ;;  %v5651_v16 = vpop.f32.mrb[131].mxu1  ;;  %v4653_v57 = vmul.f32 %v4513_v10, %v4513_v10 }
 0x28b   : > { %v4681_v63 = vadd.f32 %v4680_v37, %v4650_v52  ;;  %v5652_v43 = vadd.f32 %v5651_v16, %v5650_v34  ;;  %4581 = vst [vmem:[%s8331_s21 + $0x88] sm:$0xff] %v4505_v15  ;;  %v4612_v8 = vadd.f32 %v4611_v1, %v4505_v15  ;;  %v4651_v36 = vmul.f32 %v4505_v15, %v4505_v15 }
 0x28c   : > { %v4373_v38 = vadd.f32 %v5649_v7, %v8283_v25 }
 0x28d   : > { %v4613_v49 = vadd.f32 %v4612_v8, %v4510_v46  ;;  %v4682_v21 = vadd.f32 %v4681_v63, %v4651_v36  ;;  %v4376_v28 = vadd.f32 %v5652_v43, %v8286_v54 }
 0x28e   : > { %v5733_v40 = vpop.f32.mrb[132].mxu0 }
 0x28f   : > { %v4683_v32 = vadd.f32 %v4682_v21, %v4652_v13  ;;  %v4526_v44 = vadd.f32 %v5733_v40, %v4365_v60  ;;  %v4517_v11 = vpop.f32.mrb[133].mxu0  ;;  %v4614_v27 = vadd.f32 %v4613_v49, %v4513_v10 }
 0x290   : > { %v5653_v23 = vpop.f32.mrb[132].mxu1  ;;  %v4518_v31 = vadd.f32 %v4517_v11, %v8364_v53  ;;  %v5734_v33 = vpop.f32.mrb[134].mxu0 }
 0x291   : > { %4586 = vst [vmem:[%s8331_s21 + $0xb0] sm:$0xff] %v4526_v44  ;;  %v5654_v25 = vpop.f32.mrb[133].mxu1  ;;  %v4684_v20 = vadd.f32 %v4683_v32, %v4653_v57  ;;  %v4529_v56 = vadd.f32 %v5734_v33, %v4368_v47  ;;  %v4520_v26 = vpop.f32.mrb[135].mxu0  ;;  %v4656_v45 = vmul.f32 %v4526_v44, %v4526_v44 }
 0x292   : > { %v5655_v48 = vadd.f32 %v5654_v25, %v5653_v23  ;;  %4584 = vst [vmem:[%s8331_s21 + $0xa0] sm:$0xff] %v4518_v31  ;;  %v4615_v54 = vadd.f32 %v4614_v27, %v4518_v31  ;;  %v4654_v62 = vmul.f32 %v4518_v31, %v4518_v31  ;;  %v5656_v58 = vpop.f32.mrb[134].mxu1  ;;  %v4521_v3 = vadd.f32 %v4520_v26, %v8367_v24 }
 0x293   : > { %4587 = vst [vmem:[%s8331_s21 + $0xb8] sm:$0xff] %v4529_v56  ;;  %v5657_v5 = vpop.f32.mrb[135].mxu1  ;;  %v4657_v6 = vmul.f32 %v4529_v56, %v4529_v56 }
 0x294   : > { %v4685_v17 = vadd.f32 %v4684_v20, %v4654_v62  ;;  %v5658_v50 = vadd.f32 %v5657_v5, %v5656_v58  ;;  %4585 = vst [vmem:[%s8331_s21 + $0xa8] sm:$0xff] %v4521_v3  ;;  %v4616_v53 = vadd.f32 %v4615_v54, %v4521_v3  ;;  %v4655_v60 = vmul.f32 %v4521_v3, %v4521_v3 }
 0x295   : > { %v4381_v18 = vadd.f32 %v5655_v48, %v8292_v0 }
 0x296   : > { %v4617_v47 = vadd.f32 %v4616_v53, %v4526_v44  ;;  %v4686_v51 = vadd.f32 %v4685_v17, %v4655_v60  ;;  %v4384_v39 = vadd.f32 %v5658_v50, %v8298_v22 }
 0x298   : > { %v4687_v41 = vadd.f32 %v4686_v51, %v4656_v45  ;;  %v5737_v4 = vpop.f32.mrb[136].mxu0  ;;  %v4618_v24 = vadd.f32 %v4617_v47, %v4529_v56 }
 0x299   : > { %v4542_v14 = vadd.f32 %v5737_v4, %v4381_v18  ;;  %v4533_v46 = vpop.f32.mrb[137].mxu0 }
 0x29a   : > { %v5659_v2 = vpop.f32.mrb[136].mxu1  ;;  %v4534_v59 = vadd.f32 %v4533_v46, %v4373_v38  ;;  %v4688_v9 = vadd.f32 %v4687_v41, %v4657_v6  ;;  %v5738_v29 = vpop.f32.mrb[138].mxu0 }
 0x29b   : > { %4590 = vst [vmem:[%s8331_s21 + $0xd0] sm:$0xff] %v4542_v14  ;;  %v5660_v0 = vpop.f32.mrb[137].mxu1  ;;  %v4545_v55 = vadd.f32 %v5738_v29, %v4384_v39  ;;  %v4536_v30 = vpop.f32.mrb[139].mxu0  ;;  %v4660_v43 = vmul.f32 %v4542_v14, %v4542_v14 }
 0x29c   : > { %v5661_v37 = vadd.f32 %v5660_v0, %v5659_v2  ;;  %4588 = vst [vmem:[%s8331_s21 + $0xc0] sm:$0xff] %v4534_v59  ;;  %v4619_v22 = vadd.f32 %v4618_v24, %v4534_v59  ;;  %v4658_v10 = vmul.f32 %v4534_v59, %v4534_v59  ;;  %v5662_v42 = vpop.f32.mrb[138].mxu1  ;;  %v4537_v7 = vadd.f32 %v4536_v30, %v4376_v28 }
 0x29d   : > { %4591 = vst [vmem:[%s8331_s21 + $0xd8] sm:$0xff] %v4545_v55  ;;  %v5663_v1 = vpop.f32.mrb[139].mxu1  ;;  %v4661_v49 = vmul.f32 %v4545_v55, %v4545_v55 }
 0x29e   : > { %v4689_v52 = vadd.f32 %v4688_v9, %v4658_v10  ;;  %v5664_v34 = vadd.f32 %v5663_v1, %v5662_v42  ;;  %4589 = vst [vmem:[%s8331_s21 + $0xc8] sm:$0xff] %v4537_v7  ;;  %v4620_v15 = vadd.f32 %v4619_v22, %v4537_v7  ;;  %v4659_v16 = vmul.f32 %v4537_v7, %v4537_v7 }
 0x29f   : > { %v4389_v63 = vadd.f32 %v5661_v37, %v8304_v35 }
 0x2a0   : > { %v4621_v8 = vadd.f32 %v4620_v15, %v4542_v14  ;;  %v4690_v36 = vadd.f32 %v4689_v52, %v4659_v16  ;;  %v4392_v38 = vadd.f32 %v5664_v34, %v8310_v61 }
 0x2a1   : > { %v5741_v13 = vpop.f32.mrb[140].mxu0 }
 0x2a2   : > { %v4691_v21 = vadd.f32 %v4690_v36, %v4660_v43  ;;  %v4549_v40 = vpop.f32.mrb[141].mxu0  ;;  %v4622_v28 = vadd.f32 %v4621_v8, %v4545_v55 }
 0x2a3   : > { %v5665_v57 = vpop.f32.mrb[140].mxu1  ;;  %v4550_v32 = vadd.f32 %v4549_v40, %v4389_v63  ;;  %v5742_v44 = vpop.f32.mrb[142].mxu0 }
 0x2a4   : > { %v5666_v11 = vpop.f32.mrb[141].mxu1  ;;  %v4692_v27 = vadd.f32 %v4691_v21, %v4661_v49  ;;  %v4552_v35 = vpop.f32.mrb[143].mxu0 }
 0x2a5   : > { %v5667_v23 = vadd.f32 %v5666_v11, %v5665_v57  ;;  %4592 = vst [vmem:[%s8331_s21 + $0xe0] sm:$0xff] %v4550_v32  ;;  %v4623_v31 = vadd.f32 %v4622_v28, %v4550_v32  ;;  %v4662_v33 = vmul.f32 %v4550_v32, %v4550_v32  ;;  %v5668_v25 = vpop.f32.mrb[142].mxu1  ;;  %v4553_v61 = vadd.f32 %v4552_v35, %v4392_v38 }
 0x2a6   : > { %v5669_v20 = vpop.f32.mrb[143].mxu1 }
 0x2a7   : > { %v4397_v56 = vadd.f32 %v5667_v23, %v8319_v12  ;;  %v4693_v26 = vadd.f32 %v4692_v27, %v4662_v33  ;;  %v5670_v48 = vadd.f32 %v5669_v20, %v5668_v25  ;;  %4593 = vst [vmem:[%s8331_s21 + $0xe8] sm:$0xff] %v4553_v61  ;;  %v4624_v54 = vadd.f32 %v4623_v31, %v4553_v61 }
 0x2a8   : > { %v4663_v62 = vmul.f32 %v4553_v61, %v4553_v61 }
 0x2a9   : > { %v4558_v58 = vadd.f32 %v5741_v13, %v4397_v56  ;;  %v4400_v3 = vadd.f32 %v5670_v48, %v8322_v19 }
 0x2aa   : > { %v4694_v5 = vadd.f32 %v4693_v26, %v4663_v62 }
 0x2ab   : > { %4594 = vst [vmem:[%s8331_s21 + $0xf0] sm:$0xff] %v4558_v58  ;;  %v4664_v12 = vmul.f32 %v4558_v58, %v4558_v58  ;;  %v4561_v17 = vadd.f32 %v5742_v44, %v4400_v3  ;;  %v4625_v50 = vadd.f32 %v4624_v54, %v4558_v58 }
 0x2ad   : > { %4595 = vst [vmem:[%s8331_s21 + $0xf8] sm:$0xff] %v4561_v17  ;;  %v4665_v53 = vmul.f32 %v4561_v17, %v4561_v17  ;;  %v4626_v60 = vadd.f32 %v4625_v50, %v4561_v17  ;;  %v4695_v18 = vadd.f32 %v4694_v5, %v4664_v12 }
 0x2ae   : > { %6036 = shalt.err (!%p6033_p7)
}
 0x2af   : > { %s6037_s13 = scalar_lea.hbm %s8413_s11, 4096  ;;  %s6041_s8 = scalar_lea.hbm %s8533_s2, 8192 }
 0x2b0   : > { %p6038_p9 = scmp.ne.s32.totalorder %s8413_s11, %s6037_s13  ;;  %p6042_p5 = scmp.lt.u32.totalorder %s8413_s11, %s8533_s2 }
 0x2b1   : > { %p6043_p11 = scmp.lt.u32.totalorder %s6041_s8, %s6037_s13  ;;  %p6045_p4 = scmp.lt.u32.totalorder %s6037_s13, %s8413_s11 }
 0x2b2   : > { %p6039_p2 = pnand %p6038_p9, %p6285_p12 }
 0x2b3   : > { %p6044_p1 = por %p6043_p11, %p6042_p5 }
 0x2b4   : > { %p6040_p0 = pneg %p6039_p2 }
 0x2b5   : > { %p6046_p6 = por %p6045_p4, %p6044_p1 }
 0x2b7   : > { %p6047_p8 = pnand %p6046_p6, %p6040_p0 }
 0x2b9   : > { %6050 = shalt.err (!%p6047_p8)
}
 0x2ba   : > { %s6163_s28 = smov 128   ;;  %s6164_s29 = smov 8   ;;  %v4627_v19 = vrot.slane %v4626_v60, 4  ;;  %v4696_v45 = vadd.f32 %v4695_v18, %v4665_v53 }
 0x2bb   : > { %5765 = dma.vmem_to_hbm [thread:$0]  (%p6285_p12), %s8415_s10, 4096, %s8413_s11, %s4705_s6, %s6163_s28, %s6163_s28, %s6164_s29  }
 0x2bc   : > { %v4628_v47 = vadd.f32 %v4627_v19, %v4626_v60  ;;  %v4697_v51 = vrot.slane %v4696_v45, 4  ;;  %s4709_s26 = sand.u32 1, %s6213_s19   ;;  %s5217_s9 = sshll.u32 %s6213_s19, 4 }
 0x2bd   : > { %s240_s25 = scalar_lea.vmem [#allocation9], %s6333_s14  ;;  %s246_s13 = scalar_lea.vmem [#allocation11], %s6333_s14 }
 0x2be   : > { %v4629_v39 = vrot.slane %v4628_v47, 2  ;;  %v4698_v6 = vadd.f32 %v4697_v51, %v4696_v45  ;;  %s4742_s12 = sshll.u32 %s240_s25, 4  ;;  %s4755_s24 = sshll.u32 %s246_s13, 4  ;;  %s8454_s12 = int_to_ptr.vmem [resolvable:$true] %s4742_s12  ;;  %s8461_s24 = int_to_ptr.vmem [resolvable:$true] %s4755_s24 }
 0x2bf   : > { %s8452_s6 = scalar_lea.hbm %s8534_s3, %s5217_s9  ;;  %s8459_s8 = scalar_lea.hbm %s8535_s4, %s5217_s9 }
 0x2c0   : > { %v4699_v41 = vrot.slane %v4698_v6, 2  ;;  %v4630_v4 = vadd.f32 %v4629_v39, %v4628_v47  ;;  %s8463_s21 = scalar_lea.sflag [#allocation10], %s4709_s26  ;;  %s6051_s23 = scalar_lea.vmem %s8454_s12, 16 }
 0x2c1   : > { %p6052_p10 = scmp.ne.s32.totalorder %s8454_s12, %s6051_s23  ;;  %s6165_s28 = smov [#allocation9]  }
 0x2c2   : > { %v4631_v24 = vrot.slane %v4630_v4, 1  ;;  %v4700_v14 = vadd.f32 %v4699_v41, %v4698_v6  ;;  %s6055_s29 = sshll.u32 %s6165_s28, 4  ;;  %s6056_s29 = int_to_ptr.vmem [resolvable:$false] %s6055_s29 }
 0x2c3   : > { %p6053_p13 = pnand %p6052_p10, %p6285_p12  ;;  %s6057_s10 = scalar_lea.vmem %s6056_s29, 32 }
 0x2c4   : > { %v4632_v46 = vadd.f32 %v4631_v24, %v4630_v4  ;;  %v4701_v2 = vrot.slane %v4700_v14, 1  ;;  %p6058_p7 = scmp.lt.s32.totalorder %s8454_s12, %s6056_s29  ;;  %p6059_p9 = scmp.lt.s32.totalorder %s6057_s10, %s6051_s23 }
 0x2c5   : > { %p6054_p3 = pneg %p6053_p13 }
 0x2c6   : > { %4633 = vst [vmem:[%s240_s25] sm:$0x1] %v4632_v46  ;;  %v4702_v59 = vadd.f32 %v4701_v2, %v4700_v14  ;;  %p6060_p2 = por %p6059_p9, %p6058_p7 }
 0x2c8   : > { %p6061_p0 = pnand %p6060_p2, %p6054_p3 }
 0x2ca   : > { %6064 = shalt.err (!%p6061_p0)
}
 0x2cb   : > { %s6065_s26 = scalar_lea.hbm %s8452_s6, 16  ;;  %s6069_s11 = scalar_lea.hbm %s8534_s3, 32 }
 0x2cc   : > { %p6066_p5 = scmp.ne.s32.totalorder %s8452_s6, %s6065_s26  ;;  %p6070_p4 = scmp.lt.u32.totalorder %s8452_s6, %s8534_s3 }
 0x2cd   : > { %p6071_p6 = scmp.lt.u32.totalorder %s6069_s11, %s6065_s26  ;;  %p6073_p10 = scmp.lt.u32.totalorder %s6065_s26, %s8452_s6 }
 0x2ce   : > { %p6067_p11 = pnand %p6066_p5, %p6285_p12 }
 0x2cf   : > { %p6072_p8 = por %p6071_p6, %p6070_p4 }
 0x2d0   : > { %p6068_p1 = pneg %p6067_p11 }
 0x2d1   : > { %p6074_p13 = por %p6073_p10, %p6072_p8 }
 0x2d3   : > { %p6075_p3 = pnand %p6074_p13, %p6068_p1 }
 0x2d5   : > { %6078 = shalt.err (!%p6075_p3)
}
 0x2d6   : > { %5766 = dma.vmem_to_hbm [thread:$0]  (%p6285_p12), %s8454_s12, 16, %s8452_s6, %s8463_s21   ;;  %4703 = vst [vmem:[%s246_s13] sm:$0x1] %v4702_v59 }
 0x2d7   : > { %s6079_s23 = scalar_lea.vmem %s8461_s24, 16  ;;  %s6166_s28 = smov [#allocation11]  }
 0x2d8   : > { %p6080_p7 = scmp.ne.s32.totalorder %s8461_s24, %s6079_s23  ;;  %s6083_s29 = sshll.u32 %s6166_s28, 4  ;;  %s6084_s29 = int_to_ptr.vmem [resolvable:$false] %s6083_s29 }
 0x2d9   : > { %s6085_s10 = scalar_lea.vmem %s6084_s29, 32  ;;  %p6086_p0 = scmp.lt.s32.totalorder %s8461_s24, %s6084_s29 }
 0x2da   : > { %p6081_p9 = pnand %p6080_p7, %p6285_p12  ;;  %p6087_p5 = scmp.lt.s32.totalorder %s6085_s10, %s6079_s23 }
 0x2dc   : > { %p6082_p2 = pneg %p6081_p9  ;;  %p6088_p11 = por %p6087_p5, %p6086_p0 }
 0x2de   : > { %p6089_p1 = pnand %p6088_p11, %p6082_p2 }
 0x2e0   : > { %6092 = shalt.err (!%p6089_p1)
}
 0x2e1   : > { %s6093_s14 = scalar_lea.hbm %s8459_s8, 16  ;;  %s6097_s6 = scalar_lea.hbm %s8535_s4, 32 }
 0x2e2   : > { %p6094_p4 = scmp.ne.s32.totalorder %s8459_s8, %s6093_s14  ;;  %p6098_p10 = scmp.lt.u32.totalorder %s8459_s8, %s8535_s4 }
 0x2e3   : > { %p6099_p13 = scmp.lt.u32.totalorder %s6097_s6, %s6093_s14  ;;  %p6101_p7 = scmp.lt.u32.totalorder %s6093_s14, %s8459_s8 }
 0x2e4   : > { %p6095_p6 = pnand %p6094_p4, %p6285_p12 }
 0x2e5   : > { %p6100_p3 = por %p6099_p13, %p6098_p10 }
 0x2e6   : > { %p6096_p8 = pneg %p6095_p6 }
 0x2e7   : > { %p6102_p9 = por %p6101_p7, %p6100_p3 }
 0x2e9   : > { %p6103_p2 = pnand %p6102_p9, %p6096_p8 }
 0x2eb   : > { %6106 = shalt.err (!%p6103_p2)
}
 0x2ec   : > { %5767 = dma.vmem_to_hbm [thread:$0]  (%p6285_p12), %s8461_s24, 16, %s8459_s8, %s8463_s21  }
 0x2ed PF: > { %s4767_s25 = sand.u32 1, %s6141_s15   ;;  %p8598_p0 = scmp.ne.s32.totalorder %s8545_s22, 0 }
 0x2ee   : > { %p8599_p5 = scmp.ge.s32.totalorder %s6153_s18, 2  ;;  %s4768_s11 = scalar_lea.sflag [#allocation5], %s4767_s25 }
 0x2f0   : > { %p5780_p11 = pnand %p8599_p5, %p8598_p0 }
 0x2f2   : > { %6132 = dma.done.wait (!%p5780_p11), %s4768_s11, 4096  }
 0x2f3   : > { %6134 = vsyncadd (!%p5780_p11), %s4768_s11, 4294963200  ;;  %s4776_s19 = sand.u32 1, %s4888_s20  }
 0x2f4   : > { %s4777_s7 = scalar_lea.sflag [#allocation10], %s4776_s19 }
 0x2f5   : > { %6136 = dma.done.wait (!%p5780_p11), %s4777_s7, 32  }
 0x2f6   : > { %6138 = vsyncadd (!%p5780_p11), %s4777_s7, 4294967264  ;;  %p22_p12 = scmp.ge.s32.totalorder %s6250_s27, 4   ;;  %s8600_s15 = smov %s6145_s16 }
 0x2f7   : > { %s8601_s16 = smov %s6149_s17  ;;  %s8602_s17 = smov %s6281_s30 }
 0x2f8   : > { %s8603_s18 = smov %s6250_s27  ;;  %24 = sbr.rel (!%p22_p12) target bundleno = 8 (0x8), region = 111 }
 0x2ff   :  { %4789 = vsyncpa [#allocation4], 1 }
 0x300   :  { %4791 = vsyncpa [#allocation4 + $0x1], 1 }
 0x301   :  { %4792 = vsyncpa [#allocation7], 1 }
 0x302   :  { %4793 = vsyncpa [#allocation5], 1 }
 0x303   :  { %4795 = vsyncpa [#allocation5 + $0x1], 1 }
 0x304   :  { %4796 = vsyncpa [#allocation10], 1 }
 0x305   :  { %4798 = vsyncpa [#allocation10 + $0x1], 1 }

// kernel: resblock_pallas.4
= control target key start
LH: loop header
LB: loop body
LE: loop exit
PB: predicated region body
PF: predicated region fallthrough
CT: control target
= control target key end

     0   :  { %12 = vsyncpa [#allocation4], 0  ;;  %s9022_s0 = inlined_call_operand.hbm [shape: f32[2,16,16,128], index: 0, kind: input, shape index: {}]   ;;  %s9023_s1 = inlined_call_operand.hbm [shape: f32[1,128], index: 1, kind: input, shape index: {}]   ;;  %s9024_s2 = inlined_call_operand.hbm [shape: f32[1,128], index: 2, kind: input, shape index: {}]   ;;  %s9025_s3 = inlined_call_operand.hbm [shape: bf16[1152,128], index: 3, kind: input, shape index: {}]   ;;  %s9026_s4 = inlined_call_operand.hbm [shape: f32[2,16,16,128], index: 4, kind: output, shape index: {0}]   ;;  %s9027_s5 = inlined_call_operand.hbm [shape: f32[2,1,128], index: 5, kind: output, shape index: {1}]   ;;  %s9028_s6 = inlined_call_operand.hbm [shape: f32[2,1,128], index: 6, kind: output, shape index: {2}]  }
   0x1   :  { %14 = vsyncpa [#allocation4 + $0x1], 0 }
   0x2   :  { %15 = vsyncpa [#allocation7], 0 }
   0x3   :  { %16 = vsyncpa [#allocation10], 0 }
   0x4   :  { %17 = vsyncpa [#allocation5], 0 }
   0x5   :  { %19 = vsyncpa [#allocation5 + $0x1], 0 }
   0x6   :  { %20 = vsyncpa [#allocation13], 0 }
   0x7   :  { %22 = vsyncpa [#allocation13 + $0x1], 0  ;;  %s6502_s21 = smov 0   ;;  %s6504_s22 = smov 0  }
   0x8   :  { %s6506_s23 = smov 0   ;;  %s6508_s24 = smov 0  }
   0x9 LB: > { %s6523_s25 = sadd.s32 4294967295, %s6451_s24   ;;  %s9041_s26 = sadd.s32 4294967294, %s6451_s24   ;;  %s6451_s24 = sphi %s6508_s24, %s9137_s24   ;;  %s6447_s23 = sphi %s6506_s23, %s9136_s23   ;;  %s6443_s22 = sphi %s6504_s22, %s9135_s22   ;;  %s6439_s21 = sphi %s6502_s21, %s9134_s21  }
   0xa   : > { %p48_p0 = scmp.ne.s32.totalorder %s6443_s22, %s6439_s21  ;;  %p9029_p1 = scmp.eq.s32.totalorder %s6523_s25, 0 }
   0xb   : > { %p141_p3 = scmp.eq.s32.totalorder %s9041_s26, 1  ;;  %p5097_p5 = scmp.ge.s32.totalorder %s6451_s24, 1 }
   0xc   : > { %p6534_p4 = por %p9029_p1, %p48_p0  ;;  %p200_p7 = scmp.lt.s32.totalorder %s6451_s24, 3 }
   0xd   : > { %p6539_p6 = por %p141_p3, %p48_p0  ;;  %s6453_s30 = smov [#allocation6]  }
   0xe   : > { %s9042_s27 = scalar_select %p6534_p4, 1, 0 }
   0xf   : > { %s9043_s28 = scalar_select %p6539_p6, 1, 0 }
  0x10   : > { %p6544_p8 = pnand %p5097_p5, %p200_p7  ;;  %s213_s7 = sshll.u32 %s6453_s30, 4  ;;  %s214_s7 = int_to_ptr.vmem [resolvable:$true] %s213_s7 }
  0x11   : > { %s6454_s8 = smov [#allocation8]   ;;  %s6455_s11 = smov [#allocation9]  }
  0x12   : > { %s9044_s29 = scalar_select %p6544_p8, 1, 0 }
  0x13   : > { %p5993_p10 = pneg %p6544_p8  ;;  %s224_s9 = sshll.u32 %s6454_s8, 4  ;;  %s6557_s9 = int_to_ptr.vmem [resolvable:$true] %s224_s9 }
  0x14   : > { %s234_s12 = sshll.u32 %s6455_s11, 4  ;;  %s6203_s15 = scalar_lea.hbm %s9023_s1, 16  ;;  %s6559_s12 = int_to_ptr.vmem [resolvable:$true] %s234_s12 }
  0x15   : > { %p6553_p11 = pnand %p5993_p10, %p9029_p1  ;;  %p6204_p12 = scmp.ne.s32.totalorder %s9023_s1, %s6203_s15 }
  0x16   : > { %p6210_p5 = scmp.lt.u32.totalorder %s6203_s15, %s9023_s1 }
  0x17   : > { %p6569_p13 = pneg %p6553_p11 }
  0x19   : > { %p6206_p0 = pnand %p6569_p13, %p6204_p12 }
  0x1b   : > { %p6207_p3 = pneg %p6206_p0 }
  0x1d   : > { %p6212_p7 = pnand %p6210_p5, %p6207_p3 }
  0x1f   : > { %6215 = shalt.err (!%p6212_p7)
}
  0x20   : > { %s6216_s30 = scalar_lea.vmem %s214_s7, 16  ;;  %s6223_s8 = scalar_lea.vmem %s214_s7, 32 }
  0x21   : > { %p6217_p10 = scmp.ne.s32.totalorder %s214_s7, %s6216_s30  ;;  %p6224_p2 = scmp.lt.s32.totalorder %s214_s7, %s214_s7 }
  0x22   : > { %p6225_p6 = scmp.lt.s32.totalorder %s6223_s8, %s6216_s30 }
  0x23   : > { %p6219_p9 = pnand %p6217_p10, %p6569_p13 }
  0x24   : > { %p6226_p4 = por %p6225_p6, %p6224_p2 }
  0x25   : > { %p6220_p1 = pneg %p6219_p9 }
  0x27   : > { %p6227_p8 = pnand %p6226_p4, %p6220_p1 }
  0x29   : > { %6230 = shalt.err (!%p6227_p8)
}
  0x2a   : > { %5996 = dma.hbm_to_vmem [thread:$0]  (!%p6553_p11), %s9023_s1, 16, %s214_s7, [#allocation7]  }
  0x2b   : > { %s6231_s16 = scalar_lea.hbm %s9024_s2, 16 }
  0x2c   : > { %p6232_p9 = scmp.ne.s32.totalorder %s9024_s2, %s6231_s16  ;;  %p6238_p1 = scmp.lt.u32.totalorder %s6231_s16, %s9024_s2 }
  0x2e   : > { %p6234_p12 = pnand %p6232_p9, %p6569_p13 }
  0x30   : > { %p6235_p2 = pneg %p6234_p12 }
  0x32   : > { %p6240_p4 = pnand %p6238_p1, %p6235_p2 }
  0x34   : > { %6243 = shalt.err (!%p6240_p4)
}
  0x35   : > { %s6244_s7 = scalar_lea.vmem %s6557_s9, 16  ;;  %s6251_s8 = scalar_lea.vmem %s6557_s9, 32 }
  0x36   : > { %p6245_p6 = scmp.ne.s32.totalorder %s6557_s9, %s6244_s7  ;;  %p6252_p3 = scmp.lt.s32.totalorder %s6557_s9, %s6557_s9 }
  0x37   : > { %p6253_p5 = scmp.lt.s32.totalorder %s6251_s8, %s6244_s7 }
  0x38   : > { %p6247_p8 = pnand %p6245_p6, %p6569_p13 }
  0x39   : > { %p6254_p7 = por %p6253_p5, %p6252_p3 }
  0x3a   : > { %p6248_p0 = pneg %p6247_p8 }
  0x3c   : > { %p6255_p10 = pnand %p6254_p7, %p6248_p0 }
  0x3e   : > { %6258 = shalt.err (!%p6255_p10)
}
  0x3f   : > { %5999 = dma.hbm_to_vmem [thread:$0]  (!%p6553_p11), %s9024_s2, 16, %s6557_s9, [#allocation7]  }
  0x40   : > { %s6259_s16 = scalar_lea.hbm %s9025_s3, 9216 }
  0x41   : > { %p6260_p9 = scmp.ne.s32.totalorder %s9025_s3, %s6259_s16  ;;  %p6266_p1 = scmp.lt.u32.totalorder %s6259_s16, %s9025_s3 }
  0x43   : > { %p6262_p12 = pnand %p6260_p9, %p6569_p13 }
  0x45   : > { %p6263_p2 = pneg %p6262_p12 }
  0x47   : > { %p6268_p4 = pnand %p6266_p1, %p6263_p2 }
  0x49   : > { %6271 = shalt.err (!%p6268_p4)
}
  0x4a   : > { %s6272_s9 = scalar_lea.vmem %s6559_s12, 9216  ;;  %p6280_p3 = scmp.lt.s32.totalorder %s6559_s12, %s6559_s12 }
  0x4b   : > { %p6273_p6 = scmp.ne.s32.totalorder %s6559_s12, %s6272_s9  ;;  %p6281_p5 = scmp.lt.s32.totalorder %s6272_s9, %s6272_s9 }
  0x4d   : > { %p6275_p8 = pnand %p6273_p6, %p6569_p13  ;;  %p6282_p7 = por %p6281_p5, %p6280_p3 }
  0x4f   : > { %p6276_p0 = pneg %p6275_p8 }
  0x51   : > { %p6283_p10 = pnand %p6282_p7, %p6276_p0 }
  0x53   : > { %6286 = shalt.err (!%p6283_p10)
}
  0x54   : > { %s6456_s7 = smov 64   ;;  %s6457_s18 = smov 4  }
  0x55   : > { %6002 = dma.hbm_to_vmem [thread:$0]  (!%p6553_p11), %s9025_s3, 9216, %s6559_s12, [#allocation10], %s6456_s7, %s6456_s7, %s6457_s18  }
  0x56   : > { %s6633_s13 = sadd.s32 1, %s6451_s24   ;;  %s35_s15 = sadd.s32 1, %s6447_s23 }
  0x57   : > { %s32_s14 = ssub.s32 %s6451_s24, %s6633_s13  ;;  %p42_p9 = scmp.ne.s32.totalorder %s6447_s23, %s6443_s22 }
  0x58   : > { %p33_p13 = scmp.eq.s32.totalorder %s32_s14, 0  ;;  %p43_p12 = scmp.eq.s32.totalorder %s6451_s24, 0 }
  0x59   : > { %p6020_p2 = scmp.lt.s32.totalorder %s6451_s24, 2  ;;  %p9047_p4 = scmp.eq.s32.totalorder %s6523_s25, 1 }
  0x5a   : > { %s6643_s16 = scalar_select %p33_p13, %s6447_s23, %s35_s15  }
  0x5b   : > { %p44_p1 = por %p43_p12, %p42_p9  ;;  %p6647_p6 = por %p9047_p4, %p42_p9 }
  0x5c   : > { %s248_s10 = sand.u32 1, %s6447_s23   ;;  %s5435_s19 = sshll.u32 %s6451_s24, 12 }
  0x5d   : > { %s5102_s12 = sshll.u32 %s248_s10, 8  ;;  %s6656_s9 = scalar_lea.hbm %s9022_s0, %s5435_s19 }
  0x5e   : > { %s252_s7 = scalar_lea.vmem [#allocation3], %s5102_s12  ;;  %p6658_p11 = pnand %p6020_p2, %p44_p1 }
  0x5f   : > { %s259_s18 = sshll.u32 %s252_s7, 4  ;;  %s6664_s11 = scalar_lea.sflag [#allocation4], %s248_s10  ;;  %s6662_s18 = int_to_ptr.vmem [resolvable:$true] %s259_s18 }
  0x60   : > { %s6287_s14 = scalar_lea.hbm %s6656_s9, 4096  ;;  %p6289_p0 = pneg %p6658_p11 }
  0x61   : > { %p6288_p8 = scmp.ne.s32.totalorder %s6656_s9, %s6287_s14  ;;  %s6292_s12 = scalar_lea.hbm %s9022_s0, 8192 }
  0x62   : > { %p6293_p7 = scmp.lt.u32.totalorder %s6656_s9, %s9022_s0  ;;  %p6294_p10 = scmp.lt.u32.totalorder %s6292_s12, %s6287_s14 }
  0x63   : > { %p6290_p3 = pnand %p6289_p0, %p6288_p8  ;;  %p6296_p9 = scmp.lt.u32.totalorder %s6287_s14, %s6656_s9 }
  0x64   : > { %p6295_p13 = por %p6294_p10, %p6293_p7 }
  0x65   : > { %p6291_p5 = pneg %p6290_p3 }
  0x66   : > { %p6297_p12 = por %p6296_p9, %p6295_p13 }
  0x68   : > { %p6298_p2 = pnand %p6297_p12, %p6291_p5 }
  0x6a   : > { %6301 = shalt.err (!%p6298_p2)
}
  0x6b   : > { %s6302_s10 = scalar_lea.vmem %s6662_s18, 4096  ;;  %s6458_s7 = smov [#allocation3]  }
  0x6c   : > { %p6303_p1 = scmp.ne.s32.totalorder %s6662_s18, %s6302_s10  ;;  %s6307_s15 = sshll.u32 %s6458_s7, 4  ;;  %s6308_s15 = int_to_ptr.vmem [resolvable:$false] %s6307_s15 }
  0x6d   : > { %s6309_s19 = scalar_lea.vmem %s6308_s15, 8192  ;;  %p6310_p3 = scmp.lt.s32.totalorder %s6662_s18, %s6308_s15 }
  0x6e   : > { %p6305_p4 = pnand %p6303_p1, %p6289_p0  ;;  %p6311_p7 = scmp.lt.s32.totalorder %s6309_s19, %s6302_s10 }
  0x70   : > { %p6306_p8 = pneg %p6305_p4  ;;  %p6312_p10 = por %p6311_p7, %p6310_p3 }
  0x72   : > { %p6313_p13 = pnand %p6312_p10, %p6306_p8 }
  0x74   : > { %6316 = shalt.err (!%p6313_p13)
}
  0x75   : > { %s6459_s14 = smov 128   ;;  %s6460_s12 = smov 8  }
  0x76   : > { %6006 = dma.hbm_to_vmem [thread:$0]  (!%p6658_p11), %s6656_s9, 4096, %s6662_s18, %s6664_s11, %s6459_s14, %s6459_s14, %s6460_s12  }
  0x77   : > { %p9050_p0 = scmp.ne.s32.totalorder %s9044_s29, 0 }
  0x79   : > { %271 = sbr.rel (%p9050_p0) target bundleno = 825 (0x339), region = 36 }
  0x80   : > { %s6695_s20 = sand.u32 1, %s6443_s22   ;;  %p9051_p5 = scmp.ne.s32.totalorder %s9042_s27, 0 }
  0x81   : > { %s5106_s30 = sshll.u32 %s6695_s20, 8  ;;  %s274_s10 = scalar_lea.sflag [#allocation4], %s6695_s20 }
  0x82   : > { %s6701_s7 = scalar_lea.vmem [#allocation3], %s5106_s30 }
  0x83   : > { %6418 = dma.done.wait (%p9051_p5), %s274_s10, 4096  }
  0x84   : > { %6420 = vsyncadd (%p9051_p5), %s274_s10, 4294963200  ;;  %p9052_p11 = scmp.eq.s32.totalorder %s6523_s25, 0 }
  0x86   : > { %6422 = dma.done.wait (%p9052_p11), [#allocation7], 32   ;;  %p9053_p9 = pmov %p9052_p11 }
  0x88   : > { %6424 = vsyncadd (%p9053_p9), [#allocation7], 4294967264  ;;  %p9054_p12 = pmov %p9053_p9 }
  0x89   : > { %p9055_p2 = pmov %p9053_p9 }
  0x8a   : > { %6426 = dma.done.wait (%p9054_p12), [#allocation10], 9216  }
  0x8b   : > { %6428 = vsyncadd (%p9055_p2), [#allocation10], 4294958080  ;;  %vm638_vm0 = vcmask 1040384   ;;  %vm639_vm1 = vsmask.f32 256  ;;  %v6461_v0 = vmov 0  }
  0x8c   : > { %v488_v1 = vrot.slane %v6461_v0, 7  ;;  %vm6715_vm2 = vmand %vm638_vm0, %vm639_vm1  ;;  %v9056_v2 = vmov 0  ;;  %v6067_v8 = vld [vmem:[#allocation9 + $0x40] sm:$0xff]   ;;  %v6069_v10 = vld [vmem:[#allocation9 + $0x48] sm:$0xff]   ;;  %vm964_vm3 = vsmask.f32 3328 }
  0x8d   : > { %v9057_v2 = vsel %vm6715_vm2, 4294967295, %v9056_v2  ;;  %v6068_v9 = vld [vmem:[#allocation9] sm:$0xff]   ;;  %5437 = vmatprep.subr.bf16.mxu0 %v6067_v8  ;;  %5957 = vmatprep.subr.bf16.mxu1 %v6067_v8  ;;  %v6070_v11 = vld [vmem:[#allocation9 + $0x8] sm:$0xff]   ;;  %v6071_v12 = vld [vmem:[#allocation9 + $0x50] sm:$0xff]   ;;  %vm965_vm4 = vsmask.f32 7440 }
  0x8e   : > { %9058 = vst [vmem:[#allocation20_spill] sm:$0xff] %v9057_v2  ;;  %v641_v3 = vsel %vm6715_vm2, 0, %v488_v1  ;;  %v658_v4 = vsel %vm6715_vm2, %v488_v1, 0  ;;  %5438 = vmatpush3.bf16.msra.mxu0 %v6068_v9  ;;  %5965 = vmatpush3.bf16.msra.mxu1 %v6068_v9  ;;  %v6072_v13 = vld [vmem:[#allocation9 + $0x10] sm:$0xff]   ;;  %v6073_v14 = vld [vmem:[#allocation9 + $0x58] sm:$0xff]   ;;  %v6075_v16 = vld [vmem:[#allocation9 + $0x60] sm:$0xff]  }
  0x8f   : > { %v5113_v5 = vcombine.low %v641_v3, %v641_v3  ;;  %v5114_v6 = vcombine.high %v641_v3, %v641_v3  ;;  %v5115_v7 = vcombine.low %v658_v4, %v658_v4  ;;  %5439 = vmatprep.subr.bf16.mxu0 %v6069_v10  ;;  %5958 = vmatprep.subr.bf16.mxu1 %v6069_v10  ;;  %v6074_v15 = vld [vmem:[#allocation9 + $0x18] sm:$0xff]   ;;  %v6076_v17 = vld [vmem:[#allocation9 + $0x20] sm:$0xff]   ;;  %vm1415_vm5 = vcmask 1042432   ;;  %v6077_v18 = vld [vmem:[#allocation9 + $0x68] sm:$0xff]   ;;  %s8828_s27 = scalar_lea.vmem [#allocation11], %s5106_s30  ;;  %s5436_s29 = sshll.u32 %s6523_s25, 12 }
  0x90   : > { %vm1416_vm6 = vcmask 1046532   ;;  %v6731_v26 = vld [vmem:[#allocation6] ss:$0 sm:$0xff]  ;;  %v6734_v30 = vld [vmem:[#allocation8] ss:$0 sm:$0xff]  ;;  %v351_v31 = vld [vmem:[%s6701_s7 + $0xb0] sm:$0xff]  ;;  %s8904_s11 = scalar_lea.hbm %s9026_s4, %s5436_s29 }
  0x91   : > { %862 = vst [vmem:[#allocation2] sm:$0xf] %v5113_v5  ;;  %863 = vst [vmem:[#allocation2 + $0x4] sm:$0xf] %v5114_v6  ;;  %v6078_v32 = vld [vmem:[#allocation9 + $0x28] sm:$0xff]   ;;  %v352_v38 = vld [vmem:[%s6701_s7 + $0xb8] sm:$0xff]  ;;  %v389_v41 = vmul.f32 %v6731_v26, %v351_v31 }
  0x92   : > { %864 = vst [vmem:[#allocation2 + $0x8] sm:$0x1] %v5115_v7  ;;  %913 = vst [vmem:[#allocation2 + $0xcc] sm:$0xf] %v5113_v5  ;;  %5440 = vmatpush3.bf16.msra.mxu0 %v6070_v11  ;;  %5966 = vmatpush3.bf16.msra.mxu1 %v6070_v11  ;;  %v6079_v39 = vld [vmem:[#allocation9 + $0x70] sm:$0xff]   ;;  %v390_v42 = vmul.f32 %v6731_v26, %v352_v38  ;;  %v6081_v53 = vld [vmem:[#allocation9 + $0x78] sm:$0xff]  }
  0x93   : > { %914 = vst [vmem:[#allocation2 + $0xd0] sm:$0xf] %v5114_v6  ;;  %915 = vst [vmem:[#allocation2 + $0xd4] sm:$0x1] %v5115_v7  ;;  %5441 = vmatprep.subr.bf16.mxu0 %v6071_v12  ;;  %5959 = vmatprep.subr.bf16.mxu1 %v6071_v12  ;;  %v6080_v47 = vld [vmem:[#allocation9 + $0x30] sm:$0xff]   ;;  %v427_v49 = vadd.f32 %v6734_v30, %v389_v41  ;;  %v329_v58 = vld [vmem:[%s6701_s7] sm:$0xff] }
  0x94   : > { %vm6739_vm7 = vmor %vm1415_vm5, %vm1416_vm6  ;;  %v428_v50 = vadd.f32 %v6734_v30, %v390_v42  ;;  %v330_v59 = vld [vmem:[%s6701_s7 + $0x8] sm:$0xff]  ;;  %v6082_v60 = vld [vmem:[#allocation9 + $0x38] sm:$0xff]   ;;  %v367_v63 = vmul.f32 %v6731_v26, %v329_v58  ;;  %s4915_s9 = sshll.u32 %s8828_s27, 4  ;;  %s4894_s15 = scalar_lea.sflag [#allocation5], %s6695_s20  ;;  %s8906_s9 = int_to_ptr.vmem [resolvable:$true] %s4915_s9 }
  0x95   : > { %vm6750_vm8 = vmor %vm964_vm3, %vm965_vm4  ;;  %v459_v54 = vmax.f32 %v427_v49, 0.0  ;;  %v368_v0 = vmul.f32 %v6731_v26, %v330_v59  ;;  %v353_v1 = vld [vmem:[%s6701_s7 + $0xc0] sm:$0xff]  ;;  %v354_v3 = vld [vmem:[%s6701_s7 + $0xc8] sm:$0xff]  ;;  %s6317_s19 = scalar_lea.vmem %s8906_s9, 4096  ;;  %s6462_s14 = smov [#allocation11]  }
  0x96   : > { %5442 = vmatpush3.bf16.msra.mxu0 %v6072_v13  ;;  %5967 = vmatpush3.bf16.msra.mxu1 %v6072_v13  ;;  %v460_v55 = vmax.f32 %v428_v50, 0.0  ;;  %v6084_v6 = vld [vmem:[#allocation9 + $0xc0] sm:$0xff]   ;;  %v405_v8 = vadd.f32 %v6734_v30, %v367_v63  ;;  %v391_v10 = vmul.f32 %v6731_v26, %v353_v1  ;;  %v392_v11 = vmul.f32 %v6731_v26, %v354_v3  ;;  %p6318_p1 = scmp.ne.s32.totalorder %s8906_s9, %s6317_s19  ;;  %s6321_s12 = sshll.u32 %s6462_s14, 4  ;;  %s6322_s12 = int_to_ptr.vmem [resolvable:$false] %s6321_s12 }
  0x97   : > { %5443 = vmatprep.subr.bf16.mxu0 %v6073_v14  ;;  %5960 = vmatprep.subr.bf16.mxu1 %v6073_v14  ;;  %v6085_v7 = vld [vmem:[#allocation9 + $0x140] sm:$0xff]   ;;  %v406_v9 = vadd.f32 %v6734_v30, %v368_v0  ;;  %s6323_s30 = scalar_lea.vmem %s6322_s12, 8192  ;;  %p6324_p3 = scmp.lt.s32.totalorder %s8906_s9, %s6322_s12 }
  0x98   : > { %v6723_v19 = vld [vmem:[#allocation2] sm:$0xf]  ;;  %v6725_v20 = vld [vmem:[#allocation2 + $0x4] sm:$0xf]  ;;  %v480_v62 = vpack.c.bf16 %v460_v55, %v459_v54  ;;  %p6319_p4 = pnand %p6318_p1, %p6647_p6  ;;  %p6325_p7 = scmp.lt.s32.totalorder %s6323_s30, %s6317_s19 }
  0x99   : > { %v948_v21 = vld [vmem:[#allocation2 + $0x8] sm:$0x1]  ;;  %v968_v22 = vshrl.u32 %v6723_v19, 16  ;;  %v971_v23 = vshll.u32 %v6723_v19, 16  ;;  %v977_v24 = vshll.u32 %v6725_v20, 16  ;;  %v981_v25 = vshrl.u32 %v6725_v20, 16 }
  0x9a   : > { %5444 = vmatpush3.bf16.msra.mxu0 %v6074_v15  ;;  %5968 = vmatpush3.bf16.msra.mxu1 %v6074_v15  ;;  %v987_v27 = vshll.u32 %v948_v21, 16  ;;  %v1420_v28 = vrot.slane %v6725_v20, 5  ;;  %v1423_v29 = vrot.slane %v948_v21, 5  ;;  %v570_v4 = vshrl.u32 %v480_v62, 16  ;;  %v6088_v14 = vld [vmem:[#allocation9 + $0x100] sm:$0xff]   ;;  %v6096_v21 = vld [vmem:[#allocation9 + $0x148] sm:$0xff]   ;;  %p6320_p8 = pneg %p6319_p4  ;;  %p6326_p10 = por %p6325_p7, %p6324_p3 }
  0x9b   : > { %5445 = vmatprep.subr.bf16.mxu0 %v6075_v16  ;;  %5961 = vmatprep.subr.bf16.mxu1 %v6075_v16  ;;  %v970_v33 = vrot.slane %v968_v22, 4  ;;  %v973_v34 = vrot.slane %v971_v23, 5  ;;  %v979_v35 = vrot.slane %v977_v24, 5  ;;  %v983_v36 = vrot.slane %v981_v25, 4  ;;  %v331_v24 = vld [vmem:[%s6701_s7 + $0x10] sm:$0xff]  ;;  %v332_v25 = vld [vmem:[%s6701_s7 + $0x18] sm:$0xff] }
  0x9c   : > { %v1422_v40 = vrot.slane %v1420_v28, 4  ;;  %v989_v46 = vrot.slane %v987_v27, 5  ;;  %v573_v5 = vshll.u32 %v480_v62, 16  ;;  %v5212_v12 = vcombine.low %v6723_v19, %v6725_v20  ;;  %v334_v62 = vld [vmem:[%s6701_s7 + $0x28] sm:$0xff]  ;;  %v6137_v20 = vld [vmem:[#allocation9 + $0x170] sm:$0xff]   ;;  %p6327_p13 = pnand %p6326_p10, %p6320_p8 }
  0x9d   : > { %v974_v44 = vor.u32 %v973_v34, %v970_v33  ;;  %v984_v45 = vor.u32 %v983_v36, %v979_v35  ;;  %v572_v13 = vrot.slane %v570_v4, 7  ;;  %v437_v15 = vmax.f32 %v405_v8, 0.0  ;;  %v6098_v33 = vld [vmem:[#allocation9 + $0x108] sm:$0xff]  }
  0x9e   : > { %5446 = vmatpush3.bf16.msra.mxu0 %v6076_v17  ;;  %5969 = vmatpush3.bf16.msra.mxu1 %v6076_v17  ;;  %v6756_v48 = vsel %vm6739_vm7, %v1422_v40, %v1423_v29  ;;  %v438_v16 = vmax.f32 %v406_v9, 0.0  ;;  %v429_v17 = vadd.f32 %v6734_v30, %v391_v10  ;;  %v370_v38 = vmul.f32 %v6731_v26, %v332_v25 }
  0x9f   : > { %5447 = vmatprep.subr.bf16.mxu0 %v6077_v18  ;;  %5962 = vmatprep.subr.bf16.mxu1 %v6077_v18  ;;  %v975_v51 = vrot.slane %v974_v44, 4  ;;  %v985_v52 = vrot.slane %v984_v45, 4  ;;  %v430_v18 = vadd.f32 %v6734_v30, %v392_v11  ;;  %v575_v22 = vor.u32 %v573_v5, %v572_v13  ;;  %v356_v45 = vld [vmem:[%s6701_s7 + $0xd8] sm:$0xff] }
  0xa0   : > { %v670_v23 = vsel %vm6715_vm2, %v572_v13, 0  ;;  %v469_v19 = vpack.c.bf16 %v438_v16, %v437_v15  ;;  %v461_v29 = vmax.f32 %v429_v17, 0.0  ;;  %v394_v50 = vmul.f32 %v6731_v26, %v356_v45  ;;  %v6107_v17 = vld [vmem:[#allocation9 + $0x150] sm:$0xff]  }
  0xa1   : > { %v980_v56 = vsel %vm6750_vm8, %v975_v51, %v979_v35  ;;  %v990_v57 = vsel %vm6750_vm8, %v985_v52, %v989_v46  ;;  %v5151_v27 = vcombine.low %v670_v23, %v670_v23  ;;  %v462_v31 = vmax.f32 %v430_v18, 0.0 }
  0xa2   : > { %5448 = vmatpush3.bf16.msra.mxu0 %v6078_v32  ;;  %5970 = vmatpush3.bf16.msra.mxu1 %v6078_v32  ;;  %v5228_v61 = vcombine.low %v980_v56, %v990_v57  ;;  %v369_v32 = vmul.f32 %v6731_v26, %v331_v24  ;;  %v653_v34 = vsel %vm6715_vm2, 0, %v575_v22  ;;  %v493_v35 = vshrl.u32 %v469_v19, 16 }
  0xa3   : > { %5449 = vmatprep.subr.bf16.mxu0 %v6079_v39  ;;  %5963 = vmatprep.subr.bf16.mxu1 %v6079_v39  ;;  %v496_v36 = vshll.u32 %v469_v19, 16  ;;  %v355_v39 = vld [vmem:[%s6701_s7 + $0xd0] sm:$0xff]  ;;  %v5149_v40 = vcombine.low %v653_v34, %v653_v34  ;;  %v5150_v41 = vcombine.high %v653_v34, %v653_v34  ;;  %900 = vst [vmem:[#allocation2 + $0x98] sm:$0x1] %v5151_v27 }
  0xa4   : > { %3980 = vmatprep.mubr.bf16.mxu0 %v5228_v61  ;;  %v481_v42 = vpack.c.bf16 %v462_v31, %v461_v29  ;;  %v407_v44 = vadd.f32 %v6734_v30, %v369_v32  ;;  %v495_v46 = vrot.slane %v493_v35, 7  ;;  %v393_v49 = vmul.f32 %v6731_v26, %v355_v39  ;;  %v333_v61 = vld [vmem:[%s6701_s7 + $0x20] sm:$0xff] }
  0xa5   : > { %898 = vst [vmem:[#allocation2 + $0x90] sm:$0xf] %v5149_v40  ;;  %899 = vst [vmem:[#allocation2 + $0x94] sm:$0xf] %v5150_v41  ;;  %v371_v3 = vmul.f32 %v6731_v26, %v333_v61  ;;  %v372_v16 = vmul.f32 %v6731_v26, %v334_v62 }
  0xa6   : > { %5450 = vmatpush3.bf16.msra.mxu0 %v6080_v47  ;;  %5971 = vmatpush3.bf16.msra.mxu1 %v6080_v47  ;;  %v408_v47 = vadd.f32 %v6734_v30, %v370_v38  ;;  %v577_v51 = vshrl.u32 %v481_v42, 16  ;;  %v580_v52 = vshll.u32 %v481_v42, 16  ;;  %v498_v54 = vor.u32 %v496_v36, %v495_v46 }
  0xa7   : > { %5451 = vmatprep.subr.bf16.mxu0 %v6081_v53  ;;  %5964 = vmatprep.subr.bf16.mxu1 %v6081_v53  ;;  %v439_v53 = vmax.f32 %v407_v44, 0.0  ;;  %v659_v55 = vsel %vm6715_vm2, %v495_v46, 0  ;;  %v431_v57 = vadd.f32 %v6734_v30, %v393_v49 }
  0xa8   : > { %v440_v56 = vmax.f32 %v408_v47, 0.0  ;;  %v5118_v58 = vcombine.low %v659_v55, %v659_v55  ;;  %v579_v59 = vrot.slane %v577_v51, 7  ;;  %v642_v63 = vsel %vm6715_vm2, 0, %v498_v54  ;;  %v6110_v47 = vld [vmem:[#allocation9 + $0x110] sm:$0xff]  }
  0xa9   : > { %v463_v1 = vmax.f32 %v431_v57, 0.0  ;;  %v5116_v4 = vcombine.low %v642_v63, %v642_v63  ;;  %v5117_v5 = vcombine.high %v642_v63, %v642_v63  ;;  %v6838_v57 = vadd.f32 %v6734_v30, %v371_v3 }
  0xaa   : > { %5452 = vmatpush3.bf16.msra.mxu0 %v6082_v60  ;;  %5972 = vmatpush3.bf16.msra.mxu1 %v6082_v60  ;;  %v432_v60 = vadd.f32 %v6734_v30, %v394_v50  ;;  %v470_v0 = vpack.c.bf16 %v440_v56, %v439_v53  ;;  %867 = vst [vmem:[#allocation2 + $0x14] sm:$0x1] %v5118_v58  ;;  %v6803_v8 = vld [vmem:[#allocation2 + $0x98] sm:$0x1] }
  0xab   : > { %5549 = vmatprep.subr.bf16.mxu1 %v6084_v6  ;;  %5661 = vmatprep.subr.bf16.mxu0 %v6085_v7  ;;  %v582_v6 = vor.u32 %v580_v52, %v579_v59  ;;  %v671_v7 = vsel %vm6715_vm2, %v579_v59, 0  ;;  %v1275_v13 = vshll.u32 %v6803_v8, 16  ;;  %865 = vst [vmem:[#allocation2 + $0xc] sm:$0xf] %v5116_v4  ;;  %866 = vst [vmem:[#allocation2 + $0x10] sm:$0xf] %v5117_v5 }
  0xac   : > { %v5154_v9 = vcombine.low %v671_v7, %v671_v7  ;;  %v500_v10 = vshrl.u32 %v470_v0, 16  ;;  %v503_v11 = vshll.u32 %v470_v0, 16  ;;  %v6810_v18 = vld [vmem:[#allocation2 + $0x90] sm:$0xf]  ;;  %v6841_v58 = vadd.f32 %v6734_v30, %v372_v16 }
  0xad   : > { %3981 = vmatmul.mubr.bf16.vlgmr.msra.gmra.mrb[0].mxu0 %v5212_v12  ;;  %v464_v12 = vmax.f32 %v432_v60, 0.0  ;;  %v654_v15 = vsel %vm6715_vm2, 0, %v582_v6  ;;  %v1256_v25 = vshrl.u32 %v6810_v18, 16  ;;  %v1259_v27 = vshll.u32 %v6810_v18, 16 }
  0xae   : > { %5662 = vmatpush3.bf16.msra.mxu0 %v6088_v14  ;;  %v5152_v22 = vcombine.low %v654_v15, %v654_v15  ;;  %v5153_v23 = vcombine.high %v654_v15, %v654_v15  ;;  %903 = vst [vmem:[#allocation2 + $0xa4] sm:$0x1] %v5154_v9  ;;  %v502_v19 = vrot.slane %v500_v10, 7  ;;  %v1277_v32 = vrot.slane %v1275_v13, 5  ;;  %v6087_v13 = vld [vmem:[#allocation9 + $0x80] sm:$0xff]  }
  0xaf   : > { %5663 = vmatprep.subr.bf16.mxu0 %v6096_v21  ;;  %v6812_v21 = vld [vmem:[#allocation2 + $0x94] sm:$0xf]  ;;  %v6814_v24 = vpack.c.bf16 %v464_v12, %v463_v1  ;;  %v1258_v36 = vrot.slane %v1256_v25, 4  ;;  %v1261_v38 = vrot.slane %v1259_v27, 5 }
  0xb0   : > { %v1265_v29 = vshll.u32 %v6812_v21, 16  ;;  %v1269_v31 = vshrl.u32 %v6812_v21, 16  ;;  %901 = vst [vmem:[#allocation2 + $0x9c] sm:$0xf] %v5152_v22  ;;  %902 = vst [vmem:[#allocation2 + $0xa0] sm:$0xf] %v5153_v23  ;;  %v505_v34 = vor.u32 %v503_v11, %v502_v19 }
  0xb1   : > { %v660_v35 = vsel %vm6715_vm2, %v502_v19, 0  ;;  %v6824_v41 = vld [vmem:[#allocation2 + $0x14] sm:$0x1]  ;;  %v584_v45 = vshrl.u32 %v6814_v24, 16  ;;  %v587_v46 = vshll.u32 %v6814_v24, 16  ;;  %v1262_v49 = vor.u32 %v1261_v38, %v1258_v36 }
  0xb2   : > { %5664 = vmatpush3.bf16.msra.mxu0 %v6098_v33  ;;  %v5224_v33 = vcombine.low %v6810_v18, %v6812_v21  ;;  %v1267_v39 = vrot.slane %v1265_v29, 5  ;;  %v1271_v40 = vrot.slane %v1269_v31, 4  ;;  %v643_v42 = vsel %vm6715_vm2, 0, %v505_v34  ;;  %v6831_v53 = vld [vmem:[#allocation2 + $0xc] sm:$0xf]  ;;  %v6089_v18 = vld [vmem:[#allocation9 + $0xc8] sm:$0xff]  }
  0xb3   : > { %5665 = vmatprep.subr.bf16.mxu0 %v6107_v17  ;;  %v5121_v44 = vcombine.low %v660_v35, %v660_v35  ;;  %v1011_v51 = vshll.u32 %v6824_v41, 16  ;;  %v5119_v52 = vcombine.low %v643_v42, %v643_v42  ;;  %v6833_v54 = vld [vmem:[#allocation2 + $0x10] sm:$0xf]  ;;  %v5120_v55 = vcombine.high %v643_v42, %v643_v42 }
  0xb4   : > { %v1272_v50 = vor.u32 %v1271_v40, %v1267_v39  ;;  %v6835_v56 = vrot.slane %v584_v45, 7  ;;  %v1263_v59 = vrot.slane %v1262_v49, 4  ;;  %v992_v61 = vshrl.u32 %v6831_v53, 16 }
  0xb5   : > { %870 = vst [vmem:[#allocation2 + $0x20] sm:$0x1] %v5121_v44  ;;  %v995_v62 = vshll.u32 %v6831_v53, 16  ;;  %v961_v63 = vld [vmem:[#allocation2 + $0xa4] sm:$0x1]  ;;  %v1001_v0 = vshll.u32 %v6833_v54, 16  ;;  %v5213_v3 = vcombine.low %v6831_v53, %v6833_v54 }
  0xb6   : > { %5666 = vmatpush3.bf16.msra.mxu0 %v6110_v47  ;;  %v1273_v60 = vrot.slane %v1272_v50, 4  ;;  %868 = vst [vmem:[#allocation2 + $0x18] sm:$0xf] %v5119_v52  ;;  %v1005_v1 = vshrl.u32 %v6833_v54, 16  ;;  %v1013_v4 = vrot.slane %v1011_v51, 5  ;;  %v1268_v5 = vsel %vm6750_vm8, %v1263_v59, %v1267_v39  ;;  %v6090_v39 = vld [vmem:[#allocation9 + $0x88] sm:$0xff]  }
  0xb7   : > { %869 = vst [vmem:[#allocation2 + $0x1c] sm:$0xf] %v5120_v55  ;;  %v994_v7 = vrot.slane %v992_v61, 4  ;;  %v997_v9 = vrot.slane %v995_v62, 5  ;;  %v6853_v10 = vld [vmem:[#allocation2 + $0x9c] sm:$0xf]  ;;  %v589_v45 = vor.u32 %v587_v46, %v6835_v56 }
  0xb8   : > { %v1278_v6 = vsel %vm6750_vm8, %v1273_v60, %v1277_v32  ;;  %v6855_v11 = vld [vmem:[#allocation2 + $0xa0] sm:$0xf]  ;;  %v1003_v15 = vrot.slane %v1001_v0, 5  ;;  %v1007_v16 = vrot.slane %v1005_v1, 4  ;;  %v1280_v17 = vshrl.u32 %v6853_v10, 16  ;;  %v6092_v50 = vld [vmem:[#allocation9 + $0xd0] sm:$0xff]  }
  0xb9   : > { %v5240_v12 = vcombine.low %v1268_v5, %v1278_v6  ;;  %v998_v21 = vor.u32 %v997_v9, %v994_v7  ;;  %v1283_v22 = vshll.u32 %v6853_v10, 16  ;;  %v1289_v23 = vshll.u32 %v6855_v11, 16  ;;  %v6117_v55 = vld [vmem:[#allocation9 + $0x158] sm:$0xff]   ;;  %v6094_v60 = vld [vmem:[#allocation9 + $0x90] sm:$0xff]  }
  0xba   : > { %v1293_v19 = vshrl.u32 %v6855_v11, 16  ;;  %v1008_v24 = vor.u32 %v1007_v16, %v1003_v15  ;;  %v1282_v25 = vrot.slane %v1280_v17, 4  ;;  %v1299_v27 = vshll.u32 %v961_v63, 16  ;;  %v6095_v5 = vld [vmem:[#allocation9 + $0xd8] sm:$0xff]   ;;  %5667 = vmatprep.subr.bf16.mxu0 %v6117_v55  ;;  %v6916_v55 = vld [vmem:[#allocation2] sm:$0xe] }
  0xbb   : > { %4076 = vmatprep.mubr.bf16.mxu1 %v5240_v12  ;;  %v5225_v29 = vcombine.low %v6853_v10, %v6855_v11  ;;  %v999_v31 = vrot.slane %v998_v21, 4  ;;  %v1285_v32 = vrot.slane %v1283_v22, 5  ;;  %v1291_v34 = vrot.slane %v1289_v23, 5  ;;  %v357_v7 = vld [vmem:[%s6701_s7 + $0xe0] sm:$0xff]  ;;  %v335_v22 = vld [vmem:[%s6701_s7 + $0x30] sm:$0xff] }
  0xbc   : > { %4077 = vmatmul.mubr.bf16.vlgmr.msra.gmra.mrb[0].mxu1 %v5224_v33  ;;  %v1295_v35 = vrot.slane %v1293_v19, 4  ;;  %v6863_v36 = vld [vmem:[#allocation2 + $0x20] sm:$0x1]  ;;  %v1009_v38 = vrot.slane %v1008_v24, 4  ;;  %v1301_v40 = vrot.slane %v1299_v27, 5  ;;  %v655_v21 = vsel %vm6715_vm2, 0, %v589_v45 }
  0xbd   : > { %5550 = vmatpush3.bf16.msra.mxu1 %v6087_v13  ;;  %v6865_v42 = vld [vmem:[#allocation2 + $0x18] sm:$0xf]  ;;  %v1035_v44 = vshll.u32 %v6863_v36, 16  ;;  %v1004_v33 = vsel %vm6750_vm8, %v999_v31, %v1003_v15  ;;  %v1286_v47 = vor.u32 %v1285_v32, %v1282_v25  ;;  %v358_v15 = vld [vmem:[%s6701_s7 + $0xe8] sm:$0xff]  ;;  %v672_v27 = vsel %vm6715_vm2, %v6835_v56, 0  ;;  %v336_v31 = vld [vmem:[%s6701_s7 + $0x38] sm:$0xff] }
  0xbe   : > { %5551 = vmatprep.subr.bf16.mxu1 %v6089_v18  ;;  %v1296_v49 = vor.u32 %v1295_v35, %v1291_v34  ;;  %v6871_v51 = vld [vmem:[#allocation2 + $0x1c] sm:$0xf]  ;;  %v1016_v52 = vshrl.u32 %v6865_v42, 16  ;;  %v1014_v59 = vsel %vm6750_vm8, %v1009_v38, %v1013_v4  ;;  %v1019_v46 = vshll.u32 %v6865_v42, 16  ;;  %v6118_v23 = vld [vmem:[#allocation9 + $0x118] sm:$0xff]  }
  0xbf   : > { %v1025_v61 = vshll.u32 %v6871_v51, 16  ;;  %v1029_v62 = vshrl.u32 %v6871_v51, 16  ;;  %v5229_v63 = vcombine.low %v1004_v33, %v1014_v59  ;;  %v1287_v0 = vrot.slane %v1286_v47, 4  ;;  %v6897_v32 = vld [vmem:[#allocation2 + $0xc] sm:$0xf]  ;;  %5668 = vmatpush3.bf16.msra.mxu0 %v6118_v23  ;;  %v6123_v45 = vld [vmem:[#allocation9 + $0x160] sm:$0xff]  }
  0xc0   : > { %v1297_v1 = vrot.slane %v1296_v49, 4  ;;  %v1018_v6 = vrot.slane %v1016_v52, 4  ;;  %v1021_v9 = vrot.slane %v1019_v46, 5  ;;  %v1037_v13 = vrot.slane %v1035_v44, 5  ;;  %v6100_v56 = vld [vmem:[#allocation9 + $0xe0] sm:$0xff]   ;;  %5669 = vmatprep.subr.bf16.mxu0 %v6123_v45 }
  0xc1   : > { %5552 = vmatpush3.bf16.msra.mxu1 %v6090_v39  ;;  %v1027_v12 = vrot.slane %v1025_v61, 5  ;;  %v1031_v4 = vrot.slane %v1029_v62, 4  ;;  %3988 = vmatprep.mubr.bf16.mxu0 %v5229_v63  ;;  %v1292_v16 = vsel %vm6750_vm8, %v1287_v0, %v1291_v34  ;;  %v5214_v18 = vcombine.low %v6865_v42, %v6871_v51  ;;  %v6097_v34 = vld [vmem:[#allocation9 + $0x98] sm:$0xff]   ;;  %v338_v0 = vld [vmem:[%s6701_s7 + $0x48] sm:$0xff] }
  0xc2   : > { %v1302_v17 = vsel %vm6750_vm8, %v1297_v1, %v1301_v40  ;;  %5553 = vmatprep.subr.bf16.mxu1 %v6092_v50  ;;  %3989 = vmatmul.mubr.bf16.gmra.mrb[4].mxu0 %v5213_v3  ;;  %v1022_v24 = vor.u32 %v1021_v9, %v1018_v6  ;;  %v5155_v35 = vcombine.low %v655_v21, %v655_v21  ;;  %v441_v40 = vmax.f32 %v6838_v57, 0.0  ;;  %v337_v63 = vld [vmem:[%s6701_s7 + $0x40] sm:$0xff] }
  0xc3   : > { %v5241_v19 = vcombine.low %v1292_v16, %v1302_v17  ;;  %v1032_v25 = vor.u32 %v1031_v4, %v1027_v12  ;;  %v5156_v38 = vcombine.high %v655_v21, %v655_v21  ;;  %v5157_v39 = vcombine.low %v672_v27, %v672_v27  ;;  %v6923_v1 = vld [vmem:[#allocation2 + $0x18] sm:$0xf] }
  0xc4   : > { %v1023_v53 = vrot.slane %v1022_v24, 4  ;;  %v442_v42 = vmax.f32 %v6841_v58, 0.0  ;;  %v395_v44 = vmul.f32 %v6731_v26, %v357_v7  ;;  %904 = vst [vmem:[#allocation2 + $0xa8] sm:$0xf] %v5155_v35  ;;  %v396_v57 = vmul.f32 %v6731_v26, %v358_v15  ;;  %v6908_v58 = vld [vmem:[#allocation2 + $0x10] sm:$0xf] }
  0xc5   : > { %4084 = vmatprep.mubr.bf16.mxu1 %v5241_v19  ;;  %5554 = vmatpush3.bf16.msra.mxu1 %v6094_v60  ;;  %v1033_v3 = vrot.slane %v1032_v25, 4  ;;  %905 = vst [vmem:[#allocation2 + $0xac] sm:$0xf] %v5156_v38  ;;  %906 = vst [vmem:[#allocation2 + $0xb0] sm:$0x1] %v5157_v39  ;;  %v373_v33 = vmul.f32 %v6731_v26, %v335_v22  ;;  %v374_v47 = vmul.f32 %v6731_v26, %v336_v31  ;;  %v6103_v60 = vld [vmem:[#allocation9 + $0xe8] sm:$0xff]  }
  0xc6   : > { %4085 = vmatmul.mubr.bf16.gmra.mrb[4].mxu1 %v5225_v29  ;;  %5555 = vmatprep.subr.bf16.mxu1 %v6095_v5  ;;  %v1580_v49 = vshrl.u32 %v6897_v32, 16  ;;  %v1028_v10 = vsel %vm6750_vm8, %v1023_v53, %v1027_v12  ;;  %v6102_v29 = vld [vmem:[#allocation9 + $0xa0] sm:$0xff]   ;;  %v471_v50 = vpack.c.bf16 %v442_v42, %v441_v40  ;;  %v433_v52 = vadd.f32 %v6734_v30, %v395_v44  ;;  %v6104_v24 = vld [vmem:[#allocation9 + $0xa8] sm:$0xff]  }
  0xc7   : > { %v1038_v11 = vsel %vm6750_vm8, %v1033_v3, %v1037_v13  ;;  %v434_v46 = vadd.f32 %v6734_v30, %v396_v57  ;;  %v411_v61 = vadd.f32 %v6734_v30, %v373_v33  ;;  %v412_v62 = vadd.f32 %v6734_v30, %v374_v47  ;;  %v6925_v5 = vld [vmem:[#allocation2 + $0x1c] sm:$0xf]  ;;  %v6106_v57 = vld [vmem:[#allocation9 + $0xf0] sm:$0xff]   ;;  %v6129_v33 = vld [vmem:[#allocation9 + $0x168] sm:$0xff]  }
  0xc8   : > { %v5230_v59 = vcombine.low %v1028_v10, %v1038_v11  ;;  %v507_v6 = vshrl.u32 %v471_v50, 16  ;;  %v510_v7 = vshll.u32 %v471_v50, 16  ;;  %v465_v9 = vmax.f32 %v433_v52, 0.0  ;;  %v6125_v19 = vld [vmem:[#allocation9 + $0x120] sm:$0xff]  }
  0xc9   : > { %5556 = vmatpush3.bf16.msra.mxu1 %v6097_v34  ;;  %v6927_v12 = vrot.slane %v1580_v49, 4  ;;  %v466_v4 = vmax.f32 %v434_v46, 0.0  ;;  %v443_v13 = vmax.f32 %v411_v61, 0.0  ;;  %v444_v15 = vmax.f32 %v412_v62, 0.0  ;;  %5670 = vmatpush3.bf16.msra.mxu0 %v6125_v19  ;;  %v6109_v62 = vld [vmem:[#allocation9 + $0xb0] sm:$0xff]  }
  0xca   : > { %3996 = vmatprep.mubr.bf16.mxu0 %v5230_v59  ;;  %5557 = vmatprep.subr.bf16.mxu1 %v6100_v56  ;;  %v1583_v16 = vshll.u32 %v6897_v32, 16  ;;  %v509_v17 = vrot.slane %v507_v6, 7  ;;  %v1589_v21 = vshll.u32 %v6908_v58, 16  ;;  %v1593_v22 = vshrl.u32 %v6908_v58, 16 }
  0xcb   : > { %3997 = vmatmul.mubr.bf16.gmra.mrb[8].mxu0 %v5214_v18  ;;  %v5260_v23 = vcombine.low %v6897_v32, %v6908_v58  ;;  %v6934_v25 = vpack.c.bf16 %v466_v4, %v465_v9  ;;  %v6936_v27 = vpack.c.bf16 %v444_v15, %v443_v13  ;;  %v5164_v34 = vrot.slane %v6916_v55, 9  ;;  %v6939_v35 = vld [vmem:[#allocation2 + $0xa8] sm:$0xf]  ;;  %5671 = vmatprep.subr.bf16.mxu0 %v6129_v33  ;;  %v6111_v9 = vld [vmem:[#allocation9 + $0xf8] sm:$0xff]  }
  0xcc   : > { %v1585_v31 = vrot.slane %v1583_v16, 5  ;;  %v6941_v18 = vld [vmem:[#allocation2 + $0xac] sm:$0xf]  ;;  %v962_v38 = vld [vmem:[#allocation2 + $0xb0] sm:$0x1]  ;;  %v512_v39 = vor.u32 %v510_v7, %v509_v17  ;;  %v375_v40 = vmul.f32 %v6731_v26, %v337_v63  ;;  %v6945_v53 = vmul.f32 %v6731_v26, %v338_v0  ;;  %v6130_v4 = vld [vmem:[#allocation9 + $0x128] sm:$0xff]  }
  0xcd   : > { %5558 = vmatpush3.bf16.msra.mxu1 %v6102_v29  ;;  %v5261_v3 = vcombine.low %v6923_v1, %v6925_v5  ;;  %v1304_v42 = vshrl.u32 %v6939_v35, 16  ;;  %v1307_v44 = vshll.u32 %v6939_v35, 16  ;;  %v1313_v45 = vshll.u32 %v6941_v18, 16  ;;  %v6112_v16 = vld [vmem:[#allocation9 + $0xb8] sm:$0xff]   ;;  %5672 = vmatpush3.bf16.msra.mxu0 %v6130_v4  ;;  %v1352_v4 = vld [vmem:[#allocation2 + $0xc] sm:$0xe] }
  0xce   : > { %v1317_v56 = vshrl.u32 %v6941_v18, 16  ;;  %5559 = vmatprep.subr.bf16.mxu1 %v6103_v60  ;;  %v1323_v47 = vshll.u32 %v962_v38, 16  ;;  %v5226_v49 = vcombine.low %v6939_v35, %v6941_v18  ;;  %v644_v10 = vsel %vm6715_vm2, 0, %v512_v39  ;;  %5673 = vmatprep.subr.bf16.mxu0 %v6137_v20 }
  0xcf   : > { %v661_v11 = vsel %vm6715_vm2, %v509_v17, 0  ;;  %v1306_v29 = vrot.slane %v1304_v42, 4  ;;  %v1309_v50 = vrot.slane %v1307_v44, 5  ;;  %v1315_v52 = vrot.slane %v1313_v45, 5  ;;  %v6115_v45 = vld [vmem:[#allocation9 + $0x1c0] sm:$0xff]  }
  0xd0   : > { %v1319_v55 = vrot.slane %v1317_v56, 4  ;;  %v1325_v59 = vrot.slane %v1323_v47, 5  ;;  %v5122_v60 = vcombine.low %v644_v10, %v644_v10  ;;  %v5123_v46 = vcombine.high %v644_v10, %v644_v10 }
  0xd1   : > { %v5124_v61 = vcombine.low %v661_v11, %v661_v11  ;;  %5560 = vmatpush3.bf16.msra.mxu1 %v6104_v24  ;;  %v1310_v63 = vor.u32 %v1309_v50, %v1306_v29  ;;  %v591_v6 = vshrl.u32 %v6934_v25, 16  ;;  %v594_v7 = vshll.u32 %v6934_v25, 16 }
  0xd2   : > { %v1320_v0 = vor.u32 %v1319_v55, %v1315_v52  ;;  %5561 = vmatprep.subr.bf16.mxu1 %v6106_v57  ;;  %871 = vst [vmem:[#allocation2 + $0x24] sm:$0xf] %v5122_v60  ;;  %872 = vst [vmem:[#allocation2 + $0x28] sm:$0xf] %v5123_v46  ;;  %v514_v13 = vshrl.u32 %v6936_v27, 16  ;;  %v517_v15 = vshll.u32 %v6936_v27, 16  ;;  %v1586_v17 = vor.u32 %v1585_v31, %v6927_v12 }
  0xd3   : > { %873 = vst [vmem:[#allocation2 + $0x2c] sm:$0x1] %v5124_v61  ;;  %v6964_v19 = vrot.slane %v1589_v21, 5  ;;  %v1311_v24 = vrot.slane %v1310_v63, 4  ;;  %v593_v39 = vrot.slane %v591_v6, 7  ;;  %v1595_v25 = vrot.slane %v1593_v22, 4 }
  0xd4   : > { %v1321_v38 = vrot.slane %v1320_v0, 4  ;;  %v516_v42 = vrot.slane %v514_v13, 7  ;;  %v6966_v44 = vrot.slane %v1586_v17, 4  ;;  %v6972_v27 = vsel %vm6739_vm7, %v5164_v34, %v1420_v28  ;;  %v339_v21 = vld [vmem:[%s6701_s7 + $0x50] sm:$0xff] }
  0xd5   : > { %5562 = vmatpush3.bf16.msra.mxu1 %v6109_v62  ;;  %v6975_v12 = vadd.f32 %v6734_v30, %v375_v40  ;;  %v1316_v31 = vsel %vm6750_vm8, %v1311_v24, %v1315_v52  ;;  %v596_v56 = vor.u32 %v594_v7, %v593_v39  ;;  %v673_v57 = vsel %vm6715_vm2, %v593_v39, 0  ;;  %v6138_v40 = vld [vmem:[#allocation9 + $0x130] sm:$0xff]  }
  0xd6   : > { %v1326_v22 = vsel %vm6750_vm8, %v1321_v38, %v1325_v59  ;;  %5563 = vmatprep.subr.bf16.mxu1 %v6111_v9  ;;  %v5160_v47 = vcombine.low %v673_v57, %v673_v57  ;;  %v519_v28 = vor.u32 %v517_v15, %v516_v42  ;;  %v662_v34 = vsel %vm6715_vm2, %v516_v42, 0  ;;  %5674 = vmatpush3.bf16.msra.mxu0 %v6138_v40  ;;  %v340_v24 = vld [vmem:[%s6701_s7 + $0x58] sm:$0xff] }
  0xd7   : > { %v5242_v33 = vcombine.low %v1316_v31, %v1326_v22  ;;  %v656_v10 = vsel %vm6715_vm2, 0, %v596_v56  ;;  %v5127_v11 = vcombine.low %v662_v34, %v662_v34  ;;  %v1596_v29 = vor.u32 %v1595_v25, %v6964_v19 }
  0xd8   : > { %v5244_v50 = vcombine.low %v6972_v27, %v6756_v48  ;;  %v5158_v52 = vcombine.low %v656_v10, %v656_v10  ;;  %v5159_v55 = vcombine.high %v656_v10, %v656_v10  ;;  %909 = vst [vmem:[#allocation2 + $0xbc] sm:$0x1] %v5160_v47  ;;  %v645_v59 = vsel %vm6715_vm2, 0, %v519_v28  ;;  %v6143_v47 = vld [vmem:[#allocation9 + $0x178] sm:$0xff]  }
  0xd9   : > { %4092 = vmatprep.mubr.bf16.mxu1 %v5242_v33  ;;  %5564 = vmatpush3.bf16.msra.mxu1 %v6112_v16  ;;  %v414_v60 = vadd.f32 %v6734_v30, %v6945_v53  ;;  %v6998_v46 = vld [vmem:[#allocation2 + $0x24] sm:$0xf]  ;;  %v7000_v61 = vld [vmem:[#allocation2 + $0x28] sm:$0xf]  ;;  %v5125_v63 = vcombine.low %v645_v59, %v645_v59  ;;  %v5126_v0 = vcombine.high %v645_v59, %v645_v59  ;;  %v445_v9 = vmax.f32 %v6975_v12, 0.0 }
  0xda   : > { %4093 = vmatmul.mubr.bf16.gmra.mrb[8].mxu1 %v5226_v49  ;;  %v7002_v62 = vld [vmem:[#allocation2 + $0x2c] sm:$0x1]  ;;  %876 = vst [vmem:[#allocation2 + $0x38] sm:$0x1] %v5127_v11  ;;  %5773 = vmatprep.subr.bf16.mxu1 %v6115_v45  ;;  %v7005_v6 = vmul.f32 %v6731_v26, %v339_v21  ;;  %v1040_v7 = vshrl.u32 %v6998_v46, 16  ;;  %v1043_v30 = vshll.u32 %v6998_v46, 16  ;;  %v5215_v49 = vcombine.low %v6998_v46, %v7000_v61 }
  0xdb   : > { %v1049_v35 = vshll.u32 %v7000_v61, 16  ;;  %v1053_v18 = vshrl.u32 %v7000_v61, 16  ;;  %907 = vst [vmem:[#allocation2 + $0xb4] sm:$0xf] %v5158_v52  ;;  %908 = vst [vmem:[#allocation2 + $0xb8] sm:$0xf] %v5159_v55  ;;  %5675 = vmatprep.subr.bf16.mxu0 %v6143_v47 }
  0xdc   : > { %v1059_v53 = vshll.u32 %v7002_v62, 16  ;;  %874 = vst [vmem:[#allocation2 + $0x30] sm:$0xf] %v5125_v63  ;;  %875 = vst [vmem:[#allocation2 + $0x34] sm:$0xf] %v5126_v0  ;;  %v7014_v26 = vrot.slane %v1596_v29, 4 }
  0xdd   : > { %v1042_v13 = vrot.slane %v1040_v7, 4  ;;  %v1045_v15 = vrot.slane %v1043_v30, 5  ;;  %v1051_v16 = vrot.slane %v1049_v35, 5  ;;  %v1055_v17 = vrot.slane %v1053_v18, 4 }
  0xde   : > { %v1061_v38 = vrot.slane %v1059_v53, 5  ;;  %v446_v39 = vmax.f32 %v414_v60, 0.0  ;;  %v1604_v25 = vshrl.u32 %v6923_v1, 16  ;;  %v1607_v42 = vshll.u32 %v6923_v1, 16  ;;  %v344_v1 = vld [vmem:[%s6701_s7 + $0x78] sm:$0xff] }
  0xdf   : > { %v1046_v45 = vor.u32 %v1045_v15, %v1042_v13  ;;  %v1056_v21 = vor.u32 %v1055_v17, %v1051_v16  ;;  %v5165_v22 = vrot.slane %v1352_v4, 9  ;;  %v963_v56 = vld [vmem:[#allocation2 + $0xbc] sm:$0x1]  ;;  %v1427_v33 = vrot.slane %v6833_v54, 5  ;;  %v7038_v54 = vld [vmem:[#allocation6] ss:$0 sm:$0xff] }
  0xe0   : > { %v473_v57 = vpack.c.bf16 %v446_v39, %v445_v9  ;;  %v7021_v12 = vrot.slane %v1604_v25, 4  ;;  %v7023_v20 = vrot.slane %v1607_v42, 5  ;;  %v1347_v40 = vshll.u32 %v963_v56, 16  ;;  %v6144_v56 = vld [vmem:[#allocation9 + $0x138] sm:$0xff]  }
  0xe1   : > { %v1047_v28 = vrot.slane %v1046_v45, 4  ;;  %v1057_v34 = vrot.slane %v1056_v21, 4  ;;  %v7026_v10 = vld [vmem:[#allocation2 + $0x38] sm:$0x1]  ;;  %v1430_v11 = vrot.slane %v6824_v41, 5  ;;  %v7036_v60 = vsel %vm6739_vm7, %v5165_v22, %v1427_v33  ;;  %5676 = vmatpush3.bf16.msra.mxu0 %v6144_v56 }
  0xe2   : > { %v7029_v29 = vld [vmem:[#allocation2 + $0xb4] sm:$0xf]  ;;  %v7031_v52 = vld [vmem:[#allocation2 + $0xb8] sm:$0xf]  ;;  %v1083_v55 = vshll.u32 %v7026_v10, 16  ;;  %v521_v59 = vshrl.u32 %v473_v57, 16  ;;  %v378_v46 = vmul.f32 %v7038_v54, %v340_v24 }
  0xe3   : > { %v1052_v63 = vsel %vm6750_vm8, %v1047_v28, %v1051_v16  ;;  %v1062_v41 = vsel %vm6750_vm8, %v1057_v34, %v1061_v38  ;;  %v1328_v0 = vshrl.u32 %v7029_v29, 16  ;;  %v1331_v7 = vshll.u32 %v7029_v29, 16  ;;  %v7047_v30 = vld [vmem:[#allocation2 + $0x30] sm:$0xf]  ;;  %v7049_v35 = vld [vmem:[#allocation2 + $0x34] sm:$0xf] }
  0xe4   : > { %v5231_v18 = vcombine.low %v1052_v63, %v1062_v41  ;;  %v1337_v53 = vshll.u32 %v7031_v52, 16  ;;  %v1341_v9 = vshrl.u32 %v7031_v52, 16  ;;  %v1349_v4 = vrot.slane %v1347_v40, 5  ;;  %v1353_v56 = vld [vmem:[#allocation2 + $0x18] sm:$0xe] }
  0xe5   : > { %v1330_v13 = vrot.slane %v1328_v0, 4  ;;  %v1333_v15 = vrot.slane %v1331_v7, 5  ;;  %v5227_v16 = vcombine.low %v7029_v29, %v7031_v52  ;;  %v1064_v17 = vshrl.u32 %v7047_v30, 16 }
  0xe6   : > { %4004 = vmatprep.mubr.bf16.mxu0 %v5231_v18  ;;  %v1339_v24 = vrot.slane %v1337_v53, 5  ;;  %v1343_v38 = vrot.slane %v1341_v9, 4  ;;  %v1067_v39 = vshll.u32 %v7047_v30, 16  ;;  %v1073_v25 = vshll.u32 %v7049_v35, 16  ;;  %v7061_v18 = vld [vmem:[#allocation8] ss:$0 sm:$0xff] }
  0xe7   : > { %4005 = vmatmul.mubr.bf16.gmra.mrb[12].mxu0 %v5215_v49  ;;  %v1334_v42 = vor.u32 %v1333_v15, %v1330_v13  ;;  %v1066_v45 = vrot.slane %v1064_v17, 4  ;;  %v1077_v21 = vshrl.u32 %v7049_v35, 16  ;;  %v1085_v22 = vrot.slane %v1083_v55, 5  ;;  %v6149_v17 = vld [vmem:[#allocation9 + $0x200] sm:$0xff]  }
  0xe8   : > { %v1344_v47 = vor.u32 %v1343_v38, %v1339_v24  ;;  %v1069_v28 = vrot.slane %v1067_v39, 5  ;;  %v1075_v34 = vrot.slane %v1073_v25, 5  ;;  %v5216_v40 = vcombine.low %v7047_v30, %v7049_v35  ;;  %v7079_v25 = vld [vmem:[#allocation2 + $0x24] sm:$0xf]  ;;  %5909 = vmatprep.subr.bf16.mxu0 %v6149_v17 }
  0xe9   : > { %v1335_v29 = vrot.slane %v1334_v42, 4  ;;  %v1079_v52 = vrot.slane %v1077_v21, 4  ;;  %v523_v63 = vrot.slane %v521_v59, 7  ;;  %v524_v41 = vshll.u32 %v473_v57, 16 }
  0xea   : > { %v1345_v0 = vrot.slane %v1344_v47, 4  ;;  %v1070_v7 = vor.u32 %v1069_v28, %v1066_v45  ;;  %v1429_v49 = vrot.slane %v1427_v33, 4  ;;  %v415_v55 = vadd.f32 %v7061_v18, %v7005_v6  ;;  %v341_v47 = vld [vmem:[%s6701_s7 + $0x60] sm:$0xff] }
  0xeb   : > { %v1340_v53 = vsel %vm6750_vm8, %v1335_v29, %v1339_v24  ;;  %v1080_v9 = vor.u32 %v1079_v52, %v1075_v34  ;;  %v526_v13 = vor.u32 %v524_v41, %v523_v63  ;;  %v663_v30 = vsel %vm6715_vm2, %v523_v63, 0  ;;  %v342_v41 = vld [vmem:[%s6701_s7 + $0x68] sm:$0xff] }
  0xec   : > { %v1350_v57 = vsel %vm6750_vm8, %v1345_v0, %v1349_v4  ;;  %v1071_v59 = vrot.slane %v1070_v7, 4  ;;  %v5130_v15 = vcombine.low %v663_v30, %v663_v30  ;;  %v7073_v33 = vsel %vm6739_vm7, %v1429_v49, %v1430_v11  ;;  %v7081_v4 = vld [vmem:[#allocation2 + $0x28] sm:$0xf]  ;;  %v7095_v49 = vld [vmem:[#allocation2 + $0x30] sm:$0xf] }
  0xed   : > { %v5243_v6 = vcombine.low %v1340_v53, %v1350_v57  ;;  %v1081_v38 = vrot.slane %v1080_v9, 4  ;;  %v646_v24 = vsel %vm6715_vm2, 0, %v526_v13  ;;  %v5245_v39 = vcombine.low %v7036_v60, %v7073_v33  ;;  %v1355_v33 = vld [vmem:[#allocation2 + $0x30] sm:$0xe] }
  0xee   : > { %v1076_v42 = vsel %vm6750_vm8, %v1071_v59, %v1075_v34  ;;  %v5128_v45 = vcombine.low %v646_v24, %v646_v24  ;;  %v5129_v11 = vcombine.high %v646_v24, %v646_v24  ;;  %879 = vst [vmem:[#allocation2 + $0x44] sm:$0x1] %v5130_v15  ;;  %v416_v21 = vadd.f32 %v7061_v18, %v378_v46  ;;  %v343_v15 = vld [vmem:[%s6701_s7 + $0x70] sm:$0xff]  ;;  %v1354_v24 = vld [vmem:[#allocation2 + $0x24] sm:$0xe] }
  0xef   : > { %4100 = vmatprep.mubr.bf16.mxu1 %v5243_v6  ;;  %v1086_v28 = vsel %vm6750_vm8, %v1081_v38, %v1085_v22  ;;  %v447_v29 = vmax.f32 %v415_v55, 0.0  ;;  %v1628_v52 = vshrl.u32 %v7079_v25, 16  ;;  %v1631_v63 = vshll.u32 %v7079_v25, 16  ;;  %v7117_v38 = vld [vmem:[#allocation2 + $0x34] sm:$0xf] }
  0xf0   : > { %4101 = vmatmul.mubr.bf16.gmra.mrb[12].mxu1 %v5227_v16  ;;  %v5232_v34 = vcombine.low %v1076_v42, %v1086_v28  ;;  %877 = vst [vmem:[#allocation2 + $0x3c] sm:$0xf] %v5128_v45  ;;  %878 = vst [vmem:[#allocation2 + $0x40] sm:$0xf] %v5129_v11  ;;  %v448_v0 = vmax.f32 %v416_v21, 0.0  ;;  %v5262_v7 = vcombine.low %v7079_v25, %v7081_v4  ;;  %v5166_v16 = vrot.slane %v1353_v56, 9 }
  0xf1   : > { %4141 = vmatprep.mubr.bf16.mxu1 %v5260_v23  ;;  %v7100_v22 = vrot.slane %v1628_v52, 4  ;;  %v7102_v55 = vrot.slane %v1631_v63, 5  ;;  %v1434_v53 = vrot.slane %v6871_v51, 5  ;;  %v1437_v13 = vrot.slane %v6863_v36, 5 }
  0xf2   : > { %4012 = vmatprep.mubr.bf16.mxu0 %v5232_v34  ;;  %v474_v9 = vpack.c.bf16 %v448_v0, %v447_v29  ;;  %v379_v30 = vmul.f32 %v7038_v54, %v341_v47  ;;  %v380_v57 = vmul.f32 %v7038_v54, %v342_v41  ;;  %v1652_v23 = vshrl.u32 %v7095_v49, 16  ;;  %v6124_v29 = vld [vmem:[#allocation9 + $0x1c8] sm:$0xff]  }
  0xf3   : > { %4013 = vmatmul.mubr.bf16.gmra.mrb[16].mxu0 %v5216_v40  ;;  %v7110_v32 = vsel %vm6739_vm7, %v5166_v16, %v1434_v53  ;;  %v1436_v58 = vrot.slane %v1434_v53, 4  ;;  %v1655_v59 = vshll.u32 %v7095_v49, 16  ;;  %v6116_v40 = vld [vmem:[#allocation9 + $0x180] sm:$0xff]   ;;  %v5263_v16 = vcombine.low %v7095_v49, %v7117_v38 }
  0xf4   : > { %v528_v51 = vshrl.u32 %v474_v9, 16  ;;  %v531_v17 = vshll.u32 %v474_v9, 16  ;;  %v417_v6 = vadd.f32 %v7061_v18, %v379_v30  ;;  %v418_v36 = vadd.f32 %v7061_v18, %v380_v57 }
  0xf5   : > { %v7119_v42 = vld [vmem:[#allocation2 + $0x44] sm:$0x1]  ;;  %v7123_v45 = vsel %vm6739_vm7, %v1436_v58, %v1437_v13  ;;  %v7125_v11 = vrot.slane %v1652_v23, 4  ;;  %v7127_v21 = vrot.slane %v1655_v59, 5  ;;  %v5167_v53 = vrot.slane %v1354_v24, 9  ;;  %v6133_v24 = vld [vmem:[#allocation9 + $0x1d0] sm:$0xff]  }
  0xf6   : > { %v1107_v47 = vshll.u32 %v7119_v42, 16  ;;  %v530_v28 = vrot.slane %v528_v51, 7  ;;  %v5246_v52 = vcombine.low %v7110_v32, %v7123_v45  ;;  %v449_v63 = vmax.f32 %v417_v6, 0.0 }
  0xf7   : > { %v7133_v41 = vld [vmem:[#allocation2 + $0x3c] sm:$0xf]  ;;  %v7135_v34 = vld [vmem:[#allocation2 + $0x40] sm:$0xf]  ;;  %v450_v0 = vmax.f32 %v418_v36, 0.0  ;;  %v381_v9 = vmul.f32 %v7038_v54, %v343_v15  ;;  %v1441_v56 = vrot.slane %v7000_v61, 5 }
  0xf8   : > { %4142 = vmatmul.mubr.bf16.vlgmr.msra.gmra.mrb[16].mxu1 %v5244_v50  ;;  %v1088_v13 = vshrl.u32 %v7133_v41, 16  ;;  %v1091_v30 = vshll.u32 %v7133_v41, 16  ;;  %v1097_v57 = vshll.u32 %v7135_v34, 16  ;;  %v1101_v58 = vshrl.u32 %v7135_v34, 16  ;;  %v6126_v50 = vld [vmem:[#allocation9 + $0x188] sm:$0xff]  }
  0xf9   : > { %5774 = vmatpush3.bf16.msra.mxu1 %v6116_v40  ;;  %v1109_v23 = vrot.slane %v1107_v47, 5  ;;  %v5217_v59 = vcombine.low %v7133_v41, %v7135_v34  ;;  %4149 = vmatprep.mubr.bf16.mxu1 %v5261_v3  ;;  %v533_v48 = vor.u32 %v531_v17, %v530_v28  ;;  %v664_v27 = vsel %vm6715_vm2, %v530_v28, 0  ;;  %v7158_v28 = vld [vmem:[#allocation2 + $0x3c] sm:$0xf] }
  0xfa   : > { %v1090_v15 = vrot.slane %v1088_v13, 4  ;;  %v1093_v51 = vrot.slane %v1091_v30, 5  ;;  %v1099_v6 = vrot.slane %v1097_v57, 5  ;;  %v1103_v36 = vrot.slane %v1101_v58, 4  ;;  %5775 = vmatprep.subr.bf16.mxu1 %v6124_v29  ;;  %v6134_v58 = vld [vmem:[#allocation9 + $0x190] sm:$0xff]  }
  0xfb   : > { %v647_v40 = vsel %vm6715_vm2, 0, %v533_v48  ;;  %v5133_v47 = vcombine.low %v664_v27, %v664_v27  ;;  %v475_v14 = vpack.c.bf16 %v450_v0, %v449_v63  ;;  %v7162_v29 = vsel %vm6739_vm7, %v5167_v53, %v1441_v56  ;;  %v6141_v27 = vld [vmem:[#allocation9 + $0x1d8] sm:$0xff]  }
  0xfc   : > { %v1094_v3 = vor.u32 %v1093_v51, %v1090_v15  ;;  %v1104_v17 = vor.u32 %v1103_v36, %v1099_v6  ;;  %v5131_v46 = vcombine.low %v647_v40, %v647_v40  ;;  %v5132_v31 = vcombine.high %v647_v40, %v647_v40  ;;  %v345_v51 = vld [vmem:[%s6701_s7 + $0x80] sm:$0xff] }
  0xfd   : > { %882 = vst [vmem:[#allocation2 + $0x50] sm:$0x1] %v5133_v47  ;;  %5776 = vmatpush3.bf16.msra.mxu1 %v6126_v50  ;;  %v535_v13 = vshrl.u32 %v475_v14, 16  ;;  %v538_v30 = vshll.u32 %v475_v14, 16  ;;  %v1443_v57 = vrot.slane %v1441_v56, 4  ;;  %v1444_v61 = vrot.slane %v7002_v62, 5 }
  0xfe   : > { %v1095_v63 = vrot.slane %v1094_v3, 4  ;;  %v1105_v0 = vrot.slane %v1104_v17, 4  ;;  %880 = vst [vmem:[#allocation2 + $0x48] sm:$0xf] %v5131_v46  ;;  %881 = vst [vmem:[#allocation2 + $0x4c] sm:$0xf] %v5132_v31  ;;  %v382_v48 = vmul.f32 %v7038_v54, %v344_v1  ;;  %5777 = vmatprep.subr.bf16.mxu1 %v6133_v24  ;;  %v419_v14 = vadd.f32 %v7061_v18, %v381_v9 }
  0xff   : > { %v537_v50 = vrot.slane %v535_v13, 7  ;;  %v1676_v15 = vshrl.u32 %v7158_v28, 16  ;;  %v1679_v56 = vshll.u32 %v7158_v28, 16  ;;  %v7178_v62 = vsel %vm6739_vm7, %v1443_v57, %v1444_v61  ;;  %v7181_v9 = vld [vmem:[#allocation2 + $0x40] sm:$0xf]  ;;  %v6142_v24 = vld [vmem:[#allocation9 + $0x198] sm:$0xff]  }
 0x100   : > { %v1100_v53 = vsel %vm6750_vm8, %v1095_v63, %v1099_v6  ;;  %v1110_v31 = vsel %vm6750_vm8, %v1105_v0, %v1109_v23  ;;  %4150 = vmatmul.mubr.bf16.gmra.mrb[20].mxu1 %v5245_v39  ;;  %v420_v46 = vadd.f32 %v7061_v18, %v382_v48  ;;  %v5247_v60 = vcombine.low %v7162_v29, %v7178_v62  ;;  %v346_v39 = vld [vmem:[%s6701_s7 + $0x88] sm:$0xff] }
 0x101   : > { %v5233_v36 = vcombine.low %v1100_v53, %v1110_v31  ;;  %4157 = vmatprep.mubr.bf16.mxu1 %v5262_v7  ;;  %v540_v6 = vor.u32 %v538_v30, %v537_v50  ;;  %v665_v23 = vsel %vm6715_vm2, %v537_v50, 0  ;;  %5778 = vmatpush3.bf16.msra.mxu1 %v6134_v58  ;;  %v451_v47 = vmax.f32 %v419_v14, 0.0  ;;  %v6148_v17 = vld [vmem:[#allocation9 + $0x1e0] sm:$0xff]  }
 0x102   : > { %v5136_v40 = vcombine.low %v665_v23, %v665_v23  ;;  %v452_v1 = vmax.f32 %v420_v46, 0.0  ;;  %v7192_v3 = vrot.slane %v1676_v15, 4  ;;  %5779 = vmatprep.subr.bf16.mxu1 %v6141_v27  ;;  %v7196_v7 = vrot.slane %v1679_v56, 5  ;;  %v6150_v48 = vld [vmem:[#allocation9 + $0x1a0] sm:$0xff]  }
 0x103   : > { %4020 = vmatprep.mubr.bf16.mxu0 %v5233_v36  ;;  %v648_v25 = vsel %vm6715_vm2, 0, %v540_v6  ;;  %v5264_v30 = vcombine.low %v7158_v28, %v7181_v9  ;;  %v5168_v61 = vrot.slane %v1355_v33, 9  ;;  %v1448_v15 = vrot.slane %v7049_v35, 5  ;;  %v6153_v36 = vld [vmem:[#allocation9 + $0x1e8] sm:$0xff]  }
 0x104   : > { %4021 = vmatmul.mubr.bf16.gmra.mrb[20].mxu0 %v5217_v59  ;;  %v7204_v57 = vld [vmem:[#allocation2 + $0x50] sm:$0x1]  ;;  %v5134_v58 = vcombine.low %v648_v25, %v648_v25  ;;  %v5135_v63 = vcombine.high %v648_v25, %v648_v25  ;;  %885 = vst [vmem:[#allocation2 + $0x5c] sm:$0x1] %v5136_v40  ;;  %v476_v0 = vpack.c.bf16 %v452_v1, %v451_v47  ;;  %v6155_v47 = vld [vmem:[#allocation9 + $0x1a8] sm:$0xff]  }
 0x105   : > { %v7206_v27 = vld [vmem:[#allocation2 + $0x48] sm:$0xf]  ;;  %v7208_v50 = vld [vmem:[#allocation2 + $0x4c] sm:$0xf]  ;;  %v1131_v14 = vshll.u32 %v7204_v57, 16  ;;  %v383_v56 = vmul.f32 %v7038_v54, %v345_v51  ;;  %v384_v41 = vmul.f32 %v7038_v54, %v346_v39  ;;  %5780 = vmatpush3.bf16.msra.mxu1 %v6142_v24  ;;  %v1450_v25 = vrot.slane %v1448_v15, 4 }
 0x106   : > { %v1112_v59 = vshrl.u32 %v7206_v27, 16  ;;  %v1115_v53 = vshll.u32 %v7206_v27, 16  ;;  %v1121_v31 = vshll.u32 %v7208_v50, 16  ;;  %v1125_v46 = vshrl.u32 %v7208_v50, 16  ;;  %883 = vst [vmem:[#allocation2 + $0x54] sm:$0xf] %v5134_v58  ;;  %5781 = vmatprep.subr.bf16.mxu1 %v6148_v17 }
 0x107   : > { %884 = vst [vmem:[#allocation2 + $0x58] sm:$0xf] %v5135_v63  ;;  %v1133_v6 = vrot.slane %v1131_v14, 5  ;;  %v5218_v35 = vcombine.low %v7206_v27, %v7208_v50  ;;  %v542_v51 = vshrl.u32 %v476_v0, 16  ;;  %v545_v23 = vshll.u32 %v476_v0, 16  ;;  %v6158_v0 = vld [vmem:[#allocation9 + $0x1f0] sm:$0xff]  }
 0x108   : > { %v1114_v33 = vrot.slane %v1112_v59, 4  ;;  %v1117_v39 = vrot.slane %v1115_v53, 5  ;;  %v1123_v24 = vrot.slane %v1121_v31, 5  ;;  %v1127_v40 = vrot.slane %v1125_v46, 4  ;;  %4158 = vmatmul.mubr.bf16.gmra.mrb[24].mxu1 %v5246_v52  ;;  %v7231_v63 = vld [vmem:[#allocation2 + $0x48] sm:$0xf] }
 0x109   : > { %4165 = vmatprep.mubr.bf16.mxu1 %v5263_v16  ;;  %v544_v1 = vrot.slane %v542_v51, 7  ;;  %v7228_v17 = vsel %vm6739_vm7, %v5168_v61, %v1448_v15  ;;  %v1451_v58 = vrot.slane %v7026_v10, 5  ;;  %5782 = vmatpush3.bf16.msra.mxu1 %v6150_v48  ;;  %v421_v45 = vadd.f32 %v7061_v18, %v383_v56  ;;  %v7235_v49 = vld [vmem:[#allocation2 + $0x4c] sm:$0xf] }
 0x10a   : > { %v1118_v14 = vor.u32 %v1117_v39, %v1114_v33  ;;  %v1128_v32 = vor.u32 %v1127_v40, %v1123_v24  ;;  %v422_v52 = vadd.f32 %v7061_v18, %v384_v41  ;;  %5783 = vmatprep.subr.bf16.mxu1 %v6153_v36  ;;  %v1700_v48 = vshrl.u32 %v7231_v63, 16 }
 0x10b   : > { %v7237_v16 = vld [vmem:[#allocation2 + $0x5c] sm:$0x1]  ;;  %v547_v61 = vor.u32 %v545_v23, %v544_v1  ;;  %v666_v15 = vsel %vm6715_vm2, %v544_v1, 0  ;;  %v7243_v10 = vsel %vm6739_vm7, %v1450_v25, %v1451_v58  ;;  %v453_v23 = vmax.f32 %v421_v45, 0.0  ;;  %v6160_v58 = vld [vmem:[#allocation9 + $0x1b0] sm:$0xff]  }
 0x10c   : > { %v1119_v59 = vrot.slane %v1118_v14, 4  ;;  %v1129_v53 = vrot.slane %v1128_v32, 4  ;;  %v1155_v56 = vshll.u32 %v7237_v16, 16  ;;  %v5139_v41 = vcombine.low %v666_v15, %v666_v15 }
 0x10d   : > { %v7247_v31 = vld [vmem:[#allocation2 + $0x54] sm:$0xf]  ;;  %v649_v36 = vsel %vm6715_vm2, 0, %v547_v61  ;;  %v5248_v51 = vcombine.low %v7228_v17, %v7243_v10  ;;  %v5265_v33 = vcombine.low %v7231_v63, %v7235_v49  ;;  %5784 = vmatpush3.bf16.msra.mxu1 %v6155_v47  ;;  %v7277_v29 = vrot.slane %v1700_v48, 4 }
 0x10e   : > { %v7249_v46 = vld [vmem:[#allocation2 + $0x58] sm:$0xf]  ;;  %v1124_v39 = vsel %vm6750_vm8, %v1119_v59, %v1123_v24  ;;  %v1134_v40 = vsel %vm6750_vm8, %v1129_v53, %v1133_v6  ;;  %v1136_v1 = vshrl.u32 %v7247_v31, 16  ;;  %v1139_v25 = vshll.u32 %v7247_v31, 16  ;;  %888 = vst [vmem:[#allocation2 + $0x68] sm:$0x1] %v5139_v41  ;;  %5785 = vmatprep.subr.bf16.mxu1 %v6158_v0 }
 0x10f   : > { %v5234_v14 = vcombine.low %v1124_v39, %v1134_v40  ;;  %v1145_v32 = vshll.u32 %v7249_v46, 16  ;;  %v1149_v45 = vshrl.u32 %v7249_v46, 16  ;;  %v1157_v47 = vrot.slane %v1155_v56, 5  ;;  %v6163_v61 = vld [vmem:[#allocation9 + $0x1f8] sm:$0xff]   ;;  %v1356_v0 = vld [vmem:[#allocation2 + $0x3c] sm:$0xe] }
 0x110   : > { %v1138_v15 = vrot.slane %v1136_v1, 4  ;;  %v1141_v24 = vrot.slane %v1139_v25, 5  ;;  %v5219_v6 = vcombine.low %v7247_v31, %v7249_v46  ;;  %4166 = vmatmul.mubr.bf16.gmra.mrb[28].mxu1 %v5247_v60  ;;  %v5137_v59 = vcombine.low %v649_v36, %v649_v36  ;;  %v347_v40 = vld [vmem:[%s6701_s7 + $0x90] sm:$0xff]  ;;  %v348_v25 = vld [vmem:[%s6701_s7 + $0x98] sm:$0xff] }
 0x111   : > { %4028 = vmatprep.mubr.bf16.mxu0 %v5234_v14  ;;  %v1147_v53 = vrot.slane %v1145_v32, 5  ;;  %v1151_v41 = vrot.slane %v1149_v45, 4  ;;  %v5138_v39 = vcombine.high %v649_v36, %v649_v36  ;;  %4173 = vmatprep.mubr.bf16.mxu1 %v5264_v30  ;;  %v454_v56 = vmax.f32 %v422_v52, 0.0  ;;  %v6165_v36 = vld [vmem:[#allocation9 + $0x1b8] sm:$0xff]  }
 0x112   : > { %4029 = vmatmul.mubr.bf16.gmra.mrb[24].mxu0 %v5218_v35  ;;  %v1142_v31 = vor.u32 %v1141_v24, %v1138_v15  ;;  %886 = vst [vmem:[#allocation2 + $0x60] sm:$0xf] %v5137_v59  ;;  %v1703_v62 = vshll.u32 %v7231_v63, 16  ;;  %5786 = vmatpush3.bf16.msra.mxu1 %v6160_v58  ;;  %v5169_v30 = vrot.slane %v1356_v0, 9  ;;  %v1455_v52 = vrot.slane %v7135_v34, 5 }
 0x113   : > { %v1152_v1 = vor.u32 %v1151_v41, %v1147_v53  ;;  %887 = vst [vmem:[#allocation2 + $0x64] sm:$0xf] %v5138_v39  ;;  %v477_v28 = vpack.c.bf16 %v454_v56, %v453_v23  ;;  %5787 = vmatprep.subr.bf16.mxu1 %v6163_v61  ;;  %v1458_v48 = vrot.slane %v7119_v42, 5  ;;  %v385_v14 = vmul.f32 %v7038_v54, %v347_v40  ;;  %v1543_v0 = vld [vmem:[#allocation2 + $0x54] sm:$0xf] }
 0x114   : > { %v1143_v27 = vrot.slane %v1142_v31, 4  ;;  %v7283_v35 = vrot.slane %v1703_v62, 5  ;;  %v1456_v23 = vsel %vm6739_vm7, %v5169_v30, %v1455_v52  ;;  %v1457_v24 = vrot.slane %v1455_v52, 4 }
 0x115   : > { %v1153_v32 = vrot.slane %v1152_v1, 4  ;;  %v7287_v45 = vld [vmem:[#allocation2 + $0x68] sm:$0x1]  ;;  %v549_v58 = vshrl.u32 %v477_v28, 16  ;;  %v552_v15 = vshll.u32 %v477_v28, 16  ;;  %v386_v59 = vmul.f32 %v7038_v54, %v348_v25 }
 0x116   : > { %v1148_v34 = vsel %vm6750_vm8, %v1143_v27, %v1147_v53  ;;  %v1179_v61 = vshll.u32 %v7287_v45, 16  ;;  %5788 = vmatpush3.bf16.msra.mxu1 %v6165_v36  ;;  %v423_v39 = vadd.f32 %v7061_v18, %v385_v14  ;;  %v1724_v56 = vshrl.u32 %v1543_v0, 16  ;;  %v7323_v14 = vld [vmem:[#allocation2 + $0x58] sm:$0xf] }
 0x117   : > { %v1158_v42 = vsel %vm6750_vm8, %v1153_v32, %v1157_v47  ;;  %v551_v41 = vrot.slane %v549_v58, 7  ;;  %v1459_v53 = vsel %vm6739_vm7, %v1457_v24, %v1458_v48  ;;  %v424_v62 = vadd.f32 %v7061_v18, %v386_v59 }
 0x118   : > { %v5235_v40 = vcombine.low %v1148_v34, %v1158_v42  ;;  %v7298_v31 = vrot.slane %v1179_v61, 5  ;;  %4174 = vmatmul.mubr.bf16.gmra.mrb[32].mxu1 %v5248_v51  ;;  %v5249_v28 = vcombine.low %v1456_v23, %v1459_v53  ;;  %v455_v30 = vmax.f32 %v423_v39, 0.0  ;;  %v349_v53 = vld [vmem:[%s6701_s7 + $0xa0] sm:$0xff] }
 0x119   : > { %v7306_v36 = vld [vmem:[#allocation2 + $0x60] sm:$0xf]  ;;  %v554_v1 = vor.u32 %v552_v15, %v551_v41  ;;  %v667_v47 = vsel %vm6715_vm2, %v551_v41, 0  ;;  %4181 = vmatprep.mubr.bf16.mxu1 %v5265_v33  ;;  %v456_v25 = vmax.f32 %v424_v62, 0.0  ;;  %v7325_v59 = vrot.slane %v1724_v56, 4 }
 0x11a   : > { %4036 = vmatprep.mubr.bf16.mxu0 %v5235_v40  ;;  %v7313_v17 = vld [vmem:[#allocation2 + $0x64] sm:$0xf]  ;;  %v1160_v10 = vshrl.u32 %v7306_v36, 16  ;;  %v1163_v51 = vshll.u32 %v7306_v36, 16  ;;  %v5142_v52 = vcombine.low %v667_v47, %v667_v47  ;;  %v1727_v41 = vshll.u32 %v1543_v0, 16 }
 0x11b   : > { %4037 = vmatmul.mubr.bf16.gmra.mrb[28].mxu0 %v5219_v6  ;;  %v1169_v27 = vshll.u32 %v7313_v17, 16  ;;  %v1173_v48 = vshrl.u32 %v7313_v17, 16  ;;  %v5220_v63 = vcombine.low %v7306_v36, %v7313_v17  ;;  %v650_v33 = vsel %vm6715_vm2, 0, %v554_v1  ;;  %v1357_v6 = vld [vmem:[#allocation2 + $0x48] sm:$0xe]  ;;  %v350_v62 = vld [vmem:[%s6701_s7 + $0xa8] sm:$0xff] }
 0x11c   : > { %v1162_v32 = vrot.slane %v1160_v10, 4  ;;  %v1165_v58 = vrot.slane %v1163_v51, 5  ;;  %v5140_v15 = vcombine.low %v650_v33, %v650_v33  ;;  %v5141_v23 = vcombine.high %v650_v33, %v650_v33  ;;  %891 = vst [vmem:[#allocation2 + $0x74] sm:$0x1] %v5142_v52  ;;  %v7331_v51 = vld [vmem:[#allocation2 + $0x60] sm:$0xf] }
 0x11d   : > { %v1171_v34 = vrot.slane %v1169_v27, 5  ;;  %v1175_v61 = vrot.slane %v1173_v48, 4  ;;  %v478_v24 = vpack.c.bf16 %v456_v25, %v455_v30  ;;  %v5266_v40 = vcombine.low %v1543_v0, %v7323_v14 }
 0x11e   : > { %v1166_v42 = vor.u32 %v1165_v58, %v1162_v32  ;;  %889 = vst [vmem:[#allocation2 + $0x6c] sm:$0xf] %v5140_v15  ;;  %890 = vst [vmem:[#allocation2 + $0x70] sm:$0xf] %v5141_v23  ;;  %v5170_v10 = vrot.slane %v1357_v6, 9  ;;  %v7333_v56 = vrot.slane %v1727_v41, 5  ;;  %v387_v0 = vmul.f32 %v7038_v54, %v349_v53 }
 0x11f   : > { %v1176_v36 = vor.u32 %v1175_v61, %v1171_v34  ;;  %v556_v1 = vshrl.u32 %v478_v24, 16  ;;  %v559_v47 = vshll.u32 %v478_v24, 16  ;;  %v1462_v30 = vrot.slane %v7208_v50, 5 }
 0x120   : > { %v1167_v52 = vrot.slane %v1166_v42, 4  ;;  %4182 = vmatmul.mubr.bf16.gmra.mrb[36].mxu1 %v5249_v28  ;;  %v1465_v25 = vrot.slane %v7204_v57, 5  ;;  %v388_v33 = vmul.f32 %v7038_v54, %v350_v62  ;;  %v1748_v15 = vshrl.u32 %v7331_v51, 16 }
 0x121   : > { %v1177_v27 = vrot.slane %v1176_v36, 4  ;;  %v558_v48 = vrot.slane %v556_v1, 7  ;;  %4189 = vmatprep.mubr.bf16.mxu1 %v5266_v40  ;;  %v1463_v58 = vsel %vm6739_vm7, %v5170_v10, %v1462_v30  ;;  %v1464_v28 = vrot.slane %v1462_v30, 4 }
 0x122   : > { %v1172_v32 = vsel %vm6750_vm8, %v1167_v52, %v1171_v34  ;;  %v425_v54 = vadd.f32 %v7061_v18, %v387_v0  ;;  %v426_v62 = vadd.f32 %v7061_v18, %v388_v33  ;;  %v7368_v0 = vld [vmem:[#allocation2 + $0x64] sm:$0xf]  ;;  %v1358_v18 = vld [vmem:[#allocation2 + $0x54] sm:$0xe] }
 0x123   : > { %v1182_v57 = vsel %vm6750_vm8, %v1177_v27, %v7298_v31  ;;  %v7347_v50 = vld [vmem:[#allocation2 + $0x74] sm:$0x1]  ;;  %v561_v23 = vor.u32 %v559_v47, %v558_v48  ;;  %v668_v6 = vsel %vm6715_vm2, %v558_v48, 0  ;;  %v1466_v42 = vsel %vm6739_vm7, %v1464_v28, %v1465_v25 }
 0x124   : > { %v5236_v61 = vcombine.low %v1172_v32, %v1182_v57  ;;  %v1203_v34 = vshll.u32 %v7347_v50, 16  ;;  %v5145_v24 = vcombine.low %v668_v6, %v668_v6  ;;  %v5250_v53 = vcombine.low %v1463_v58, %v1466_v42  ;;  %v7370_v57 = vld [vmem:[#allocation2 + $0x14] sm:$0x1] }
 0x125   : > { %v7355_v41 = vld [vmem:[#allocation2 + $0x6c] sm:$0xf]  ;;  %v7357_v40 = vld [vmem:[#allocation2 + $0x70] sm:$0xf]  ;;  %v651_v31 = vsel %vm6715_vm2, 0, %v561_v23  ;;  %v457_v36 = vmax.f32 %v425_v54, 0.0  ;;  %v5267_v42 = vcombine.low %v7331_v51, %v7368_v0 }
 0x126   : > { %4044 = vmatprep.mubr.bf16.mxu0 %v5236_v61  ;;  %v1184_v1 = vshrl.u32 %v7355_v41, 16  ;;  %v1187_v47 = vshll.u32 %v7355_v41, 16  ;;  %v1193_v10 = vshll.u32 %v7357_v40, 16  ;;  %v1197_v52 = vshrl.u32 %v7357_v40, 16  ;;  %894 = vst [vmem:[#allocation2 + $0x80] sm:$0x1] %v5145_v24 }
 0x127   : > { %4045 = vmatmul.mubr.bf16.gmra.mrb[32].mxu0 %v5220_v63  ;;  %v1205_v30 = vrot.slane %v1203_v34, 5  ;;  %v5221_v25 = vcombine.low %v7355_v41, %v7357_v40  ;;  %v5143_v27 = vcombine.low %v651_v31, %v651_v31  ;;  %v5144_v48 = vcombine.high %v651_v31, %v651_v31  ;;  %v1963_v61 = vld [vmem:[#allocation2 + $0xc] sm:$0xe] }
 0x128   : > { %v1186_v33 = vrot.slane %v1184_v1, 4  ;;  %v1189_v32 = vrot.slane %v1187_v47, 5  ;;  %v1195_v58 = vrot.slane %v1193_v10, 5  ;;  %v1199_v28 = vrot.slane %v1197_v52, 4  ;;  %4190 = vmatmul.mubr.bf16.gmra.mrb[40].mxu1 %v5250_v53 }
 0x129   : > { %892 = vst [vmem:[#allocation2 + $0x78] sm:$0xf] %v5143_v27  ;;  %893 = vst [vmem:[#allocation2 + $0x7c] sm:$0xf] %v5144_v48  ;;  %v458_v23 = vmax.f32 %v426_v62, 0.0  ;;  %v7372_v63 = vrot.slane %v1748_v15, 4  ;;  %4197 = vmatprep.mubr.bf16.mxu1 %v5267_v42 }
 0x12a   : > { %v1751_v6 = vshll.u32 %v7331_v51, 16  ;;  %v1190_v34 = vor.u32 %v1189_v32, %v1186_v33  ;;  %v1200_v24 = vor.u32 %v1199_v28, %v1195_v58  ;;  %v5171_v41 = vrot.slane %v1358_v18, 9 }
 0x12b   : > { %v479_v31 = vpack.c.bf16 %v458_v23, %v457_v36  ;;  %v1469_v1 = vrot.slane %v7249_v46, 5  ;;  %v1472_v62 = vrot.slane %v7237_v16, 5  ;;  %v1599_v10 = vshll.u32 %v7370_v57, 16 }
 0x12c   : > { %v7378_v53 = vrot.slane %v1751_v6, 5  ;;  %v1191_v15 = vrot.slane %v1190_v34, 4  ;;  %v1201_v47 = vrot.slane %v1200_v24, 4  ;;  %v5180_v52 = vrot.slane %v1963_v61, 9  ;;  %v6189_v61 = vld [vmem:[#allocation2 + $0x10] sm:$0xf] }
 0x12d   : > { %v7383_v27 = vld [vmem:[#allocation2 + $0x80] sm:$0x1]  ;;  %v563_v48 = vshrl.u32 %v479_v31, 16  ;;  %v566_v33 = vshll.u32 %v479_v31, 16  ;;  %v1470_v51 = vsel %vm6739_vm7, %v5171_v41, %v1469_v1  ;;  %v1471_v36 = vrot.slane %v1469_v1, 4 }
 0x12e   : > { %v1196_v18 = vsel %vm6750_vm8, %v1191_v15, %v1195_v58  ;;  %v1206_v16 = vsel %vm6750_vm8, %v1201_v47, %v1205_v30  ;;  %v1227_v46 = vshll.u32 %v7383_v27, 16  ;;  %v1601_v32 = vrot.slane %v1599_v10, 5 }
 0x12f   : > { %v5237_v28 = vcombine.low %v1196_v18, %v1206_v16  ;;  %v565_v23 = vrot.slane %v563_v48, 7  ;;  %v1473_v6 = vsel %vm6739_vm7, %v1471_v36, %v1472_v62  ;;  %v2029_v34 = vrot.slane %v6189_v61, 5 }
 0x130   : > { %v7394_v24 = vld [vmem:[#allocation2 + $0x78] sm:$0xf]  ;;  %v7396_v42 = vld [vmem:[#allocation2 + $0x7c] sm:$0xf]  ;;  %v1229_v41 = vrot.slane %v1227_v46, 5  ;;  %v5251_v31 = vcombine.low %v1470_v51, %v1473_v6  ;;  %v2032_v58 = vrot.slane %v7370_v57, 5  ;;  %v1592_v30 = vsel %vm6750_vm8, %v6966_v44, %v6964_v19 }
 0x131   : > { %4052 = vmatprep.mubr.bf16.mxu0 %v5237_v28  ;;  %v1208_v1 = vshrl.u32 %v7394_v24, 16  ;;  %v1211_v62 = vshll.u32 %v7394_v24, 16  ;;  %v1217_v15 = vshll.u32 %v7396_v42, 16  ;;  %v1221_v47 = vshrl.u32 %v7396_v42, 16 }
 0x132   : > { %4053 = vmatmul.mubr.bf16.gmra.mrb[36].mxu0 %v5221_v25  ;;  %v5222_v10 = vcombine.low %v7394_v24, %v7396_v42  ;;  %v568_v48 = vor.u32 %v566_v33, %v565_v23  ;;  %v669_v57 = vsel %vm6715_vm2, %v565_v23, 0  ;;  %4198 = vmatmul.mubr.bf16.gmra.mrb[44].mxu1 %v5251_v31  ;;  %v7413_v19 = vsel %vm6739_vm7, %v5180_v52, %v2029_v34  ;;  %v1547_v24 = vld [vmem:[#allocation2 + $0x6c] sm:$0xf]  ;;  %v7420_v52 = vld [vmem:[#allocation2 + $0x70] sm:$0xf] }
 0x133   : > { %v1210_v44 = vrot.slane %v1208_v1, 4  ;;  %v1213_v51 = vrot.slane %v1211_v62, 5  ;;  %v1219_v36 = vrot.slane %v1217_v15, 5  ;;  %v1223_v18 = vrot.slane %v1221_v47, 4  ;;  %v1359_v31 = vld [vmem:[#allocation2 + $0x60] sm:$0xe] }
 0x134   : > { %v652_v16 = vsel %vm6715_vm2, 0, %v568_v48  ;;  %v5148_v25 = vcombine.low %v669_v57, %v669_v57  ;;  %v2031_v46 = vrot.slane %v2029_v34, 4  ;;  %v1602_v33 = vsel %vm6750_vm8, %v7014_v26, %v1601_v32  ;;  %v1564_v47 = vld [vmem:[#allocation2 + $0x20] sm:$0x1] }
 0x135   : > { %v1214_v28 = vor.u32 %v1213_v51, %v1210_v44  ;;  %v1224_v23 = vor.u32 %v1223_v18, %v1219_v36  ;;  %v5146_v6 = vcombine.low %v652_v16, %v652_v16  ;;  %v5147_v61 = vcombine.high %v652_v16, %v652_v16  ;;  %v1964_v44 = vld [vmem:[#allocation2 + $0x18] sm:$0xe] }
 0x136   : > { %897 = vst [vmem:[#allocation2 + $0x8c] sm:$0x1] %v5148_v25  ;;  %v7424_v1 = vsel %vm6739_vm7, %v2031_v46, %v2032_v58  ;;  %v7426_v62 = vcombine.low %v1592_v30, %v1602_v33  ;;  %v1772_v34 = vshrl.u32 %v1547_v24, 16  ;;  %v1775_v15 = vshll.u32 %v1547_v24, 16 }
 0x137   : > { %v1215_v48 = vrot.slane %v1214_v28, 4  ;;  %v1225_v26 = vrot.slane %v1224_v23, 4  ;;  %895 = vst [vmem:[#allocation2 + $0x84] sm:$0xf] %v5146_v6  ;;  %896 = vst [vmem:[#allocation2 + $0x88] sm:$0xf] %v5147_v61  ;;  %v5268_v58 = vcombine.low %v1547_v24, %v7420_v52 }
 0x138   : > { %v7431_v51 = vrot.slane %v1772_v34, 4  ;;  %v7433_v18 = vrot.slane %v1775_v15, 5  ;;  %v5172_v30 = vrot.slane %v1359_v31, 9  ;;  %v1476_v46 = vrot.slane %v7313_v17, 5  ;;  %v6190_v6 = vld [vmem:[#allocation2 + $0x1c] sm:$0xf] }
 0x139   : > { %v1220_v16 = vsel %vm6750_vm8, %v1215_v48, %v1219_v36  ;;  %v1230_v25 = vsel %vm6750_vm8, %v1225_v26, %v1229_v41  ;;  %v1479_v33 = vrot.slane %v7287_v45, 5  ;;  %4205 = vmatprep.mubr.bf16.mxu1 %v5268_v58  ;;  %v5181_v23 = vrot.slane %v1964_v44, 9  ;;  %v1549_v44 = vld [vmem:[#allocation2 + $0x78] sm:$0xf] }
 0x13a   : > { %9063 = vst [vmem:[#allocation21_spill] sm:$0xff] %v7433_v18  ;;  %v5238_v28 = vcombine.low %v1220_v16, %v1230_v25  ;;  %v2036_v61 = vrot.slane %v6190_v6, 5  ;;  %v2039_v34 = vrot.slane %v1564_v47, 5  ;;  %v1477_v24 = vsel %vm6739_vm7, %v5172_v30, %v1476_v46 }
 0x13b   : > { %v1478_v31 = vrot.slane %v1476_v46, 4  ;;  %v1610_v36 = vor.u32 %v7023_v20, %v7021_v12  ;;  %v1613_v15 = vshll.u32 %v6190_v6, 16  ;;  %v9064_v41 = vshrl.u32 %v6925_v5, 16 }
 0x13c   : > { %4060 = vmatprep.mubr.bf16.mxu0 %v5238_v28  ;;  %v7448_v17 = vsel %vm6739_vm7, %v5181_v23, %v2036_v61  ;;  %v2038_v45 = vrot.slane %v2036_v61, 4  ;;  %v1623_v26 = vshll.u32 %v1564_v47, 16  ;;  %v1796_v20 = vshrl.u32 %v1549_v44, 16 }
 0x13d   : > { %v1619_v48 = vrot.slane %v9064_v41, 4  ;;  %4061 = vmatmul.mubr.bf16.gmra.mrb[40].mxu0 %v5222_v10  ;;  %v7452_v58 = vld [vmem:[#allocation2 + $0x8c] sm:$0x1]  ;;  %v1480_v30 = vsel %vm6739_vm7, %v1478_v31, %v1479_v33  ;;  %v1611_v16 = vrot.slane %v1610_v36, 4  ;;  %v1615_v12 = vrot.slane %v1613_v15, 5 }
 0x13e   : > { %v7456_v25 = vld [vmem:[#allocation2 + $0x84] sm:$0xf]  ;;  %v7458_v46 = vld [vmem:[#allocation2 + $0x88] sm:$0xf]  ;;  %v1251_v28 = vshll.u32 %v7452_v58, 16  ;;  %v5252_v23 = vcombine.low %v1477_v24, %v1480_v30  ;;  %v7463_v5 = vsel %vm6739_vm7, %v2038_v45, %v2039_v34  ;;  %v1625_v10 = vrot.slane %v1623_v26, 5 }
 0x13f   : > { %v1232_v47 = vshrl.u32 %v7456_v25, 16  ;;  %v1235_v6 = vshll.u32 %v7456_v25, 16  ;;  %v1241_v33 = vshll.u32 %v7458_v46, 16  ;;  %v1245_v61 = vshrl.u32 %v7458_v46, 16  ;;  %v7475_v15 = vld [vmem:[#allocation2 + $0x7c] sm:$0xf] }
 0x140   : > { %v1253_v31 = vrot.slane %v1251_v28, 5  ;;  %v5223_v36 = vcombine.low %v7456_v25, %v7458_v46  ;;  %4206 = vmatmul.mubr.bf16.gmra.mrb[48].mxu1 %v5252_v23  ;;  %v1616_v34 = vsel %vm6750_vm8, %v1611_v16, %v1615_v12  ;;  %v1360_v45 = vld [vmem:[#allocation2 + $0x6c] sm:$0xe]  ;;  %v1620_v54 = vor.u32 %v1619_v48, %v1615_v12  ;;  %v1965_v23 = vld [vmem:[#allocation2 + $0x24] sm:$0xe] }
 0x141   : > { %v1234_v41 = vrot.slane %v1232_v47, 4  ;;  %v1237_v26 = vrot.slane %v1235_v6, 5  ;;  %v1243_v30 = vrot.slane %v1241_v33, 5  ;;  %v1247_v57 = vrot.slane %v1245_v61, 4  ;;  %v1565_v16 = vld [vmem:[#allocation2 + $0x2c] sm:$0x1] }
 0x142   : > { %v7477_v39 = vrot.slane %v1796_v20, 4  ;;  %v1799_v28 = vshll.u32 %v1549_v44, 16  ;;  %v1809_v25 = vshrl.u32 %v7475_v15, 16  ;;  %v5269_v24 = vcombine.low %v1549_v44, %v7475_v15  ;;  %v6191_v33 = vld [vmem:[#allocation2 + $0x28] sm:$0xf] }
 0x143   : > { %v1238_v60 = vor.u32 %v1237_v26, %v1234_v41  ;;  %v1248_v13 = vor.u32 %v1247_v57, %v1243_v30  ;;  %v5173_v32 = vrot.slane %v1360_v45, 9  ;;  %v1621_v2 = vrot.slane %v1620_v54, 4  ;;  %v1361_v26 = vld [vmem:[#allocation2 + $0x78] sm:$0xe] }
 0x144   : > { %v7481_v18 = vrot.slane %v1799_v28, 5  ;;  %v1483_v47 = vrot.slane %v7357_v40, 5  ;;  %v1486_v6 = vrot.slane %v7347_v50, 5  ;;  %4213 = vmatprep.mubr.bf16.mxu1 %v5269_v24  ;;  %v5182_v20 = vrot.slane %v1965_v23, 9  ;;  %v1551_v24 = vld [vmem:[#allocation2 + $0x84] sm:$0xf] }
 0x145   : > { %v1239_v48 = vrot.slane %v1238_v60, 4  ;;  %v1249_v12 = vrot.slane %v1248_v13, 4  ;;  %v2043_v61 = vrot.slane %v6191_v33, 5  ;;  %v1626_v57 = vsel %vm6750_vm8, %v1621_v2, %v1625_v10 }
 0x146   : > { %v1484_v44 = vsel %vm6739_vm7, %v5173_v32, %v1483_v47  ;;  %v1485_v45 = vrot.slane %v1483_v47, 4  ;;  %v2046_v54 = vrot.slane %v1565_v16, 5  ;;  %v7493_v60 = vcombine.low %v1616_v34, %v1626_v57  ;;  %v7505_v47 = vld [vmem:[#allocation2 + $0x88] sm:$0xf] }
 0x147   : > { %v1244_v41 = vsel %vm6750_vm8, %v1239_v48, %v1243_v30  ;;  %v1254_v50 = vsel %vm6750_vm8, %v1249_v12, %v1253_v31  ;;  %v7497_v13 = vsel %vm6739_vm7, %v5182_v20, %v2043_v61  ;;  %v2045_v10 = vrot.slane %v2043_v61, 4  ;;  %v1566_v61 = vld [vmem:[#allocation2 + $0x38] sm:$0x1] }
 0x148   : > { %v5239_v40 = vcombine.low %v1244_v41, %v1254_v50  ;;  %v1487_v2 = vsel %vm6739_vm7, %v1485_v45, %v1486_v6  ;;  %v1634_v32 = vor.u32 %v7102_v55, %v7100_v22  ;;  %v1637_v28 = vshll.u32 %v6191_v33, 16  ;;  %v1966_v33 = vld [vmem:[#allocation2 + $0x30] sm:$0xe] }
 0x149   : > { %v5253_v30 = vcombine.low %v1484_v44, %v1487_v2  ;;  %v9065_v31 = vshrl.u32 %v7081_v4, 16  ;;  %v1647_v23 = vshll.u32 %v1565_v16, 16  ;;  %v7509_v48 = vsel %vm6739_vm7, %v2045_v10, %v2046_v54 }
 0x14a   : > { %4068 = vmatprep.mubr.bf16.mxu0 %v5239_v40  ;;  %v1635_v6 = vrot.slane %v1634_v32, 4  ;;  %v1820_v12 = vshrl.u32 %v1551_v24, 16  ;;  %v1823_v20 = vshll.u32 %v1551_v24, 16  ;;  %v5294_v22 = vcombine.low %v7497_v13, %v7509_v48  ;;  %v6192_v32 = vld [vmem:[#allocation2 + $0x34] sm:$0xf] }
 0x14b   : > { %v1643_v34 = vrot.slane %v9065_v31, 4  ;;  %4069 = vmatmul.mubr.bf16.gmra.mrb[44].mxu0 %v5223_v36  ;;  %4214 = vmatmul.mubr.bf16.gmra.mrb[52].mxu1 %v5253_v30  ;;  %v1639_v55 = vrot.slane %v1637_v28, 5  ;;  %v1649_v4 = vrot.slane %v1647_v23, 5  ;;  %v9066_v57 = vcombine.low %v7413_v19, %v7424_v1  ;;  %v6154_v23 = vld [vmem:[#allocation9 + $0x208] sm:$0xff]  }
 0x14c   : > { %v7517_v44 = vrot.slane %v1820_v12, 4  ;;  %v7519_v45 = vrot.slane %v1823_v20, 5  ;;  %v5270_v54 = vcombine.low %v1551_v24, %v7505_v47  ;;  %v5174_v36 = vrot.slane %v1361_v26, 9 }
 0x14d   : > { %4302 = vmatprep.mubr.bf16.mxu0 %v9066_v57  ;;  %v1640_v41 = vsel %vm6750_vm8, %v1635_v6, %v1639_v55  ;;  %v1644_v50 = vor.u32 %v1643_v34, %v1639_v55  ;;  %v1490_v40 = vrot.slane %v7396_v42, 5  ;;  %v1493_v2 = vrot.slane %v7383_v27, 5  ;;  %v7540_v57 = vld [vmem:[#allocation2 + $0x94] sm:$0xf] }
 0x14e   : > { %4221 = vmatprep.mubr.bf16.mxu1 %v5270_v54  ;;  %v5183_v10 = vrot.slane %v1966_v33, 9  ;;  %v2050_v19 = vrot.slane %v6192_v32, 5  ;;  %v2053_v1 = vrot.slane %v1566_v61, 5  ;;  %v1658_v30 = vor.u32 %v7127_v21, %v7125_v11  ;;  %v1553_v33 = vld [vmem:[#allocation2 + $0x90] sm:$0xf] }
 0x14f   : > { %v1645_v28 = vrot.slane %v1644_v50, 4  ;;  %v1491_v24 = vsel %vm6739_vm7, %v5174_v36, %v1490_v40  ;;  %v1492_v26 = vrot.slane %v1490_v40, 4  ;;  %v1661_v31 = vshll.u32 %v6192_v32, 16  ;;  %v1362_v40 = vld [vmem:[#allocation2 + $0x84] sm:$0xe] }
 0x150   : > { %v7532_v42 = vsel %vm6739_vm7, %v5183_v10, %v2050_v19  ;;  %v2052_v27 = vrot.slane %v2050_v19, 4  ;;  %v1659_v34 = vrot.slane %v1658_v30, 4  ;;  %v9067_v6 = vshrl.u32 %v7117_v38, 16  ;;  %v1567_v32 = vld [vmem:[#allocation2 + $0x44] sm:$0x1]  ;;  %v6193_v19 = vld [vmem:[#allocation9 + $0x200] sm:$0xff]  }
 0x151   : > { %v1650_v20 = vsel %vm6750_vm8, %v1645_v28, %v1649_v4  ;;  %v1494_v11 = vsel %vm6739_vm7, %v1492_v26, %v1493_v2  ;;  %v1663_v21 = vrot.slane %v1661_v31, 5  ;;  %v1671_v55 = vshll.u32 %v1566_v61, 16 }
 0x152   : > { %v1667_v12 = vrot.slane %v9067_v6, 4  ;;  %v7542_v54 = vcombine.low %v1640_v41, %v1650_v20  ;;  %v5254_v36 = vcombine.low %v1491_v24, %v1494_v11  ;;  %v7546_v50 = vsel %vm6739_vm7, %v2052_v27, %v2053_v1  ;;  %v1967_v41 = vld [vmem:[#allocation2 + $0x3c] sm:$0xe]  ;;  %v6159_v6 = vld [vmem:[#allocation9 + $0x210] sm:$0xff]  }
 0x153   : > { %v1844_v38 = vshrl.u32 %v1553_v33, 16  ;;  %4303 = vmatmul.mubr.bf16.vlgmr.msra.gmra.mrb[48].mxu0 %v7426_v62  ;;  %v5295_v4 = vcombine.low %v7532_v42, %v7546_v50  ;;  %v1664_v61 = vsel %vm6750_vm8, %v1659_v34, %v1663_v21  ;;  %v1673_v10 = vrot.slane %v1671_v55, 5 }
 0x154   : > { %v1668_v2 = vor.u32 %v1667_v12, %v1663_v21  ;;  %5910 = vmatpush3.bf16.msra.mxu0 %v6193_v19  ;;  %v9068_v1 = vcombine.low %v7448_v17, %v7463_v5  ;;  %v1847_v28 = vshll.u32 %v1553_v33, 16  ;;  %v5271_v24 = vcombine.low %v1553_v33, %v7540_v57  ;;  %4222 = vmatmul.mubr.bf16.gmra.mrb[56].mxu1 %v5254_v36 }
 0x155   : > { %v7556_v30 = vrot.slane %v1844_v38, 4  ;;  %5911 = vmatprep.subr.bf16.mxu0 %v6154_v23  ;;  %v5175_v31 = vrot.slane %v1362_v40, 9  ;;  %v1497_v27 = vrot.slane %v7458_v46, 5  ;;  %v1500_v34 = vrot.slane %v7452_v58, 5  ;;  %v1555_v40 = vld [vmem:[#allocation2 + $0x9c] sm:$0xf] }
 0x156   : > { %4310 = vmatprep.mubr.bf16.mxu0 %v9068_v1  ;;  %v1669_v26 = vrot.slane %v1668_v2, 4  ;;  %v7562_v12 = vrot.slane %v1847_v28, 5  ;;  %4229 = vmatprep.mubr.bf16.mxu1 %v5271_v24  ;;  %v5184_v17 = vrot.slane %v1967_v41, 9  ;;  %v2057_v5 = vrot.slane %v7181_v9, 5 }
 0x157   : > { %v2060_v20 = vrot.slane %v1567_v32, 5  ;;  %v1498_v21 = vsel %vm6739_vm7, %v5175_v31, %v1497_v27  ;;  %v1499_v55 = vrot.slane %v1497_v27, 4  ;;  %v1682_v46 = vor.u32 %v7196_v7, %v7192_v3  ;;  %v7582_v3 = vld [vmem:[#allocation2 + $0xa0] sm:$0xf]  ;;  %v6164_v7 = vld [vmem:[#allocation9 + $0x218] sm:$0xff]  }
 0x158   : > { %v1674_v11 = vsel %vm6750_vm8, %v1669_v26, %v1673_v10  ;;  %5912 = vmatpush3.bf16.msra.mxu0 %v6154_v23  ;;  %v7575_v33 = vsel %vm6739_vm7, %v5184_v17, %v2057_v5  ;;  %v2059_v36 = vrot.slane %v2057_v5, 4  ;;  %v1685_v38 = vshll.u32 %v7181_v9, 16  ;;  %v1363_v26 = vld [vmem:[#allocation2 + $0x90] sm:$0xe]  ;;  %v1968_v31 = vld [vmem:[#allocation2 + $0x48] sm:$0xe] }
 0x159   : > { %v7571_v58 = vcombine.low %v1664_v61, %v1674_v11  ;;  %v1501_v2 = vsel %vm6739_vm7, %v1499_v55, %v1500_v34  ;;  %v1683_v10 = vrot.slane %v1682_v46, 4  ;;  %v9069_v41 = vshrl.u32 %v7181_v9, 16  ;;  %5913 = vmatprep.subr.bf16.mxu0 %v6159_v6  ;;  %v1568_v17 = vld [vmem:[#allocation2 + $0x50] sm:$0x1]  ;;  %v6194_v46 = vld [vmem:[#allocation2 + $0x94] sm:$0xf] }
 0x15a   : > { %v1695_v1 = vshll.u32 %v1567_v32, 16  ;;  %v5255_v23 = vcombine.low %v1498_v21, %v1501_v2  ;;  %v7586_v61 = vsel %vm6739_vm7, %v2059_v36, %v2060_v20  ;;  %v1687_v28 = vrot.slane %v1685_v38, 5  ;;  %v6167_v2 = vld [vmem:[#allocation9 + $0x220] sm:$0xff]  }
 0x15b   : > { %v1691_v19 = vrot.slane %v9069_v41, 4  ;;  %v1868_v24 = vshrl.u32 %v1555_v40, 16  ;;  %4311 = vmatmul.mubr.bf16.gmra.mrb[52].mxu0 %v7493_v60  ;;  %v5296_v9 = vcombine.low %v7575_v33, %v7586_v61  ;;  %v1871_v32 = vshll.u32 %v1555_v40, 16 }
 0x15c   : > { %v1697_v27 = vrot.slane %v1695_v1, 5  ;;  %4318 = vmatprep.mubr.bf16.mxu0 %v5294_v22  ;;  %v1688_v5 = vsel %vm6750_vm8, %v1683_v10, %v1687_v28  ;;  %v5272_v60 = vcombine.low %v1555_v40, %v7582_v3  ;;  %5914 = vmatpush3.bf16.msra.mxu0 %v6159_v6  ;;  %v5176_v55 = vrot.slane %v1363_v26, 9 }
 0x15d   : > { %v1692_v20 = vor.u32 %v1691_v19, %v1687_v28  ;;  %v7597_v11 = vrot.slane %v1868_v24, 4  ;;  %4230 = vmatmul.mubr.bf16.gmra.mrb[60].mxu1 %v5255_v23  ;;  %v7600_v21 = vrot.slane %v1871_v32, 5  ;;  %v1504_v36 = vrot.slane %v6194_v46, 5  ;;  %5915 = vmatprep.subr.bf16.mxu0 %v6164_v7 }
 0x15e   : > { %v5185_v38 = vrot.slane %v1968_v31, 9  ;;  %4237 = vmatprep.mubr.bf16.mxu1 %v5272_v60  ;;  %v2064_v48 = vrot.slane %v7235_v49, 5  ;;  %v2067_v22 = vrot.slane %v1568_v17, 5  ;;  %v1706_v10 = vor.u32 %v7283_v35, %v7277_v29  ;;  %v1557_v31 = vld [vmem:[#allocation2 + $0xa8] sm:$0xf] }
 0x15f   : > { %v1693_v13 = vrot.slane %v1692_v20, 4  ;;  %v1505_v6 = vsel %vm6739_vm7, %v5176_v55, %v1504_v36  ;;  %v1506_v40 = vrot.slane %v1504_v36, 4  ;;  %v1709_v41 = vshll.u32 %v7235_v49, 16  ;;  %v7622_v60 = vld [vmem:[#allocation2 + $0xac] sm:$0xf] }
 0x160   : > { %v9070_v19 = vshrl.u32 %v7235_v49, 16  ;;  %v7614_v28 = vsel %vm6739_vm7, %v5185_v38, %v2064_v48  ;;  %v2066_v24 = vrot.slane %v2064_v48, 4  ;;  %v1707_v26 = vrot.slane %v1706_v10, 4  ;;  %5916 = vmatpush3.bf16.msra.mxu0 %v6164_v7  ;;  %v1569_v48 = vld [vmem:[#allocation2 + $0x5c] sm:$0x1] }
 0x161   : > { %v1698_v23 = vsel %vm6750_vm8, %v1693_v13, %v1697_v27  ;;  %v9071_v35 = vrot.slane %v6803_v8, 5  ;;  %v1711_v49 = vrot.slane %v1709_v41, 5  ;;  %v1719_v20 = vshll.u32 %v1568_v17, 16  ;;  %5917 = vmatprep.subr.bf16.mxu0 %v6167_v2  ;;  %v6170_v27 = vld [vmem:[#allocation9 + $0x228] sm:$0xff]   ;;  %v1969_v10 = vld [vmem:[#allocation2 + $0x54] sm:$0xe] }
 0x162   : > { %v1715_v1 = vrot.slane %v9070_v19, 4  ;;  %v7616_v29 = vcombine.low %v1688_v5, %v1698_v23  ;;  %v7626_v46 = vsel %vm6739_vm7, %v2066_v24, %v2067_v22  ;;  %v1892_v36 = vshrl.u32 %v1557_v31, 16  ;;  %v1364_v5 = vld [vmem:[#allocation2 + $0x9c] sm:$0xe]  ;;  %v6196_v24 = vld [vmem:[#allocation2 + $0xa4] sm:$0x1] }
 0x163   : > { %v1508_v32 = vsel %vm6739_vm7, %v1506_v40, %v9071_v35  ;;  %v1895_v7 = vshll.u32 %v1557_v31, 16  ;;  %4319 = vmatmul.mubr.bf16.gmra.mrb[56].mxu0 %v7542_v54  ;;  %v5297_v8 = vcombine.low %v7614_v28, %v7626_v46  ;;  %v1712_v17 = vsel %vm6750_vm8, %v1707_v26, %v1711_v49  ;;  %v6173_v35 = vld [vmem:[#allocation9 + $0x230] sm:$0xff]  }
 0x164   : > { %v5256_v55 = vcombine.low %v1505_v6, %v1508_v32  ;;  %v1716_v38 = vor.u32 %v1715_v1, %v1711_v49  ;;  %v1721_v13 = vrot.slane %v1719_v20, 5  ;;  %4326 = vmatprep.mubr.bf16.mxu0 %v5295_v4  ;;  %v7636_v22 = vrot.slane %v1892_v36, 4  ;;  %5918 = vmatpush3.bf16.msra.mxu0 %v6167_v2  ;;  %v6195_v1 = vld [vmem:[#allocation2 + $0xa0] sm:$0xf] }
 0x165   : > { %v7638_v6 = vrot.slane %v1895_v7, 5  ;;  %v5273_v40 = vcombine.low %v1557_v31, %v7622_v60  ;;  %v5177_v19 = vrot.slane %v1364_v5, 9  ;;  %v1511_v23 = vrot.slane %v6195_v1, 5  ;;  %5919 = vmatprep.subr.bf16.mxu0 %v6170_v27 }
 0x166   : > { %4238 = vmatmul.mubr.bf16.gmra.mrb[64].mxu1 %v5256_v55  ;;  %v1717_v41 = vrot.slane %v1716_v38, 4  ;;  %v1514_v26 = vrot.slane %v6196_v24, 5  ;;  %v5186_v42 = vrot.slane %v1969_v10, 9  ;;  %v2071_v50 = vrot.slane %v7323_v14, 5  ;;  %v1559_v38 = vld [vmem:[#allocation2 + $0xb4] sm:$0xf] }
 0x167   : > { %4245 = vmatprep.mubr.bf16.mxu1 %v5273_v40  ;;  %v2074_v4 = vrot.slane %v1569_v48, 5  ;;  %v1730_v32 = vor.u32 %v7333_v56, %v7325_v59  ;;  %v1512_v31 = vsel %vm6739_vm7, %v5177_v19, %v1511_v23  ;;  %v1513_v49 = vrot.slane %v1511_v23, 4 }
 0x168   : > { %v1722_v2 = vsel %vm6750_vm8, %v1717_v41, %v1721_v13  ;;  %v1733_v20 = vshll.u32 %v7323_v14, 16  ;;  %v7654_v36 = vsel %vm6739_vm7, %v5186_v42, %v2071_v50  ;;  %v2073_v7 = vrot.slane %v2071_v50, 4  ;;  %5920 = vmatpush3.bf16.msra.mxu0 %v6170_v27  ;;  %v7660_v41 = vld [vmem:[#allocation2 + $0xb8] sm:$0xf]  ;;  %v1365_v27 = vld [vmem:[#allocation2 + $0xa8] sm:$0xe] }
 0x169   : > { %v7650_v55 = vcombine.low %v1712_v17, %v1722_v2  ;;  %v1731_v5 = vrot.slane %v1730_v32, 4  ;;  %v1515_v59 = vsel %vm6739_vm7, %v1513_v49, %v1514_v26  ;;  %v9072_v13 = vshrl.u32 %v7323_v14, 16  ;;  %5921 = vmatprep.subr.bf16.mxu0 %v6173_v35  ;;  %v6176_v17 = vld [vmem:[#allocation9 + $0x238] sm:$0xff]   ;;  %v1570_v50 = vld [vmem:[#allocation2 + $0x68] sm:$0x1] }
 0x16a   : > { %v1735_v56 = vrot.slane %v1733_v20, 5  ;;  %v1743_v40 = vshll.u32 %v1569_v48, 16  ;;  %v5257_v19 = vcombine.low %v1512_v31, %v1515_v59  ;;  %v7664_v1 = vsel %vm6739_vm7, %v2073_v7, %v2074_v4  ;;  %v1970_v32 = vld [vmem:[#allocation2 + $0x60] sm:$0xe]  ;;  %v6197_v7 = vld [vmem:[#allocation2 + $0xac] sm:$0xf] }
 0x16b   : > { %v1739_v10 = vrot.slane %v9072_v13, 4  ;;  %v1916_v23 = vshrl.u32 %v1559_v38, 16  ;;  %v1919_v24 = vshll.u32 %v1559_v38, 16  ;;  %4327 = vmatmul.mubr.bf16.gmra.mrb[60].mxu0 %v7571_v58  ;;  %v5298_v26 = vcombine.low %v7654_v36, %v7664_v1  ;;  %v6198_v59 = vld [vmem:[#allocation2 + $0xb0] sm:$0x1] }
 0x16c   : > { %v1736_v14 = vsel %vm6750_vm8, %v1731_v5, %v1735_v56  ;;  %v1745_v42 = vrot.slane %v1743_v40, 5  ;;  %4334 = vmatprep.mubr.bf16.mxu0 %v5296_v9  ;;  %v5274_v31 = vcombine.low %v1559_v38, %v7660_v41  ;;  %5922 = vmatpush3.bf16.msra.mxu0 %v6173_v35  ;;  %v5178_v20 = vrot.slane %v1365_v27, 9 }
 0x16d   : > { %v1740_v48 = vor.u32 %v1739_v10, %v1735_v56  ;;  %v7674_v4 = vrot.slane %v1916_v23, 4  ;;  %v7676_v2 = vrot.slane %v1919_v24, 5  ;;  %v1518_v5 = vrot.slane %v6197_v7, 5  ;;  %5923 = vmatprep.subr.bf16.mxu0 %v6176_v17  ;;  %v360_v23 = vld [vmem:[%s6701_s7 + $0xf8] sm:$0xff] }
 0x16e   : > { %4246 = vmatmul.mubr.bf16.gmra.mrb[68].mxu1 %v5257_v19  ;;  %v1521_v56 = vrot.slane %v6198_v59, 5  ;;  %v5187_v33 = vrot.slane %v1970_v32, 9  ;;  %v2078_v61 = vrot.slane %v7368_v0, 5  ;;  %v2081_v9 = vrot.slane %v1570_v50, 5  ;;  %v359_v19 = vld [vmem:[%s6701_s7 + $0xf0] sm:$0xff] }
 0x16f   : > { %v1741_v49 = vrot.slane %v1740_v48, 4  ;;  %4253 = vmatprep.mubr.bf16.mxu1 %v5274_v31  ;;  %v1754_v13 = vor.u32 %v7378_v53, %v7372_v63  ;;  %v1519_v38 = vsel %vm6739_vm7, %v5178_v20, %v1518_v5  ;;  %v1520_v10 = vrot.slane %v1518_v5, 4  ;;  %v1366_v20 = vld [vmem:[#allocation2 + $0xb4] sm:$0xe]  ;;  %v6199_v5 = vld [vmem:[#allocation6] ss:$0 sm:$0xff] }
 0x170   : > { %v1757_v40 = vshll.u32 %v7368_v0, 16  ;;  %v7694_v27 = vsel %vm6739_vm7, %v5187_v33, %v2078_v61  ;;  %v2080_v48 = vrot.slane %v2078_v61, 4  ;;  %5924 = vmatpush3.bf16.msra.mxu0 %v6176_v17  ;;  %v397_v59 = vmul.f32 %v6199_v5, %v359_v19  ;;  %v1971_v61 = vld [vmem:[#allocation2 + $0x6c] sm:$0xe]  ;;  %v1571_v19 = vld [vmem:[#allocation2 + $0x74] sm:$0x1] }
 0x171   : > { %v1746_v35 = vsel %vm6750_vm8, %v1741_v49, %v1745_v42  ;;  %v1755_v32 = vrot.slane %v1754_v13, 4  ;;  %v1522_v63 = vsel %vm6739_vm7, %v1520_v10, %v1521_v56  ;;  %v9073_v42 = vshrl.u32 %v7368_v0, 16  ;;  %v6201_v10 = vld [vmem:[#allocation2 + $0xb8] sm:$0xf] }
 0x172   : > { %v7690_v24 = vcombine.low %v1736_v14, %v1746_v35  ;;  %v1759_v53 = vrot.slane %v1757_v40, 5  ;;  %v1767_v49 = vshll.u32 %v1570_v50, 16  ;;  %v5258_v7 = vcombine.low %v1519_v38, %v1522_v63 }
 0x173   : > { %v1763_v31 = vrot.slane %v9073_v42, 4  ;;  %v7702_v14 = vsel %vm6739_vm7, %v2080_v48, %v2081_v9  ;;  %v398_v33 = vmul.f32 %v6199_v5, %v360_v23  ;;  %4335 = vmatmul.mubr.bf16.gmra.mrb[64].mxu0 %v7616_v29  ;;  %v6200_v9 = vld [vmem:[#allocation8] ss:$0 sm:$0xff]  ;;  %v5179_v38 = vrot.slane %v1366_v20, 9  ;;  %v6202_v23 = vld [vmem:[#allocation2 + $0xbc] sm:$0x1] }
 0x174   : > { %v1760_v0 = vsel %vm6750_vm8, %v1755_v32, %v1759_v53  ;;  %v1769_v50 = vrot.slane %v1767_v49, 5  ;;  %4342 = vmatprep.mubr.bf16.mxu0 %v5297_v8  ;;  %v435_v13 = vadd.f32 %v6200_v9, %v397_v59  ;;  %v1525_v40 = vrot.slane %v6201_v10, 5 }
 0x175   : > { %v1764_v56 = vor.u32 %v1763_v31, %v1759_v53  ;;  %v436_v35 = vadd.f32 %v6200_v9, %v398_v33  ;;  %v1528_v48 = vrot.slane %v6202_v23, 5  ;;  %v5188_v63 = vrot.slane %v1971_v61, 9  ;;  %v9074_v33 = vld [vmem:[#allocation21_spill] sm:$0xff]  ;;  %v7733_v9 = vld [vmem:[#allocation2 + $0x1c] sm:$0xf] }
 0x176   : > { %4254 = vmatmul.mubr.bf16.gmra.mrb[72].mxu1 %v5258_v7  ;;  %v2085_v32 = vrot.slane %v7420_v52, 5  ;;  %v467_v53 = vmax.f32 %v435_v13, 0.0  ;;  %v7715_v28 = vsel %vm6739_vm7, %v5179_v38, %v1525_v40  ;;  %v1527_v46 = vrot.slane %v1525_v40, 4  ;;  %9075 = vst [vmem:[#allocation21_spill] sm:$0xff] %v7733_v9  ;;  %v7746_v40 = vld [vmem:[#allocation2 + $0x20] sm:$0x1] }
 0x177   : > { %v1765_v29 = vrot.slane %v1764_v56, 4  ;;  %v468_v42 = vmax.f32 %v436_v35, 0.0  ;;  %v2088_v20 = vrot.slane %v1571_v19, 5  ;;  %v1778_v61 = vor.u32 %v9074_v33, %v7431_v51  ;;  %v7731_v56 = vld [vmem:[#allocation2 + $0x18] sm:$0xf]  ;;  %9077 = vst [vmem:[#allocation22_spill] sm:$0xff] %v7746_v40 }
 0x178   : > { %v7721_v31 = vsel %vm6739_vm7, %v5188_v63, %v2085_v32  ;;  %v2087_v49 = vrot.slane %v2085_v32, 4  ;;  %v7727_v59 = vsel %vm6739_vm7, %v1527_v46, %v1528_v48  ;;  %v1781_v35 = vshll.u32 %v7420_v52, 16  ;;  %v1972_v33 = vld [vmem:[#allocation2 + $0x78] sm:$0xe] }
 0x179   : > { %v1770_v8 = vsel %vm6750_vm8, %v1765_v29, %v1769_v50  ;;  %v484_v5 = vpack.c.bf16 %v468_v42, %v467_v53  ;;  %v9076_v38 = vshrl.u32 %v7420_v52, 16  ;;  %v1779_v63 = vrot.slane %v1778_v61, 4 }
 0x17a   : > { %v7723_v7 = vcombine.low %v1760_v0, %v1770_v8  ;;  %v7741_v0 = vsel %vm6739_vm7, %v2087_v49, %v2088_v20  ;;  %v1783_v53 = vrot.slane %v1781_v35, 5  ;;  %v1791_v42 = vshll.u32 %v1571_v19, 16 }
 0x17b   : > { %v1787_v10 = vrot.slane %v9076_v38, 4  ;;  %v598_v29 = vshrl.u32 %v484_v5, 16  ;;  %v601_v23 = vshll.u32 %v484_v5, 16  ;;  %4343 = vmatmul.mubr.bf16.gmra.mrb[68].mxu0 %v7650_v55  ;;  %v2189_v46 = vshrl.u32 %v7731_v56, 16 }
 0x17c   : > { %v2192_v52 = vshll.u32 %v7731_v56, 16  ;;  %4350 = vmatprep.mubr.bf16.mxu0 %v5298_v26  ;;  %v2198_v20 = vshll.u32 %v7733_v9, 16  ;;  %v2202_v5 = vshrl.u32 %v7733_v9, 16  ;;  %v2208_v55 = vshll.u32 %v7746_v40, 16  ;;  %v1572_v26 = vld [vmem:[#allocation2 + $0x80] sm:$0x1] }
 0x17d   : > { %v7762_v49 = vrot.slane %v598_v29, 7  ;;  %v1784_v19 = vsel %vm6750_vm8, %v1779_v63, %v1783_v53  ;;  %v1788_v61 = vor.u32 %v1787_v10, %v1783_v53  ;;  %v1793_v35 = vrot.slane %v1791_v42, 5 }
 0x17e   : > { %v2191_v38 = vrot.slane %v2189_v46, 4  ;;  %v2194_v54 = vrot.slane %v2192_v52, 5  ;;  %v2200_v36 = vrot.slane %v2198_v20, 5  ;;  %v2204_v1 = vrot.slane %v2202_v5, 4  ;;  %v7777_v52 = vld [vmem:[#allocation2 + $0x24] sm:$0xf] }
 0x17f   : > { %v603_v58 = vor.u32 %v601_v23, %v7762_v49  ;;  %v1789_v29 = vrot.slane %v1788_v61, 4  ;;  %v2210_v34 = vrot.slane %v2208_v55, 5  ;;  %v5308_v62 = vcombine.low %v7731_v56, %v7733_v9 }
 0x180   : > { %v7735_v50 = vpop.f32.mrb[0].mxu0  ;;  %v5189_v16 = vrot.slane %v1972_v33, 9  ;;  %v2195_v17 = vor.u32 %v2194_v54, %v2191_v38  ;;  %v2205_v63 = vor.u32 %v2204_v1, %v2200_v36  ;;  %v2092_v10 = vrot.slane %v7475_v15, 5 }
 0x181   : > { %v7748_v51 = vpop.f32.mrb[1].mxu0  ;;  %v657_v48 = vsel %vm6715_vm2, 0, %v603_v58  ;;  %v1794_v23 = vsel %vm6750_vm8, %v1789_v29, %v1793_v35  ;;  %v2095_v46 = vrot.slane %v1572_v26, 5  ;;  %v1802_v58 = vor.u32 %v7481_v18, %v7477_v39  ;;  %v7798_v35 = vld [vmem:[#allocation2 + $0x28] sm:$0xf] }
 0x182   : > { %v7752_v32 = vpop.f32.mrb[2].mxu0  ;;  %v5161_v53 = vcombine.low %v657_v48, %v657_v48  ;;  %v5162_v42 = vcombine.high %v657_v48, %v657_v48  ;;  %v7779_v20 = vcombine.low %v1784_v19, %v1794_v23  ;;  %v2196_v5 = vrot.slane %v2195_v17, 4 }
 0x183   : > { %v7757_v8 = vpop.f32.mrb[3].mxu0  ;;  %v2206_v55 = vrot.slane %v2205_v63, 4  ;;  %v7783_v33 = vsel %vm6739_vm7, %v5189_v16, %v2092_v10  ;;  %4351 = vmatmul.mubr.bf16.gmra.mrb[72].mxu0 %v7690_v24  ;;  %v2094_v54 = vrot.slane %v2092_v10, 4  ;;  %v1805_v48 = vshll.u32 %v7475_v15, 16 }
 0x184   : > { %910 = vst [vmem:[#allocation2 + $0xc0] sm:$0xf] %v5161_v53  ;;  %911 = vst [vmem:[#allocation2 + $0xc4] sm:$0xf] %v5162_v42  ;;  %v1811_v19 = vrot.slane %v1809_v25, 4  ;;  %v9079_v17 = vcombine.low %v7694_v27, %v7702_v14  ;;  %v2201_v16 = vsel %vm6750_vm8, %v2196_v5, %v2200_v36  ;;  %v1815_v61 = vshll.u32 %v1572_v26, 16 }
 0x185   : > { %v2211_v24 = vsel %vm6750_vm8, %v2206_v55, %v2210_v34  ;;  %v2213_v39 = vshrl.u32 %v7777_v52, 16  ;;  %v7803_v15 = vsel %vm6739_vm7, %v2094_v54, %v2095_v46  ;;  %v1803_v25 = vrot.slane %v1802_v58, 4  ;;  %v7805_v27 = vld [vmem:[#allocation2 + $0x2c] sm:$0x1]  ;;  %v1973_v26 = vld [vmem:[#allocation2 + $0x84] sm:$0xe] }
 0x186   : > { %4358 = vmatprep.mubr.bf16.mxu0 %v9079_v17  ;;  %v5324_v18 = vcombine.low %v2201_v16, %v2211_v24  ;;  %v1807_v38 = vrot.slane %v1805_v48, 5  ;;  %9080 = vst [vmem:[#allocation20_spill] sm:$0xff] %v7805_v27  ;;  %v5301_v14 = vcombine.low %v7783_v33, %v7803_v15  ;;  %v1817_v36 = vrot.slane %v1815_v61, 5 }
 0x187   : > { %v2215_v1 = vrot.slane %v2213_v39, 4  ;;  %v2216_v34 = vshll.u32 %v7777_v52, 16  ;;  %v2222_v10 = vshll.u32 %v7798_v35, 16  ;;  %v2226_v53 = vshrl.u32 %v7798_v35, 16 }
 0x188   : > { %v1808_v29 = vsel %vm6750_vm8, %v1803_v25, %v1807_v38  ;;  %v1812_v63 = vor.u32 %v1811_v19, %v1807_v38  ;;  %v2232_v23 = vshll.u32 %v7805_v27, 16  ;;  %v5190_v48 = vrot.slane %v1973_v26, 9 }
 0x189   : > { %v2218_v42 = vrot.slane %v2216_v34, 5  ;;  %v2224_v54 = vrot.slane %v2222_v10, 5  ;;  %v2228_v58 = vrot.slane %v2226_v53, 4  ;;  %v2099_v61 = vrot.slane %v7505_v47, 5  ;;  %v1573_v10 = vld [vmem:[#allocation2 + $0x8c] sm:$0x1] }
 0x18a   : > { %v1813_v55 = vrot.slane %v1812_v63, 4  ;;  %v2234_v24 = vrot.slane %v2232_v23, 5  ;;  %v1826_v39 = vor.u32 %v7519_v45, %v7517_v44  ;;  %v9081_v26 = vcombine.low %v7721_v31, %v7741_v0  ;;  %v7835_v45 = vld [vmem:[#allocation2 + $0x30] sm:$0xf]  ;;  %v7843_v0 = vld [vmem:[#allocation2 + $0x34] sm:$0xf] }
 0x18b   : > { %v1561_v17 = vld [vmem:[#allocation2 + $0xc0] sm:$0xf]  ;;  %v7818_v16 = vld [vmem:[#allocation2 + $0xc4] sm:$0xf]  ;;  %v2219_v19 = vor.u32 %v2218_v42, %v2215_v1  ;;  %4359 = vmatmul.mubr.bf16.gmra.mrb[76].mxu0 %v7723_v7  ;;  %v2229_v42 = vor.u32 %v2228_v58, %v2224_v54  ;;  %v7833_v44 = vsel %vm6739_vm7, %v5190_v48, %v2099_v61  ;;  %v2101_v31 = vrot.slane %v2099_v61, 4 }
 0x18c   : > { %v1940_v25 = vshrl.u32 %v1561_v17, 16  ;;  %v1943_v38 = vshll.u32 %v1561_v17, 16  ;;  %v5275_v63 = vcombine.low %v1561_v17, %v7818_v16  ;;  %4366 = vmatprep.mubr.bf16.mxu0 %v9081_v26  ;;  %v1818_v1 = vsel %vm6750_vm8, %v1813_v55, %v1817_v36 }
 0x18d   : > { %v2220_v53 = vrot.slane %v2219_v19, 4  ;;  %v7841_v17 = vcombine.low %v1808_v29, %v1818_v1  ;;  %v9082_v36 = vcombine.low %v7715_v28, %v7727_v59  ;;  %v2230_v58 = vrot.slane %v2229_v42, 4 }
 0x18e   : > { %v7837_v7 = vrot.slane %v1940_v25, 4  ;;  %v7839_v23 = vrot.slane %v1943_v38, 5  ;;  %4261 = vmatprep.mubr.bf16.mxu1 %v5275_v63  ;;  %v2102_v48 = vrot.slane %v1573_v10, 5  ;;  %v1827_v19 = vrot.slane %v1826_v39, 4  ;;  %v7850_v25 = vld [vmem:[#allocation2 + $0x38] sm:$0x1] }
 0x18f   : > { %4262 = vmatmul.mubr.bf16.gmra.mrb[76].mxu1 %v9082_v36  ;;  %v2225_v55 = vsel %vm6750_vm8, %v2220_v53, %v2224_v54  ;;  %9083 = vst [vmem:[#allocation23_spill] sm:$0xff] %v7850_v25  ;;  %v1829_v38 = vshll.u32 %v7505_v47, 16  ;;  %v9084_v29 = vshrl.u32 %v7505_v47, 16  ;;  %v1839_v63 = vshll.u32 %v1573_v10, 16  ;;  %v7856_v1 = vpop.f32.mrb[0].mxu1 }
 0x190   : > { %4463 = vmatprep.mubr.bf16.mxu1 %v5324_v18  ;;  %v2237_v26 = vshrl.u32 %v7835_v45, 16  ;;  %v2235_v28 = vsel %vm6750_vm8, %v2230_v58, %v2234_v24  ;;  %v7862_v59 = vsel %vm6739_vm7, %v2101_v31, %v2102_v48  ;;  %v2240_v54 = vshll.u32 %v7835_v45, 16  ;;  %v7866_v39 = vld [vmem:[#allocation2 + $0x98] sm:$0x1]  ;;  %v7868_v47 = vpop.f32.mrb[1].mxu1 }
 0x191   : > { %v1835_v61 = vrot.slane %v9084_v29, 4  ;;  %v2246_v18 = vshll.u32 %v7843_v0, 16  ;;  %v5325_v10 = vcombine.low %v2225_v55, %v2235_v28  ;;  %v5302_v53 = vcombine.low %v7833_v44, %v7862_v59  ;;  %v1974_v29 = vld [vmem:[#allocation2 + $0x90] sm:$0xe]  ;;  %v7872_v24 = vpop.f32.mrb[2].mxu1 }
 0x192   : > { %v1831_v42 = vrot.slane %v1829_v38, 5  ;;  %v1841_v36 = vrot.slane %v1839_v63, 5  ;;  %v2239_v58 = vrot.slane %v2237_v26, 4  ;;  %v2242_v31 = vrot.slane %v2240_v54, 5  ;;  %v7875_v34 = vpop.f32.mrb[3].mxu1 }
 0x193   : > { %v2248_v48 = vrot.slane %v2246_v18, 5  ;;  %v2250_v46 = vshrl.u32 %v7843_v0, 16  ;;  %4367 = vmatmul.mubr.bf16.gmra.mrb[80].mxu0 %v7779_v20  ;;  %v2256_v44 = vshll.u32 %v7850_v25, 16  ;;  %v5191_v59 = vrot.slane %v1974_v29, 9 }
 0x194   : > { %v1832_v55 = vsel %vm6750_vm8, %v1827_v19, %v1831_v42  ;;  %v1836_v28 = vor.u32 %v1835_v61, %v1831_v42  ;;  %4374 = vmatprep.mubr.bf16.mxu0 %v5301_v14  ;;  %v2243_v63 = vor.u32 %v2242_v31, %v2239_v58  ;;  %v2106_v54 = vrot.slane %v7540_v57, 5  ;;  %v7897_v14 = vld [vmem:[#allocation2 + $0x3c] sm:$0xf]  ;;  %v7906_v58 = vld [vmem:[#allocation2 + $0x40] sm:$0xf] }
 0x195   : > { %v2252_v26 = vrot.slane %v2250_v46, 4  ;;  %v2258_v20 = vrot.slane %v2256_v44, 5  ;;  %v2109_v5 = vrot.slane %v7866_v39, 5  ;;  %v1850_v19 = vor.u32 %v7562_v12, %v7556_v30  ;;  %v7899_v46 = vpop.f32.mrb[4].mxu0 }
 0x196   : > { %v1837_v18 = vrot.slane %v1836_v28, 4  ;;  %v2244_v61 = vrot.slane %v2243_v63, 4  ;;  %v7895_v33 = vsel %vm6739_vm7, %v5191_v59, %v2106_v54  ;;  %v2108_v15 = vrot.slane %v2106_v54, 4  ;;  %v7908_v31 = vpop.f32.mrb[5].mxu0 }
 0x197   : > { %4464 = vmatmul.mubr.bf16.vlgmr.msra.gmra.mrb[80].mxu1 %v5308_v62  ;;  %v2253_v42 = vor.u32 %v2252_v26, %v2248_v48  ;;  %v1851_v30 = vrot.slane %v1850_v19, 4  ;;  %v1853_v12 = vshll.u32 %v7540_v57, 16  ;;  %v9085_v62 = vshrl.u32 %v7540_v57, 16  ;;  %v7920_v26 = vpop.f32.mrb[6].mxu0  ;;  %v1575_v57 = vld [vmem:[#allocation2 + $0xa4] sm:$0x1] }
 0x198   : > { %4471 = vmatprep.mubr.bf16.mxu1 %v5325_v10  ;;  %v1842_v29 = vsel %vm6750_vm8, %v1837_v18, %v1841_v36  ;;  %v2249_v44 = vsel %vm6750_vm8, %v2244_v61, %v2248_v48  ;;  %v7916_v10 = vsel %vm6739_vm7, %v2108_v15, %v2109_v5  ;;  %v7918_v36 = vld [vmem:[#allocation2 + $0x44] sm:$0x1]  ;;  %v1863_v54 = vshll.u32 %v7866_v39, 16  ;;  %v7926_v18 = vpop.f32.mrb[7].mxu0  ;;  %v1975_v15 = vld [vmem:[#allocation2 + $0x9c] sm:$0xe] }
 0x199   : > { %v1859_v56 = vrot.slane %v9085_v62, 4  ;;  %v7910_v28 = vcombine.low %v1832_v55, %v1842_v29  ;;  %v2254_v63 = vrot.slane %v2253_v42, 4  ;;  %9086 = vst [vmem:[#allocation24_spill] sm:$0xff] %v7918_v36  ;;  %v1855_v59 = vrot.slane %v1853_v12, 5  ;;  %v7928_v48 = vpop.f32.mrb[4].mxu1 }
 0x19a   : > { %v2261_v55 = vshrl.u32 %v7897_v14, 16  ;;  %9087 = vst [vmem:[#allocation25_spill] sm:$0xff] %v7928_v48  ;;  %v2264_v19 = vshll.u32 %v7897_v14, 16  ;;  %v2270_v61 = vshll.u32 %v7906_v58, 16  ;;  %v2274_v42 = vshrl.u32 %v7906_v58, 16  ;;  %v7935_v29 = vpop.f32.mrb[5].mxu1 }
 0x19b   : > { %v2259_v5 = vsel %vm6750_vm8, %v2254_v63, %v2258_v20  ;;  %9088 = vst [vmem:[#allocation26_spill] sm:$0xff] %v7935_v29  ;;  %4375 = vmatmul.mubr.bf16.gmra.mrb[84].mxu0 %v7841_v17  ;;  %v1856_v12 = vsel %vm6750_vm8, %v1851_v30, %v1855_v59  ;;  %v1860_v62 = vor.u32 %v1859_v56, %v1855_v59  ;;  %v1865_v38 = vrot.slane %v1863_v54, 5  ;;  %v7940_v25 = vpop.f32.mrb[6].mxu1 }
 0x19c   : > { %v5326_v39 = vcombine.low %v2249_v44, %v2259_v5  ;;  %4382 = vmatprep.mubr.bf16.mxu0 %v5302_v53  ;;  %v2263_v20 = vrot.slane %v2261_v55, 4  ;;  %v2266_v63 = vrot.slane %v2264_v19, 5  ;;  %v2272_v27 = vrot.slane %v2270_v61, 5  ;;  %v7942_v9 = vpop.f32.mrb[7].mxu1 }
 0x19d   : > { %v2276_v40 = vrot.slane %v2274_v42, 4  ;;  %v1861_v48 = vrot.slane %v1860_v62, 4  ;;  %v2280_v29 = vshll.u32 %v7918_v36, 16  ;;  %v5192_v44 = vrot.slane %v1975_v15, 9  ;;  %v7958_v15 = vld [vmem:[#allocation2 + $0x48] sm:$0xf] }
 0x19e   : > { %v9089_v30 = vcombine.low %v7777_v52, %v7798_v35  ;;  %v2267_v56 = vor.u32 %v2266_v63, %v2263_v20  ;;  %v2113_v53 = vrot.slane %v7582_v3, 5  ;;  %v2116_v54 = vrot.slane %v1575_v57, 5  ;;  %v7951_v55 = vpop.f32.mrb[8].mxu0 }
 0x19f   : > { %v2277_v59 = vor.u32 %v2276_v40, %v2272_v27  ;;  %v1866_v5 = vsel %vm6750_vm8, %v1861_v48, %v1865_v38  ;;  %v2282_v19 = vrot.slane %v2280_v29, 5  ;;  %v1874_v61 = vor.u32 %v7600_v21, %v7597_v11  ;;  %v7960_v52 = vpop.f32.mrb[9].mxu0 }
 0x1a0   : > { %4472 = vmatmul.mubr.bf16.gmra.mrb[84].mxu1 %v9089_v30  ;;  %v1877_v42 = vshll.u32 %v7582_v3, 16  ;;  %v5287_v40 = vcombine.low %v1856_v12, %v1866_v5  ;;  %v2268_v62 = vrot.slane %v2267_v56, 4  ;;  %v2114_v63 = vsel %vm6739_vm7, %v5192_v44, %v2113_v53  ;;  %v7976_v44 = vld [vmem:[#allocation2 + $0x50] sm:$0x1] }
 0x1a1   : > { %4479 = vmatprep.mubr.bf16.mxu1 %v5326_v39  ;;  %v2278_v20 = vrot.slane %v2277_v59, 4  ;;  %v7964_v39 = vpop.f32.mrb[10].mxu0  ;;  %v2115_v30 = vrot.slane %v2113_v53, 4  ;;  %v1875_v38 = vrot.slane %v1874_v61, 4  ;;  %v9090_v29 = vshrl.u32 %v7582_v3, 16  ;;  %9091 = vst [vmem:[#allocation27_spill] sm:$0xff] %v7976_v44 }
 0x1a2   : > { %v1879_v48 = vrot.slane %v1877_v42, 5  ;;  %v7968_v21 = vpop.f32.mrb[11].mxu0  ;;  %v2273_v17 = vsel %vm6750_vm8, %v2268_v62, %v2272_v27  ;;  %v1887_v56 = vshll.u32 %v1575_v57, 16  ;;  %v7974_v59 = vld [vmem:[#allocation2 + $0x4c] sm:$0xf]  ;;  %v2285_v53 = vshrl.u32 %v7958_v15, 16 }
 0x1a3   : > { %v1883_v11 = vrot.slane %v9090_v29, 4  ;;  %v2283_v12 = vsel %vm6750_vm8, %v2278_v20, %v2282_v19  ;;  %4383 = vmatmul.mubr.bf16.gmra.mrb[88].mxu0 %v7910_v28  ;;  %v2117_v3 = vsel %vm6739_vm7, %v2115_v30, %v2116_v54  ;;  %v1976_v42 = vld [vmem:[#allocation2 + $0xa8] sm:$0xe]  ;;  %v9092_v57 = vcombine.low %v7895_v33, %v7916_v10  ;;  %v1576_v10 = vld [vmem:[#allocation2 + $0xb0] sm:$0x1] }
 0x1a4   : > { %v5327_v5 = vcombine.low %v2273_v17, %v2283_v12  ;;  %v1880_v61 = vsel %vm6750_vm8, %v1875_v38, %v1879_v48  ;;  %v5304_v19 = vcombine.low %v2114_v63, %v2117_v3  ;;  %v1889_v62 = vrot.slane %v1887_v56, 5  ;;  %v7999_v3 = vld [vmem:[#allocation2 + $0x54] sm:$0xf] }
 0x1a5   : > { %v1884_v27 = vor.u32 %v1883_v11, %v1879_v48  ;;  %4390 = vmatprep.mubr.bf16.mxu0 %v9092_v57  ;;  %v2287_v20 = vrot.slane %v2285_v53, 4  ;;  %v2288_v29 = vshll.u32 %v7958_v15, 16  ;;  %v2294_v28 = vshll.u32 %v7974_v59, 16 }
 0x1a6   : > { %v2298_v17 = vshrl.u32 %v7974_v59, 16  ;;  %v2304_v54 = vshll.u32 %v7976_v44, 16  ;;  %v9093_v30 = vcombine.low %v7835_v45, %v7843_v0  ;;  %v5193_v63 = vrot.slane %v1976_v42, 9 }
 0x1a7   : > { %v1885_v36 = vrot.slane %v1884_v27, 4  ;;  %v2290_v38 = vrot.slane %v2288_v29, 5  ;;  %v2120_v48 = vrot.slane %v7622_v60, 5  ;;  %v2296_v12 = vrot.slane %v2294_v28, 5 }
 0x1a8   : > { %4480 = vmatmul.mubr.bf16.gmra.mrb[88].mxu1 %v9093_v30  ;;  %v2300_v56 = vrot.slane %v2298_v17, 4  ;;  %v2306_v53 = vrot.slane %v2304_v54, 5  ;;  %v2123_v33 = vrot.slane %v1576_v10, 5  ;;  %v1898_v42 = vor.u32 %v7638_v6, %v7636_v22  ;;  %v8008_v17 = vld [vmem:[#allocation2 + $0x58] sm:$0xf] }
 0x1a9   : > { %4487 = vmatprep.mubr.bf16.mxu1 %v5327_v5  ;;  %v1890_v11 = vsel %vm6750_vm8, %v1885_v36, %v1889_v62  ;;  %v2291_v45 = vor.u32 %v2290_v38, %v2287_v20  ;;  %v2121_v57 = vsel %vm6739_vm7, %v5193_v63, %v2120_v48  ;;  %v2122_v29 = vrot.slane %v2120_v48, 4  ;;  %v8013_v48 = vld [vmem:[#allocation2 + $0x5c] sm:$0x1] }
 0x1aa   : > { %v5288_v27 = vcombine.low %v1880_v61, %v1890_v11  ;;  %v2301_v30 = vor.u32 %v2300_v56, %v2296_v12  ;;  %v1901_v5 = vshll.u32 %v7622_v60, 16  ;;  %v9094_v36 = vshrl.u32 %v7622_v60, 16  ;;  %9095 = vst [vmem:[#allocation28_spill] sm:$0xff] %v8013_v48  ;;  %v1977_v11 = vld [vmem:[#allocation2 + $0xb4] sm:$0xe] }
 0x1ab   : > { %v2292_v44 = vrot.slane %v2291_v45, 4  ;;  %v1911_v28 = vshll.u32 %v1576_v10, 16  ;;  %v2309_v61 = vshrl.u32 %v7999_v3, 16  ;;  %4391 = vmatmul.mubr.bf16.gmra.mrb[92].mxu0 %v5287_v40  ;;  %v2124_v54 = vsel %vm6739_vm7, %v2122_v29, %v2123_v33 }
 0x1ac   : > { %v1907_v62 = vrot.slane %v9094_v36, 4  ;;  %v2302_v20 = vrot.slane %v2301_v30, 4  ;;  %v1899_v38 = vrot.slane %v1898_v42, 4  ;;  %v1903_v63 = vrot.slane %v1901_v5, 5  ;;  %4398 = vmatprep.mubr.bf16.mxu0 %v5304_v19 }
 0x1ad   : > { %v2297_v22 = vsel %vm6750_vm8, %v2292_v44, %v2296_v12  ;;  %v5305_v60 = vcombine.low %v2121_v57, %v2124_v54  ;;  %v1913_v6 = vrot.slane %v1911_v28, 5  ;;  %v2311_v10 = vrot.slane %v2309_v61, 4  ;;  %v8022_v29 = vpop.f32.mrb[8].mxu1 }
 0x1ae   : > { %v2307_v56 = vsel %vm6750_vm8, %v2302_v20, %v2306_v53  ;;  %v1904_v40 = vsel %vm6750_vm8, %v1899_v38, %v1903_v63  ;;  %v1908_v45 = vor.u32 %v1907_v62, %v1903_v63  ;;  %v2312_v33 = vshll.u32 %v7999_v3, 16  ;;  %v1577_v53 = vld [vmem:[#allocation2 + $0xbc] sm:$0x1]  ;;  %v8030_v42 = vpop.f32.mrb[9].mxu1 }
 0x1af   : > { %v9096_v19 = vcombine.low %v7897_v14, %v7906_v58  ;;  %v5328_v44 = vcombine.low %v2297_v22, %v2307_v56  ;;  %v2318_v12 = vshll.u32 %v8008_v17, 16  ;;  %v2322_v57 = vshrl.u32 %v8008_v17, 16  ;;  %v8034_v61 = vpop.f32.mrb[10].mxu1 }
 0x1b0   : > { %v2328_v30 = vshll.u32 %v8013_v48, 16  ;;  %v1909_v5 = vrot.slane %v1908_v45, 4  ;;  %v2314_v36 = vrot.slane %v2312_v33, 5  ;;  %v5194_v28 = vrot.slane %v1977_v11, 9  ;;  %v8037_v63 = vpop.f32.mrb[11].mxu1 }
 0x1b1   : > { %4488 = vmatmul.mubr.bf16.gmra.mrb[92].mxu1 %v9096_v19  ;;  %v2320_v14 = vrot.slane %v2318_v12, 5  ;;  %v2324_v20 = vrot.slane %v2322_v57, 4  ;;  %v2127_v38 = vrot.slane %v7660_v41, 5  ;;  %v2130_v45 = vrot.slane %v1577_v53, 5  ;;  %v8043_v19 = vld [vmem:[#allocation2 + $0x60] sm:$0xf] }
 0x1b2   : > { %4495 = vmatprep.mubr.bf16.mxu1 %v5328_v44  ;;  %v2330_v54 = vrot.slane %v2328_v30, 5  ;;  %v1914_v22 = vsel %vm6750_vm8, %v1909_v5, %v1913_v6  ;;  %v2315_v56 = vor.u32 %v2314_v36, %v2311_v10  ;;  %v1922_v33 = vor.u32 %v7676_v2, %v7674_v4  ;;  %v8050_v5 = vld [vmem:[#allocation2 + $0x64] sm:$0xf] }
 0x1b3   : > { %v5289_v11 = vcombine.low %v1904_v40, %v1914_v22  ;;  %v2325_v62 = vor.u32 %v2324_v20, %v2320_v14  ;;  %v2128_v44 = vsel %vm6739_vm7, %v5194_v28, %v2127_v38  ;;  %v2129_v12 = vrot.slane %v2127_v38, 4  ;;  %4399 = vmatmul.mubr.bf16.gmra.mrb[96].mxu0 %v5288_v27  ;;  %v8057_v38 = vld [vmem:[#allocation2 + $0x68] sm:$0x1] }
 0x1b4   : > { %v2316_v57 = vrot.slane %v2315_v56, 4  ;;  %v1923_v30 = vrot.slane %v1922_v33, 4  ;;  %v1925_v48 = vshll.u32 %v7660_v41, 16  ;;  %v9097_v6 = vshrl.u32 %v7660_v41, 16  ;;  %4406 = vmatprep.mubr.bf16.mxu0 %v5305_v60 }
 0x1b5   : > { %v2326_v4 = vrot.slane %v2325_v62, 4  ;;  %v2131_v2 = vsel %vm6739_vm7, %v2129_v12, %v2130_v45  ;;  %v1935_v40 = vshll.u32 %v1577_v53, 16  ;;  %v2333_v36 = vshrl.u32 %v8043_v19, 16 }
 0x1b6   : > { %v1931_v10 = vrot.slane %v9097_v6, 4  ;;  %v2321_v27 = vsel %vm6750_vm8, %v2316_v57, %v2320_v14  ;;  %v5306_v28 = vcombine.low %v2128_v44, %v2131_v2  ;;  %v1927_v20 = vrot.slane %v1925_v48, 5  ;;  %v1978_v6 = vld [vmem:[#allocation2 + $0xc0] sm:$0xe] }
 0x1b7   : > { %v2336_v41 = vshll.u32 %v8043_v19, 16  ;;  %v9098_v22 = vcombine.low %v7958_v15, %v7974_v59  ;;  %v2331_v60 = vsel %vm6750_vm8, %v2326_v4, %v2330_v54  ;;  %v1937_v62 = vrot.slane %v1935_v40, 5 }
 0x1b8   : > { %v2335_v53 = vrot.slane %v2333_v36, 4  ;;  %v2342_v56 = vshll.u32 %v8050_v5, 16  ;;  %v5329_v45 = vcombine.low %v2321_v27, %v2331_v60  ;;  %v1928_v14 = vsel %vm6750_vm8, %v1923_v30, %v1927_v20 }
 0x1b9   : > { %4496 = vmatmul.mubr.bf16.gmra.mrb[96].mxu1 %v9098_v22  ;;  %v1932_v48 = vor.u32 %v1931_v10, %v1927_v20  ;;  %v2338_v33 = vrot.slane %v2336_v41, 5  ;;  %v2346_v12 = vshrl.u32 %v8050_v5, 16  ;;  %v2352_v57 = vshll.u32 %v8057_v38, 16 }
 0x1ba   : > { %v2344_v44 = vrot.slane %v2342_v56, 5  ;;  %v5314_v15 = vcombine.low %v8043_v19, %v8050_v5  ;;  %4503 = vmatprep.mubr.bf16.mxu1 %v5329_v45  ;;  %v8074_v2 = vadd.f32 %v7748_v51, %v7735_v50  ;;  %v8078_v30 = vadd.f32 %v7757_v8, %v7752_v32  ;;  %v8087_v20 = vpop.f32.mrb[12].mxu0 }
 0x1bb   : > { %v1933_v54 = vrot.slane %v1932_v48, 4  ;;  %v2339_v4 = vor.u32 %v2338_v33, %v2335_v53  ;;  %v2348_v10 = vrot.slane %v2346_v12, 4  ;;  %v2354_v40 = vrot.slane %v2352_v57, 5  ;;  %4407 = vmatmul.mubr.bf16.gmra.mrb[100].mxu0 %v5289_v11  ;;  %v8091_v8 = vpop.f32.mrb[13].mxu0 }
 0x1bc   : > { %v8082_v36 = vadd.f32 %v7868_v47, %v7856_v1  ;;  %v674_v27 = vsel %vm6715_vm2, %v7762_v49, 0  ;;  %v5195_v32 = vrot.slane %v1978_v6, 9  ;;  %4414 = vmatprep.mubr.bf16.mxu0 %v5306_v28  ;;  %v2134_v1 = vrot.slane %v7818_v16, 5  ;;  %v8096_v49 = vld [vmem:[#allocation2 + $0x6c] sm:$0xf]  ;;  %v8100_v11 = vpop.f32.mrb[14].mxu0 }
 0x1bd   : > { %v1938_v50 = vsel %vm6750_vm8, %v1933_v54, %v1937_v62  ;;  %v2340_v51 = vrot.slane %v2339_v4, 4  ;;  %v5163_v41 = vcombine.low %v674_v27, %v674_v27  ;;  %v2349_v60 = vor.u32 %v2348_v10, %v2344_v44  ;;  %v8098_v47 = vld [vmem:[#allocation2 + $0x70] sm:$0xf] }
 0x1be   : > { %9099 = vst [vmem:[#allocation29_spill] sm:$0xff] %v8082_v36  ;;  %v5290_v22 = vcombine.low %v1928_v14, %v1938_v50  ;;  %v1946_v13 = vor.u32 %v7839_v23, %v7837_v7  ;;  %v1949_v53 = vshll.u32 %v7818_v16, 16  ;;  %v9100_v28 = vshrl.u32 %v7818_v16, 16  ;;  %v8111_v7 = vld [vmem:[#allocation2 + $0x74] sm:$0x1]  ;;  %v8113_v23 = vpop.f32.mrb[15].mxu0 }
 0x1bf   : > { %v2345_v62 = vsel %vm6750_vm8, %v2340_v51, %v2344_v44  ;;  %912 = vst [vmem:[#allocation2 + $0xc8] sm:$0x1] %v5163_v41  ;;  %v8109_v45 = vadd.f32 %v7875_v34, %v7872_v24  ;;  %v9102_v14 = vcombine.low %v7999_v3, %v8008_v17  ;;  %v2350_v48 = vrot.slane %v2349_v60, 4  ;;  %v2572_v41 = vld [vmem:[#allocation2 + $0x18] sm:$0xe] }
 0x1c0   : > { %v1955_v56 = vrot.slane %v9100_v28, 4  ;;  %v8120_v33 = vsel %vm6739_vm7, %v5195_v32, %v2134_v1  ;;  %v2136_v44 = vrot.slane %v2134_v1, 4  ;;  %v8122_v16 = vrot.slane %v1946_v13, 4  ;;  %v2573_v13 = vld [vmem:[#allocation2 + $0x24] sm:$0xe] }
 0x1c1   : > { %9101 = vst [vmem:[#allocation30_spill] sm:$0xff] %v8109_v45  ;;  %4504 = vmatmul.mubr.bf16.gmra.mrb[100].mxu1 %v9102_v14  ;;  %v8124_v12 = vrot.slane %v1949_v53, 5  ;;  %v2357_v34 = vshrl.u32 %v8096_v49, 16  ;;  %v2360_v24 = vshll.u32 %v8096_v49, 16  ;;  %v2366_v57 = vshll.u32 %v8098_v47, 16  ;;  %v9103_v14 = vld [vmem:[#allocation25_spill] sm:$0xff] }
 0x1c2   : > { %v2355_v3 = vsel %vm6750_vm8, %v2350_v48, %v2354_v40  ;;  %v2370_v6 = vshrl.u32 %v8098_v47, 16  ;;  %v2376_v54 = vshll.u32 %v8111_v7, 16  ;;  %v8146_v28 = vadd.f32 %v7926_v18, %v7920_v26 }
 0x1c3   : > { %v5330_v10 = vcombine.low %v2345_v62, %v2355_v3  ;;  %v1952_v27 = vsel %vm6750_vm8, %v8122_v16, %v8124_v12  ;;  %v1956_v50 = vor.u32 %v1955_v56, %v8124_v12  ;;  %v2359_v51 = vrot.slane %v2357_v34, 4  ;;  %4415 = vmatmul.mubr.bf16.gmra.mrb[104].mxu0 %v5290_v22  ;;  %v9104_v56 = vld [vmem:[#allocation26_spill] sm:$0xff]  ;;  %v8152_v16 = vpop.f32.mrb[12].mxu1 }
 0x1c4   : > { %v2362_v32 = vrot.slane %v2360_v24, 5  ;;  %v2368_v60 = vrot.slane %v2366_v57, 5  ;;  %v2372_v40 = vrot.slane %v2370_v6, 4  ;;  %v2378_v1 = vrot.slane %v2376_v54, 5  ;;  %v9106_v57 = vld [vmem:[#allocation21_spill] sm:$0xff]  ;;  %v8155_v6 = vpop.f32.mrb[13].mxu1 }
 0x1c5   : > { %4511 = vmatprep.mubr.bf16.mxu1 %v5330_v10  ;;  %v1957_v53 = vrot.slane %v1956_v50, 4  ;;  %v8142_v62 = vadd.f32 %v7908_v31, %v7899_v46  ;;  %v8150_v48 = vadd.f32 %v9104_v56, %v9103_v14  ;;  %v5196_v22 = vrot.slane %v2572_v41, 9  ;;  %v9107_v54 = vld [vmem:[#allocation22_spill] sm:$0xff]  ;;  %v8158_v18 = vpop.f32.mrb[14].mxu1 }
 0x1c6   : > { %v1578_v12 = vld [vmem:[#allocation2 + $0xc8] sm:$0x1]  ;;  %v2363_v34 = vor.u32 %v2362_v32, %v2359_v51  ;;  %v2373_v24 = vor.u32 %v2372_v40, %v2368_v60  ;;  %v2638_v3 = vrot.slane %v9106_v57, 5  ;;  %v2641_v10 = vrot.slane %v9107_v54, 5  ;;  %v8165_v32 = vpop.f32.mrb[15].mxu1  ;;  %v8167_v40 = vpop.f32.mrb[16].mxu0 }
 0x1c7   : > { %9105 = vst [vmem:[#allocation25_spill] sm:$0xff] %v8150_v48  ;;  %v2137_v46 = vrot.slane %v1578_v12, 5  ;;  %v1959_v31 = vshll.u32 %v1578_v12, 16  ;;  %v5197_v26 = vrot.slane %v2573_v13, 9  ;;  %v2645_v12 = vrot.slane %v7798_v35, 5 }
 0x1c8   : > { %v2364_v50 = vrot.slane %v2363_v34, 4  ;;  %v2374_v14 = vrot.slane %v2373_v24, 4  ;;  %v2639_v51 = vsel %vm6739_vm7, %v5196_v22, %v2638_v3  ;;  %v2640_v41 = vrot.slane %v2638_v3, 4  ;;  %v8178_v34 = vpop.f32.mrb[17].mxu0  ;;  %v8187_v35 = vld [vmem:[#allocation2 + $0x7c] sm:$0xf] }
 0x1c9   : > { %4512 = vmatmul.mubr.bf16.gmra.mrb[104].mxu1 %v5314_v15  ;;  %v2138_v56 = vsel %vm6739_vm7, %v2136_v44, %v2137_v46  ;;  %v1961_v13 = vrot.slane %v1959_v31, 5  ;;  %v8174_v19 = vadd.f32 %v7942_v9, %v7940_v25  ;;  %v8176_v15 = vld [vmem:[#allocation2 + $0x78] sm:$0xf]  ;;  %v8189_v3 = vld [vmem:[#allocation2 + $0x80] sm:$0x1]  ;;  %v8191_v9 = vpop.f32.mrb[18].mxu0 }
 0x1ca   : > { %v5307_v24 = vcombine.low %v8120_v33, %v2138_v56  ;;  %v2369_v22 = vsel %vm6750_vm8, %v2364_v50, %v2368_v60  ;;  %v2379_v57 = vsel %vm6750_vm8, %v2374_v14, %v2378_v1  ;;  %v2642_v44 = vsel %vm6739_vm7, %v2640_v41, %v2641_v10  ;;  %v8197_v31 = vpop.f32.mrb[19].mxu0 }
 0x1cb   : > { %9108 = vst [vmem:[#allocation26_spill] sm:$0xff] %v8174_v19  ;;  %v1962_v25 = vsel %vm6750_vm8, %v1957_v53, %v1961_v13  ;;  %v5331_v46 = vcombine.low %v2369_v22, %v2379_v57  ;;  %v5340_v33 = vcombine.low %v2639_v51, %v2642_v44  ;;  %v2646_v60 = vsel %vm6739_vm7, %v5197_v26, %v2645_v12  ;;  %v2574_v26 = vld [vmem:[#allocation2 + $0x30] sm:$0xe]  ;;  %v8206_v56 = vpop.f32.mrb[16].mxu1  ;;  %v2575_v44 = vld [vmem:[#allocation2 + $0x3c] sm:$0xe] }
 0x1cc   : > { %4422 = vmatprep.mubr.bf16.mxu0 %v5307_v24  ;;  %v5291_v1 = vcombine.low %v1952_v27, %v1962_v25  ;;  %v2647_v54 = vrot.slane %v2645_v12, 4  ;;  %v2381_v10 = vshrl.u32 %v8176_v15, 16  ;;  %v2384_v50 = vshll.u32 %v8176_v15, 16  ;;  %v9109_v27 = vld [vmem:[#allocation20_spill] sm:$0xff]  ;;  %v8216_v25 = vpop.f32.mrb[17].mxu1 }
 0x1cd   : > { %4519 = vmatprep.mubr.bf16.mxu1 %v5331_v46  ;;  %v2390_v14 = vshll.u32 %v8187_v35, 16  ;;  %v2394_v41 = vshrl.u32 %v8187_v35, 16  ;;  %v2400_v53 = vshll.u32 %v8189_v3, 16  ;;  %v9110_v13 = vrot.slane %v9109_v27, 5 }
 0x1ce   : > { %4423 = vmatmul.mubr.bf16.gmra.mrb[108].mxu0 %v5291_v1  ;;  %v2383_v24 = vrot.slane %v2381_v10, 4  ;;  %v2386_v22 = vrot.slane %v2384_v50, 5  ;;  %v8214_v57 = vadd.f32 %v7960_v52, %v7951_v55  ;;  %v8218_v1 = vpop.f32.mrb[18].mxu1  ;;  %v9111_v27 = vcombine.low %v8096_v49, %v8098_v47 }
 0x1cf   : > { %v2649_v12 = vsel %vm6739_vm7, %v2647_v54, %v9110_v13  ;;  %5925 = vmatprep.mubr.bf16.mxu0 %v5340_v33  ;;  %v2392_v51 = vrot.slane %v2390_v14, 5  ;;  %v2396_v4 = vrot.slane %v2394_v41, 4  ;;  %v2402_v19 = vrot.slane %v2400_v53, 5  ;;  %v8231_v33 = vld [vmem:[#allocation2 + $0x84] sm:$0xf]  ;;  %v9113_v41 = vld [vmem:[#allocation23_spill] sm:$0xff] }
 0x1d0   : > { %v5341_v46 = vcombine.low %v2646_v60, %v2649_v12  ;;  %v2387_v54 = vor.u32 %v2386_v22, %v2383_v24  ;;  %v8225_v10 = vadd.f32 %v7968_v21, %v7964_v39  ;;  %v8229_v55 = vadd.f32 %v8030_v42, %v8022_v29  ;;  %v8233_v60 = vpop.f32.mrb[19].mxu1  ;;  %v9114_v39 = vld [vmem:[#allocation24_spill] sm:$0xff]  ;;  %v8243_v42 = vld [vmem:[#allocation2 + $0x88] sm:$0xf] }
 0x1d1   : > { %4520 = vmatmul.mubr.bf16.gmra.mrb[108].mxu1 %v9111_v27  ;;  %v5198_v52 = vrot.slane %v2574_v26, 9  ;;  %v2397_v50 = vor.u32 %v2396_v4, %v2392_v51  ;;  %v2652_v14 = vrot.slane %v7843_v0, 5  ;;  %v2655_v49 = vrot.slane %v9113_v41, 5  ;;  %v8252_v27 = vld [vmem:[#allocation2 + $0x8c] sm:$0x1] }
 0x1d2   : > { %9112 = vst [vmem:[#allocation21_spill] sm:$0xff] %v8229_v55  ;;  %v5199_v53 = vrot.slane %v2575_v44, 9  ;;  %v2388_v13 = vrot.slane %v2387_v54, 4  ;;  %v2659_v12 = vrot.slane %v7906_v58, 5  ;;  %v2662_v21 = vrot.slane %v9114_v39, 5 }
 0x1d3   : > { %v8241_v29 = vadd.f32 %v8037_v63, %v8034_v61  ;;  %v2398_v26 = vrot.slane %v2397_v50, 4  ;;  %v2653_v4 = vsel %vm6739_vm7, %v5198_v52, %v2652_v14  ;;  %v2654_v24 = vrot.slane %v2652_v14, 4  ;;  %v2576_v14 = vld [vmem:[#allocation2 + $0x48] sm:$0xe]  ;;  %v8260_v41 = vpop.f32.mrb[20].mxu1 }
 0x1d4   : > { %v2405_v0 = vshrl.u32 %v8231_v33, 16  ;;  %v2393_v22 = vsel %vm6750_vm8, %v2388_v13, %v2392_v51  ;;  %v2660_v58 = vsel %vm6739_vm7, %v5199_v53, %v2659_v12  ;;  %v2661_v44 = vrot.slane %v2659_v12, 4  ;;  %v8264_v39 = vpop.f32.mrb[21].mxu1 }
 0x1d5   : > { %9115 = vst [vmem:[#allocation22_spill] sm:$0xff] %v8241_v29  ;;  %v2408_v61 = vshll.u32 %v8231_v33, 16  ;;  %v2403_v63 = vsel %vm6750_vm8, %v2398_v26, %v2402_v19  ;;  %v2656_v54 = vsel %vm6739_vm7, %v2654_v24, %v2655_v49  ;;  %v2414_v50 = vshll.u32 %v8243_v42, 16  ;;  %v2577_v24 = vld [vmem:[#allocation2 + $0x54] sm:$0xe] }
 0x1d6   : > { %v2407_v52 = vrot.slane %v2405_v0, 4  ;;  %5926 = vmatmul.mubr.bf16.vlgmr.msra.gmra.mrb[112].mxu0 %v5341_v46  ;;  %v5332_v51 = vcombine.low %v2393_v22, %v2403_v63  ;;  %v5342_v53 = vcombine.low %v2653_v4, %v2656_v54  ;;  %v2663_v13 = vsel %vm6739_vm7, %v2661_v44, %v2662_v21  ;;  %v8268_v0 = vpop.f32.mrb[22].mxu1 }
 0x1d7   : > { %v2410_v12 = vrot.slane %v2408_v61, 5  ;;  %v5343_v29 = vcombine.low %v2660_v58, %v2663_v13  ;;  %v2416_v19 = vrot.slane %v2414_v50, 5  ;;  %v2418_v26 = vshrl.u32 %v8243_v42, 16  ;;  %v8276_v58 = vpop.f32.mrb[23].mxu1 }
 0x1d8   : > { %v2424_v49 = vshll.u32 %v8252_v27, 16  ;;  %4527 = vmatprep.mubr.bf16.mxu1 %v5332_v51  ;;  %5929 = vmatprep.mubr.bf16.mxu0 %v5342_v53  ;;  %v5317_v4 = vcombine.low %v8231_v33, %v8243_v42  ;;  %v8274_v21 = vadd.f32 %v8091_v8, %v8087_v20  ;;  %v5200_v22 = vrot.slane %v2576_v14, 9  ;;  %v8291_v20 = vpop.f32.mrb[20].mxu0  ;;  %v9119_v14 = vld [vmem:[#allocation27_spill] sm:$0xff] }
 0x1d9   : > { %v2411_v46 = vor.u32 %v2410_v12, %v2407_v52  ;;  %v9116_v44 = vcombine.low %v8176_v15, %v8187_v35  ;;  %v2420_v61 = vrot.slane %v2418_v26, 4  ;;  %v8283_v54 = vadd.f32 %v8113_v23, %v8100_v11  ;;  %v8289_v52 = vld [vmem:[#allocation2 + $0x90] sm:$0xf]  ;;  %v8295_v53 = vpop.f32.mrb[21].mxu0  ;;  %v9120_v23 = vld [vmem:[#allocation28_spill] sm:$0xff] }
 0x1da   : > { %v2426_v63 = vrot.slane %v2424_v49, 5  ;;  %v8287_v33 = vadd.f32 %v8155_v6, %v8152_v16  ;;  %v2666_v50 = vrot.slane %v7974_v59, 5  ;;  %v2669_v15 = vrot.slane %v9119_v14, 5  ;;  %v8303_v6 = vld [vmem:[#allocation2 + $0x94] sm:$0xf]  ;;  %v8305_v26 = vpop.f32.mrb[22].mxu0 }
 0x1db   : > { %4528 = vmatmul.mubr.bf16.gmra.mrb[112].mxu1 %v9116_v44  ;;  %9117 = vst [vmem:[#allocation20_spill] sm:$0xff] %v8283_v54  ;;  %v2412_v8 = vrot.slane %v2411_v46, 4  ;;  %v5201_v51 = vrot.slane %v2577_v24, 9  ;;  %v2421_v13 = vor.u32 %v2420_v61, %v2416_v19  ;;  %v2673_v11 = vrot.slane %v8008_v17, 5  ;;  %v8312_v17 = vpop.f32.mrb[23].mxu0  ;;  %v8317_v14 = vpop.f32.mrb[24].mxu1 }
 0x1dc   : > { %9118 = vst [vmem:[#allocation23_spill] sm:$0xff] %v8287_v33  ;;  %v2676_v12 = vrot.slane %v9120_v23, 5  ;;  %v8301_v16 = vadd.f32 %v8165_v32, %v8158_v18  ;;  %v2667_v49 = vsel %vm6739_vm7, %v5200_v22, %v2666_v50  ;;  %v2668_v24 = vrot.slane %v2666_v50, 4  ;;  %v2578_v33 = vld [vmem:[#allocation2 + $0x60] sm:$0xe] }
 0x1dd   : > { %v2417_v59 = vsel %vm6750_vm8, %v2412_v8, %v2416_v19  ;;  %v2429_v46 = vshrl.u32 %v8289_v52, 16  ;;  %v2422_v44 = vrot.slane %v2421_v13, 4  ;;  %v2674_v18 = vsel %vm6739_vm7, %v5201_v51, %v2673_v11  ;;  %v8321_v8 = vld [vmem:[#allocation2 + $0x98] sm:$0x1]  ;;  %v8325_v13 = vpop.f32.mrb[25].mxu1 }
 0x1de   : > { %9121 = vst [vmem:[#allocation24_spill] sm:$0xff] %v8301_v16  ;;  %v2675_v32 = vrot.slane %v2673_v11, 4  ;;  %v2432_v61 = vshll.u32 %v8289_v52, 16  ;;  %5930 = vmatmul.mubr.bf16.gmra.mrb[116].mxu0 %v5343_v29  ;;  %v2670_v19 = vsel %vm6739_vm7, %v2668_v24, %v2669_v15  ;;  %v2438_v50 = vshll.u32 %v8303_v6, 16  ;;  %v8331_v55 = vpop.f32.mrb[26].mxu1 }
 0x1df   : > { %v2431_v22 = vrot.slane %v2429_v46, 4  ;;  %v2442_v23 = vshrl.u32 %v8303_v6, 16  ;;  %v2427_v51 = vsel %vm6750_vm8, %v2422_v44, %v2426_v63  ;;  %v5344_v11 = vcombine.low %v2667_v49, %v2670_v19  ;;  %v8333_v45 = vpop.f32.mrb[27].mxu1  ;;  %v2579_v49 = vld [vmem:[#allocation2 + $0x6c] sm:$0xe] }
 0x1e0   : > { %v2677_v16 = vsel %vm6739_vm7, %v2675_v32, %v2676_v12  ;;  %v2434_v29 = vrot.slane %v2432_v61, 5  ;;  %v5333_v15 = vcombine.low %v2417_v59, %v2427_v51  ;;  %v2440_v46 = vrot.slane %v2438_v50, 5 }
 0x1e1   : > { %v5345_v24 = vcombine.low %v2674_v18, %v2677_v16  ;;  %v2444_v48 = vrot.slane %v2442_v23, 4  ;;  %5933 = vmatprep.mubr.bf16.mxu0 %v5344_v11  ;;  %v2448_v54 = vshll.u32 %v8321_v8, 16  ;;  %v5318_v63 = vcombine.low %v8289_v52, %v8303_v6  ;;  %v8375_v23 = vld [vmem:[#allocation2 + $0xa4] sm:$0x1] }
 0x1e2   : > { %v2435_v36 = vor.u32 %v2434_v29, %v2431_v22  ;;  %v8340_v12 = vadd.f32 %v8178_v34, %v8167_v40  ;;  %4535 = vmatprep.mubr.bf16.mxu1 %v5333_v15  ;;  %v8344_v16 = vadd.f32 %v8197_v31, %v8191_v9  ;;  %v5567_v59 = vadd.f32 %v8216_v25, %v8206_v56  ;;  %v8354_v9 = vld [vmem:[#allocation2 + $0x9c] sm:$0xf]  ;;  %v8361_v25 = vld [vmem:[#allocation2 + $0xa0] sm:$0xf] }
 0x1e3   : > { %v2445_v44 = vor.u32 %v2444_v48, %v2440_v46  ;;  %v5202_v18 = vrot.slane %v2578_v33, 9  ;;  %4536 = vmatmul.mubr.bf16.gmra.mrb[116].mxu1 %v5317_v4  ;;  %v2450_v61 = vrot.slane %v2448_v54, 5  ;;  %v2680_v52 = vrot.slane %v8050_v5, 5 }
 0x1e4   : > { %v2436_v32 = vrot.slane %v2435_v36, 4  ;;  %v2683_v19 = vrot.slane %v8057_v38, 5  ;;  %v8351_v34 = vadd.f32 %v5567_v59, %v8074_v2  ;;  %v5203_v48 = vrot.slane %v2579_v49, 9  ;;  %v8363_v38 = vpop.f32.mrb[28].mxu1 }
 0x1e5   : > { %v2446_v40 = vrot.slane %v2445_v44, 4  ;;  %v2687_v22 = vrot.slane %v8098_v47, 5  ;;  %v2681_v36 = vsel %vm6739_vm7, %v5202_v18, %v2680_v52  ;;  %v2682_v56 = vrot.slane %v2680_v52, 4  ;;  %v8371_v33 = vpop.f32.mrb[29].mxu1  ;;  %v8379_v29 = vpop.f32.mrb[24].mxu0 }
 0x1e6   : > { %v2441_v31 = vsel %vm6750_vm8, %v2436_v32, %v2440_v46  ;;  %v2690_v5 = vrot.slane %v8111_v7, 5  ;;  %5934 = vmatmul.mubr.bf16.gmra.mrb[120].mxu0 %v5345_v24  ;;  %v5570_v54 = vadd.f32 %v8233_v60, %v8218_v1  ;;  %v2453_v51 = vshrl.u32 %v8354_v9, 16  ;;  %v8381_v15 = vpop.f32.mrb[30].mxu1  ;;  %v8389_v49 = vpop.f32.mrb[25].mxu0  ;;  %v2580_v52 = vld [vmem:[#allocation2 + $0x78] sm:$0xe] }
 0x1e7   : > { %v2451_v2 = vsel %vm6750_vm8, %v2446_v40, %v2450_v61  ;;  %v2688_v47 = vsel %vm6739_vm7, %v5203_v48, %v2687_v22  ;;  %v2689_v4 = vrot.slane %v2687_v22, 4  ;;  %v2684_v7 = vsel %vm6739_vm7, %v2682_v56, %v2683_v19  ;;  %v8391_v44 = vpop.f32.mrb[31].mxu1  ;;  %v8394_v19 = vpop.f32.mrb[26].mxu0 }
 0x1e8   : > { %v5334_v50 = vcombine.low %v2441_v31, %v2451_v2  ;;  %v2456_v11 = vshll.u32 %v8354_v9, 16  ;;  %v5346_v24 = vcombine.low %v2681_v36, %v2684_v7  ;;  %v8386_v60 = vadd.f32 %v5570_v54, %v8078_v30  ;;  %v2581_v31 = vld [vmem:[#allocation2 + $0x84] sm:$0xe]  ;;  %v5493_v36 = vpop.f32.mrb[27].mxu0 }
 0x1e9   : > { %v2691_v1 = vsel %vm6739_vm7, %v2689_v4, %v2690_v5  ;;  %v2462_v46 = vshll.u32 %v8361_v25, 16  ;;  %v2455_v18 = vrot.slane %v2453_v51, 4  ;;  %v2466_v61 = vshrl.u32 %v8361_v25, 16 }
 0x1ea   : > { %4543 = vmatprep.mubr.bf16.mxu1 %v5334_v50  ;;  %v5347_v59 = vcombine.low %v2688_v47, %v2691_v1  ;;  %v2458_v32 = vrot.slane %v2456_v11, 5  ;;  %5937 = vmatprep.mubr.bf16.mxu0 %v5346_v24  ;;  %v2472_v30 = vshll.u32 %v8375_v23, 16  ;;  %v5319_v48 = vcombine.low %v8354_v9, %v8361_v25  ;;  %v8428_v1 = vld [vmem:[#allocation2 + $0xac] sm:$0xf] }
 0x1eb   : > { %v2464_v40 = vrot.slane %v2462_v46, 5  ;;  %v8401_v22 = vadd.f32 %v8295_v53, %v8291_v20  ;;  %4544 = vmatmul.mubr.bf16.gmra.mrb[120].mxu1 %v5318_v63  ;;  %v2468_v5 = vrot.slane %v2466_v61, 4  ;;  %v8405_v2 = vadd.f32 %v8312_v17, %v8305_v26  ;;  %v8411_v20 = vld [vmem:[#allocation2 + $0xa8] sm:$0xf]  ;;  %v8416_v11 = vpop.f32.mrb[32].mxu1 }
 0x1ec   : > { %v2459_v56 = vor.u32 %v2458_v32, %v2455_v18  ;;  %v5573_v47 = vadd.f32 %v8264_v39, %v8260_v41  ;;  %v2474_v4 = vrot.slane %v2472_v30, 5  ;;  %v5204_v54 = vrot.slane %v2580_v52, 9  ;;  %v8437_v32 = vld [vmem:[#allocation2 + $0xb0] sm:$0x1] }
 0x1ed   : > { %v2694_v9 = vrot.slane %v8187_v35, 5  ;;  %v2697_v50 = vrot.slane %v8189_v3, 5  ;;  %v2469_v7 = vor.u32 %v2468_v5, %v2464_v40  ;;  %v5205_v51 = vrot.slane %v2581_v31, 9  ;;  %v8422_v3 = vpop.f32.mrb[33].mxu1 }
 0x1ee   : > { %v2460_v53 = vrot.slane %v2459_v56, 4  ;;  %v8414_v63 = vadd.f32 %v5573_v47, %v8142_v62  ;;  %5938 = vmatmul.mubr.bf16.gmra.mrb[124].mxu0 %v5347_v59  ;;  %v2701_v26 = vrot.slane %v8243_v42, 5  ;;  %v2704_v35 = vrot.slane %v8252_v27, 5  ;;  %v8431_v59 = vpop.f32.mrb[34].mxu1  ;;  %v8440_v52 = vpop.f32.mrb[28].mxu0 }
 0x1ef   : > { %v2695_v41 = vsel %vm6739_vm7, %v5204_v54, %v2694_v9  ;;  %v2696_v39 = vrot.slane %v2694_v9, 4  ;;  %v2470_v24 = vrot.slane %v2469_v7, 4  ;;  %v5576_v62 = vadd.f32 %v8276_v58, %v8268_v0  ;;  %v8442_v0 = vpop.f32.mrb[35].mxu1  ;;  %v8449_v56 = vpop.f32.mrb[29].mxu0 }
 0x1f0   : > { %v2465_v17 = vsel %vm6750_vm8, %v2460_v53, %v2464_v40  ;;  %v2477_v46 = vshrl.u32 %v8411_v20, 16  ;;  %v2702_v27 = vsel %vm6739_vm7, %v5205_v51, %v2701_v26  ;;  %v2703_v18 = vrot.slane %v2701_v26, 4  ;;  %v8454_v53 = vpop.f32.mrb[30].mxu0 }
 0x1f1   : > { %v2698_v42 = vsel %vm6739_vm7, %v2696_v39, %v2697_v50  ;;  %v2480_v61 = vshll.u32 %v8411_v20, 16  ;;  %v2475_v58 = vsel %vm6750_vm8, %v2470_v24, %v2474_v4  ;;  %v8447_v30 = vadd.f32 %v5576_v62, %v8146_v28  ;;  %v2582_v50 = vld [vmem:[#allocation2 + $0x90] sm:$0xe]  ;;  %v5499_v39 = vpop.f32.mrb[31].mxu0 }
 0x1f2   : > { %v5348_v40 = vcombine.low %v2695_v41, %v2698_v42  ;;  %v2479_v31 = vrot.slane %v2477_v46, 4  ;;  %v5335_v5 = vcombine.low %v2465_v17, %v2475_v58  ;;  %v2705_v47 = vsel %vm6739_vm7, %v2703_v18, %v2704_v35  ;;  %v2583_v41 = vld [vmem:[#allocation2 + $0x9c] sm:$0xe]  ;;  %v8469_v18 = vld [vmem:[#allocation2 + $0xb4] sm:$0xf] }
 0x1f3   : > { %v2482_v54 = vrot.slane %v2480_v61, 5  ;;  %v2486_v9 = vshll.u32 %v8428_v1, 16  ;;  %v5349_v7 = vcombine.low %v2702_v27, %v2705_v47  ;;  %v2490_v4 = vshrl.u32 %v8428_v1, 16  ;;  %v8471_v61 = vpop.f32.mrb[36].mxu1 }
 0x1f4   : > { %5941 = vmatprep.mubr.bf16.mxu0 %v5348_v40  ;;  %v2496_v28 = vshll.u32 %v8437_v32, 16  ;;  %v5320_v51 = vcombine.low %v8411_v20, %v8428_v1  ;;  %4551 = vmatprep.mubr.bf16.mxu1 %v5335_v5  ;;  %v8462_v17 = vadd.f32 %v8389_v49, %v8379_v29  ;;  %v8465_v24 = vadd.f32 %v5493_v36, %v8394_v19  ;;  %v8475_v19 = vpop.f32.mrb[37].mxu1 }
 0x1f5   : > { %v2483_v26 = vor.u32 %v2482_v54, %v2479_v31  ;;  %v2488_v35 = vrot.slane %v2486_v9, 5  ;;  %4552 = vmatmul.mubr.bf16.gmra.mrb[124].mxu1 %v5319_v48  ;;  %v2492_v62 = vrot.slane %v2490_v4, 4  ;;  %v5579_v42 = vadd.f32 %v8325_v13, %v8317_v14  ;;  %v8482_v31 = vld [vmem:[#allocation2 + $0xb8] sm:$0xf]  ;;  %v8484_v5 = vpop.f32.mrb[38].mxu1 }
 0x1f6   : > { %v2498_v46 = vrot.slane %v2496_v28, 5  ;;  %v5206_v27 = vrot.slane %v2582_v50, 9  ;;  %5942 = vmatmul.mubr.bf16.gmra.mrb[128].mxu0 %v5349_v7  ;;  %v2708_v40 = vrot.slane %v8303_v6, 5  ;;  %v2711_v29 = vrot.slane %v8321_v8, 5  ;;  %v2185_v28 = vld [vmem:[#allocation2 + $0xbc] sm:$0x1] }
 0x1f7   : > { %v2484_v58 = vrot.slane %v2483_v26, 4  ;;  %v5207_v49 = vrot.slane %v2583_v41, 9  ;;  %v2493_v48 = vor.u32 %v2492_v62, %v2488_v35  ;;  %v8478_v36 = vadd.f32 %v5579_v42, %v8214_v57  ;;  %v8492_v57 = vpop.f32.mrb[39].mxu1  ;;  %v2584_v42 = vld [vmem:[#allocation2 + $0xa8] sm:$0xe] }
 0x1f8   : > { %v2715_v14 = vrot.slane %v8361_v25, 5  ;;  %v2718_v13 = vrot.slane %v8375_v23, 5  ;;  %v2709_v8 = vsel %vm6739_vm7, %v5206_v27, %v2708_v40  ;;  %v2710_v47 = vrot.slane %v2708_v40, 4 }
 0x1f9   : > { %v2489_v6 = vsel %vm6750_vm8, %v2484_v58, %v2488_v35  ;;  %v5582_v54 = vadd.f32 %v8333_v45, %v8331_v55  ;;  %v2494_v9 = vrot.slane %v2493_v48, 4  ;;  %v2501_v50 = vshrl.u32 %v8469_v18, 16 }
 0x1fa   : > { %v2716_v25 = vsel %vm6739_vm7, %v5207_v49, %v2715_v14  ;;  %v2717_v23 = vrot.slane %v2715_v14, 4  ;;  %v2712_v7 = vsel %vm6739_vm7, %v2710_v47, %v2711_v29  ;;  %v2504_v41 = vshll.u32 %v8469_v18, 16 }
 0x1fb   : > { %v8500_v4 = vadd.f32 %v5582_v54, %v8225_v10  ;;  %v2510_v45 = vshll.u32 %v8482_v31, 16  ;;  %v2499_v55 = vsel %vm6750_vm8, %v2494_v9, %v2498_v46  ;;  %v5350_v26 = vcombine.low %v2709_v8, %v2712_v7  ;;  %v8508_v10 = vpop.f32.mrb[32].mxu0  ;;  %v8517_v47 = vpop.f32.mrb[40].mxu1 }
 0x1fc   : > { %v2719_v35 = vsel %vm6739_vm7, %v2717_v23, %v2718_v13  ;;  %v2503_v62 = vrot.slane %v2501_v50, 4  ;;  %v5336_v27 = vcombine.low %v2489_v6, %v2499_v55  ;;  %v2506_v40 = vrot.slane %v2504_v41, 5  ;;  %v2585_v13 = vld [vmem:[#allocation2 + $0xb4] sm:$0xe]  ;;  %v5502_v8 = vpop.f32.mrb[33].mxu0  ;;  %v8524_v50 = vpop.f32.mrb[41].mxu1 }
 0x1fd   : > { %v5351_v58 = vcombine.low %v2716_v25, %v2719_v35  ;;  %v2512_v29 = vrot.slane %v2510_v45, 5  ;;  %5945 = vmatprep.mubr.bf16.mxu0 %v5350_v26  ;;  %v2514_v49 = vshrl.u32 %v8482_v31, 16  ;;  %v2520_v48 = vshll.u32 %v2185_v28, 16  ;;  %v5504_v23 = vpop.f32.mrb[34].mxu0  ;;  %v8537_v26 = vld [vmem:[#allocation2 + $0xc0] sm:$0xf] }
 0x1fe   : > { %v5321_v14 = vcombine.low %v8469_v18, %v8482_v31  ;;  %v8515_v46 = vadd.f32 %v8449_v56, %v8440_v52  ;;  %4559 = vmatprep.mubr.bf16.mxu1 %v5336_v27  ;;  %v2507_v6 = vor.u32 %v2506_v40, %v2503_v62  ;;  %v8520_v54 = vadd.f32 %v5499_v39, %v8454_v53  ;;  %v5505_v45 = vpop.f32.mrb[35].mxu0  ;;  %v8531_v53 = vpop.f32.mrb[42].mxu1  ;;  %v8543_v62 = vld [vmem:[#allocation2 + $0xc4] sm:$0xf] }
 0x1ff   : > { %5946 = vmatmul.mubr.bf16.gmra.mrb[132].mxu0 %v5351_v58  ;;  %v5585_v9 = vadd.f32 %v8371_v33, %v8363_v38  ;;  %v5208_v25 = vrot.slane %v2584_v42, 9  ;;  %4560 = vmatmul.mubr.bf16.gmra.mrb[128].mxu1 %v5320_v51  ;;  %v2516_v52 = vrot.slane %v2514_v49, 4  ;;  %v2522_v56 = vrot.slane %v2520_v48, 5  ;;  %v8539_v20 = vpop.f32.mrb[43].mxu1  ;;  %v2186_v48 = vld [vmem:[#allocation2 + $0xc8] sm:$0x1] }
 0x200   : > { %v2722_v7 = vrot.slane %v8428_v1, 5  ;;  %v2725_v41 = vrot.slane %v8437_v32, 5  ;;  %v2508_v39 = vrot.slane %v2507_v6, 4  ;;  %v5209_v33 = vrot.slane %v2585_v13, 9 }
 0x201   : > { %v8534_v38 = vadd.f32 %v5585_v9, %v8274_v21  ;;  %v2729_v55 = vrot.slane %v8482_v31, 5  ;;  %v2517_v51 = vor.u32 %v2516_v52, %v2512_v29  ;;  %v2732_v32 = vrot.slane %v2185_v28, 5  ;;  %v9122_v9 = vld [vmem:[#allocation20_spill] sm:$0xff] }
 0x202   : > { %v2723_v1 = vsel %vm6739_vm7, %v5208_v25, %v2722_v7  ;;  %v2724_v35 = vrot.slane %v2722_v7, 4  ;;  %v2513_v42 = vsel %vm6750_vm8, %v2508_v39, %v2512_v29  ;;  %v5588_v58 = vadd.f32 %v8391_v44, %v8381_v15  ;;  %v2586_v39 = vld [vmem:[#allocation2 + $0xc0] sm:$0xe] }
 0x203   : > { %v2730_v21 = vsel %vm6739_vm7, %v5209_v33, %v2729_v55  ;;  %v2731_v27 = vrot.slane %v2729_v55, 4  ;;  %v2518_v40 = vrot.slane %v2517_v51, 4  ;;  %v2525_v13 = vshrl.u32 %v8537_v26, 16  ;;  %v8563_v33 = vld [vmem:[#allocation2 + $0xd0] sm:$0xf] }
 0x204   : > { %v2726_v49 = vsel %vm6739_vm7, %v2724_v35, %v2725_v41  ;;  %v2528_v28 = vshll.u32 %v8537_v26, 16  ;;  %v8558_v25 = vadd.f32 %v5588_v58, %v9122_v9  ;;  %v2534_v52 = vshll.u32 %v8543_v62, 16 }
 0x205   : > { %v5352_v6 = vcombine.low %v2723_v1, %v2726_v49  ;;  %v2733_v29 = vsel %vm6739_vm7, %v2731_v27, %v2732_v32  ;;  %v2523_v15 = vsel %vm6750_vm8, %v2518_v40, %v2522_v56  ;;  %v2527_v7 = vrot.slane %v2525_v13, 4  ;;  %v2587_v32 = vld [vmem:[#allocation2 + $0xcc] sm:$0xe]  ;;  %v2187_v40 = vld [vmem:[#allocation2 + $0xd4] sm:$0x1]  ;;  %v5607_v13 = vpop.f32.mrb[44].mxu1 }
 0x206   : > { %v5353_v44 = vcombine.low %v2730_v21, %v2733_v29  ;;  %v2530_v41 = vrot.slane %v2528_v28, 5  ;;  %v5337_v55 = vcombine.low %v2513_v42, %v2523_v15  ;;  %v2536_v51 = vrot.slane %v2534_v52, 5  ;;  %v8573_v49 = vld [vmem:[#allocation2 + $0xcc] sm:$0xf]  ;;  %v5507_v42 = vpop.f32.mrb[36].mxu0  ;;  %v5608_v15 = vpop.f32.mrb[45].mxu1 }
 0x207   : > { %5949 = vmatprep.mubr.bf16.mxu0 %v5352_v6  ;;  %v2538_v1 = vshrl.u32 %v8543_v62, 16  ;;  %v2544_v35 = vshll.u32 %v2186_v48, 16  ;;  %v5322_v58 = vcombine.low %v8537_v26, %v8543_v62  ;;  %v8569_v56 = vadd.f32 %v5502_v8, %v8508_v10  ;;  %v5508_v52 = vpop.f32.mrb[37].mxu0 }
 0x208   : > { %5950 = vmatmul.mubr.bf16.gmra.mrb[136].mxu0 %v5353_v44  ;;  %v2531_v27 = vor.u32 %v2530_v41, %v2527_v7  ;;  %v8571_v21 = vadd.f32 %v5505_v45, %v5504_v23  ;;  %4567 = vmatprep.mubr.bf16.mxu1 %v5337_v55  ;;  %v5591_v29 = vadd.f32 %v8422_v3, %v8416_v11  ;;  %v5210_v9 = vrot.slane %v2586_v39, 9  ;;  %v5510_v26 = vpop.f32.mrb[38].mxu0  ;;  %v5610_v44 = vpop.f32.mrb[46].mxu1 }
 0x209   : > { %v2540_v28 = vrot.slane %v2538_v1, 4  ;;  %v2546_v6 = vrot.slane %v2544_v35, 5  ;;  %4568 = vmatmul.mubr.bf16.gmra.mrb[132].mxu1 %v5321_v14  ;;  %v2736_v8 = vrot.slane %v8543_v62, 5  ;;  %v2739_v23 = vrot.slane %v2186_v48, 5  ;;  %v5511_v39 = vpop.f32.mrb[39].mxu0  ;;  %v5611_v55 = vpop.f32.mrb[47].mxu1 }
 0x20a   : > { %v2532_v10 = vrot.slane %v2531_v27, 4  ;;  %v5211_v45 = vrot.slane %v2587_v32, 9  ;;  %v8582_v41 = vadd.f32 %v5591_v29, %v8340_v12  ;;  %v2743_v11 = vrot.slane %v8563_v33, 5 }
 0x20b   : > { %v2541_v7 = vor.u32 %v2540_v28, %v2536_v51  ;;  %v2746_v3 = vrot.slane %v2187_v40, 5  ;;  %v2737_v31 = vsel %vm6739_vm7, %v5210_v9, %v2736_v8  ;;  %v2738_v14 = vrot.slane %v2736_v8, 4 }
 0x20c   : > { %v2537_v18 = vsel %vm6750_vm8, %v2532_v10, %v2536_v51  ;;  %v5594_v62 = vadd.f32 %v8442_v0, %v8431_v59  ;;  %v2744_v12 = vsel %vm6739_vm7, %v5211_v45, %v2743_v11  ;;  %v2745_v1 = vrot.slane %v2743_v11, 4 }
 0x20d   : > { %v2542_v48 = vrot.slane %v2541_v7, 4  ;;  %v2549_v35 = vshrl.u32 %v8573_v49, 16  ;;  %v2740_v32 = vsel %vm6739_vm7, %v2738_v14, %v2739_v23  ;;  %v2552_v51 = vshll.u32 %v8573_v49, 16 }
 0x20e   : > { %v8597_v27 = vadd.f32 %v5594_v62, %v8344_v16  ;;  %v2558_v28 = vshll.u32 %v8563_v33, 16  ;;  %v5354_v0 = vcombine.low %v2737_v31, %v2740_v32  ;;  %v2747_v29 = vsel %vm6739_vm7, %v2745_v1, %v2746_v3 }
 0x20f   : > { %v2547_v59 = vsel %vm6750_vm8, %v2542_v48, %v2546_v6  ;;  %v2551_v9 = vrot.slane %v2549_v35, 4  ;;  %v5355_v8 = vcombine.low %v2744_v12, %v2747_v29  ;;  %v2554_v45 = vrot.slane %v2552_v51, 5 }
 0x210   : > { %v5338_v10 = vcombine.low %v2537_v18, %v2547_v59  ;;  %5953 = vmatprep.mubr.bf16.mxu0 %v5354_v0  ;;  %v2560_v23 = vrot.slane %v2558_v28, 5  ;;  %v2562_v16 = vshrl.u32 %v8563_v33, 16  ;;  %v2568_v7 = vshll.u32 %v2187_v40, 16  ;;  %v5513_v31 = vpop.f32.mrb[40].mxu0 }
 0x211   : > { %v5509_v11 = vadd.f32 %v5508_v52, %v5507_v42  ;;  %5954 = vmatmul.mubr.bf16.gmra.mrb[140].mxu0 %v5355_v8  ;;  %v2555_v14 = vor.u32 %v2554_v45, %v2551_v9  ;;  %v5512_v62 = vadd.f32 %v5511_v39, %v5510_v26  ;;  %v5597_v6 = vadd.f32 %v8475_v19, %v8471_v61  ;;  %v5514_v42 = vpop.f32.mrb[41].mxu0 }
 0x212   : > { %4575 = vmatprep.mubr.bf16.mxu1 %v5338_v10  ;;  %v2564_v37 = vrot.slane %v2562_v16, 4  ;;  %v2570_v3 = vrot.slane %v2568_v7, 5  ;;  %v5600_v18 = vadd.f32 %v8492_v57, %v8484_v5  ;;  %v5603_v48 = vadd.f32 %v8524_v50, %v8517_v47  ;;  %v5516_v39 = vpop.f32.mrb[42].mxu0 }
 0x213   : > { %4576 = vmatmul.mubr.bf16.gmra.mrb[136].mxu1 %v5322_v58  ;;  %v2556_v12 = vrot.slane %v2555_v14, 4  ;;  %v8613_v40 = vadd.f32 %v5597_v6, %v8401_v22  ;;  %v5606_v52 = vadd.f32 %v8539_v20, %v8531_v53  ;;  %v5609_v26 = vadd.f32 %v5608_v15, %v5607_v13  ;;  %v5517_v57 = vpop.f32.mrb[43].mxu0  ;;  %v5613_v1 = vpop.f32.mrb[48].mxu1 }
 0x214   : > { %v2565_v61 = vor.u32 %v2564_v37, %v2560_v23  ;;  %v8618_v19 = vadd.f32 %v5600_v18, %v8405_v2  ;;  %v5515_v58 = vadd.f32 %v5514_v42, %v5513_v31  ;;  %v8621_v5 = vadd.f32 %v5603_v48, %v8462_v17  ;;  %v5614_v13 = vpop.f32.mrb[49].mxu1 }
 0x215   : > { %v8624_v47 = vadd.f32 %v5606_v52, %v8465_v24  ;;  %v8627_v22 = vadd.f32 %v5609_v26, %v8515_v46  ;;  %v5612_v50 = vadd.f32 %v5611_v55, %v5610_v44  ;;  %v2561_v53 = vsel %vm6750_vm8, %v2556_v12, %v2560_v23  ;;  %v5616_v35 = vpop.f32.mrb[50].mxu1 }
 0x216   : > { %v2566_v20 = vrot.slane %v2565_v61, 4  ;;  %v5518_v2 = vadd.f32 %v5517_v57, %v5516_v39  ;;  %v5615_v17 = vadd.f32 %v5614_v13, %v5613_v1  ;;  %v5323_v46 = vcombine.low %v8573_v49, %v8563_v33  ;;  %v5617_v32 = vpop.f32.mrb[51].mxu1 }
 0x217   : > { %v8632_v15 = vadd.f32 %v5612_v50, %v8520_v54  ;;  %v5618_v51 = vadd.f32 %v5617_v32, %v5616_v35 }
 0x218   : > { %v2571_v24 = vsel %vm6750_vm8, %v2566_v20, %v2570_v3  ;;  %v8639_v55 = vadd.f32 %v5615_v17, %v8569_v56 }
 0x219   : > { %v5339_v44 = vcombine.low %v2561_v53, %v2571_v24  ;;  %v8642_v28 = vadd.f32 %v5618_v51, %v8571_v21 }
 0x21b   : > { %4583 = vmatprep.mubr.bf16.mxu1 %v5339_v44 }
 0x21c   : > { %4584 = vmatmul.mubr.bf16.gmra.mrb[140].mxu1 %v5323_v46 }
 0x21e   : > { %v5519_v54 = vpop.f32.mrb[44].mxu0  ;;  %v5619_v59 = vpop.f32.mrb[52].mxu1 }
 0x21f   : > { %v5520_v0 = vpop.f32.mrb[45].mxu0  ;;  %v5620_v29 = vpop.f32.mrb[53].mxu1 }
 0x220   : > { %v5521_v43 = vadd.f32 %v5520_v0, %v5519_v54  ;;  %v5522_v9 = vpop.f32.mrb[46].mxu0  ;;  %v5621_v10 = vadd.f32 %v5620_v29, %v5619_v59  ;;  %v5622_v8 = vpop.f32.mrb[54].mxu1 }
 0x221   : > { %v5523_v33 = vpop.f32.mrb[47].mxu0  ;;  %v5623_v49 = vpop.f32.mrb[55].mxu1 }
 0x222   : > { %v5524_v45 = vadd.f32 %v5523_v33, %v5522_v9  ;;  %v8644_v23 = vadd.f32 %v5621_v10, %v5509_v11  ;;  %v5624_v56 = vadd.f32 %v5623_v49, %v5622_v8  ;;  %v9123_v49 = vld [vmem:[#allocation29_spill] sm:$0xff] }
 0x224   : > { %v8646_v16 = vadd.f32 %v5624_v56, %v5512_v62 }
 0x226   : > { %v5677_v7 = vpop.f32.mrb[48].mxu0 }
 0x227   : > { %v5678_v21 = vpop.f32.mrb[49].mxu0  ;;  %v5625_v37 = vpop.f32.mrb[56].mxu1 }
 0x228   : > { %v5679_v14 = vadd.f32 %v5678_v21, %v5677_v7  ;;  %v5680_v6 = vpop.f32.mrb[50].mxu0  ;;  %v5626_v18 = vpop.f32.mrb[57].mxu1  ;;  %v9124_v21 = vld [vmem:[#allocation30_spill] sm:$0xff] }
 0x229   : > { %v5681_v3 = vpop.f32.mrb[51].mxu0  ;;  %v5627_v12 = vadd.f32 %v5626_v18, %v5625_v37  ;;  %v5628_v42 = vpop.f32.mrb[58].mxu1 }
 0x22a   : > { %v8649_v31 = vadd.f32 %v5679_v14, %v8351_v34  ;;  %v5682_v48 = vadd.f32 %v5681_v3, %v5680_v6  ;;  %v5629_v52 = vpop.f32.mrb[59].mxu1 }
 0x22b   : > { %v8654_v26 = vadd.f32 %v5627_v12, %v5515_v58  ;;  %v5630_v62 = vadd.f32 %v5629_v52, %v5628_v42 }
 0x22c   : > { %v8652_v11 = vadd.f32 %v5682_v48, %v8386_v60 }
 0x22d   : > { %v8656_v39 = vadd.f32 %v5630_v62, %v5518_v2 }
 0x22e   : > { %v5683_v61 = vpop.f32.mrb[52].mxu0 }
 0x22f   : > { %v5684_v57 = vpop.f32.mrb[53].mxu0 }
 0x230   : > { %v5685_v50 = vadd.f32 %v5684_v57, %v5683_v61  ;;  %v5686_v1 = vpop.f32.mrb[54].mxu0  ;;  %v5631_v53 = vpop.f32.mrb[60].mxu1  ;;  %v9125_v57 = vld [vmem:[#allocation25_spill] sm:$0xff] }
 0x231   : > { %v5687_v20 = vpop.f32.mrb[55].mxu0  ;;  %v5632_v34 = vpop.f32.mrb[61].mxu1 }
 0x232   : > { %v8659_v13 = vadd.f32 %v5685_v50, %v8414_v63  ;;  %v5688_v17 = vadd.f32 %v5687_v20, %v5686_v1  ;;  %v5633_v35 = vadd.f32 %v5632_v34, %v5631_v53  ;;  %v5634_v24 = vpop.f32.mrb[62].mxu1  ;;  %v9126_v20 = vld [vmem:[#allocation26_spill] sm:$0xff] }
 0x233   : > { %v5635_v60 = vpop.f32.mrb[63].mxu1 }
 0x234   : > { %v8662_v58 = vadd.f32 %v5688_v17, %v8447_v30  ;;  %v8664_v46 = vadd.f32 %v5633_v35, %v5521_v43  ;;  %v5636_v2 = vadd.f32 %v5635_v60, %v5634_v24 }
 0x236   : > { %v5689_v32 = vpop.f32.mrb[56].mxu0  ;;  %v8666_v44 = vadd.f32 %v5636_v2, %v5524_v45 }
 0x237   : > { %v5690_v51 = vpop.f32.mrb[57].mxu0 }
 0x238   : > { %v5691_v54 = vadd.f32 %v5690_v51, %v5689_v32  ;;  %v5692_v59 = vpop.f32.mrb[58].mxu0 }
 0x239   : > { %v5637_v0 = vpop.f32.mrb[64].mxu1  ;;  %v5693_v29 = vpop.f32.mrb[59].mxu0 }
 0x23a   : > { %v5638_v63 = vpop.f32.mrb[65].mxu1  ;;  %v8669_v9 = vadd.f32 %v5691_v54, %v8478_v36  ;;  %v5694_v10 = vadd.f32 %v5693_v29, %v5692_v59  ;;  %v9127_v29 = vld [vmem:[#allocation21_spill] sm:$0xff] }
 0x23b   : > { %v5639_v8 = vadd.f32 %v5638_v63, %v5637_v0  ;;  %v5640_v33 = vpop.f32.mrb[66].mxu1 }
 0x23c   : > { %v5641_v30 = vpop.f32.mrb[67].mxu1  ;;  %v8672_v43 = vadd.f32 %v5694_v10, %v8500_v4 }
 0x23d   : > { %v8675_v56 = vadd.f32 %v5639_v8, %v9123_v49  ;;  %v5642_v45 = vadd.f32 %v5641_v30, %v5640_v33  ;;  %v9128_v33 = vld [vmem:[#allocation22_spill] sm:$0xff] }
 0x23e   : > { %v5695_v7 = vpop.f32.mrb[60].mxu0 }
 0x23f   : > { %v8678_v14 = vadd.f32 %v5642_v45, %v9124_v21  ;;  %v5696_v6 = vpop.f32.mrb[61].mxu0 }
 0x240   : > { %v5697_v37 = vadd.f32 %v5696_v6, %v5695_v7  ;;  %v5698_v3 = vpop.f32.mrb[62].mxu0 }
 0x241   : > { %v5643_v36 = vpop.f32.mrb[68].mxu1  ;;  %v5699_v18 = vpop.f32.mrb[63].mxu0 }
 0x242   : > { %v5644_v48 = vpop.f32.mrb[69].mxu1  ;;  %v8681_v12 = vadd.f32 %v5697_v37, %v8534_v38  ;;  %v5700_v42 = vadd.f32 %v5699_v18, %v5698_v3 }
 0x243   : > { %v5645_v4 = vadd.f32 %v5644_v48, %v5643_v36  ;;  %v5646_v52 = vpop.f32.mrb[70].mxu1 }
 0x244   : > { %v5647_v62 = vpop.f32.mrb[71].mxu1  ;;  %v8684_v61 = vadd.f32 %v5700_v42, %v8558_v25 }
 0x245   : > { %v8687_v50 = vadd.f32 %v5645_v4, %v9125_v57  ;;  %v5648_v1 = vadd.f32 %v5647_v62, %v5646_v52 }
 0x246   : > { %v5701_v53 = vpop.f32.mrb[64].mxu0 }
 0x247   : > { %v8690_v34 = vadd.f32 %v5648_v1, %v9126_v20  ;;  %v5702_v17 = vpop.f32.mrb[65].mxu0 }
 0x248   : > { %v5703_v35 = vadd.f32 %v5702_v17, %v5701_v53  ;;  %v5704_v24 = vpop.f32.mrb[66].mxu0 }
 0x249   : > { %v5649_v38 = vpop.f32.mrb[72].mxu1  ;;  %v5705_v60 = vpop.f32.mrb[67].mxu0 }
 0x24a   : > { %v5650_v2 = vpop.f32.mrb[73].mxu1  ;;  %v8693_v32 = vadd.f32 %v5703_v35, %v8582_v41  ;;  %v5706_v51 = vadd.f32 %v5705_v60, %v5704_v24 }
 0x24b   : > { %v5651_v25 = vadd.f32 %v5650_v2, %v5649_v38  ;;  %v5652_v54 = vpop.f32.mrb[74].mxu1  ;;  %v9129_v2 = vld [vmem:[#allocation23_spill] sm:$0xff] }
 0x24c   : > { %v5653_v59 = vpop.f32.mrb[75].mxu1  ;;  %v8696_v0 = vadd.f32 %v5706_v51, %v8597_v27 }
 0x24d   : > { %v8699_v63 = vadd.f32 %v5651_v25, %v9127_v29  ;;  %v5654_v10 = vadd.f32 %v5653_v59, %v5652_v54  ;;  %v9130_v54 = vld [vmem:[#allocation24_spill] sm:$0xff] }
 0x24e   : > { %v5707_v8 = vpop.f32.mrb[68].mxu0 }
 0x24f   : > { %v8702_v30 = vadd.f32 %v5654_v10, %v9128_v33  ;;  %v5708_v49 = vpop.f32.mrb[69].mxu0 }
 0x250   : > { %v5709_v45 = vadd.f32 %v5708_v49, %v5707_v8  ;;  %v5710_v7 = vpop.f32.mrb[70].mxu0 }
 0x251   : > { %v5711_v41 = vpop.f32.mrb[71].mxu0 }
 0x252   : > { %v8705_v21 = vadd.f32 %v5709_v45, %v8613_v40  ;;  %v5712_v6 = vadd.f32 %v5711_v41, %v5710_v7 }
 0x254   : > { %v8708_v37 = vadd.f32 %v5712_v6, %v8618_v19 }
 0x256   : > { %v5713_v27 = vpop.f32.mrb[72].mxu0 }
 0x257   : > { %v5714_v3 = vpop.f32.mrb[73].mxu0 }
 0x258   : > { %v5715_v36 = vadd.f32 %v5714_v3, %v5713_v27  ;;  %v5716_v18 = vpop.f32.mrb[74].mxu0 }
 0x259   : > { %v5717_v48 = vpop.f32.mrb[75].mxu0 }
 0x25a   : > { %v8711_v42 = vadd.f32 %v5715_v36, %v8621_v5  ;;  %v5718_v4 = vadd.f32 %v5717_v48, %v5716_v18 }
 0x25c   : > { %v8714_v52 = vadd.f32 %v5718_v4, %v8624_v47 }
 0x25e   : > { %v5719_v62 = vpop.f32.mrb[76].mxu0 }
 0x25f   : > { %v5720_v57 = vpop.f32.mrb[77].mxu0 }
 0x260   : > { %v5721_v40 = vadd.f32 %v5720_v57, %v5719_v62  ;;  %v5722_v1 = vpop.f32.mrb[78].mxu0 }
 0x261   : > { %v5723_v20 = vpop.f32.mrb[79].mxu0 }
 0x262   : > { %v5655_v53 = vpop.f32.mrb[76].mxu1  ;;  %v8717_v19 = vadd.f32 %v5721_v40, %v8627_v22  ;;  %v5724_v17 = vadd.f32 %v5723_v20, %v5722_v1 }
 0x263   : > { %v5656_v35 = vpop.f32.mrb[77].mxu1 }
 0x264   : > { %v5657_v24 = vadd.f32 %v5656_v35, %v5655_v53  ;;  %v5658_v38 = vpop.f32.mrb[78].mxu1  ;;  %v8720_v5 = vadd.f32 %v5724_v17, %v8632_v15 }
 0x265   : > { %v5659_v60 = vpop.f32.mrb[79].mxu1 }
 0x266   : > { %v8723_v47 = vadd.f32 %v5657_v24, %v9129_v2  ;;  %v5660_v51 = vadd.f32 %v5659_v60, %v5658_v38  ;;  %v5725_v25 = vpop.f32.mrb[80].mxu0 }
 0x267   : > { %v5726_v29 = vpop.f32.mrb[81].mxu0 }
 0x268   : > { %v8726_v59 = vadd.f32 %v5660_v51, %v9130_v54  ;;  %v5727_v10 = vadd.f32 %v5726_v29, %v5725_v25  ;;  %v5728_v22 = vpop.f32.mrb[82].mxu0 }
 0x269   : > { %v5729_v8 = vpop.f32.mrb[83].mxu0 }
 0x26a   : > { %v5789_v33 = vpop.f32.mrb[80].mxu1  ;;  %v8729_v49 = vadd.f32 %v5727_v10, %v8639_v55  ;;  %v5730_v45 = vadd.f32 %v5729_v8, %v5728_v22 }
 0x26b   : > { %v5790_v15 = vpop.f32.mrb[81].mxu1 }
 0x26c   : > { %v5791_v7 = vadd.f32 %v5790_v15, %v5789_v33  ;;  %v5792_v41 = vpop.f32.mrb[82].mxu1  ;;  %v8732_v6 = vadd.f32 %v5730_v45, %v8642_v28 }
 0x26d   : > { %v5793_v27 = vpop.f32.mrb[83].mxu1 }
 0x26e   : > { %v5794_v3 = vadd.f32 %v5793_v27, %v5792_v41  ;;  %v8735_v36 = vadd.f32 %v5791_v7, %v8649_v31  ;;  %v5731_v18 = vpop.f32.mrb[84].mxu0 }
 0x26f   : > { %v5732_v48 = vpop.f32.mrb[85].mxu0 }
 0x270   : > { %v8738_v4 = vadd.f32 %v5794_v3, %v8652_v11  ;;  %v5733_v62 = vadd.f32 %v5732_v48, %v5731_v18  ;;  %v5734_v55 = vpop.f32.mrb[86].mxu0 }
 0x271   : > { %v5735_v57 = vpop.f32.mrb[87].mxu0 }
 0x272   : > { %v8741_v1 = vadd.f32 %v5733_v62, %v8644_v23  ;;  %v5736_v53 = vadd.f32 %v5735_v57, %v5734_v55 }
 0x273   : > { %v5795_v40 = vpop.f32.mrb[84].mxu1 }
 0x274   : > { %v5796_v28 = vpop.f32.mrb[85].mxu1  ;;  %v8744_v35 = vadd.f32 %v5736_v53, %v8646_v16 }
 0x275   : > { %v5797_v20 = vadd.f32 %v5796_v28, %v5795_v40  ;;  %v5798_v17 = vpop.f32.mrb[86].mxu1 }
 0x276   : > { %v5799_v31 = vpop.f32.mrb[87].mxu1  ;;  %v5737_v11 = vpop.f32.mrb[88].mxu0 }
 0x277   : > { %v5800_v24 = vadd.f32 %v5799_v31, %v5798_v17  ;;  %v8747_v38 = vadd.f32 %v5797_v20, %v8659_v13  ;;  %v5738_v60 = vpop.f32.mrb[89].mxu0 }
 0x278   : > { %v5739_v51 = vadd.f32 %v5738_v60, %v5737_v11  ;;  %v5740_v23 = vpop.f32.mrb[90].mxu0 }
 0x279   : > { %v8750_v2 = vadd.f32 %v5800_v24, %v8662_v58  ;;  %v5741_v25 = vpop.f32.mrb[91].mxu0 }
 0x27a   : > { %v8753_v29 = vadd.f32 %v5739_v51, %v8654_v26  ;;  %v5742_v10 = vadd.f32 %v5741_v25, %v5740_v23 }
 0x27b   : > { %v5801_v54 = vpop.f32.mrb[88].mxu1 }
 0x27c   : > { %v5802_v16 = vpop.f32.mrb[89].mxu1  ;;  %v8756_v33 = vadd.f32 %v5742_v10, %v8656_v39 }
 0x27d   : > { %v5803_v22 = vadd.f32 %v5802_v16, %v5801_v54  ;;  %v5804_v8 = vpop.f32.mrb[90].mxu1 }
 0x27e   : > { %v5805_v13 = vpop.f32.mrb[91].mxu1  ;;  %v5743_v58 = vpop.f32.mrb[92].mxu0 }
 0x27f   : > { %v5806_v45 = vadd.f32 %v5805_v13, %v5804_v8  ;;  %v8759_v15 = vadd.f32 %v5803_v22, %v8669_v9  ;;  %v5744_v7 = vpop.f32.mrb[93].mxu0 }
 0x280   : > { %v5745_v27 = vadd.f32 %v5744_v7, %v5743_v58  ;;  %v5746_v26 = vpop.f32.mrb[94].mxu0 }
 0x281   : > { %v8762_v41 = vadd.f32 %v5806_v45, %v8672_v43  ;;  %v5747_v3 = vpop.f32.mrb[95].mxu0 }
 0x282   : > { %v8765_v48 = vadd.f32 %v5745_v27, %v8664_v46  ;;  %v5748_v62 = vadd.f32 %v5747_v3, %v5746_v26 }
 0x284   : > { %v5807_v18 = vpop.f32.mrb[92].mxu1  ;;  %v8768_v40 = vadd.f32 %v5748_v62, %v8666_v44 }
 0x285   : > { %v5808_v39 = vpop.f32.mrb[93].mxu1 }
 0x286   : > { %v5809_v55 = vadd.f32 %v5808_v39, %v5807_v18  ;;  %v5810_v57 = vpop.f32.mrb[94].mxu1  ;;  %v5749_v43 = vpop.f32.mrb[96].mxu0 }
 0x287   : > { %v5811_v9 = vpop.f32.mrb[95].mxu1  ;;  %v5750_v20 = vpop.f32.mrb[97].mxu0 }
 0x288   : > { %v5812_v53 = vadd.f32 %v5811_v9, %v5810_v57  ;;  %v8771_v28 = vadd.f32 %v5809_v55, %v8681_v12  ;;  %v5751_v31 = vadd.f32 %v5750_v20, %v5749_v43  ;;  %v5752_v46 = vpop.f32.mrb[98].mxu0 }
 0x289   : > { %v5753_v24 = vpop.f32.mrb[99].mxu0 }
 0x28a   : > { %v8774_v17 = vadd.f32 %v5812_v53, %v8684_v61  ;;  %v8777_v60 = vadd.f32 %v5751_v31, %v8675_v56  ;;  %v5754_v51 = vadd.f32 %v5753_v24, %v5752_v46 }
 0x28c   : > { %v5813_v11 = vpop.f32.mrb[96].mxu1  ;;  %v8780_v54 = vadd.f32 %v5754_v51, %v8678_v14 }
 0x28d   : > { %v5814_v44 = vpop.f32.mrb[97].mxu1 }
 0x28e   : > { %v5815_v23 = vadd.f32 %v5814_v44, %v5813_v11  ;;  %v5816_v25 = vpop.f32.mrb[98].mxu1  ;;  %v5755_v61 = vpop.f32.mrb[100].mxu0 }
 0x28f   : > { %v5817_v12 = vpop.f32.mrb[99].mxu1  ;;  %v5756_v22 = vpop.f32.mrb[101].mxu0 }
 0x290   : > { %v5818_v10 = vadd.f32 %v5817_v12, %v5816_v25  ;;  %v8783_v16 = vadd.f32 %v5815_v23, %v8693_v32  ;;  %v5757_v13 = vadd.f32 %v5756_v22, %v5755_v61  ;;  %v5758_v56 = vpop.f32.mrb[102].mxu0 }
 0x291   : > { %v5759_v45 = vpop.f32.mrb[103].mxu0 }
 0x292   : > { %v8786_v8 = vadd.f32 %v5818_v10, %v8696_v0  ;;  %v8789_v7 = vadd.f32 %v5757_v13, %v8687_v50  ;;  %v5760_v27 = vadd.f32 %v5759_v45, %v5758_v56 }
 0x294   : > { %v5819_v58 = vpop.f32.mrb[100].mxu1  ;;  %v8792_v18 = vadd.f32 %v5760_v27, %v8690_v34 }
 0x295   : > { %v5820_v14 = vpop.f32.mrb[101].mxu1 }
 0x296   : > { %v5821_v26 = vadd.f32 %v5820_v14, %v5819_v58  ;;  %v5822_v3 = vpop.f32.mrb[102].mxu1  ;;  %v5761_v0 = vpop.f32.mrb[104].mxu0 }
 0x297   : > { %v5823_v32 = vpop.f32.mrb[103].mxu1  ;;  %v5762_v55 = vpop.f32.mrb[105].mxu0 }
 0x298   : > { %v5824_v62 = vadd.f32 %v5823_v32, %v5822_v3  ;;  %v8795_v39 = vadd.f32 %v5821_v26, %v8705_v21  ;;  %v5763_v9 = vadd.f32 %v5762_v55, %v5761_v0  ;;  %v5764_v50 = vpop.f32.mrb[106].mxu0 }
 0x299   : > { %v5765_v53 = vpop.f32.mrb[107].mxu0 }
 0x29a   : > { %v8798_v57 = vadd.f32 %v5824_v62, %v8708_v37  ;;  %v8801_v20 = vadd.f32 %v5763_v9, %v8699_v63  ;;  %v5766_v31 = vadd.f32 %v5765_v53, %v5764_v50 }
 0x29c   : > { %v5825_v43 = vpop.f32.mrb[104].mxu1  ;;  %v8804_v11 = vadd.f32 %v5766_v31, %v8702_v30 }
 0x29d   : > { %v5826_v34 = vpop.f32.mrb[105].mxu1 }
 0x29e   : > { %v5827_v46 = vadd.f32 %v5826_v34, %v5825_v43  ;;  %v5828_v24 = vpop.f32.mrb[106].mxu1 }
 0x29f   : > { %v5829_v21 = vpop.f32.mrb[107].mxu1 }
 0x2a0   : > { %v5830_v51 = vadd.f32 %v5829_v21, %v5828_v24  ;;  %v8807_v44 = vadd.f32 %v5827_v46, %v8711_v42 }
 0x2a1   : > { %v5767_v37 = vpop.f32.mrb[108].mxu0 }
 0x2a2   : > { %v8810_v23 = vadd.f32 %v5830_v51, %v8714_v52  ;;  %v5768_v25 = vpop.f32.mrb[109].mxu0 }
 0x2a3   : > { %v5769_v12 = vadd.f32 %v5768_v25, %v5767_v37  ;;  %v5770_v63 = vpop.f32.mrb[110].mxu0 }
 0x2a4   : > { %v5831_v10 = vpop.f32.mrb[108].mxu1  ;;  %v5771_v61 = vpop.f32.mrb[111].mxu0 }
 0x2a5   : > { %v5832_v22 = vpop.f32.mrb[109].mxu1  ;;  %v8813_v13 = vadd.f32 %v5769_v12, %v8723_v47  ;;  %v5772_v30 = vadd.f32 %v5771_v61, %v5770_v63 }
 0x2a6   : > { %v5833_v56 = vadd.f32 %v5832_v22, %v5831_v10  ;;  %v5834_v45 = vpop.f32.mrb[110].mxu1 }
 0x2a7   : > { %v5835_v58 = vpop.f32.mrb[111].mxu1  ;;  %v8816_v42 = vadd.f32 %v5772_v30, %v8726_v59 }
 0x2a8   : > { %v5836_v27 = vadd.f32 %v5835_v58, %v5834_v45  ;;  %v8819_v52 = vadd.f32 %v5833_v56, %v8717_v19 }
 0x2a9   : > { %v5927_v14 = vpop.f32.mrb[112].mxu0 }
 0x2aa   : > { %v8822_v26 = vadd.f32 %v5836_v27, %v8720_v5  ;;  %v4635_v3 = vadd.f32 %v5927_v14, %v8747_v38  ;;  %v4626_v32 = vpop.f32.mrb[113].mxu0 }
 0x2ab   : > { %v4627_v47 = vadd.f32 %v4626_v32, %v8735_v36  ;;  %v5928_v62 = vpop.f32.mrb[114].mxu0 }
 0x2ac   : > { %4755 = vst [vmem:[%s8828_s27 + $0x10] sm:$0xff] %v4635_v3  ;;  %v4638_v19 = vadd.f32 %v5928_v62, %v8750_v2  ;;  %v4629_v0 = vpop.f32.mrb[115].mxu0  ;;  %v4825_v2 = vmul.f32 %v4635_v3, %v4635_v3 }
 0x2ad   : > { %4753 = vst [vmem:[%s8828_s27] sm:$0xff] %v4627_v47  ;;  %v4630_v5 = vadd.f32 %v4629_v0, %v8738_v4  ;;  %v4823_v9 = vmul.f32 %v4627_v47, %v4627_v47 }
 0x2ae   : > { %v5837_v59 = vpop.f32.mrb[112].mxu1  ;;  %4756 = vst [vmem:[%s8828_s27 + $0x18] sm:$0xff] %v4638_v19  ;;  %v4826_v25 = vmul.f32 %v4638_v19, %v4638_v19 }
 0x2af   : > { %v5838_v38 = vpop.f32.mrb[113].mxu1  ;;  %4754 = vst [vmem:[%s8828_s27 + $0x8] sm:$0xff] %v4630_v5  ;;  %v4785_v50 = vadd.f32 %v4630_v5, %v4627_v47  ;;  %v4824_v53 = vmul.f32 %v4630_v5, %v4630_v5 }
 0x2b0   : > { %v5839_v55 = vadd.f32 %v5838_v38, %v5837_v59  ;;  %v5840_v36 = vpop.f32.mrb[114].mxu1 }
 0x2b1   : > { %v5841_v43 = vpop.f32.mrb[115].mxu1  ;;  %v4786_v46 = vadd.f32 %v4785_v50, %v4635_v3  ;;  %v4855_v24 = vadd.f32 %v4824_v53, %v4823_v9  ;;  %v5931_v21 = vpop.f32.mrb[116].mxu0 }
 0x2b2   : > { %v5842_v31 = vadd.f32 %v5841_v43, %v5840_v36  ;;  %v8837_v34 = vadd.f32 %v5839_v55, %v8729_v49  ;;  %v4651_v4 = vadd.f32 %v5931_v21, %v8771_v28  ;;  %v4642_v51 = vpop.f32.mrb[117].mxu0 }
 0x2b3   : > { %v4856_v12 = vadd.f32 %v4855_v24, %v4825_v2  ;;  %v4643_v63 = vadd.f32 %v4642_v51, %v8759_v15  ;;  %v4787_v10 = vadd.f32 %v4786_v46, %v4638_v19  ;;  %v5932_v49 = vpop.f32.mrb[118].mxu0 }
 0x2b4   : > { %v8841_v37 = vadd.f32 %v5842_v31, %v8732_v6  ;;  %4759 = vst [vmem:[%s8828_s27 + $0x30] sm:$0xff] %v4651_v4  ;;  %v4654_v61 = vadd.f32 %v5932_v49, %v8774_v17  ;;  %v4645_v22 = vpop.f32.mrb[119].mxu0  ;;  %v4829_v47 = vmul.f32 %v4651_v4, %v4651_v4 }
 0x2b5   : > { %4757 = vst [vmem:[%s8828_s27 + $0x20] sm:$0xff] %v4643_v63  ;;  %v4788_v30 = vadd.f32 %v4787_v10, %v4643_v63  ;;  %v4827_v56 = vmul.f32 %v4643_v63, %v4643_v63  ;;  %v4857_v28 = vadd.f32 %v4856_v12, %v4826_v25  ;;  %v4646_v45 = vadd.f32 %v4645_v22, %v8762_v41 }
 0x2b6   : > { %4760 = vst [vmem:[%s8828_s27 + $0x38] sm:$0xff] %v4654_v61  ;;  %v5843_v6 = vpop.f32.mrb[116].mxu1  ;;  %v4830_v55 = vmul.f32 %v4654_v61, %v4654_v61 }
 0x2b7   : > { %v4858_v58 = vadd.f32 %v4857_v28, %v4827_v56  ;;  %4758 = vst [vmem:[%s8828_s27 + $0x28] sm:$0xff] %v4646_v45  ;;  %v4789_v27 = vadd.f32 %v4788_v30, %v4646_v45  ;;  %v4828_v14 = vmul.f32 %v4646_v45, %v4646_v45  ;;  %v5844_v3 = vpop.f32.mrb[117].mxu1 }
 0x2b8   : > { %v5845_v15 = vadd.f32 %v5844_v3, %v5843_v6  ;;  %v5846_v32 = vpop.f32.mrb[118].mxu1 }
 0x2b9   : > { %v4790_v62 = vadd.f32 %v4789_v27, %v4651_v4  ;;  %v4859_v17 = vadd.f32 %v4858_v58, %v4828_v14  ;;  %v5847_v19 = vpop.f32.mrb[119].mxu1  ;;  %v5935_v59 = vpop.f32.mrb[120].mxu0 }
 0x2ba   : > { %v5848_v0 = vadd.f32 %v5847_v19, %v5846_v32  ;;  %v4667_v5 = vadd.f32 %v5935_v59, %v8795_v39  ;;  %v4658_v41 = vpop.f32.mrb[121].mxu0  ;;  %v4538_v38 = vadd.f32 %v5845_v15, %v8741_v1 }
 0x2bb   : > { %v4860_v36 = vadd.f32 %v4859_v17, %v4829_v47  ;;  %v4659_v9 = vadd.f32 %v4658_v41, %v8783_v16  ;;  %v4791_v50 = vadd.f32 %v4790_v62, %v4654_v61  ;;  %v5936_v53 = vpop.f32.mrb[122].mxu0 }
 0x2bc   : > { %4763 = vst [vmem:[%s8828_s27 + $0x50] sm:$0xff] %v4667_v5  ;;  %v4670_v43 = vadd.f32 %v5936_v53, %v8798_v57  ;;  %v4661_v31 = vpop.f32.mrb[123].mxu0  ;;  %v4541_v2 = vadd.f32 %v5848_v0, %v8744_v35  ;;  %v4833_v57 = vmul.f32 %v4667_v5, %v4667_v5 }
 0x2bd   : > { %4761 = vst [vmem:[%s8828_s27 + $0x40] sm:$0xff] %v4659_v9  ;;  %v4792_v46 = vadd.f32 %v4791_v50, %v4659_v9  ;;  %v4831_v39 = vmul.f32 %v4659_v9, %v4659_v9  ;;  %v4861_v24 = vadd.f32 %v4860_v36, %v4830_v55  ;;  %v4662_v21 = vadd.f32 %v4661_v31, %v8786_v8 }
 0x2be   : > { %4764 = vst [vmem:[%s8828_s27 + $0x58] sm:$0xff] %v4670_v43  ;;  %v5849_v1 = vpop.f32.mrb[120].mxu1  ;;  %v4834_v28 = vmul.f32 %v4670_v43, %v4670_v43 }
 0x2bf   : > { %v4862_v4 = vadd.f32 %v4861_v24, %v4831_v39  ;;  %4762 = vst [vmem:[%s8828_s27 + $0x48] sm:$0xff] %v4662_v21  ;;  %v4793_v51 = vadd.f32 %v4792_v46, %v4662_v21  ;;  %v4832_v16 = vmul.f32 %v4662_v21, %v4662_v21  ;;  %v5850_v25 = vpop.f32.mrb[121].mxu1 }
 0x2c0   : > { %v5851_v12 = vadd.f32 %v5850_v25, %v5849_v1  ;;  %v5852_v63 = vpop.f32.mrb[122].mxu1 }
 0x2c1   : > { %v4794_v10 = vadd.f32 %v4793_v51, %v4667_v5  ;;  %v4863_v49 = vadd.f32 %v4862_v4, %v4832_v16  ;;  %v5853_v35 = vpop.f32.mrb[123].mxu1  ;;  %v5939_v61 = vpop.f32.mrb[124].mxu0 }
 0x2c2   : > { %v5854_v22 = vadd.f32 %v5853_v35, %v5852_v63  ;;  %v4683_v30 = vadd.f32 %v5939_v61, %v8819_v52  ;;  %v4674_v8 = vpop.f32.mrb[125].mxu0  ;;  %v4546_v56 = vadd.f32 %v5851_v12, %v8753_v29 }
 0x2c3   : > { %v4864_v45 = vadd.f32 %v4863_v49, %v4833_v57  ;;  %v4675_v6 = vadd.f32 %v4674_v8, %v8807_v44  ;;  %v4795_v58 = vadd.f32 %v4794_v10, %v4670_v43  ;;  %v5940_v27 = vpop.f32.mrb[126].mxu0 }
 0x2c4   : > { %4767 = vst [vmem:[%s8828_s27 + $0x70] sm:$0xff] %v4683_v30  ;;  %v4686_v14 = vadd.f32 %v5940_v27, %v8822_v26  ;;  %v4677_v3 = vpop.f32.mrb[127].mxu0  ;;  %v8866_v15 = vadd.f32 %v5854_v22, %v8756_v33  ;;  %v4837_v59 = vmul.f32 %v4683_v30, %v4683_v30 }
 0x2c5   : > { %4765 = vst [vmem:[%s8828_s27 + $0x60] sm:$0xff] %v4675_v6  ;;  %v4796_v52 = vadd.f32 %v4795_v58, %v4675_v6  ;;  %v4835_v32 = vmul.f32 %v4675_v6, %v4675_v6  ;;  %v4865_v47 = vadd.f32 %v4864_v45, %v4834_v28  ;;  %v4678_v29 = vadd.f32 %v4677_v3, %v8810_v23 }
 0x2c6   : > { %4768 = vst [vmem:[%s8828_s27 + $0x78] sm:$0xff] %v4686_v14  ;;  %v4838_v50 = vmul.f32 %v4686_v14, %v4686_v14 }
 0x2c7   : > { %v4866_v62 = vadd.f32 %v4865_v47, %v4835_v32  ;;  %4766 = vst [vmem:[%s8828_s27 + $0x68] sm:$0xff] %v4678_v29  ;;  %v4797_v17 = vadd.f32 %v4796_v52, %v4678_v29  ;;  %v4836_v44 = vmul.f32 %v4678_v29, %v4678_v29 }
 0x2c8   : > { %v5855_v19 = vpop.f32.mrb[124].mxu1 }
 0x2c9   : > { %v4798_v0 = vadd.f32 %v4797_v17, %v4683_v30  ;;  %v4867_v26 = vadd.f32 %v4866_v62, %v4836_v44  ;;  %v5856_v5 = vpop.f32.mrb[125].mxu1  ;;  %v5943_v41 = vpop.f32.mrb[128].mxu0 }
 0x2ca   : > { %v5857_v33 = vadd.f32 %v5856_v5, %v5855_v19  ;;  %v5858_v55 = vpop.f32.mrb[126].mxu1  ;;  %v4699_v36 = vadd.f32 %v5943_v41, %v4538_v38  ;;  %v4690_v9 = vpop.f32.mrb[129].mxu0 }
 0x2cb   : > { %v4868_v23 = vadd.f32 %v4867_v26, %v4837_v59  ;;  %v5859_v53 = vpop.f32.mrb[127].mxu1  ;;  %v4691_v43 = vadd.f32 %v4690_v9, %v8837_v34  ;;  %v4799_v31 = vadd.f32 %v4798_v0, %v4686_v14  ;;  %v5944_v46 = vpop.f32.mrb[130].mxu0 }
 0x2cc   : > { %v5860_v39 = vadd.f32 %v5859_v53, %v5858_v55  ;;  %4771 = vst [vmem:[%s8828_s27 + $0x90] sm:$0xff] %v4699_v36  ;;  %v4702_v24 = vadd.f32 %v5944_v46, %v4541_v2  ;;  %v4693_v21 = vpop.f32.mrb[131].mxu0  ;;  %v4554_v1 = vadd.f32 %v5857_v33, %v8765_v48  ;;  %v4841_v57 = vmul.f32 %v4699_v36, %v4699_v36 }
 0x2cd   : > { %4769 = vst [vmem:[%s8828_s27 + $0x80] sm:$0xff] %v4691_v43  ;;  %v4800_v4 = vadd.f32 %v4799_v31, %v4691_v43  ;;  %v4839_v51 = vmul.f32 %v4691_v43, %v4691_v43  ;;  %v4869_v38 = vadd.f32 %v4868_v23, %v4838_v50  ;;  %v4694_v16 = vadd.f32 %v4693_v21, %v8841_v37 }
 0x2ce   : > { %4772 = vst [vmem:[%s8828_s27 + $0x98] sm:$0xff] %v4702_v24  ;;  %v4557_v25 = vadd.f32 %v5860_v39, %v8768_v40  ;;  %v4842_v22 = vmul.f32 %v4702_v24, %v4702_v24 }
 0x2cf   : > { %v4870_v12 = vadd.f32 %v4869_v38, %v4839_v51  ;;  %4770 = vst [vmem:[%s8828_s27 + $0x88] sm:$0xff] %v4694_v16  ;;  %v4801_v34 = vadd.f32 %v4800_v4, %v4694_v16  ;;  %v4840_v63 = vmul.f32 %v4694_v16, %v4694_v16 }
 0x2d1   : > { %v4802_v10 = vadd.f32 %v4801_v34, %v4699_v36  ;;  %v4871_v2 = vadd.f32 %v4870_v12, %v4840_v63 }
 0x2d2   : > { %v5947_v49 = vpop.f32.mrb[132].mxu0  ;;  %v5861_v48 = vpop.f32.mrb[128].mxu1 }
 0x2d3   : > { %v4715_v35 = vadd.f32 %v5947_v49, %v4554_v1  ;;  %v4706_v61 = vpop.f32.mrb[133].mxu0  ;;  %v4872_v30 = vadd.f32 %v4871_v2, %v4841_v57  ;;  %v5862_v8 = vpop.f32.mrb[129].mxu1  ;;  %v4803_v28 = vadd.f32 %v4802_v10, %v4702_v24 }
 0x2d4   : > { %v4707_v37 = vadd.f32 %v4706_v61, %v4546_v56  ;;  %v5948_v40 = vpop.f32.mrb[134].mxu0  ;;  %v5863_v45 = vadd.f32 %v5862_v8, %v5861_v48  ;;  %v5864_v6 = vpop.f32.mrb[130].mxu1 }
 0x2d5   : > { %4775 = vst [vmem:[%s8828_s27 + $0xb0] sm:$0xff] %v4715_v35  ;;  %v4718_v58 = vadd.f32 %v5948_v40, %v4557_v25  ;;  %v4709_v27 = vpop.f32.mrb[135].mxu0  ;;  %v5865_v14 = vpop.f32.mrb[131].mxu1  ;;  %v4873_v32 = vadd.f32 %v4872_v30, %v4842_v22  ;;  %v4845_v59 = vmul.f32 %v4715_v35, %v4715_v35 }
 0x2d6   : > { %4773 = vst [vmem:[%s8828_s27 + $0xa0] sm:$0xff] %v4707_v37  ;;  %v4804_v3 = vadd.f32 %v4803_v28, %v4707_v37  ;;  %v4843_v52 = vmul.f32 %v4707_v37, %v4707_v37  ;;  %v4710_v47 = vadd.f32 %v4709_v27, %v8866_v15  ;;  %v5866_v29 = vadd.f32 %v5865_v14, %v5864_v6 }
 0x2d7   : > { %4776 = vst [vmem:[%s8828_s27 + $0xb8] sm:$0xff] %v4718_v58  ;;  %v4562_v62 = vadd.f32 %v5863_v45, %v8777_v60  ;;  %v4846_v41 = vmul.f32 %v4718_v58, %v4718_v58 }
 0x2d8   : > { %v4874_v56 = vadd.f32 %v4873_v32, %v4843_v52  ;;  %4774 = vst [vmem:[%s8828_s27 + $0xa8] sm:$0xff] %v4710_v47  ;;  %v4805_v17 = vadd.f32 %v4804_v3, %v4710_v47  ;;  %v4844_v44 = vmul.f32 %v4710_v47, %v4710_v47  ;;  %v4565_v19 = vadd.f32 %v5866_v29, %v8780_v54 }
 0x2da   : > { %v4806_v0 = vadd.f32 %v4805_v17, %v4715_v35  ;;  %v4875_v26 = vadd.f32 %v4874_v56, %v4844_v44 }
 0x2db   : > { %v5951_v5 = vpop.f32.mrb[136].mxu0 }
 0x2dc   : > { %v4876_v33 = vadd.f32 %v4875_v26, %v4845_v59  ;;  %v4722_v55 = vpop.f32.mrb[137].mxu0  ;;  %v4807_v36 = vadd.f32 %v4806_v0, %v4718_v58  ;;  %v5867_v15 = vpop.f32.mrb[132].mxu1 }
 0x2dd   : > { %v4723_v9 = vadd.f32 %v4722_v55, %v4562_v62  ;;  %v5952_v50 = vpop.f32.mrb[138].mxu0  ;;  %v5868_v60 = vpop.f32.mrb[133].mxu1 }
 0x2de   : > { %v4877_v23 = vadd.f32 %v4876_v33, %v4846_v41  ;;  %v4725_v53 = vpop.f32.mrb[139].mxu0  ;;  %v5869_v43 = vadd.f32 %v5868_v60, %v5867_v15  ;;  %v5870_v31 = vpop.f32.mrb[134].mxu1 }
 0x2df   : > { %4777 = vst [vmem:[%s8828_s27 + $0xc0] sm:$0xff] %v4723_v9  ;;  %v4808_v54 = vadd.f32 %v4807_v36, %v4723_v9  ;;  %v4847_v46 = vmul.f32 %v4723_v9, %v4723_v9  ;;  %v4726_v39 = vadd.f32 %v4725_v53, %v4565_v19  ;;  %v5871_v24 = vpop.f32.mrb[135].mxu1 }
 0x2e0   : > { %v5872_v21 = vadd.f32 %v5871_v24, %v5870_v31  ;;  %v4570_v1 = vadd.f32 %v5869_v43, %v8789_v7 }
 0x2e1   : > { %v4878_v4 = vadd.f32 %v4877_v23, %v4847_v46  ;;  %4778 = vst [vmem:[%s8828_s27 + $0xc8] sm:$0xff] %v4726_v39  ;;  %v4809_v51 = vadd.f32 %v4808_v54, %v4726_v39  ;;  %v4848_v38 = vmul.f32 %v4726_v39, %v4726_v39 }
 0x2e2   : > { %v4731_v16 = vadd.f32 %v5951_v5, %v4570_v1  ;;  %v4573_v25 = vadd.f32 %v5872_v21, %v8792_v18 }
 0x2e3   : > { %v4879_v12 = vadd.f32 %v4878_v4, %v4848_v38 }
 0x2e4   : > { %4779 = vst [vmem:[%s8828_s27 + $0xd0] sm:$0xff] %v4731_v16  ;;  %v4849_v34 = vmul.f32 %v4731_v16, %v4731_v16  ;;  %v4734_v63 = vadd.f32 %v5952_v50, %v4573_v25  ;;  %v4810_v57 = vadd.f32 %v4809_v51, %v4731_v16  ;;  %v5955_v10 = vpop.f32.mrb[140].mxu0 }
 0x2e5   : > { %v4738_v49 = vpop.f32.mrb[141].mxu0 }
 0x2e6   : > { %v5873_v2 = vpop.f32.mrb[136].mxu1  ;;  %4780 = vst [vmem:[%s8828_s27 + $0xd8] sm:$0xff] %v4734_v63  ;;  %v4850_v48 = vmul.f32 %v4734_v63, %v4734_v63  ;;  %v4880_v35 = vadd.f32 %v4879_v12, %v4849_v34  ;;  %v4811_v61 = vadd.f32 %v4810_v57, %v4734_v63  ;;  %v5956_v22 = vpop.f32.mrb[142].mxu0 }
 0x2e7   : > { %v5874_v7 = vpop.f32.mrb[137].mxu1  ;;  %v4741_v37 = vpop.f32.mrb[143].mxu0 }
 0x2e8   : > { %v5875_v30 = vadd.f32 %v5874_v7, %v5873_v2  ;;  %v5876_v8 = vpop.f32.mrb[138].mxu1  ;;  %v4881_v28 = vadd.f32 %v4880_v35, %v4850_v48 }
 0x2e9   : > { %v5877_v18 = vpop.f32.mrb[139].mxu1 }
 0x2ea   : > { %v5878_v40 = vadd.f32 %v5877_v18, %v5876_v8  ;;  %v4578_v45 = vadd.f32 %v5875_v30, %v8801_v20 }
 0x2ec   : > { %v4739_v6 = vadd.f32 %v4738_v49, %v4578_v45  ;;  %v4581_v58 = vadd.f32 %v5878_v40, %v8804_v11 }
 0x2ee   : > { %4781 = vst [vmem:[%s8828_s27 + $0xe0] sm:$0xff] %v4739_v6  ;;  %v4812_v27 = vadd.f32 %v4811_v61, %v4739_v6  ;;  %v4851_v14 = vmul.f32 %v4739_v6, %v4739_v6  ;;  %v4742_v3 = vadd.f32 %v4741_v37, %v4581_v58 }
 0x2ef   : > { %v5879_v32 = vpop.f32.mrb[140].mxu1 }
 0x2f0   : > { %v4882_v52 = vadd.f32 %v4881_v28, %v4851_v14  ;;  %4782 = vst [vmem:[%s8828_s27 + $0xe8] sm:$0xff] %v4742_v3  ;;  %v4813_v47 = vadd.f32 %v4812_v27, %v4742_v3  ;;  %v4852_v29 = vmul.f32 %v4742_v3, %v4742_v3  ;;  %v5880_v62 = vpop.f32.mrb[141].mxu1 }
 0x2f1   : > { %v5881_v17 = vadd.f32 %v5880_v62, %v5879_v32  ;;  %v5882_v20 = vpop.f32.mrb[142].mxu1 }
 0x2f2   : > { %v4883_v56 = vadd.f32 %v4882_v52, %v4852_v29  ;;  %v5883_v44 = vpop.f32.mrb[143].mxu1 }
 0x2f3   : > { %v4586_v11 = vadd.f32 %v5881_v17, %v8813_v13  ;;  %v5884_v19 = vadd.f32 %v5883_v44, %v5882_v20 }
 0x2f5   : > { %v4747_v59 = vadd.f32 %v5955_v10, %v4586_v11  ;;  %v4589_v0 = vadd.f32 %v5884_v19, %v8816_v42 }
 0x2f7   : > { %4783 = vst [vmem:[%s8828_s27 + $0xf0] sm:$0xff] %v4747_v59  ;;  %v4814_v26 = vadd.f32 %v4813_v47, %v4747_v59  ;;  %v4853_v13 = vmul.f32 %v4747_v59, %v4747_v59  ;;  %v4750_v5 = vadd.f32 %v5956_v22, %v4589_v0 }
 0x2f9   : > { %v4884_v41 = vadd.f32 %v4883_v56, %v4853_v13  ;;  %4784 = vst [vmem:[%s8828_s27 + $0xf8] sm:$0xff] %v4750_v5  ;;  %v4815_v33 = vadd.f32 %v4814_v26, %v4750_v5  ;;  %v4854_v55 = vmul.f32 %v4750_v5, %v4750_v5 }
 0x2fa   : > { %6330 = shalt.err (!%p6327_p13)
}
 0x2fb   : > { %s6331_s10 = scalar_lea.hbm %s8904_s11, 4096  ;;  %s6335_s29 = scalar_lea.hbm %s9026_s4, 8192 }
 0x2fc   : > { %p6332_p0 = scmp.ne.s32.totalorder %s8904_s11, %s6331_s10  ;;  %p6336_p9 = scmp.lt.u32.totalorder %s8904_s11, %s9026_s4 }
 0x2fd   : > { %p6337_p12 = scmp.lt.u32.totalorder %s6335_s29, %s6331_s10  ;;  %p6339_p1 = scmp.lt.u32.totalorder %s6331_s10, %s8904_s11 }
 0x2fe   : > { %p6333_p5 = pnand %p6332_p0, %p6647_p6 }
 0x2ff   : > { %p6338_p2 = por %p6337_p12, %p6336_p9 }
 0x300   : > { %p6334_p11 = pneg %p6333_p5 }
 0x301   : > { %p6340_p4 = por %p6339_p1, %p6338_p2 }
 0x303   : > { %p6341_p8 = pnand %p6340_p4, %p6334_p11 }
 0x305   : > { %6344 = shalt.err (!%p6341_p8)
}
 0x306   : > { %s6463_s19 = smov 128   ;;  %s6464_s14 = smov 8   ;;  %v4816_v42 = vrot.slane %v4815_v33, 4  ;;  %v4885_v36 = vadd.f32 %v4884_v41, %v4854_v55 }
 0x307   : > { %5987 = dma.vmem_to_hbm [thread:$0]  (%p6647_p6), %s8906_s9, 4096, %s8904_s11, %s4894_s15, %s6463_s19, %s6463_s19, %s6464_s14  }
 0x308   : > { %v4817_v15 = vadd.f32 %v4816_v42, %v4815_v33  ;;  %v4886_v9 = vrot.slane %v4885_v36, 4  ;;  %s4898_s12 = sand.u32 1, %s6523_s25   ;;  %s5431_s30 = sshll.u32 %s6523_s25, 4 }
 0x309   : > { %s319_s10 = scalar_lea.vmem [#allocation12], %s6695_s20  ;;  %s325_s27 = scalar_lea.vmem [#allocation14], %s6695_s20 }
 0x30a   : > { %v4818_v50 = vrot.slane %v4817_v15, 2  ;;  %v4887_v60 = vadd.f32 %v4886_v9, %v4885_v36  ;;  %s4931_s7 = sshll.u32 %s319_s10, 4  ;;  %s4944_s29 = sshll.u32 %s325_s27, 4  ;;  %s8945_s7 = int_to_ptr.vmem [resolvable:$true] %s4931_s7  ;;  %s8952_s29 = int_to_ptr.vmem [resolvable:$true] %s4944_s29 }
 0x30b   : > { %s8943_s15 = scalar_lea.hbm %s9027_s5, %s5431_s30  ;;  %s8950_s8 = scalar_lea.hbm %s9028_s6, %s5431_s30 }
 0x30c   : > { %v4888_v23 = vrot.slane %v4887_v60, 2  ;;  %v4819_v53 = vadd.f32 %v4818_v50, %v4817_v15  ;;  %s8954_s19 = scalar_lea.sflag [#allocation13], %s4898_s12  ;;  %s6345_s14 = scalar_lea.vmem %s8945_s7, 16 }
 0x30d   : > { %p6346_p3 = scmp.ne.s32.totalorder %s8945_s7, %s6345_s14  ;;  %s6465_s9 = smov [#allocation12]  }
 0x30e   : > { %v4820_v43 = vrot.slane %v4819_v53, 1  ;;  %v4889_v31 = vadd.f32 %v4888_v23, %v4887_v60  ;;  %s6349_s11 = sshll.u32 %s6465_s9, 4  ;;  %s6350_s11 = int_to_ptr.vmem [resolvable:$false] %s6349_s11 }
 0x30f   : > { %p6347_p7 = pnand %p6346_p3, %p6647_p6  ;;  %s6351_s26 = scalar_lea.vmem %s6350_s11, 32 }
 0x310   : > { %v4821_v54 = vadd.f32 %v4820_v43, %v4819_v53  ;;  %v4890_v46 = vrot.slane %v4889_v31, 1  ;;  %p6352_p13 = scmp.lt.s32.totalorder %s8945_s7, %s6350_s11  ;;  %p6353_p0 = scmp.lt.s32.totalorder %s6351_s26, %s6345_s14 }
 0x311   : > { %p6348_p10 = pneg %p6347_p7 }
 0x312   : > { %4822 = vst [vmem:[%s319_s10] sm:$0x1] %v4821_v54  ;;  %v4891_v39 = vadd.f32 %v4890_v46, %v4889_v31  ;;  %p6354_p5 = por %p6353_p0, %p6352_p13 }
 0x314   : > { %p6355_p11 = pnand %p6354_p5, %p6348_p10 }
 0x316   : > { %6358 = shalt.err (!%p6355_p11)
}
 0x317   : > { %s6359_s12 = scalar_lea.hbm %s8943_s15, 16  ;;  %s6363_s25 = scalar_lea.hbm %s9027_s5, 32 }
 0x318   : > { %p6360_p9 = scmp.ne.s32.totalorder %s8943_s15, %s6359_s12  ;;  %p6364_p1 = scmp.lt.u32.totalorder %s8943_s15, %s9027_s5 }
 0x319   : > { %p6365_p4 = scmp.lt.u32.totalorder %s6363_s25, %s6359_s12  ;;  %p6367_p3 = scmp.lt.u32.totalorder %s6359_s12, %s8943_s15 }
 0x31a   : > { %p6361_p12 = pnand %p6360_p9, %p6647_p6 }
 0x31b   : > { %p6366_p8 = por %p6365_p4, %p6364_p1 }
 0x31c   : > { %p6362_p2 = pneg %p6361_p12 }
 0x31d   : > { %p6368_p7 = por %p6367_p3, %p6366_p8 }
 0x31f   : > { %p6369_p10 = pnand %p6368_p7, %p6362_p2 }
 0x321   : > { %6372 = shalt.err (!%p6369_p10)
}
 0x322   : > { %5988 = dma.vmem_to_hbm [thread:$0]  (%p6647_p6), %s8945_s7, 16, %s8943_s15, %s8954_s19   ;;  %4892 = vst [vmem:[%s325_s27] sm:$0x1] %v4891_v39 }
 0x323   : > { %s6373_s26 = scalar_lea.vmem %s8952_s29, 16  ;;  %s6466_s14 = smov [#allocation14]  }
 0x324   : > { %p6374_p13 = scmp.ne.s32.totalorder %s8952_s29, %s6373_s26  ;;  %s6377_s11 = sshll.u32 %s6466_s14, 4  ;;  %s6378_s11 = int_to_ptr.vmem [resolvable:$false] %s6377_s11 }
 0x325   : > { %s6379_s12 = scalar_lea.vmem %s6378_s11, 32  ;;  %p6380_p11 = scmp.lt.s32.totalorder %s8952_s29, %s6378_s11 }
 0x326   : > { %p6375_p0 = pnand %p6374_p13, %p6647_p6  ;;  %p6381_p9 = scmp.lt.s32.totalorder %s6379_s12, %s6373_s26 }
 0x328   : > { %p6376_p5 = pneg %p6375_p0  ;;  %p6382_p12 = por %p6381_p9, %p6380_p11 }
 0x32a   : > { %p6383_p2 = pnand %p6382_p12, %p6376_p5 }
 0x32c   : > { %6386 = shalt.err (!%p6383_p2)
}
 0x32d   : > { %s6387_s20 = scalar_lea.hbm %s8950_s8, 16  ;;  %s6391_s15 = scalar_lea.hbm %s9028_s6, 32 }
 0x32e   : > { %p6388_p1 = scmp.ne.s32.totalorder %s8950_s8, %s6387_s20  ;;  %p6392_p3 = scmp.lt.u32.totalorder %s8950_s8, %s9028_s6 }
 0x32f   : > { %p6393_p7 = scmp.lt.u32.totalorder %s6391_s15, %s6387_s20  ;;  %p6395_p13 = scmp.lt.u32.totalorder %s6387_s20, %s8950_s8 }
 0x330   : > { %p6389_p4 = pnand %p6388_p1, %p6647_p6 }
 0x331   : > { %p6394_p10 = por %p6393_p7, %p6392_p3 }
 0x332   : > { %p6390_p8 = pneg %p6389_p4 }
 0x333   : > { %p6396_p0 = por %p6395_p13, %p6394_p10 }
 0x335   : > { %p6397_p5 = pnand %p6396_p0, %p6390_p8 }
 0x337   : > { %6400 = shalt.err (!%p6397_p5)
}
 0x338   : > { %5989 = dma.vmem_to_hbm [thread:$0]  (%p6647_p6), %s8952_s29, 16, %s8950_s8, %s8954_s19  }
 0x339 PF: > { %s4956_s25 = sand.u32 1, %s6439_s21   ;;  %p9131_p11 = scmp.ne.s32.totalorder %s9043_s28, 0 }
 0x33a   : > { %p9132_p9 = scmp.ge.s32.totalorder %s6451_s24, 2  ;;  %s4957_s18 = scalar_lea.sflag [#allocation5], %s4956_s25 }
 0x33c   : > { %p6008_p12 = pnand %p9132_p9, %p9131_p11 }
 0x33e   : > { %6430 = dma.done.wait (!%p6008_p12), %s4957_s18, 4096  }
 0x33f   : > { %6432 = vsyncadd (!%p6008_p12), %s4957_s18, 4294963200  ;;  %s9133_s9 = sadd.s32 4294967294, %s6451_s24  }
 0x340   : > { %s4965_s26 = sand.u32 1, %s9133_s9  }
 0x341   : > { %s4966_s14 = scalar_lea.sflag [#allocation13], %s4965_s26 }
 0x342   : > { %6434 = dma.done.wait (!%p6008_p12), %s4966_s14, 32  }
 0x343   : > { %6436 = vsyncadd (!%p6008_p12), %s4966_s14, 4294967264  ;;  %p25_p6 = scmp.ge.s32.totalorder %s6633_s13, 4   ;;  %s9134_s21 = smov %s6443_s22 }
 0x344   : > { %s9135_s22 = smov %s6447_s23  ;;  %s9136_s23 = smov %s6643_s16 }
 0x345   : > { %s9137_s24 = smov %s6633_s13  ;;  %27 = sbr.rel (!%p25_p6) target bundleno = 9 (0x9), region = 127 }
 0x34c   :  { %4978 = vsyncpa [#allocation4], 1 }
 0x34d   :  { %4980 = vsyncpa [#allocation4 + $0x1], 1 }
 0x34e   :  { %4981 = vsyncpa [#allocation7], 1 }
 0x34f   :  { %4982 = vsyncpa [#allocation10], 1 }
 0x350   :  { %4983 = vsyncpa [#allocation5], 1 }
 0x351   :  { %4985 = vsyncpa [#allocation5 + $0x1], 1 }
 0x352   :  { %4986 = vsyncpa [#allocation13], 1 }
 0x353   :  { %4988 = vsyncpa [#allocation13 + $0x1], 1 }

</bundles_post_ra>
